<compile_context>
chip_gen: v7x
topology: tpu7x:2x2x1
jax: 0.10.0
libtpu: 0.0.40
codegen_flags: <defaults>
</compile_context>

<pallas_src>
import functools

import numpy as np

import jax
import jax.numpy as jnp
from jax.experimental import pallas as pl
from jax.experimental.pallas import tpu as pltpu


# ---------------------------------------------------------------------------
# Pallas kernel: fused GEMM + bias + activation (the only compute-heavy op).
# ---------------------------------------------------------------------------
def _gemm_bias_act_kernel(x_ref, w_ref, b_ref, o_ref, *, act):
    y = jnp.dot(x_ref[...], w_ref[...], preferred_element_type=jnp.float32)
    y = y + b_ref[...]                                  # bias in f32
    if act == "relu":
        y = jnp.maximum(y, 0.0)
    elif act == "sigmoid":
        y = jax.nn.sigmoid(y)
    o_ref[...] = y.astype(o_ref.dtype)


def _pick_tile_m(M, tm_max=1024):
    """Largest M-tile <= tm_max dividing M; prefer >=2 grid steps (v7x has 2 TCs)."""
    if M <= 8:
        return M
    target = min(tm_max, max(8, M // 2))
    for tm in range(target, 7, -1):
        if M % tm == 0 and tm % 8 == 0:
            return tm
    return M                                            # fallback: one full-extent block


def gemm_bias_act(x, w, b2d, *, act, out_dtype=jnp.float32):
    """x:[M,K] (bf16) @ w:[K,N] (bf16) + b:[1,N] (f32), fused activation."""
    M, K = x.shape
    K2, N = w.shape
    assert K == K2 and b2d.shape == (1, N)
    tm = _pick_tile_m(M)
    return pl.pallas_call(
        functools.partial(_gemm_bias_act_kernel, act=act),
        out_shape=jax.ShapeDtypeStruct((M, N), out_dtype),
        grid_spec=pltpu.PrefetchScalarGridSpec(
            num_scalar_prefetch=0,
            grid=(M // tm,),
            in_specs=[
                pl.BlockSpec((tm, K), lambda i: (i, 0)),   # patches / activations
                pl.BlockSpec((K, N), lambda i: (0, 0)),    # weights (VMEM resident)
                pl.BlockSpec((1, N), lambda i: (0, 0)),    # bias  (VMEM resident)
            ],
            out_specs=pl.BlockSpec((tm, N), lambda i: (i, 0)),
        ),
        compiler_params=pltpu.CompilerParams(
            dimension_semantics=("parallel",),
            vmem_limit_bytes=32 * 1024 * 1024,
        ),
    )(x, w, b2d)


# ---------------------------------------------------------------------------
# Weight packing (done once, on host) into GEMM-ready matrices.
# ---------------------------------------------------------------------------
def _pack_convt_1x1(w, b, padding):
    """ConvTranspose2d applied to a 1x1 input == dense GEMM over the central window.

    out[b, i, j, co] = sum_ci z[b, ci] * w[ci, co, i+padding, j+padding] + b[co]
    """
    w = np.asarray(w, np.float32)
    b = np.asarray(b, np.float32)
    cin, cout, K, _ = w.shape
    oh = K - 2 * padding                                 # spatial size from a 1x1 input
    wc = w[:, :, padding:padding + oh, padding:padding + oh]        # [Cin, Cout, oh, oh]
    wmat = np.transpose(wc, (0, 2, 3, 1)).reshape(cin, oh * oh * cout)
    bias = np.tile(b, oh * oh)                           # column = (i*oh + j)*Cout + co
    return (jnp.asarray(wmat, dtype=jnp.bfloat16),
            jnp.asarray(bias.reshape(1, -1), dtype=jnp.float32))


def _pack_convt(w, b, stride, *, channels_first=False):
    """Phase-packed weights for ConvTranspose2d with K = 2*stride, padding = stride/2.

    Default (NHWC-out) column order (rr, rc, co):
        out[b, s*q+rr, s*x+rc, co] = patches[b,q,x] @ W[:, (rr*s+rc)*Cout + co] + b[co]
    With channels_first=True the columns are ordered (co, rr, rc) so the GEMM output
    pixel-shuffles directly into NCHW (saves one transpose on the final layer).
    The N axis is zero-padded up to a multiple of 128 for lane-dense stores.
    """
    w = np.asarray(w, np.float32)
    b = np.asarray(b, np.float32)
    cin, cout, K, _ = w.shape
    s = stride
    assert K == 2 * s
    n_real = s * s * cout
    wbig = np.zeros((3, 3, cin, s, s, cout), np.float32)

    def taps(r):
        # (window offset in the 3-wide padded window, kernel tap) pairs for phase r
        if r < s // 2:
            return [(0, r + 3 * s // 2), (1, r + s // 2)]
        return [(1, r + s // 2), (2, r - s // 2)]

    for rr in range(s):
        for rc in range(s):
            for wh, kh in taps(rr):
                for ww, kw in taps(rc):
                    wbig[wh, ww, :, rr, rc, :] = w[:, :, kh, kw]

    if channels_first:
        wmat = np.transpose(wbig, (0, 1, 2, 5, 3, 4)).reshape(9 * cin, n_real)
        bias = np.repeat(b, s * s)
    else:
        wmat = wbig.reshape(9 * cin, n_real)
        bias = np.tile(b, s * s)
    n_pad = (-n_real) % 128                              # lane-dense output (Cout=3 layer)
    if n_pad:
        wmat = np.pad(wmat, ((0, 0), (0, n_pad)))
        bias = np.pad(bias, (0, n_pad))
    return (jnp.asarray(wmat, dtype=jnp.bfloat16),
            jnp.asarray(bias.reshape(1, -1), dtype=jnp.float32))


def pack_params(params, attribute_names):
    packed = {f"emb_{n}": params["embeddings"][n] for n in attribute_names}
    packed["w1"], packed["b1"] = _pack_convt_1x1(params["w1"], params["b1"], padding=2)
    packed["w2"], packed["b2"] = _pack_convt(params["w2"], params["b2"], stride=4)
    packed["w3"], packed["b3"] = _pack_convt(params["w3"], params["b3"], stride=2)
    packed["w4"], packed["b4"] = _pack_convt(params["w4"], params["b4"], stride=2,
                                             channels_first=True)
    return packed


# ---------------------------------------------------------------------------
# Forward pass
# ---------------------------------------------------------------------------
def _convt_layer(x_nhwc, wmat, bias, *, stride, cout, act, out_dtype,
                 channels_first_out=False):
    """Zero-free (sub-pixel) transposed conv: 3x3 patches -> one Pallas GEMM -> shuffle."""
    B, H, W, cin = x_nhwc.shape
    s = stride
    n_real = s * s * cout
    xp = jnp.pad(x_nhwc, ((0, 0), (1, 1), (1, 1), (0, 0))).astype(jnp.bfloat16)
    wins = [xp[:, wh:wh + H, ww:ww + W, :] for wh in range(3) for ww in range(3)]
    patches = jnp.stack(wins, axis=3).reshape(B * H * W, 9 * cin)      # [M, 9*Cin]
    out = gemm_bias_act(patches, wmat, bias, act=act, out_dtype=out_dtype)
    out = out[:, :n_real]                                # drop lane-padding columns
    if channels_first_out:
        out = out.reshape(B, H, W, cout, s, s)
        out = out.transpose(0, 3, 1, 4, 2, 5).reshape(B, cout, s * H, s * W)   # NCHW
    else:
        out = out.reshape(B, H, W, s, s, cout)
        out = out.transpose(0, 1, 3, 2, 4, 5).reshape(B, s * H, s * W, cout)   # NHWC
    return out


def decoder_forward(packed, x, attribute_names, latent_dim):
    z = x[:, :latent_dim]
    embs = []
    for i, name in enumerate(attribute_names):
        idx = x[:, latent_dim + i].astype(jnp.int32)     # == .long() for these values
        embs.append(jnp.take(packed[f"emb_{name}"], idx, axis=0))
    z = jnp.concatenate([z] + embs, axis=1)              # [B, total_input_dim]
    B = z.shape[0]

    # transconv1: 1x1 spatial input -> plain dense GEMM, output 4x4x64 NHWC.
    h = gemm_bias_act(z.astype(jnp.bfloat16), packed["w1"], packed["b1"],
                      act="relu", out_dtype=jnp.bfloat16)              # [B, 4*4*64]
    h = h.reshape(B, 4, 4, 64)

    # transconv2/3/4: zero-free phase-decomposed transposed convs (NHWC between layers).
    h = _convt_layer(h, packed["w2"], packed["b2"], stride=4, cout=64,
                     act="relu", out_dtype=jnp.bfloat16)               # [B,16,16,64]
    h = _convt_layer(h, packed["w3"], packed["b3"], stride=2, cout=64,
                     act="relu", out_dtype=jnp.bfloat16)               # [B,32,32,64]
    h = _convt_layer(h, packed["w4"], packed["b4"], stride=2, cout=3,
                     act="sigmoid", out_dtype=jnp.float32,
                     channels_first_out=True)                          # [B,3,64,64]
    return h                                              # already NCHW


# ---------------------------------------------------------------------------
# Synthetic init (PyTorch-like layout) + pure-JAX reference for verification
# ---------------------------------------------------------------------------
def init_params(key, attribute_dims, latent_dim, embedding_dim):
    names = list(attribute_dims.keys())
    total_input_dim = latent_dim + len(names) * embedding_dim
    keys = jax.random.split(key, len(names) + 4)

    params = {"embeddings": {}}
    for i, n in enumerate(names):
        params["embeddings"][n] = jax.random.normal(
            keys[i], (attribute_dims[n], embedding_dim), jnp.float32)

    def conv_init(k, cin, cout, ksize):
        kw, kb = jax.random.split(k)
        scale = 1.0 / np.sqrt(cin * ksize * ksize)
        w = jax.random.uniform(kw, (cin, cout, ksize, ksize), jnp.float32, -scale, scale)
        bb = jax.random.uniform(kb, (cout,), jnp.float32, -scale, scale)
        return w, bb

    params["w1"], params["b1"] = conv_init(keys[len(names) + 0], total_input_dim, 64, 8)
    params["w2"], params["b2"] = conv_init(keys[len(names) + 1], 64, 64, 8)
    params["w3"], params["b3"] = conv_init(keys[len(names) + 2], 64, 4 * 16, 4)[0][:, :64], None
    # (re-init cleanly below to keep shapes exact)
    params["w3"], params["b3"] = conv_init(keys[len(names) + 2], 64, 64, 4)
    params["w4"], params["b4"] = conv_init(keys[len(names) + 3], 64, 3, 4)
    return params


def _ref_conv_transpose2d(x, w, b, stride, padding):
    # x: [B,Cin,H,W], w: [Cin,Cout,K,K] (PyTorch ConvTranspose2d layout)
    K = w.shape[-1]
    wf = jnp.transpose(w[:, :, ::-1, ::-1], (1, 0, 2, 3))          # [Cout,Cin,K,K]
    pad = K - 1 - padding
    y = jax.lax.conv_general_dilated(
        x, wf, window_strides=(1, 1), padding=[(pad, pad), (pad, pad)],
        lhs_dilation=(stride, stride),
        dimension_numbers=("NCHW", "OIHW", "NCHW"),
        precision=jax.lax.Precision.HIGHEST)
    return y + b.reshape(1, -1, 1, 1)


def reference_forward(params, x, attribute_names, latent_dim):
    z = x[:, :latent_dim]
    embs = [jnp.take(params["embeddings"][n], x[:, latent_dim + i].astype(jnp.int32), axis=0)
            for i, n in enumerate(attribute_names)]
    z = jnp.concatenate([z] + embs, axis=1)
    z = z.reshape(z.shape[0], z.shape[1], 1, 1)
    out = jax.nn.relu(_ref_conv_transpose2d(z, params["w1"], params["b1"], 4, 2))
    out = jax.nn.relu(_ref_conv_transpose2d(out, params["w2"], params["b2"], 4, 2))
    out = jax.nn.relu(_ref_conv_transpose2d(out, params["w3"], params["b3"], 2, 1))
    out = jax.nn.sigmoid(_ref_conv_transpose2d(out, params["w4"], params["b4"], 2, 1))
    return out


if __name__ == "__main__":
    key = jax.random.PRNGKey(0)
    attribute_dims = {"ethnicity": 3, "facial_expression": 3}
    latent_dim, embedding_dim, B = 64, 10, 2
    names = list(attribute_dims.keys())

    pkey, zkey, akey = jax.random.split(key, 3)
    params = init_params(pkey, attribute_dims, latent_dim, embedding_dim)
    packed = pack_params(params, names)

    z = jax.random.normal(zkey, (B, latent_dim), jnp.float32)
    attrs = jax.random.randint(akey, (B, len(names)), 0, 3).astype(jnp.float32)
    x = jnp.concatenate([z, attrs], axis=1)              # [2, 66]

    fwd = jax.jit(functools.partial(decoder_forward,
                                    attribute_names=tuple(names),
                                    latent_dim=latent_dim))
    out = jax.block_until_ready(fwd(packed, x))

    assert out.shape == (B, 3, 64, 64), out.shape
    assert bool(jnp.all((out >= 0.0) & (out <= 1.0)))    # sigmoid output range

    # correctness vs full-precision XLA ConvTranspose2d reference
    ref = jax.block_until_ready(reference_forward(params, x, names, latent_dim))
    max_err = float(jnp.max(jnp.abs(out - ref)))
    assert max_err < 5e-3, f"max abs error vs reference: {max_err}"

    print("KERNEL_OK")
</pallas_src>

<mosaic_0001>
module attributes {stable_mosaic.version = 11 : i64} {
  func.func @_gemm_bias_act_kernel(%arg0: i32, %arg1: memref<2x84xbf16, #tpu.memory_space<vmem>>, %arg2: memref<84x1024xbf16, #tpu.memory_space<vmem>>, %arg3: memref<1x1024xf32, #tpu.memory_space<vmem>>, %arg4: memref<2x1024xbf16, #tpu.memory_space<vmem>>) attributes {dimension_semantics = [#tpu.dimension_semantics<parallel>], iteration_bounds = array<i64: 1>, scalar_prefetch = 0 : i64, scratch_operands = 0 : i64, tpu.core_type = #tpu.core_type<tc>, window_params = [{transform_indices = @transform_0, window_bounds = array<i64: 2, 84>}, {pipeline_mode = #tpu.pipeline_mode<synchronous>, transform_indices = @transform_1, window_bounds = array<i64: 84, 1024>}, {pipeline_mode = #tpu.pipeline_mode<synchronous>, transform_indices = @transform_2, window_bounds = array<i64: 1, 1024>}, {transform_indices = @transform_3, window_bounds = array<i64: 2, 1024>}]} {
    %c0 = arith.constant 0 : index
    %c0_0 = arith.constant 0 : index
    %0 = vector.load %arg1[%c0, %c0_0] : memref<2x84xbf16, #tpu.memory_space<vmem>>, vector<2x84xbf16>
    %c0_1 = arith.constant 0 : index
    %c0_2 = arith.constant 0 : index
    %1 = vector.load %arg2[%c0_1, %c0_2] : memref<84x1024xbf16, #tpu.memory_space<vmem>>, vector<84x1024xbf16>
    %cst = arith.constant dense<0.000000e+00> : vector<2x1024xf32>
    %2 = tpu.matmul %0, %1, %cst {dimension_numbers = #tpu.dot_dimension_numbers<[1], [0], [0], [1], [0, 0, 1, 1], [], []>} : vector<2x84xbf16>, vector<84x1024xbf16>, vector<2x1024xf32> -> vector<2x1024xf32>
    %c0_3 = arith.constant 0 : index
    %c0_4 = arith.constant 0 : index
    %3 = vector.load %arg3[%c0_3, %c0_4] : memref<1x1024xf32, #tpu.memory_space<vmem>>, vector<1x1024xf32>
    %4 = vector.broadcast %3 : vector<1x1024xf32> to vector<2x1024xf32>
    %5 = arith.addf %2, %4 : vector<2x1024xf32>
    %cst_5 = arith.constant 0.000000e+00 : f32
    %6 = vector.broadcast %cst_5 : f32 to vector<2x1024xf32>
    %7 = arith.maximumf %5, %6 : vector<2x1024xf32>
    %8 = arith.truncf %7 : vector<2x1024xf32> to vector<2x1024xbf16>
    %c0_6 = arith.constant 0 : index
    %c0_7 = arith.constant 0 : index
    %9 = vector.load %arg4[%c0_6, %c0_7] : memref<2x1024xbf16, #tpu.memory_space<vmem>>, vector<2x1024xbf16>
    tpu.vector_store %arg4[%c0_6, %c0_7], %8 {strides = array<i32>} : memref<2x1024xbf16, #tpu.memory_space<vmem>>, vector<2x1024xbf16>,
    return
  }
  func.func @transform_0(%arg0: i32) -> (i32, i32) {
    %c0_i32 = arith.constant 0 : i32
    %c0_i32_0 = arith.constant 0 : i32
    return %arg0, %c0_i32 : i32, i32
  }
  func.func @transform_1(%arg0: i32) -> (i32, i32) {
    %c0_i32 = arith.constant 0 : i32
    %c0_i32_0 = arith.constant 0 : i32
    %c0_i32_1 = arith.constant 0 : i32
    return %c0_i32, %c0_i32_0 : i32, i32
  }
  func.func @transform_2(%arg0: i32) -> (i32, i32) {
    %c0_i32 = arith.constant 0 : i32
    %c0_i32_0 = arith.constant 0 : i32
    %c0_i32_1 = arith.constant 0 : i32
    return %c0_i32, %c0_i32_0 : i32, i32
  }
  func.func @transform_3(%arg0: i32) -> (i32, i32) {
    %c0_i32 = arith.constant 0 : i32
    %c0_i32_0 = arith.constant 0 : i32
    return %arg0, %c0_i32 : i32, i32
  }
}

module attributes {stable_mosaic.version = 11 : i64} {
  func.func @_gemm_bias_act_kernel(%arg0: i32, %arg1: memref<16x576xbf16, #tpu.memory_space<vmem>>, %arg2: memref<576x1024xbf16, #tpu.memory_space<vmem>>, %arg3: memref<1x1024xf32, #tpu.memory_space<vmem>>, %arg4: memref<16x1024xbf16, #tpu.memory_space<vmem>>) attributes {dimension_semantics = [#tpu.dimension_semantics<parallel>], iteration_bounds = array<i64: 2>, scalar_prefetch = 0 : i64, scratch_operands = 0 : i64, tpu.core_type = #tpu.core_type<tc>, window_params = [{transform_indices = @transform_0, window_bounds = array<i64: 16, 576>}, {pipeline_mode = #tpu.pipeline_mode<synchronous>, transform_indices = @transform_1, window_bounds = array<i64: 576, 1024>}, {pipeline_mode = #tpu.pipeline_mode<synchronous>, transform_indices = @transform_2, window_bounds = array<i64: 1, 1024>}, {transform_indices = @transform_3, window_bounds = array<i64: 16, 1024>}]} {
    %c0 = arith.constant 0 : index
    %c0_0 = arith.constant 0 : index
    %0 = vector.load %arg1[%c0, %c0_0] : memref<16x576xbf16, #tpu.memory_space<vmem>>, vector<16x576xbf16>
    %c0_1 = arith.constant 0 : index
    %c0_2 = arith.constant 0 : index
    %1 = vector.load %arg2[%c0_1, %c0_2] : memref<576x1024xbf16, #tpu.memory_space<vmem>>, vector<576x1024xbf16>
    %cst = arith.constant dense<0.000000e+00> : vector<16x1024xf32>
    %2 = tpu.matmul %0, %1, %cst {dimension_numbers = #tpu.dot_dimension_numbers<[1], [0], [0], [1], [0, 0, 1, 1], [], []>} : vector<16x576xbf16>, vector<576x1024xbf16>, vector<16x1024xf32> -> vector<16x1024xf32>
    %c0_3 = arith.constant 0 : index
    %c0_4 = arith.constant 0 : index
    %3 = vector.load %arg3[%c0_3, %c0_4] : memref<1x1024xf32, #tpu.memory_space<vmem>>, vector<1x1024xf32>
    %4 = vector.broadcast %3 : vector<1x1024xf32> to vector<16x1024xf32>
    %5 = arith.addf %2, %4 : vector<16x1024xf32>
    %cst_5 = arith.constant 0.000000e+00 : f32
    %6 = vector.broadcast %cst_5 : f32 to vector<16x1024xf32>
    %7 = arith.maximumf %5, %6 : vector<16x1024xf32>
    %8 = arith.truncf %7 : vector<16x1024xf32> to vector<16x1024xbf16>
    %c0_6 = arith.constant 0 : index
    %c0_7 = arith.constant 0 : index
    %9 = vector.load %arg4[%c0_6, %c0_7] : memref<16x1024xbf16, #tpu.memory_space<vmem>>, vector<16x1024xbf16>
    tpu.vector_store %arg4[%c0_6, %c0_7], %8 {strides = array<i32>} : memref<16x1024xbf16, #tpu.memory_space<vmem>>, vector<16x1024xbf16>,
    return
  }
  func.func @transform_0(%arg0: i32) -> (i32, i32) {
    %c0_i32 = arith.constant 0 : i32
    %c0_i32_0 = arith.constant 0 : i32
    return %arg0, %c0_i32 : i32, i32
  }
  func.func @transform_1(%arg0: i32) -> (i32, i32) {
    %c0_i32 = arith.constant 0 : i32
    %c0_i32_0 = arith.constant 0 : i32
    %c0_i32_1 = arith.constant 0 : i32
    return %c0_i32, %c0_i32_0 : i32, i32
  }
  func.func @transform_2(%arg0: i32) -> (i32, i32) {
    %c0_i32 = arith.constant 0 : i32
    %c0_i32_0 = arith.constant 0 : i32
    %c0_i32_1 = arith.constant 0 : i32
    return %c0_i32, %c0_i32_0 : i32, i32
  }
  func.func @transform_3(%arg0: i32) -> (i32, i32) {
    %c0_i32 = arith.constant 0 : i32
    %c0_i32_0 = arith.constant 0 : i32
    return %arg0, %c0_i32 : i32, i32
  }
}

module attributes {stable_mosaic.version = 11 : i64} {
  func.func @_gemm_bias_act_kernel(%arg0: i32, %arg1: memref<256x576xbf16, #tpu.memory_space<vmem>>, %arg2: memref<576x256xbf16, #tpu.memory_space<vmem>>, %arg3: memref<1x256xf32, #tpu.memory_space<vmem>>, %arg4: memref<256x256xbf16, #tpu.memory_space<vmem>>) attributes {dimension_semantics = [#tpu.dimension_semantics<parallel>], iteration_bounds = array<i64: 2>, scalar_prefetch = 0 : i64, scratch_operands = 0 : i64, tpu.core_type = #tpu.core_type<tc>, window_params = [{transform_indices = @transform_0, window_bounds = array<i64: 256, 576>}, {pipeline_mode = #tpu.pipeline_mode<synchronous>, transform_indices = @transform_1, window_bounds = array<i64: 576, 256>}, {pipeline_mode = #tpu.pipeline_mode<synchronous>, transform_indices = @transform_2, window_bounds = array<i64: 1, 256>}, {transform_indices = @transform_3, window_bounds = array<i64: 256, 256>}]} {
    %c0 = arith.constant 0 : index
    %c0_0 = arith.constant 0 : index
    %0 = vector.load %arg1[%c0, %c0_0] : memref<256x576xbf16, #tpu.memory_space<vmem>>, vector<256x576xbf16>
    %c0_1 = arith.constant 0 : index
    %c0_2 = arith.constant 0 : index
    %1 = vector.load %arg2[%c0_1, %c0_2] : memref<576x256xbf16, #tpu.memory_space<vmem>>, vector<576x256xbf16>
    %cst = arith.constant dense<0.000000e+00> : vector<256x256xf32>
    %2 = tpu.matmul %0, %1, %cst {dimension_numbers = #tpu.dot_dimension_numbers<[1], [0], [0], [1], [0, 0, 1, 1], [], []>} : vector<256x576xbf16>, vector<576x256xbf16>, vector<256x256xf32> -> vector<256x256xf32>
    %c0_3 = arith.constant 0 : index
    %c0_4 = arith.constant 0 : index
    %3 = vector.load %arg3[%c0_3, %c0_4] : memref<1x256xf32, #tpu.memory_space<vmem>>, vector<1x256xf32>
    %4 = vector.broadcast %3 : vector<1x256xf32> to vector<256x256xf32>
    %5 = arith.addf %2, %4 : vector<256x256xf32>
    %cst_5 = arith.constant 0.000000e+00 : f32
    %6 = vector.broadcast %cst_5 : f32 to vector<256x256xf32>
    %7 = arith.maximumf %5, %6 : vector<256x256xf32>
    %8 = arith.truncf %7 : vector<256x256xf32> to vector<256x256xbf16>
    %c0_6 = arith.constant 0 : index
    %c0_7 = arith.constant 0 : index
    %9 = vector.load %arg4[%c0_6, %c0_7] : memref<256x256xbf16, #tpu.memory_space<vmem>>, vector<256x256xbf16>
    tpu.vector_store %arg4[%c0_6, %c0_7], %8 {strides = array<i32>} : memref<256x256xbf16, #tpu.memory_space<vmem>>, vector<256x256xbf16>,
    return
  }
  func.func @transform_0(%arg0: i32) -> (i32, i32) {
    %c0_i32 = arith.constant 0 : i32
    %c0_i32_0 = arith.constant 0 : i32
    return %arg0, %c0_i32 : i32, i32
  }
  func.func @transform_1(%arg0: i32) -> (i32, i32) {
    %c0_i32 = arith.constant 0 : i32
    %c0_i32_0 = arith.constant 0 : i32
    %c0_i32_1 = arith.constant 0 : i32
    return %c0_i32, %c0_i32_0 : i32, i32
  }
  func.func @transform_2(%arg0: i32) -> (i32, i32) {
    %c0_i32 = arith.constant 0 : i32
    %c0_i32_0 = arith.constant 0 : i32
    %c0_i32_1 = arith.constant 0 : i32
    return %c0_i32, %c0_i32_0 : i32, i32
  }
  func.func @transform_3(%arg0: i32) -> (i32, i32) {
    %c0_i32 = arith.constant 0 : i32
    %c0_i32_0 = arith.constant 0 : i32
    return %arg0, %c0_i32 : i32, i32
  }
}

module attributes {stable_mosaic.version = 11 : i64} {
  func.func @_gemm_bias_act_kernel(%arg0: i32, %arg1: memref<1024x576xbf16, #tpu.memory_space<vmem>>, %arg2: memref<576x128xbf16, #tpu.memory_space<vmem>>, %arg3: memref<1x128xf32, #tpu.memory_space<vmem>>, %arg4: memref<1024x128xf32, #tpu.memory_space<vmem>>) attributes {dimension_semantics = [#tpu.dimension_semantics<parallel>], iteration_bounds = array<i64: 2>, scalar_prefetch = 0 : i64, scratch_operands = 0 : i64, tpu.core_type = #tpu.core_type<tc>, window_params = [{transform_indices = @transform_0, window_bounds = array<i64: 1024, 576>}, {pipeline_mode = #tpu.pipeline_mode<synchronous>, transform_indices = @transform_1, window_bounds = array<i64: 576, 128>}, {pipeline_mode = #tpu.pipeline_mode<synchronous>, transform_indices = @transform_2, window_bounds = array<i64: 1, 128>}, {transform_indices = @transform_3, window_bounds = array<i64: 1024, 128>}]} {
    %c0 = arith.constant 0 : index
    %c0_0 = arith.constant 0 : index
    %0 = vector.load %arg1[%c0, %c0_0] : memref<1024x576xbf16, #tpu.memory_space<vmem>>, vector<1024x576xbf16>
    %c0_1 = arith.constant 0 : index
    %c0_2 = arith.constant 0 : index
    %1 = vector.load %arg2[%c0_1, %c0_2] : memref<576x128xbf16, #tpu.memory_space<vmem>>, vector<576x128xbf16>
    %cst = arith.constant dense<0.000000e+00> : vector<1024x128xf32>
    %2 = tpu.matmul %0, %1, %cst {dimension_numbers = #tpu.dot_dimension_numbers<[1], [0], [0], [1], [0, 0, 1, 1], [], []>} : vector<1024x576xbf16>, vector<576x128xbf16>, vector<1024x128xf32> -> vector<1024x128xf32>
    %c0_3 = arith.constant 0 : index
    %c0_4 = arith.constant 0 : index
    %3 = vector.load %arg3[%c0_3, %c0_4] : memref<1x128xf32, #tpu.memory_space<vmem>>, vector<1x128xf32>
    %4 = vector.broadcast %3 : vector<1x128xf32> to vector<1024x128xf32>
    %5 = arith.addf %2, %4 : vector<1024x128xf32>
    %6 = arith.negf %5 : vector<1024x128xf32>
    %7 = math.exp %6 : vector<1024x128xf32>
    %cst_5 = arith.constant 1.000000e+00 : f32
    %8 = vector.broadcast %cst_5 : f32 to vector<1024x128xf32>
    %9 = arith.addf %8, %7 : vector<1024x128xf32>
    %10 = arith.divf %8, %9 : vector<1024x128xf32>
    %c0_6 = arith.constant 0 : index
    %c0_7 = arith.constant 0 : index
    %11 = vector.load %arg4[%c0_6, %c0_7] : memref<1024x128xf32, #tpu.memory_space<vmem>>, vector<1024x128xf32>
    tpu.vector_store %arg4[%c0_6, %c0_7], %10 {strides = array<i32>} : memref<1024x128xf32, #tpu.memory_space<vmem>>, vector<1024x128xf32>,
    return
  }
  func.func @transform_0(%arg0: i32) -> (i32, i32) {
    %c0_i32 = arith.constant 0 : i32
    %c0_i32_0 = arith.constant 0 : i32
    return %arg0, %c0_i32 : i32, i32
  }
  func.func @transform_1(%arg0: i32) -> (i32, i32) {
    %c0_i32 = arith.constant 0 : i32
    %c0_i32_0 = arith.constant 0 : i32
    %c0_i32_1 = arith.constant 0 : i32
    return %c0_i32, %c0_i32_0 : i32, i32
  }
  func.func @transform_2(%arg0: i32) -> (i32, i32) {
    %c0_i32 = arith.constant 0 : i32
    %c0_i32_0 = arith.constant 0 : i32
    %c0_i32_1 = arith.constant 0 : i32
    return %c0_i32, %c0_i32_0 : i32, i32
  }
  func.func @transform_3(%arg0: i32) -> (i32, i32) {
    %c0_i32 = arith.constant 0 : i32
    %c0_i32_0 = arith.constant 0 : i32
    return %arg0, %c0_i32 : i32, i32
  }
}

</mosaic_0001>

<bundles_post_ra>
// kernel: decoder_forward.4
= control target key start
LH: loop header
LB: loop body
LE: loop exit
PB: predicated region body
PF: predicated region fallthrough
CT: control target
= control target key end

     0   :  { %8 = vsyncpa [#allocation3], 0  ;;  %s822_s0 = inlined_call_operand.vmem [shape: bf16[2,84], index: 0, kind: input, shape index: {}]   ;;  %s823_s1 = inlined_call_operand.hbm [shape: bf16[84,1024], index: 1, kind: input, shape index: {}]   ;;  %s824_s2 = inlined_call_operand.hbm [shape: f32[1,1024], index: 2, kind: input, shape index: {}]   ;;  %s825_s3 = inlined_call_operand.vmem [shape: bf16[2,1024], index: 3, kind: output, shape index: {}]  }
   0x1   :  { %9 = vsyncpa [#allocation5], 0  ;;  %s744_s12 = smov [#allocation2]   ;;  %s696_s16 = scalar_lea.hbm %s823_s1, 5632 }
   0x2   :  { %s17_s13 = sshll.u32 %s744_s12, 4  ;;  %p697_p0 = scmp.ne.s32.totalorder %s823_s1, %s696_s16  ;;  %s18_s13 = int_to_ptr.vmem [resolvable:$true] %s17_s13 }
   0x3   :  { %p700_p1 = scmp.lt.u32.totalorder %s696_s16, %s823_s1 }
   0x5   :  { %p702_p2 = pnand %p700_p1, %p697_p0 }
   0x7   :  { %705 = shalt.err (!%p702_p2)
}
   0x8   :  { %s706_s21 = scalar_lea.vmem %s18_s13, 5632  ;;  %p711_p4 = scmp.lt.s32.totalorder %s18_s13, %s18_s13 }
   0x9   :  { %p707_p3 = scmp.ne.s32.totalorder %s18_s13, %s706_s21  ;;  %p712_p5 = scmp.lt.s32.totalorder %s706_s21, %s706_s21 }
   0xb   :  { %p713_p6 = por %p712_p5, %p711_p4 }
   0xd   :  { %p714_p7 = pnand %p713_p6, %p707_p3 }
   0xf   :  { %717 = shalt.err (!%p714_p7)
}
  0x10   :  { %s745_s22 = smov 512   ;;  %s746_s23 = smov 32  }
  0x11   :  { %23 = dma.hbm_to_vmem [thread:$0]  %s823_s1, 5632, %s18_s13, [#allocation3], %s745_s22, %s745_s22, %s746_s23  }
  0x12   :  { %s747_s26 = smov [#allocation4]   ;;  %s718_s30 = scalar_lea.hbm %s824_s2, 128 }
  0x13   :  { %s30_s27 = sshll.u32 %s747_s26, 4  ;;  %p719_p8 = scmp.ne.s32.totalorder %s824_s2, %s718_s30  ;;  %s31_s27 = int_to_ptr.vmem [resolvable:$true] %s30_s27 }
  0x14   :  { %p722_p9 = scmp.lt.u32.totalorder %s718_s30, %s824_s2 }
  0x16   :  { %p724_p10 = pnand %p722_p9, %p719_p8 }
  0x18   :  { %727 = shalt.err (!%p724_p10)
}
  0x19   :  { %s728_s8 = scalar_lea.vmem %s31_s27, 128  ;;  %p733_p12 = scmp.lt.s32.totalorder %s31_s27, %s31_s27 }
  0x1a   :  { %p729_p11 = scmp.ne.s32.totalorder %s31_s27, %s728_s8  ;;  %p734_p13 = scmp.lt.s32.totalorder %s728_s8, %s728_s8 }
  0x1c   :  { %p735_p0 = por %p734_p13, %p733_p12 }
  0x1e   :  { %p736_p1 = pnand %p735_p0, %p729_p11 }
  0x20   :  { %739 = shalt.err (!%p736_p1)
}
  0x21   :  { %33 = dma.hbm_to_vmem [thread:$0]  %s824_s2, 128, %s31_s27, [#allocation5]  }
  0x22   :  { %740 = dma.done.wait [#allocation3], 5632  }
  0x23   :  { %741 = vsyncadd [#allocation3], 4294961664 }
  0x24   :  { %742 = dma.done.wait [#allocation5], 128  }
  0x25   :  { %743 = vsyncadd [#allocation5], 4294967168  ;;  %v748_v0 = vmov 0   ;;  %v42_v1 = vld [vmem:[#allocation2] sm:$0xff]  ;;  %v43_v3 = vld [vmem:[#allocation2 + $0x8] sm:$0xff]  ;;  %vm352_vm0 = vcmask 1041408  }
  0x26   :  { %409 = vmatprep.mubr.bf16.mxu0 %v748_v0  ;;  %450 = vmatprep.mubr.bf16.mxu1 %v748_v0  ;;  %v46_v2 = vld [vmem:[#allocation2 + $0x20] sm:$0xff]  ;;  %v47_v5 = vld [vmem:[#allocation2 + $0x28] sm:$0xff]  ;;  %v44_v47 = vld [vmem:[#allocation2 + $0x10] sm:$0xff]  ;;  %vm348_vm1 = vcmask 687104  }
  0x27   :  { %v623_v4 = vcombine.high %v42_v1, %v46_v2  ;;  %v622_v6 = vcombine.low %v42_v1, %v46_v2  ;;  %v50_v7 = vld [vmem:[#allocation2 + $0x40] sm:$0xff]  ;;  %v625_v9 = vcombine.high %v43_v3, %v47_v5  ;;  %v624_v10 = vcombine.low %v43_v3, %v47_v5  ;;  %v51_v12 = vld [vmem:[#allocation2 + $0x48] sm:$0xff]  ;;  %v48_v48 = vld [vmem:[#allocation2 + $0x30] sm:$0xff] }
  0x28   :  { %v54_v8 = vld [vmem:[#allocation2 + $0x60] sm:$0xff]  ;;  %v55_v13 = vld [vmem:[#allocation2 + $0x68] sm:$0xff]  ;;  %v45_v49 = vld [vmem:[#allocation2 + $0x18] sm:$0xff]  ;;  %v627_v52 = vcombine.high %v44_v47, %v48_v48  ;;  %v626_v60 = vcombine.low %v44_v47, %v48_v48 }
  0x29   :  { %v631_v11 = vcombine.high %v50_v7, %v54_v8  ;;  %v58_v14 = vld [vmem:[#allocation2 + $0x80] sm:$0xff]  ;;  %377 = vmatprep.subr.bf16.mxu0 %v623_v4  ;;  %v633_v15 = vcombine.high %v51_v12, %v55_v13  ;;  %v59_v17 = vld [vmem:[#allocation2 + $0x88] sm:$0xff]  ;;  %418 = vmatprep.subr.bf16.mxu1 %v625_v9  ;;  %v630_v19 = vcombine.low %v50_v7, %v54_v8  ;;  %v49_v50 = vld [vmem:[#allocation2 + $0x38] sm:$0xff] }
  0x2a   :  { %v62_v16 = vld [vmem:[#allocation2 + $0xa0] sm:$0xff]  ;;  %v63_v18 = vld [vmem:[#allocation2 + $0xa8] sm:$0xff]  ;;  %378 = vmatpush1.bf16.msra.mxu0 %v622_v6  ;;  %419 = vmatpush1.bf16.msra.mxu1 %v624_v10  ;;  %v632_v20 = vcombine.low %v51_v12, %v55_v13  ;;  %v629_v54 = vcombine.high %v45_v49, %v49_v50  ;;  %v52_v55 = vld [vmem:[#allocation2 + $0x50] sm:$0xff]  ;;  %v628_v61 = vcombine.low %v45_v49, %v49_v50 }
  0x2b   :  { %379 = vmatprep.subr.bf16.mxu0 %v631_v11  ;;  %v639_v21 = vcombine.high %v58_v14, %v62_v16  ;;  %420 = vmatprep.subr.bf16.mxu1 %v633_v15  ;;  %v641_v22 = vcombine.high %v59_v17, %v63_v18  ;;  %v66_v23 = vld [vmem:[#allocation2 + $0xc0] sm:$0xff]  ;;  %v67_v25 = vld [vmem:[#allocation2 + $0xc8] sm:$0xff]  ;;  %v638_v27 = vcombine.low %v58_v14, %v62_v16  ;;  %v56_v56 = vld [vmem:[#allocation2 + $0x70] sm:$0xff] }
  0x2c   :  { %v70_v24 = vld [vmem:[#allocation2 + $0xe0] sm:$0xff]  ;;  %v71_v26 = vld [vmem:[#allocation2 + $0xe8] sm:$0xff]  ;;  %v640_v28 = vcombine.low %v59_v17, %v63_v18  ;;  %v53_v57 = vld [vmem:[#allocation2 + $0x58] sm:$0xff]  ;;  %v635_v62 = vcombine.high %v52_v55, %v56_v56  ;;  %v634_v5 = vcombine.low %v52_v55, %v56_v56 }
  0x2d   :  { %v647_v29 = vcombine.high %v66_v23, %v70_v24  ;;  %v649_v30 = vcombine.high %v67_v25, %v71_v26  ;;  %v74_v31 = vld [vmem:[#allocation2 + $0x100] sm:$0xff]  ;;  %v75_v33 = vld [vmem:[#allocation2 + $0x108] sm:$0xff]  ;;  %v646_v35 = vcombine.low %v66_v23, %v70_v24  ;;  %v648_v36 = vcombine.low %v67_v25, %v71_v26  ;;  %v57_v58 = vld [vmem:[#allocation2 + $0x78] sm:$0xff] }
  0x2e   :  { %380 = vmatpush1.bf16.msra.mxu0 %v630_v19  ;;  %421 = vmatpush1.bf16.msra.mxu1 %v632_v20  ;;  %v78_v32 = vld [vmem:[#allocation2 + $0x120] sm:$0xff]  ;;  %v79_v34 = vld [vmem:[#allocation2 + $0x128] sm:$0xff]  ;;  %v637_v63 = vcombine.high %v53_v57, %v57_v58  ;;  %v60_v1 = vld [vmem:[#allocation2 + $0x90] sm:$0xff]  ;;  %v636_v6 = vcombine.low %v53_v57, %v57_v58 }
  0x2f   :  { %381 = vmatprep.subr.bf16.mxu0 %v639_v21  ;;  %422 = vmatprep.subr.bf16.mxu1 %v641_v22  ;;  %v655_v37 = vcombine.high %v74_v31, %v78_v32  ;;  %v657_v38 = vcombine.high %v75_v33, %v79_v34  ;;  %v82_v39 = vld [vmem:[#allocation2 + $0x140] sm:$0x33]  ;;  %v83_v40 = vld [vmem:[#allocation2 + $0x148] sm:$0x33]  ;;  %v654_v41 = vcombine.low %v74_v31, %v78_v32  ;;  %v64_v2 = vld [vmem:[#allocation2 + $0xb0] sm:$0xff] }
  0x30   :  { %v656_v42 = vcombine.low %v75_v33, %v79_v34  ;;  %v663_v43 = vcombine.high %v82_v39, %v82_v39  ;;  %v662_v44 = vcombine.low %v82_v39, %v82_v39  ;;  %v665_v45 = vcombine.high %v83_v40, %v83_v40  ;;  %v803_v59 = vld [vmem:[%s822_s0] sm:$0x1]  ;;  %v61_v3 = vld [vmem:[#allocation2 + $0x98] sm:$0xff]  ;;  %v68_v9 = vld [vmem:[#allocation2 + $0xd0] sm:$0xff] }
  0x31   :  { %v664_v46 = vcombine.low %v83_v40, %v83_v40  ;;  %v65_v4 = vld [vmem:[#allocation2 + $0xb8] sm:$0xff]  ;;  %v643_v7 = vcombine.high %v60_v1, %v64_v2  ;;  %v72_v10 = vld [vmem:[#allocation2 + $0xf0] sm:$0xff]  ;;  %v642_v13 = vcombine.low %v60_v1, %v64_v2  ;;  %v88_v34 = vlaneseq }
  0x32   :  { %382 = vmatpush1.bf16.msra.mxu0 %v638_v27  ;;  %423 = vmatpush1.bf16.msra.mxu1 %v640_v28  ;;  %v354_v51 = vsel %vm352_vm0, %v662_v44, 0  ;;  %v645_v8 = vcombine.high %v61_v3, %v65_v4  ;;  %v69_v11 = vld [vmem:[#allocation2 + $0xd8] sm:$0xff]  ;;  %v644_v14 = vcombine.low %v61_v3, %v65_v4  ;;  %v651_v15 = vcombine.high %v68_v9, %v72_v10  ;;  %v76_v17 = vld [vmem:[#allocation2 + $0x110] sm:$0xff] }
  0x33   :  { %383 = vmatprep.subr.bf16.mxu0 %v647_v29  ;;  %424 = vmatprep.subr.bf16.mxu1 %v649_v30  ;;  %v360_v53 = vsel %vm352_vm0, %v664_v46, 0  ;;  %v73_v12 = vld [vmem:[#allocation2 + $0xf8] sm:$0xff]  ;;  %v80_v18 = vld [vmem:[#allocation2 + $0x130] sm:$0xff]  ;;  %v650_v21 = vcombine.low %v68_v9, %v72_v10 }
  0x34   :  { %v653_v16 = vcombine.high %v69_v11, %v73_v12  ;;  %v77_v19 = vld [vmem:[#allocation2 + $0x118] sm:$0xff]  ;;  %v652_v22 = vcombine.low %v69_v11, %v73_v12  ;;  %v659_v23 = vcombine.high %v76_v17, %v80_v18  ;;  %v84_v24 = vld [vmem:[#allocation2 + $0x150] sm:$0x33]  ;;  %v658_v26 = vcombine.low %v76_v17, %v80_v18 }
  0x35   :  { %v81_v20 = vld [vmem:[#allocation2 + $0x138] sm:$0xff]  ;;  %v667_v28 = vcombine.high %v84_v24, %v84_v24  ;;  %v666_v29 = vcombine.low %v84_v24, %v84_v24 }
  0x36   :  { %384 = vmatpush1.bf16.msra.mxu0 %v646_v35  ;;  %425 = vmatpush1.bf16.msra.mxu1 %v648_v36  ;;  %v85_v25 = vld [vmem:[#allocation2 + $0x158] sm:$0x33]  ;;  %v660_v27 = vcombine.low %v77_v19, %v81_v20  ;;  %v89_v35 = vshrl.u32 %v88_v34, 7 }
  0x37   :  { %385 = vmatprep.subr.bf16.mxu0 %v655_v37  ;;  %426 = vmatprep.subr.bf16.mxu1 %v657_v38  ;;  %v669_v30 = vcombine.high %v85_v25, %v85_v25  ;;  %v668_v31 = vcombine.low %v85_v25, %v85_v25  ;;  %v366_v32 = vsel %vm352_vm0, %v666_v29, 0  ;;  %v86_v37 = vld [vmem:[#allocation4] sm:$0xff] }
  0x38   :  { %v90_v36 = vsub.s32 0, %v89_v35  ;;  %v98_v38 = vsub.s32 2, %v89_v35  ;;  %v94_v39 = vsub.s32 1, %v89_v35  ;;  %v102_v40 = vsub.s32 3, %v89_v35 }
  0x39   :  { %v372_v33 = vsel %vm352_vm0, %v668_v31, 0  ;;  %v110_v9 = vsub.s32 5, %v89_v35  ;;  %v118_v10 = vsub.s32 7, %v89_v35 }
  0x3a   :  { %386 = vmatpush1.bf16.msra.mxu0 %v654_v41  ;;  %427 = vmatpush1.bf16.msra.mxu1 %v656_v42  ;;  %v749_v41 = vmov 1966171168   ;;  %v99_v44 = vrot.slane %v86_v37, %v98_v38  ;;  %v103_v46 = vrot.slane %v86_v37, %v102_v40 }
  0x3b   :  { %670 = vmatprep.subr.msk.bf16.mxu0 %vm352_vm0, %v663_v43  ;;  %672 = vmatprep.subr.msk.bf16.mxu1 %vm352_vm0, %v665_v45  ;;  %v570_v42 = vunpack.c.l.s4 %v749_v41  ;;  %v91_v43 = vrot.slane %v86_v37, %v90_v36  ;;  %v95_v45 = vrot.slane %v86_v37, %v94_v39 }
  0x3d   :  { %v571_v48 = vunpack.c.0.s8 %v570_v42 }
  0x3e   :  { %388 = vmatpush1.bf16.msra.mxu0 %v354_v51  ;;  %429 = vmatpush1.bf16.msra.mxu1 %v360_v53 }
  0x3f   :  { %459 = vmatprep.subr.bf16.mxu0 %v627_v52  ;;  %500 = vmatprep.subr.bf16.mxu1 %v629_v54 }
  0x41   :  { %671 = vmatmul.mubr.msk.bf16.vlgmr.msra.gmra.mrb[0].mxu0 %vm348_vm1, %v803_v59  ;;  %673 = vmatmul.mubr.msk.bf16.vlgmr.msra.gmra.mrb[0].mxu1 %vm348_vm1, %v803_v59 }
  0x42   :  { %460 = vmatpush1.bf16.msra.mxu0 %v626_v60  ;;  %501 = vmatpush1.bf16.msra.mxu1 %v628_v61 }
  0x43   :  { %461 = vmatprep.subr.bf16.mxu0 %v635_v62  ;;  %502 = vmatprep.subr.bf16.mxu1 %v637_v63  ;;  %v574_v62 = vsub.s32 %v571_v48, %v89_v35 }
  0x44   :  { %491 = vmatprep.mubr.bf16.mxu0 %v748_v0  ;;  %532 = vmatprep.mubr.bf16.mxu1 %v748_v0  ;;  %v661_v0 = vcombine.high %v77_v19, %v81_v20 }
  0x46   :  { %462 = vmatpush1.bf16.msra.mxu0 %v634_v5  ;;  %503 = vmatpush1.bf16.msra.mxu1 %v636_v6 }
  0x47   :  { %463 = vmatprep.subr.bf16.mxu0 %v643_v7  ;;  %504 = vmatprep.subr.bf16.mxu1 %v645_v8  ;;  %v106_v7 = vsub.s32 4, %v89_v35  ;;  %v114_v8 = vsub.s32 6, %v89_v35 }
  0x49   :  { %v107_v11 = vrot.slane %v86_v37, %v106_v7  ;;  %v115_v12 = vrot.slane %v86_v37, %v114_v8 }
  0x4a   :  { %464 = vmatpush1.bf16.msra.mxu0 %v642_v13  ;;  %505 = vmatpush1.bf16.msra.mxu1 %v644_v14  ;;  %v111_v13 = vrot.slane %v86_v37, %v110_v9  ;;  %v119_v14 = vrot.slane %v86_v37, %v118_v10 }
  0x4b   :  { %465 = vmatprep.subr.bf16.mxu0 %v651_v15  ;;  %506 = vmatprep.subr.bf16.mxu1 %v653_v16 }
  0x4e   :  { %466 = vmatpush1.bf16.msra.mxu0 %v650_v21  ;;  %507 = vmatpush1.bf16.msra.mxu1 %v652_v22 }
  0x4f   :  { %467 = vmatprep.subr.bf16.mxu0 %v659_v23  ;;  %508 = vmatprep.subr.bf16.mxu1 %v661_v0 }
  0x52   :  { %468 = vmatpush1.bf16.msra.mxu0 %v658_v26  ;;  %509 = vmatpush1.bf16.msra.mxu1 %v660_v27 }
  0x53   :  { %674 = vmatprep.subr.msk.bf16.mxu0 %vm352_vm0, %v667_v28  ;;  %676 = vmatprep.subr.msk.bf16.mxu1 %vm352_vm0, %v669_v30 }
  0x56   :  { %470 = vmatpush1.bf16.msra.mxu0 %v366_v32  ;;  %511 = vmatpush1.bf16.msra.mxu1 %v372_v33 }
  0x59   :  { %675 = vmatmul.mubr.msk.bf16.vlgmr.msra.gmra.mrb[4].mxu0 %vm348_vm1, %v803_v59  ;;  %677 = vmatmul.mubr.msk.bf16.vlgmr.msra.gmra.mrb[4].mxu1 %vm348_vm1, %v803_v59 }
 0x114   :  { %v411_v47 = vpop.f32.mrb[0].mxu0  ;;  %v452_v50 = vpop.f32.mrb[0].mxu1 }
 0x115   :  { %v412_v49 = vadd.f32 %v411_v47, %v91_v43  ;;  %v413_v51 = vpop.f32.mrb[1].mxu0  ;;  %v453_v52 = vadd.f32 %v452_v50, %v99_v44  ;;  %v454_v54 = vpop.f32.mrb[1].mxu1 }
 0x116   :  { %v414_v53 = vadd.f32 %v413_v51, %v95_v45  ;;  %v415_v55 = vpop.f32.mrb[2].mxu0  ;;  %v455_v57 = vadd.f32 %v454_v54, %v103_v46  ;;  %v456_v58 = vpop.f32.mrb[2].mxu1 }
 0x117   :  { %v541_v56 = vmax.f32 %v412_v49, 0.0  ;;  %v416_v59 = vpop.f32.mrb[3].mxu0  ;;  %v543_v60 = vmax.f32 %v453_v52, 0.0  ;;  %v457_v63 = vpop.f32.mrb[3].mxu1 }
 0x118   :  { %v542_v61 = vmax.f32 %v414_v53, 0.0  ;;  %v544_v1 = vmax.f32 %v455_v57, 0.0 }
 0x11a   :  { %v678_v2 = vpack.c.bf16 %v542_v61, %v541_v56  ;;  %v679_v3 = vpack.c.bf16 %v544_v1, %v543_v60 }
 0x11c   :  { %v575_v4 = vrot.slane %v678_v2, %v574_v62  ;;  %v582_v5 = vrot.slane %v679_v3, %v574_v62 }
 0x11e   :  { %v597_v6 = vcombine.low %v575_v4, %v582_v5 }
 0x120   :  { %v605_v35 = vrot.slane %v597_v6, %v574_v62 }
 0x12c   :  { %v493_v15 = vpop.f32.mrb[4].mxu0  ;;  %v534_v17 = vpop.f32.mrb[4].mxu1 }
 0x12d   :  { %v494_v16 = vadd.f32 %v493_v15, %v107_v11  ;;  %v495_v18 = vpop.f32.mrb[5].mxu0  ;;  %v535_v19 = vadd.f32 %v534_v17, %v115_v12  ;;  %v536_v21 = vpop.f32.mrb[5].mxu1 }
 0x12e   :  { %v496_v20 = vadd.f32 %v495_v18, %v111_v13  ;;  %v497_v22 = vpop.f32.mrb[6].mxu0  ;;  %v537_v0 = vadd.f32 %v536_v21, %v119_v14  ;;  %v538_v24 = vpop.f32.mrb[6].mxu1 }
 0x12f   :  { %v545_v23 = vmax.f32 %v494_v16, 0.0  ;;  %v498_v25 = vpop.f32.mrb[7].mxu0  ;;  %v547_v26 = vmax.f32 %v535_v19, 0.0  ;;  %v539_v28 = vpop.f32.mrb[7].mxu1 }
 0x130   :  { %v546_v27 = vmax.f32 %v496_v20, 0.0  ;;  %v548_v29 = vmax.f32 %v537_v0, 0.0 }
 0x132   :  { %v680_v30 = vpack.c.bf16 %v546_v27, %v545_v23  ;;  %v681_v31 = vpack.c.bf16 %v548_v29, %v547_v26 }
 0x134   :  { %v589_v32 = vrot.slane %v680_v30, %v574_v62  ;;  %v596_v33 = vrot.slane %v681_v31, %v574_v62 }
 0x136   :  { %v598_v34 = vcombine.low %v589_v32, %v596_v33 }
 0x138   :  { %v612_v36 = vrot.slane %v598_v34, %v574_v62 }
 0x13a   :  { %v613_v37 = vcombine.low %v605_v35, %v612_v36 }
 0x13c   :  { %615 = vst [vmem:[%s825_s3] sm:$0xff] %v613_v37 }
 0x13d   :  { %620 = vsyncpa [#allocation3], 1 }
 0x13e   :  { %621 = vsyncpa [#allocation5], 1 }

// kernel: decoder_forward.5
= control target key start
LH: loop header
LB: loop body
LE: loop exit
PB: predicated region body
PF: predicated region fallthrough
CT: control target
= control target key end

     0   :  { %8 = vsyncpa [#allocation3], 0  ;;  %s3351_s0 = inlined_call_operand.vmem [shape: bf16[32,576], index: 0, kind: input, shape index: {}]   ;;  %s3352_s1 = inlined_call_operand.hbm [shape: bf16[576,1024], index: 1, kind: input, shape index: {}]   ;;  %s3353_s2 = inlined_call_operand.hbm [shape: f32[1,1024], index: 2, kind: input, shape index: {}]   ;;  %s3354_s3 = inlined_call_operand.vmem [shape: bf16[32,1024], index: 3, kind: output, shape index: {}]  }
   0x1   :  { %9 = vsyncpa [#allocation5], 0  ;;  %s3196_s12 = smov 0  }
   0x2 LB: > { %s2681_s13 = sadd.s32 4294967295, %s3169_s12   ;;  %p2683_p0 = scmp.ge.s32.totalorder %s3169_s12, 1  ;;  %s3169_s12 = sphi %s3196_s12, %s15_s12  }
   0x3   : > { %p114_p1 = scmp.lt.s32.totalorder %s3169_s12, 3  ;;  %s3171_s14 = smov [#allocation2]  }
   0x4   : > { %s126_s15 = sshll.u32 %s3171_s14, 4  ;;  %p3210_p3 = scmp.eq.s32.totalorder %s2681_s13, 0  ;;  %s127_s15 = int_to_ptr.vmem [resolvable:$true] %s126_s15 }
   0x5   : > { %p3204_p2 = pnand %p2683_p0, %p114_p1  ;;  %s3172_s18 = smov [#allocation4]  }
   0x6   : > { %s3359_s17 = scalar_select %p3210_p3, 1, 0 }
   0x7   : > { %s3358_s16 = scalar_select %p3204_p2, 1, 0 }
   0x8   : > { %p3068_p4 = pneg %p3204_p2  ;;  %s140_s19 = sshll.u32 %s3172_s18, 4  ;;  %s3222_s19 = int_to_ptr.vmem [resolvable:$true] %s140_s19 }
   0x9   : > { %s3099_s23 = scalar_lea.hbm %s3352_s1, 36864 }
   0xa   : > { %p3218_p5 = pnand %p3210_p3, %p3068_p4  ;;  %p3100_p6 = scmp.ne.s32.totalorder %s3352_s1, %s3099_s23 }
   0xb   : > { %p3106_p10 = scmp.lt.u32.totalorder %s3099_s23, %s3352_s1 }
   0xc   : > { %p3101_p7 = pneg %p3218_p5 }
   0xe   : > { %p3102_p8 = pnand %p3101_p7, %p3100_p6 }
  0x10   : > { %p3103_p9 = pneg %p3102_p8 }
  0x12   : > { %p3108_p11 = pnand %p3106_p10, %p3103_p9 }
  0x14   : > { %3111 = shalt.err (!%p3108_p11)
}
  0x15   : > { %s3112_s28 = scalar_lea.vmem %s127_s15, 36864  ;;  %p3120_p1 = scmp.lt.s32.totalorder %s127_s15, %s127_s15 }
  0x16   : > { %p3113_p12 = scmp.ne.s32.totalorder %s127_s15, %s3112_s28  ;;  %p3121_p4 = scmp.lt.s32.totalorder %s3112_s28, %s3112_s28 }
  0x18   : > { %p3115_p13 = pnand %p3113_p12, %p3101_p7  ;;  %p3122_p3 = por %p3121_p4, %p3120_p1 }
  0x1a   : > { %p3116_p0 = pneg %p3115_p13 }
  0x1c   : > { %p3123_p2 = pnand %p3122_p3, %p3116_p0 }
  0x1e   : > { %3126 = shalt.err (!%p3123_p2)
}
  0x1f   : > { %s3173_s29 = smov 512   ;;  %s3174_s30 = smov 32  }
  0x20   : > { %3071 = dma.hbm_to_vmem [thread:$0]  (!%p3218_p5), %s3352_s1, 36864, %s127_s15, [#allocation3], %s3173_s29, %s3173_s29, %s3174_s30  }
  0x21   : > { %s3127_s8 = scalar_lea.hbm %s3353_s2, 128 }
  0x22   : > { %p3128_p6 = scmp.ne.s32.totalorder %s3353_s2, %s3127_s8  ;;  %p3134_p8 = scmp.lt.u32.totalorder %s3127_s8, %s3353_s2 }
  0x24   : > { %p3130_p2 = pnand %p3128_p6, %p3101_p7 }
  0x26   : > { %p3131_p3 = pneg %p3130_p2 }
  0x28   : > { %p3136_p9 = pnand %p3134_p8, %p3131_p3 }
  0x2a   : > { %3139 = shalt.err (!%p3136_p9)
}
  0x2b   : > { %s3140_s15 = scalar_lea.vmem %s3222_s19, 128  ;;  %p3148_p13 = scmp.lt.s32.totalorder %s3222_s19, %s3222_s19 }
  0x2c   : > { %p3141_p10 = scmp.ne.s32.totalorder %s3222_s19, %s3140_s15  ;;  %p3149_p0 = scmp.lt.s32.totalorder %s3140_s15, %s3140_s15 }
  0x2e   : > { %p3143_p11 = pnand %p3141_p10, %p3101_p7  ;;  %p3150_p1 = por %p3149_p0, %p3148_p13 }
  0x30   : > { %p3144_p12 = pneg %p3143_p11 }
  0x32   : > { %p3151_p4 = pnand %p3150_p1, %p3144_p12 }
  0x34   : > { %3154 = shalt.err (!%p3151_p4)
}
  0x35   : > { %3074 = dma.hbm_to_vmem [thread:$0]  (!%p3218_p5), %s3353_s2, 128, %s3222_s19, [#allocation5]  }
  0x36   : > { %p3361_p6 = scmp.ne.s32.totalorder %s3358_s16, 0 }
  0x37   : > { %p3362_p2 = scmp.ne.s32.totalorder (!%p3361_p6), %s3359_s17, 0 }
  0x38   : > { %163 = sbr.rel (%p3361_p6) target bundleno = 580 (0x244), region = 32 }
  0x3f   : > { %3160 = dma.done.wait (%p3362_p2), [#allocation3], 36864  }
  0x40   : > { %3162 = vsyncadd (%p3362_p2), [#allocation3], 4294930432 }
  0x41   : > { %3164 = dma.done.wait (%p3362_p2), [#allocation5], 128  }
  0x42   : > { %3166 = vsyncadd (%p3362_p2), [#allocation5], 4294967168  ;;  %v214_v0 = vld [vmem:[#allocation2] sm:$0xff]  ;;  %v215_v2 = vld [vmem:[#allocation2 + $0x8] sm:$0xff]  ;;  %s2690_s16 = sshll.u32 %s2681_s13, 1  ;;  %vm2009_vm0 = vcmask 523264  }
  0x43   : > { %v218_v1 = vld [vmem:[#allocation2 + $0x20] sm:$0xff]  ;;  %v219_v4 = vld [vmem:[#allocation2 + $0x28] sm:$0xff]  ;;  %p194_p5 = scmp.lt.s32.totalorder %s2690_s16, 3 }
  0x44   : > { %v2701_v3 = vcombine.high %v214_v0, %v218_v1  ;;  %v2700_v5 = vcombine.low %v214_v0, %v218_v1  ;;  %v222_v6 = vld [vmem:[#allocation2 + $0x40] sm:$0xff]  ;;  %v2703_v8 = vcombine.high %v215_v2, %v219_v4  ;;  %v2702_v9 = vcombine.low %v215_v2, %v219_v4  ;;  %v223_v11 = vld [vmem:[#allocation2 + $0x48] sm:$0xff] }
  0x45   : > { %v226_v7 = vld [vmem:[#allocation2 + $0x60] sm:$0xff]  ;;  %v227_v12 = vld [vmem:[#allocation2 + $0x68] sm:$0xff]  ;;  %s3364_s16 = smov (!%p194_p5, %s2690_s16), 3 }
  0x46   : > { %v2709_v10 = vcombine.high %v222_v6, %v226_v7  ;;  %v230_v13 = vld [vmem:[#allocation2 + $0x80] sm:$0xff]  ;;  %2013 = vmatprep.subr.bf16.mxu0 %v2701_v3  ;;  %v2711_v14 = vcombine.high %v223_v11, %v227_v12  ;;  %v231_v16 = vld [vmem:[#allocation2 + $0x88] sm:$0xff]  ;;  %2142 = vmatprep.subr.bf16.mxu1 %v2703_v8  ;;  %v2708_v18 = vcombine.low %v222_v6, %v226_v7  ;;  %s3059_s13 = smul.u32 20, %s3364_s16  ;;  %s3002_s22 = sshll.u32 %s3364_s16, 5 }
  0x47   : > { %v234_v15 = vld [vmem:[#allocation2 + $0xa0] sm:$0xff]  ;;  %v235_v17 = vld [vmem:[#allocation2 + $0xa8] sm:$0xff]  ;;  %2014 = vmatpush1.bf16.msra.mxu0 %v2700_v5  ;;  %2143 = vmatpush1.bf16.msra.mxu1 %v2702_v9  ;;  %v2710_v19 = vcombine.low %v223_v11, %v227_v12  ;;  %s3338_s25 = scalar_lea.vmem %s3354_s3, %s3002_s22 }
  0x48   : > { %2015 = vmatprep.subr.bf16.mxu0 %v2709_v10  ;;  %v2717_v20 = vcombine.high %v230_v13, %v234_v15  ;;  %2144 = vmatprep.subr.bf16.mxu1 %v2711_v14  ;;  %v2719_v21 = vcombine.high %v231_v16, %v235_v17  ;;  %v238_v22 = vld [vmem:[#allocation2 + $0xc0] sm:$0xff]  ;;  %v239_v24 = vld [vmem:[#allocation2 + $0xc8] sm:$0xff]  ;;  %v2716_v26 = vcombine.low %v230_v13, %v234_v15  ;;  %s3289_s20 = scalar_lea.vmem %s3351_s0, %s3059_s13 }
  0x49   : > { %v242_v23 = vld [vmem:[#allocation2 + $0xe0] sm:$0xff]  ;;  %v243_v25 = vld [vmem:[#allocation2 + $0xe8] sm:$0xff]  ;;  %v2718_v27 = vcombine.low %v231_v16, %v235_v17 }
  0x4a   : > { %v2725_v28 = vcombine.high %v238_v22, %v242_v23  ;;  %v2727_v29 = vcombine.high %v239_v24, %v243_v25  ;;  %v246_v30 = vld [vmem:[#allocation2 + $0x100] sm:$0xff]  ;;  %v247_v32 = vld [vmem:[#allocation2 + $0x108] sm:$0xff]  ;;  %v2724_v34 = vcombine.low %v238_v22, %v242_v23  ;;  %v2726_v35 = vcombine.low %v239_v24, %v243_v25 }
  0x4b   : > { %2016 = vmatpush1.bf16.msra.mxu0 %v2708_v18  ;;  %2145 = vmatpush1.bf16.msra.mxu1 %v2710_v19  ;;  %v250_v31 = vld [vmem:[#allocation2 + $0x120] sm:$0xff]  ;;  %v251_v33 = vld [vmem:[#allocation2 + $0x128] sm:$0xff] }
  0x4c   : > { %2017 = vmatprep.subr.bf16.mxu0 %v2717_v20  ;;  %2146 = vmatprep.subr.bf16.mxu1 %v2719_v21  ;;  %v2733_v36 = vcombine.high %v246_v30, %v250_v31  ;;  %v2735_v37 = vcombine.high %v247_v32, %v251_v33  ;;  %v254_v38 = vld [vmem:[#allocation2 + $0x140] sm:$0xff]  ;;  %v255_v40 = vld [vmem:[#allocation2 + $0x148] sm:$0xff]  ;;  %v2732_v42 = vcombine.low %v246_v30, %v250_v31 }
  0x4d   : > { %v258_v39 = vld [vmem:[#allocation2 + $0x160] sm:$0xff]  ;;  %v259_v41 = vld [vmem:[#allocation2 + $0x168] sm:$0xff]  ;;  %v2734_v43 = vcombine.low %v247_v32, %v251_v33 }
  0x4e   : > { %v2741_v44 = vcombine.high %v254_v38, %v258_v39  ;;  %v2743_v45 = vcombine.high %v255_v40, %v259_v41  ;;  %v262_v46 = vld [vmem:[#allocation2 + $0x180] sm:$0xff]  ;;  %v263_v48 = vld [vmem:[#allocation2 + $0x188] sm:$0xff]  ;;  %v2740_v50 = vcombine.low %v254_v38, %v258_v39  ;;  %v2742_v51 = vcombine.low %v255_v40, %v259_v41 }
  0x4f   : > { %2018 = vmatpush1.bf16.msra.mxu0 %v2716_v26  ;;  %2147 = vmatpush1.bf16.msra.mxu1 %v2718_v27  ;;  %v266_v47 = vld [vmem:[#allocation2 + $0x1a0] sm:$0xff]  ;;  %v267_v49 = vld [vmem:[#allocation2 + $0x1a8] sm:$0xff] }
  0x50   : > { %2019 = vmatprep.subr.bf16.mxu0 %v2725_v28  ;;  %2148 = vmatprep.subr.bf16.mxu1 %v2727_v29  ;;  %v2749_v52 = vcombine.high %v262_v46, %v266_v47  ;;  %v2751_v53 = vcombine.high %v263_v48, %v267_v49  ;;  %v270_v54 = vld [vmem:[#allocation2 + $0x1c0] sm:$0xff]  ;;  %v271_v57 = vld [vmem:[#allocation2 + $0x1c8] sm:$0xff]  ;;  %v2748_v59 = vcombine.low %v262_v46, %v266_v47 }
  0x51   : > { %v274_v55 = vld [vmem:[#allocation2 + $0x1e0] sm:$0xff]  ;;  %v275_v58 = vld [vmem:[#allocation2 + $0x1e8] sm:$0xff]  ;;  %v2750_v60 = vcombine.low %v263_v48, %v267_v49 }
  0x52   : > { %v3292_v56 = vld [vmem:[%s3289_s20 + $0x4] ss:$20 sps:$4 sm:$0xff]   ;;  %v2757_v61 = vcombine.high %v270_v54, %v274_v55  ;;  %v2759_v62 = vcombine.high %v271_v57, %v275_v58  ;;  %v279_v1 = vld [vmem:[#allocation2 + $0x208] sm:$0xff]  ;;  %v2756_v3 = vcombine.low %v270_v54, %v274_v55  ;;  %v2758_v4 = vcombine.low %v271_v57, %v275_v58 }
  0x53   : > { %2020 = vmatpush1.bf16.msra.mxu0 %v2724_v34  ;;  %2149 = vmatpush1.bf16.msra.mxu1 %v2726_v35  ;;  %v278_v63 = vld [vmem:[#allocation2 + $0x200] sm:$0xff]  ;;  %v283_v2 = vld [vmem:[#allocation2 + $0x228] sm:$0xff] }
  0x54   : > { %2021 = vmatprep.subr.bf16.mxu0 %v2733_v36  ;;  %2150 = vmatprep.subr.bf16.mxu1 %v2735_v37  ;;  %v282_v0 = vld [vmem:[#allocation2 + $0x220] sm:$0xff]  ;;  %v2767_v6 = vcombine.high %v279_v1, %v283_v2  ;;  %v287_v9 = vld [vmem:[#allocation2 + $0x248] sm:$0xff]  ;;  %v2766_v12 = vcombine.low %v279_v1, %v283_v2 }
  0x55   : > { %2045 = vmatprep.mubr.bf16.mxu0 %v3292_v56  ;;  %2174 = vmatprep.mubr.bf16.mxu1 %v3292_v56  ;;  %v2765_v5 = vcombine.high %v278_v63, %v282_v0  ;;  %v286_v7 = vld [vmem:[#allocation2 + $0x240] sm:$0xff]  ;;  %v291_v10 = vld [vmem:[#allocation2 + $0x268] sm:$0xff]  ;;  %v2764_v11 = vcombine.low %v278_v63, %v282_v0 }
  0x56   : > { %v290_v8 = vld [vmem:[#allocation2 + $0x260] sm:$0xff]  ;;  %v2775_v14 = vcombine.high %v287_v9, %v291_v10  ;;  %v295_v17 = vld [vmem:[#allocation2 + $0x288] sm:$0xff]  ;;  %v2774_v20 = vcombine.low %v287_v9, %v291_v10 }
  0x57   : > { %2022 = vmatpush1.bf16.msra.mxu0 %v2732_v42  ;;  %2151 = vmatpush1.bf16.msra.mxu1 %v2734_v43  ;;  %v2773_v13 = vcombine.high %v286_v7, %v290_v8  ;;  %v294_v15 = vld [vmem:[#allocation2 + $0x280] sm:$0xff]  ;;  %v299_v18 = vld [vmem:[#allocation2 + $0x2a8] sm:$0xff]  ;;  %v2772_v19 = vcombine.low %v286_v7, %v290_v8 }
  0x58   : > { %2023 = vmatprep.subr.bf16.mxu0 %v2741_v44  ;;  %2152 = vmatprep.subr.bf16.mxu1 %v2743_v45  ;;  %v298_v16 = vld [vmem:[#allocation2 + $0x2a0] sm:$0xff]  ;;  %v2783_v22 = vcombine.high %v295_v17, %v299_v18  ;;  %v303_v25 = vld [vmem:[#allocation2 + $0x2c8] sm:$0xff]  ;;  %v2782_v28 = vcombine.low %v295_v17, %v299_v18 }
  0x59   : > { %v2781_v21 = vcombine.high %v294_v15, %v298_v16  ;;  %v302_v23 = vld [vmem:[#allocation2 + $0x2c0] sm:$0xff]  ;;  %v307_v26 = vld [vmem:[#allocation2 + $0x2e8] sm:$0xff]  ;;  %v2780_v27 = vcombine.low %v294_v15, %v298_v16 }
  0x5a   : > { %v306_v24 = vld [vmem:[#allocation2 + $0x2e0] sm:$0xff]  ;;  %v2791_v30 = vcombine.high %v303_v25, %v307_v26  ;;  %v311_v33 = vld [vmem:[#allocation2 + $0x308] sm:$0xff]  ;;  %v2790_v36 = vcombine.low %v303_v25, %v307_v26 }
  0x5b   : > { %2024 = vmatpush1.bf16.msra.mxu0 %v2740_v50  ;;  %2153 = vmatpush1.bf16.msra.mxu1 %v2742_v51  ;;  %v2789_v29 = vcombine.high %v302_v23, %v306_v24  ;;  %v310_v31 = vld [vmem:[#allocation2 + $0x300] sm:$0xff]  ;;  %v315_v34 = vld [vmem:[#allocation2 + $0x328] sm:$0xff]  ;;  %v2788_v35 = vcombine.low %v302_v23, %v306_v24 }
  0x5c   : > { %2025 = vmatprep.subr.bf16.mxu0 %v2749_v52  ;;  %2154 = vmatprep.subr.bf16.mxu1 %v2751_v53  ;;  %v314_v32 = vld [vmem:[#allocation2 + $0x320] sm:$0xff]  ;;  %v2799_v38 = vcombine.high %v311_v33, %v315_v34  ;;  %v319_v41 = vld [vmem:[#allocation2 + $0x348] sm:$0xff]  ;;  %v2798_v44 = vcombine.low %v311_v33, %v315_v34 }
  0x5d   : > { %v2797_v37 = vcombine.high %v310_v31, %v314_v32  ;;  %v318_v39 = vld [vmem:[#allocation2 + $0x340] sm:$0xff]  ;;  %v323_v42 = vld [vmem:[#allocation2 + $0x368] sm:$0xff]  ;;  %v2796_v43 = vcombine.low %v310_v31, %v314_v32 }
  0x5e   : > { %v322_v40 = vld [vmem:[#allocation2 + $0x360] sm:$0xff]  ;;  %v2807_v46 = vcombine.high %v319_v41, %v323_v42  ;;  %v327_v49 = vld [vmem:[#allocation2 + $0x388] sm:$0xff]  ;;  %v2806_v52 = vcombine.low %v319_v41, %v323_v42 }
  0x5f   : > { %2026 = vmatpush1.bf16.msra.mxu0 %v2748_v59  ;;  %2155 = vmatpush1.bf16.msra.mxu1 %v2750_v60  ;;  %v2805_v45 = vcombine.high %v318_v39, %v322_v40  ;;  %v326_v47 = vld [vmem:[#allocation2 + $0x380] sm:$0xff]  ;;  %v331_v50 = vld [vmem:[#allocation2 + $0x3a8] sm:$0xff]  ;;  %v2804_v51 = vcombine.low %v318_v39, %v322_v40 }
  0x60   : > { %2027 = vmatprep.subr.bf16.mxu0 %v2757_v61  ;;  %2156 = vmatprep.subr.bf16.mxu1 %v2759_v62  ;;  %v330_v48 = vld [vmem:[#allocation2 + $0x3a0] sm:$0xff]  ;;  %v2815_v54 = vcombine.high %v327_v49, %v331_v50  ;;  %v335_v58 = vld [vmem:[#allocation2 + $0x3c8] sm:$0xff]  ;;  %v2814_v61 = vcombine.low %v327_v49, %v331_v50 }
  0x61   : > { %v2813_v53 = vcombine.high %v326_v47, %v330_v48  ;;  %v334_v55 = vld [vmem:[#allocation2 + $0x3c0] sm:$0xff]  ;;  %v339_v59 = vld [vmem:[#allocation2 + $0x3e8] sm:$0xff]  ;;  %v2812_v60 = vcombine.low %v326_v47, %v330_v48 }
  0x62   : > { %v338_v57 = vld [vmem:[#allocation2 + $0x3e0] sm:$0xff]  ;;  %v2823_v63 = vcombine.high %v335_v58, %v339_v59  ;;  %v343_v2 = vld [vmem:[#allocation2 + $0x408] sm:$0xff] }
  0x63   : > { %2028 = vmatpush1.bf16.msra.mxu0 %v2756_v3  ;;  %2157 = vmatpush1.bf16.msra.mxu1 %v2758_v4  ;;  %v2821_v62 = vcombine.high %v334_v55, %v338_v57  ;;  %v342_v0 = vld [vmem:[#allocation2 + $0x400] sm:$0xff]  ;;  %v347_v3 = vld [vmem:[#allocation2 + $0x428] sm:$0xff]  ;;  %v2820_v4 = vcombine.low %v334_v55, %v338_v57 }
  0x64   : > { %2029 = vmatprep.subr.bf16.mxu0 %v2765_v5  ;;  %2158 = vmatprep.subr.bf16.mxu1 %v2767_v6  ;;  %v346_v1 = vld [vmem:[#allocation2 + $0x420] sm:$0xff]  ;;  %v2822_v5 = vcombine.low %v335_v58, %v339_v59  ;;  %v2831_v7 = vcombine.high %v343_v2, %v347_v3 }
  0x65   : > { %v2829_v6 = vcombine.high %v342_v0, %v346_v1  ;;  %v350_v8 = vld [vmem:[#allocation2 + $0x440] sm:$0xff] }
  0x66   : > { %v354_v9 = vld [vmem:[#allocation2 + $0x460] sm:$0xff] }
  0x67   : > { %2030 = vmatpush1.bf16.msra.mxu0 %v2764_v11  ;;  %2159 = vmatpush1.bf16.msra.mxu1 %v2766_v12  ;;  %v3297_v10 = vld [vmem:[%s3289_s20] ss:$20 sps:$4 sm:$0xff]   ;;  %v351_v11 = vld [vmem:[#allocation2 + $0x448] sm:$0xff]  ;;  %v2837_v15 = vcombine.high %v350_v8, %v354_v9 }
  0x68   : > { %2031 = vmatprep.subr.bf16.mxu0 %v2773_v13  ;;  %2160 = vmatprep.subr.bf16.mxu1 %v2775_v14  ;;  %v355_v12 = vld [vmem:[#allocation2 + $0x468] sm:$0xff]  ;;  %v2828_v13 = vcombine.low %v342_v0, %v346_v1  ;;  %v2830_v14 = vcombine.low %v343_v2, %v347_v3  ;;  %v358_v17 = vld [vmem:[#allocation2 + $0x480] sm:$0xff] }
  0x69   : > { %v2839_v16 = vcombine.high %v351_v11, %v355_v12  ;;  %v362_v18 = vld [vmem:[#allocation2 + $0x4a0] sm:$0xff]  ;;  %v2838_v23 = vcombine.low %v351_v11, %v355_v12 }
  0x6a   : > { %v2845_v24 = vcombine.high %v358_v17, %v362_v18  ;;  %v366_v26 = vld [vmem:[#allocation2 + $0x4c0] sm:$0xff] }
  0x6b   : > { %2032 = vmatpush1.bf16.msra.mxu0 %v2772_v19  ;;  %2161 = vmatpush1.bf16.msra.mxu1 %v2774_v20  ;;  %v3300_v19 = vld [vmem:[%s3289_s20 + $0xc] ss:$20 sps:$4 sm:$0xff]  }
  0x6c   : > { %2033 = vmatprep.subr.bf16.mxu0 %v2781_v21  ;;  %2162 = vmatprep.subr.bf16.mxu1 %v2783_v22  ;;  %v359_v20 = vld [vmem:[#allocation2 + $0x488] sm:$0xff]  ;;  %v2836_v22 = vcombine.low %v350_v8, %v354_v9  ;;  %v374_v34 = vld [vmem:[#allocation2 + $0x500] sm:$0xff] }
  0x6d   : > { %v363_v21 = vld [vmem:[#allocation2 + $0x4a8] sm:$0xff]  ;;  %v382_v42 = vld [vmem:[#allocation2 + $0x540] sm:$0xff] }
  0x6e   : > { %v2847_v25 = vcombine.high %v359_v20, %v363_v21  ;;  %v2846_v31 = vcombine.low %v359_v20, %v363_v21  ;;  %v390_v50 = vld [vmem:[#allocation2 + $0x580] sm:$0xff] }
  0x6f   : > { %2034 = vmatpush1.bf16.msra.mxu0 %v2780_v27  ;;  %2163 = vmatpush1.bf16.msra.mxu1 %v2782_v28  ;;  %v370_v27 = vld [vmem:[#allocation2 + $0x4e0] sm:$0xff]  ;;  %v367_v28 = vld [vmem:[#allocation2 + $0x4c8] sm:$0xff] }
  0x70   : > { %2035 = vmatprep.subr.bf16.mxu0 %v2789_v29  ;;  %2164 = vmatprep.subr.bf16.mxu1 %v2791_v30  ;;  %v371_v29 = vld [vmem:[#allocation2 + $0x4e8] sm:$0xff]  ;;  %v2844_v30 = vcombine.low %v358_v17, %v362_v18  ;;  %v2853_v32 = vcombine.high %v366_v26, %v370_v27  ;;  %v398_v59 = vld [vmem:[#allocation2 + $0x5c0] sm:$0xff] }
  0x71   : > { %v2855_v33 = vcombine.high %v367_v28, %v371_v29  ;;  %v2854_v39 = vcombine.low %v367_v28, %v371_v29  ;;  %v406_v3 = vld [vmem:[#allocation2 + $0x600] sm:$0xff] }
  0x72   : > { %v414_v12 = vld [vmem:[#allocation2 + $0x640] sm:$0xff] }
  0x73   : > { %2036 = vmatpush1.bf16.msra.mxu0 %v2788_v35  ;;  %2165 = vmatpush1.bf16.msra.mxu1 %v2790_v36  ;;  %v378_v35 = vld [vmem:[#allocation2 + $0x520] sm:$0xff]  ;;  %v375_v36 = vld [vmem:[#allocation2 + $0x508] sm:$0xff] }
  0x74   : > { %2037 = vmatprep.subr.bf16.mxu0 %v2797_v37  ;;  %2166 = vmatprep.subr.bf16.mxu1 %v2799_v38  ;;  %v379_v37 = vld [vmem:[#allocation2 + $0x528] sm:$0xff]  ;;  %v2852_v38 = vcombine.low %v366_v26, %v370_v27  ;;  %v2861_v40 = vcombine.high %v374_v34, %v378_v35  ;;  %v422_v21 = vld [vmem:[#allocation2 + $0x680] sm:$0xff] }
  0x75   : > { %v2863_v41 = vcombine.high %v375_v36, %v379_v37  ;;  %v2862_v47 = vcombine.low %v375_v36, %v379_v37  ;;  %v430_v29 = vld [vmem:[#allocation2 + $0x6c0] sm:$0xff] }
  0x76   : > { %v438_v37 = vld [vmem:[#allocation2 + $0x700] sm:$0xff] }
  0x77   : > { %2038 = vmatpush1.bf16.msra.mxu0 %v2796_v43  ;;  %2167 = vmatpush1.bf16.msra.mxu1 %v2798_v44  ;;  %v386_v43 = vld [vmem:[#allocation2 + $0x560] sm:$0xff]  ;;  %v383_v44 = vld [vmem:[#allocation2 + $0x548] sm:$0xff] }
  0x78   : > { %2039 = vmatprep.subr.bf16.mxu0 %v2805_v45  ;;  %2168 = vmatprep.subr.bf16.mxu1 %v2807_v46  ;;  %v387_v45 = vld [vmem:[#allocation2 + $0x568] sm:$0xff]  ;;  %v2860_v46 = vcombine.low %v374_v34, %v378_v35  ;;  %v2869_v48 = vcombine.high %v382_v42, %v386_v43 }
  0x79   : > { %v2871_v49 = vcombine.high %v383_v44, %v387_v45  ;;  %v2870_v55 = vcombine.low %v383_v44, %v387_v45  ;;  %v446_v45 = vld [vmem:[#allocation2 + $0x740] sm:$0xff] }
  0x7b   : > { %2040 = vmatpush1.bf16.msra.mxu0 %v2804_v51  ;;  %2169 = vmatpush1.bf16.msra.mxu1 %v2806_v52  ;;  %v394_v51 = vld [vmem:[#allocation2 + $0x5a0] sm:$0xff]  ;;  %v391_v52 = vld [vmem:[#allocation2 + $0x588] sm:$0xff] }
  0x7c   : > { %2041 = vmatprep.subr.bf16.mxu0 %v2813_v53  ;;  %2170 = vmatprep.subr.bf16.mxu1 %v2815_v54  ;;  %v395_v53 = vld [vmem:[#allocation2 + $0x5a8] sm:$0xff]  ;;  %v2868_v54 = vcombine.low %v382_v42, %v386_v43  ;;  %v2877_v57 = vcombine.high %v390_v50, %v394_v51 }
  0x7d   : > { %v2879_v58 = vcombine.high %v391_v52, %v395_v53  ;;  %v2878_v0 = vcombine.low %v391_v52, %v395_v53  ;;  %v454_v53 = vld [vmem:[#allocation2 + $0x780] sm:$0xff] }
  0x7f   : > { %2042 = vmatpush1.bf16.msra.mxu0 %v2812_v60  ;;  %2171 = vmatpush1.bf16.msra.mxu1 %v2814_v61  ;;  %v402_v60 = vld [vmem:[#allocation2 + $0x5e0] sm:$0xff]  ;;  %v399_v61 = vld [vmem:[#allocation2 + $0x5c8] sm:$0xff] }
  0x80   : > { %2043 = vmatprep.subr.bf16.mxu0 %v2821_v62  ;;  %2172 = vmatprep.subr.bf16.mxu1 %v2823_v63  ;;  %v403_v62 = vld [vmem:[#allocation2 + $0x5e8] sm:$0xff]  ;;  %v2876_v63 = vcombine.low %v390_v50, %v394_v51  ;;  %v2885_v1 = vcombine.high %v398_v59, %v402_v60 }
  0x81   : > { %v2887_v2 = vcombine.high %v399_v61, %v403_v62  ;;  %v2886_v8 = vcombine.low %v399_v61, %v403_v62  ;;  %v462_v62 = vld [vmem:[#allocation2 + $0x7c0] sm:$0xff] }
  0x83   : > { %2044 = vmatpush1.bf16.msra.mxu0 %v2820_v4  ;;  %2173 = vmatpush1.bf16.msra.mxu1 %v2822_v5  ;;  %v410_v4 = vld [vmem:[#allocation2 + $0x620] sm:$0xff]  ;;  %v407_v5 = vld [vmem:[#allocation2 + $0x608] sm:$0xff] }
  0x84   : > { %2056 = vmatprep.subr.bf16.mxu0 %v2829_v6  ;;  %2185 = vmatprep.subr.bf16.mxu1 %v2831_v7  ;;  %v411_v6 = vld [vmem:[#allocation2 + $0x628] sm:$0xff]  ;;  %v2884_v7 = vcombine.low %v398_v59, %v402_v60  ;;  %v2893_v9 = vcombine.high %v406_v3, %v410_v4 }
  0x85   : > { %v2895_v11 = vcombine.high %v407_v5, %v411_v6  ;;  %v2894_v17 = vcombine.low %v407_v5, %v411_v6  ;;  %v470_v6 = vld [vmem:[#allocation2 + $0x800] sm:$0xff] }
  0x86   : > { %2046 = vmatmul.mubr.bf16.vlgmr.msra.gmra.mrb[0].mxu0 %v3297_v10  ;;  %2175 = vmatmul.mubr.bf16.vlgmr.msra.gmra.mrb[0].mxu1 %v3297_v10 }
  0x87   : > { %2057 = vmatpush1.bf16.msra.mxu0 %v2828_v13  ;;  %2186 = vmatpush1.bf16.msra.mxu1 %v2830_v14  ;;  %v418_v13 = vld [vmem:[#allocation2 + $0x660] sm:$0xff]  ;;  %v415_v14 = vld [vmem:[#allocation2 + $0x648] sm:$0xff] }
  0x88   : > { %2058 = vmatprep.subr.bf16.mxu0 %v2837_v15  ;;  %2187 = vmatprep.subr.bf16.mxu1 %v2839_v16  ;;  %v419_v15 = vld [vmem:[#allocation2 + $0x668] sm:$0xff]  ;;  %v2892_v16 = vcombine.low %v406_v3, %v410_v4  ;;  %v2901_v18 = vcombine.high %v414_v12, %v418_v13 }
  0x89   : > { %2088 = vmatprep.mubr.bf16.mxu0 %v3300_v19  ;;  %2217 = vmatprep.mubr.bf16.mxu1 %v3300_v19  ;;  %v2903_v20 = vcombine.high %v415_v14, %v419_v15  ;;  %v2902_v26 = vcombine.low %v415_v14, %v419_v15  ;;  %v478_v15 = vld [vmem:[#allocation2 + $0x840] sm:$0xff] }
  0x8b   : > { %2059 = vmatpush1.bf16.msra.mxu0 %v2836_v22  ;;  %2188 = vmatpush1.bf16.msra.mxu1 %v2838_v23  ;;  %v426_v22 = vld [vmem:[#allocation2 + $0x6a0] sm:$0xff]  ;;  %v423_v23 = vld [vmem:[#allocation2 + $0x688] sm:$0xff] }
  0x8c   : > { %2060 = vmatprep.subr.bf16.mxu0 %v2845_v24  ;;  %2189 = vmatprep.subr.bf16.mxu1 %v2847_v25  ;;  %v427_v24 = vld [vmem:[#allocation2 + $0x6a8] sm:$0xff]  ;;  %v2900_v25 = vcombine.low %v414_v12, %v418_v13  ;;  %v2909_v27 = vcombine.high %v422_v21, %v426_v22 }
  0x8d   : > { %v2911_v28 = vcombine.high %v423_v23, %v427_v24  ;;  %v2910_v34 = vcombine.low %v423_v23, %v427_v24 }
  0x8f   : > { %2061 = vmatpush1.bf16.msra.mxu0 %v2844_v30  ;;  %2190 = vmatpush1.bf16.msra.mxu1 %v2846_v31  ;;  %v434_v30 = vld [vmem:[#allocation2 + $0x6e0] sm:$0xff]  ;;  %v431_v31 = vld [vmem:[#allocation2 + $0x6c8] sm:$0xff] }
  0x90   : > { %2062 = vmatprep.subr.bf16.mxu0 %v2853_v32  ;;  %2191 = vmatprep.subr.bf16.mxu1 %v2855_v33  ;;  %v435_v32 = vld [vmem:[#allocation2 + $0x6e8] sm:$0xff]  ;;  %v2908_v33 = vcombine.low %v422_v21, %v426_v22  ;;  %v2917_v35 = vcombine.high %v430_v29, %v434_v30 }
  0x91   : > { %v2919_v36 = vcombine.high %v431_v31, %v435_v32  ;;  %v2918_v42 = vcombine.low %v431_v31, %v435_v32 }
  0x93   : > { %2063 = vmatpush1.bf16.msra.mxu0 %v2852_v38  ;;  %2192 = vmatpush1.bf16.msra.mxu1 %v2854_v39  ;;  %v442_v38 = vld [vmem:[#allocation2 + $0x720] sm:$0xff]  ;;  %v439_v39 = vld [vmem:[#allocation2 + $0x708] sm:$0xff] }
  0x94   : > { %2064 = vmatprep.subr.bf16.mxu0 %v2861_v40  ;;  %2193 = vmatprep.subr.bf16.mxu1 %v2863_v41  ;;  %v443_v40 = vld [vmem:[#allocation2 + $0x728] sm:$0xff]  ;;  %v2916_v41 = vcombine.low %v430_v29, %v434_v30  ;;  %v2925_v43 = vcombine.high %v438_v37, %v442_v38 }
  0x95   : > { %v2927_v44 = vcombine.high %v439_v39, %v443_v40  ;;  %v2926_v50 = vcombine.low %v439_v39, %v443_v40 }
  0x97   : > { %2065 = vmatpush1.bf16.msra.mxu0 %v2860_v46  ;;  %2194 = vmatpush1.bf16.msra.mxu1 %v2862_v47  ;;  %v450_v46 = vld [vmem:[#allocation2 + $0x760] sm:$0xff]  ;;  %v447_v47 = vld [vmem:[#allocation2 + $0x748] sm:$0xff] }
  0x98   : > { %2066 = vmatprep.subr.bf16.mxu0 %v2869_v48  ;;  %2195 = vmatprep.subr.bf16.mxu1 %v2871_v49  ;;  %v451_v48 = vld [vmem:[#allocation2 + $0x768] sm:$0xff]  ;;  %v2924_v49 = vcombine.low %v438_v37, %v442_v38  ;;  %v2933_v51 = vcombine.high %v446_v45, %v450_v46 }
  0x99   : > { %v2935_v52 = vcombine.high %v447_v47, %v451_v48  ;;  %v2934_v59 = vcombine.low %v447_v47, %v451_v48  ;;  %v499_v37 = vld [vmem:[#allocation2 + $0x8e8] sm:$0xff] }
  0x9b   : > { %2067 = vmatpush1.bf16.msra.mxu0 %v2868_v54  ;;  %2196 = vmatpush1.bf16.msra.mxu1 %v2870_v55  ;;  %v458_v54 = vld [vmem:[#allocation2 + $0x7a0] sm:$0xff]  ;;  %v455_v55 = vld [vmem:[#allocation2 + $0x788] sm:$0xff] }
  0x9c   : > { %2068 = vmatprep.subr.bf16.mxu0 %v2877_v57  ;;  %2197 = vmatprep.subr.bf16.mxu1 %v2879_v58  ;;  %v459_v57 = vld [vmem:[#allocation2 + $0x7a8] sm:$0xff]  ;;  %v2932_v58 = vcombine.low %v446_v45, %v450_v46  ;;  %v2941_v60 = vcombine.high %v454_v53, %v458_v54  ;;  %v221_v45 = vld [vmem:[#allocation2 + $0x38] sm:$0xff] }
  0x9d   : > { %v2943_v61 = vcombine.high %v455_v55, %v459_v57  ;;  %v2942_v3 = vcombine.low %v455_v55, %v459_v57 }
  0x9f   : > { %2069 = vmatpush1.bf16.msra.mxu0 %v2876_v63  ;;  %2198 = vmatpush1.bf16.msra.mxu1 %v2878_v0  ;;  %v466_v63 = vld [vmem:[#allocation2 + $0x7e0] sm:$0xff]  ;;  %v463_v0 = vld [vmem:[#allocation2 + $0x7c8] sm:$0xff] }
  0xa0   : > { %2070 = vmatprep.subr.bf16.mxu0 %v2885_v1  ;;  %2199 = vmatprep.subr.bf16.mxu1 %v2887_v2  ;;  %v467_v1 = vld [vmem:[#allocation2 + $0x7e8] sm:$0xff]  ;;  %v2940_v2 = vcombine.low %v454_v53, %v458_v54  ;;  %v2949_v4 = vcombine.high %v462_v62, %v466_v63  ;;  %v225_v53 = vld [vmem:[#allocation2 + $0x58] sm:$0xff] }
  0xa1   : > { %v2951_v5 = vcombine.high %v463_v0, %v467_v1  ;;  %v2950_v12 = vcombine.low %v463_v0, %v467_v1  ;;  %v229_v54 = vld [vmem:[#allocation2 + $0x78] sm:$0xff] }
  0xa2   : > { %v2714_v1 = vcombine.low %v225_v53, %v229_v54 }
  0xa3   : > { %2071 = vmatpush1.bf16.msra.mxu0 %v2884_v7  ;;  %2200 = vmatpush1.bf16.msra.mxu1 %v2886_v8  ;;  %v474_v7 = vld [vmem:[#allocation2 + $0x820] sm:$0xff]  ;;  %v471_v8 = vld [vmem:[#allocation2 + $0x808] sm:$0xff] }
  0xa4   : > { %2072 = vmatprep.subr.bf16.mxu0 %v2893_v9  ;;  %2201 = vmatprep.subr.bf16.mxu1 %v2895_v11  ;;  %v475_v9 = vld [vmem:[#allocation2 + $0x828] sm:$0xff]  ;;  %v2948_v11 = vcombine.low %v462_v62, %v466_v63  ;;  %v2957_v13 = vcombine.high %v470_v6, %v474_v7  ;;  %v2956_v21 = vcombine.low %v470_v6, %v474_v7  ;;  %v233_v62 = vld [vmem:[#allocation2 + $0x98] sm:$0xff] }
  0xa5   : > { %v2959_v14 = vcombine.high %v471_v8, %v475_v9  ;;  %v2958_v22 = vcombine.low %v471_v8, %v475_v9  ;;  %v237_v63 = vld [vmem:[#allocation2 + $0xb8] sm:$0xff] }
  0xa6   : > { %v241_v6 = vld [vmem:[#allocation2 + $0xd8] sm:$0xff]  ;;  %v2722_v9 = vcombine.low %v233_v62, %v237_v63 }
  0xa7   : > { %2073 = vmatpush1.bf16.msra.mxu0 %v2892_v16  ;;  %2202 = vmatpush1.bf16.msra.mxu1 %v2894_v17  ;;  %v482_v16 = vld [vmem:[#allocation2 + $0x860] sm:$0xff]  ;;  %v3307_v17 = vld [vmem:[%s3289_s20 + $0x8] ss:$20 sps:$4 sm:$0xff]  }
  0xa8   : > { %2074 = vmatprep.subr.bf16.mxu0 %v2901_v18  ;;  %2203 = vmatprep.subr.bf16.mxu1 %v2903_v20  ;;  %v479_v18 = vld [vmem:[#allocation2 + $0x848] sm:$0xff]  ;;  %v2965_v23 = vcombine.high %v478_v15, %v482_v16  ;;  %v2964_v29 = vcombine.low %v478_v15, %v482_v16  ;;  %v245_v7 = vld [vmem:[#allocation2 + $0xf8] sm:$0xff] }
  0xa9   : > { %v483_v20 = vld [vmem:[#allocation2 + $0x868] sm:$0xff]  ;;  %v249_v15 = vld [vmem:[#allocation2 + $0x118] sm:$0xff] }
  0xaa   : > { %v2967_v24 = vcombine.high %v479_v18, %v483_v20  ;;  %v2966_v30 = vcombine.low %v479_v18, %v483_v20  ;;  %v253_v16 = vld [vmem:[#allocation2 + $0x138] sm:$0xff]  ;;  %v2730_v20 = vcombine.low %v241_v6, %v245_v7 }
  0xab   : > { %2075 = vmatpush1.bf16.msra.mxu0 %v2900_v25  ;;  %2204 = vmatpush1.bf16.msra.mxu1 %v2902_v26  ;;  %v486_v25 = vld [vmem:[#allocation2 + $0x880] sm:$0xff] }
  0xac   : > { %2076 = vmatprep.subr.bf16.mxu0 %v2909_v27  ;;  %2205 = vmatprep.subr.bf16.mxu1 %v2911_v28  ;;  %v490_v26 = vld [vmem:[#allocation2 + $0x8a0] sm:$0xff]  ;;  %v487_v27 = vld [vmem:[#allocation2 + $0x888] sm:$0xff] }
  0xad   : > { %v491_v28 = vld [vmem:[#allocation2 + $0x8a8] sm:$0xff]  ;;  %v2973_v31 = vcombine.high %v486_v25, %v490_v26  ;;  %v2972_v38 = vcombine.low %v486_v25, %v490_v26  ;;  %v261_v25 = vld [vmem:[#allocation2 + $0x178] sm:$0xff] }
  0xae   : > { %v2975_v32 = vcombine.high %v487_v27, %v491_v28  ;;  %v2974_v39 = vcombine.low %v487_v27, %v491_v28  ;;  %v2738_v27 = vcombine.low %v249_v15, %v253_v16 }
  0xaf   : > { %2077 = vmatpush1.bf16.msra.mxu0 %v2908_v33  ;;  %2206 = vmatpush1.bf16.msra.mxu1 %v2910_v34  ;;  %v494_v33 = vld [vmem:[#allocation2 + $0x8c0] sm:$0xff] }
  0xb0   : > { %2078 = vmatprep.subr.bf16.mxu0 %v2917_v35  ;;  %2207 = vmatprep.subr.bf16.mxu1 %v2919_v36  ;;  %v498_v34 = vld [vmem:[#allocation2 + $0x8e0] sm:$0xff]  ;;  %v3175_v35 = vmov 0   ;;  %v495_v36 = vld [vmem:[#allocation2 + $0x8c8] sm:$0xff] }
  0xb1   : > { %v2981_v40 = vcombine.high %v494_v33, %v498_v34  ;;  %v2980_v46 = vcombine.low %v494_v33, %v498_v34  ;;  %v2982_v47 = vcombine.low %v495_v36, %v499_v37  ;;  %v269_v33 = vld [vmem:[#allocation2 + $0x1b8] sm:$0xff] }
  0xb3   : > { %2079 = vmatpush1.bf16.msra.mxu0 %v2916_v41  ;;  %2208 = vmatpush1.bf16.msra.mxu1 %v2918_v42  ;;  %v2983_v41 = vcombine.high %v495_v36, %v499_v37  ;;  %v216_v42 = vld [vmem:[#allocation2 + $0x10] sm:$0xff] }
  0xb4   : > { %2080 = vmatprep.subr.bf16.mxu0 %v2925_v43  ;;  %2209 = vmatprep.subr.bf16.mxu1 %v2927_v44  ;;  %v220_v43 = vld [vmem:[#allocation2 + $0x30] sm:$0xff]  ;;  %v217_v44 = vld [vmem:[#allocation2 + $0x18] sm:$0xff] }
  0xb5   : > { %v2705_v48 = vcombine.high %v216_v42, %v220_v43  ;;  %v2704_v55 = vcombine.low %v216_v42, %v220_v43  ;;  %v2706_v57 = vcombine.low %v217_v44, %v221_v45  ;;  %v277_v42 = vld [vmem:[#allocation2 + $0x1f8] sm:$0xff] }
  0xb7   : > { %2081 = vmatpush1.bf16.msra.mxu0 %v2924_v49  ;;  %2210 = vmatpush1.bf16.msra.mxu1 %v2926_v50  ;;  %v2707_v49 = vcombine.high %v217_v44, %v221_v45  ;;  %v224_v50 = vld [vmem:[#allocation2 + $0x50] sm:$0xff] }
  0xb8   : > { %2082 = vmatprep.subr.bf16.mxu0 %v2933_v51  ;;  %2211 = vmatprep.subr.bf16.mxu1 %v2935_v52  ;;  %v228_v51 = vld [vmem:[#allocation2 + $0x70] sm:$0xff] }
  0xb9   : > { %v3314_v52 = vld [vmem:[%s3289_s20 + $0x10] ss:$20 sps:$4 sm:$0xff]   ;;  %v2712_v0 = vcombine.low %v224_v50, %v228_v51 }
  0xbb   : > { %2083 = vmatpush1.bf16.msra.mxu0 %v2932_v58  ;;  %2212 = vmatpush1.bf16.msra.mxu1 %v2934_v59  ;;  %v2713_v58 = vcombine.high %v224_v50, %v228_v51  ;;  %v2715_v59 = vcombine.high %v225_v53, %v229_v54  ;;  %v285_v50 = vld [vmem:[#allocation2 + $0x238] sm:$0xff] }
  0xbc   : > { %2084 = vmatprep.subr.bf16.mxu0 %v2941_v60  ;;  %2213 = vmatprep.subr.bf16.mxu1 %v2943_v61  ;;  %v232_v60 = vld [vmem:[#allocation2 + $0x90] sm:$0xff] }
  0xbd   : > { %v236_v61 = vld [vmem:[#allocation2 + $0xb0] sm:$0xff] }
  0xbe   : > { %v2720_v8 = vcombine.low %v232_v60, %v236_v61 }
  0xbf   : > { %2085 = vmatpush1.bf16.msra.mxu0 %v2940_v2  ;;  %2214 = vmatpush1.bf16.msra.mxu1 %v2942_v3  ;;  %v2721_v2 = vcombine.high %v232_v60, %v236_v61  ;;  %v2723_v3 = vcombine.high %v233_v62, %v237_v63  ;;  %v293_v60 = vld [vmem:[#allocation2 + $0x278] sm:$0xff] }
  0xc0   : > { %2086 = vmatprep.subr.bf16.mxu0 %v2949_v4  ;;  %2215 = vmatprep.subr.bf16.mxu1 %v2951_v5  ;;  %v240_v4 = vld [vmem:[#allocation2 + $0xd0] sm:$0xff] }
  0xc1   : > { %v244_v5 = vld [vmem:[#allocation2 + $0xf0] sm:$0xff] }
  0xc2   : > { %v2728_v18 = vcombine.low %v240_v4, %v244_v5 }
  0xc3   : > { %2087 = vmatpush1.bf16.msra.mxu0 %v2948_v11  ;;  %2216 = vmatpush1.bf16.msra.mxu1 %v2950_v12  ;;  %v2729_v11 = vcombine.high %v240_v4, %v244_v5  ;;  %v2731_v12 = vcombine.high %v241_v6, %v245_v7  ;;  %v301_v4 = vld [vmem:[#allocation2 + $0x2b8] sm:$0xff] }
  0xc4   : > { %2099 = vmatprep.subr.bf16.mxu0 %v2957_v13  ;;  %2228 = vmatprep.subr.bf16.mxu1 %v2959_v14  ;;  %v248_v13 = vld [vmem:[#allocation2 + $0x110] sm:$0xff] }
  0xc5   : > { %v252_v14 = vld [vmem:[#allocation2 + $0x130] sm:$0xff] }
  0xc6   : > { %2089 = vmatmul.mubr.bf16.vlgmr.msra.gmra.mrb[0].mxu0 %v3307_v17  ;;  %2218 = vmatmul.mubr.bf16.vlgmr.msra.gmra.mrb[0].mxu1 %v3307_v17  ;;  %v2736_v26 = vcombine.low %v248_v13, %v252_v14 }
  0xc7   : > { %2100 = vmatpush1.bf16.msra.mxu0 %v2956_v21  ;;  %2229 = vmatpush1.bf16.msra.mxu1 %v2958_v22  ;;  %v2737_v21 = vcombine.high %v248_v13, %v252_v14  ;;  %v256_v22 = vld [vmem:[#allocation2 + $0x150] sm:$0xff]  ;;  %v309_v13 = vld [vmem:[#allocation2 + $0x2f8] sm:$0xff] }
  0xc8   : > { %2101 = vmatprep.subr.bf16.mxu0 %v2965_v23  ;;  %2230 = vmatprep.subr.bf16.mxu1 %v2967_v24  ;;  %v260_v23 = vld [vmem:[#allocation2 + $0x170] sm:$0xff]  ;;  %v257_v24 = vld [vmem:[#allocation2 + $0x158] sm:$0xff] }
  0xc9   : > { %2131 = vmatprep.mubr.bf16.mxu0 %v3175_v35  ;;  %2260 = vmatprep.mubr.bf16.mxu1 %v3175_v35  ;;  %v2745_v28 = vcombine.high %v256_v22, %v260_v23  ;;  %v2744_v34 = vcombine.low %v256_v22, %v260_v23  ;;  %v2746_v36 = vcombine.low %v257_v24, %v261_v25  ;;  %v317_v22 = vld [vmem:[#allocation2 + $0x338] sm:$0xff] }
  0xcb   : > { %2102 = vmatpush1.bf16.msra.mxu0 %v2964_v29  ;;  %2231 = vmatpush1.bf16.msra.mxu1 %v2966_v30  ;;  %v2747_v29 = vcombine.high %v257_v24, %v261_v25  ;;  %v264_v30 = vld [vmem:[#allocation2 + $0x190] sm:$0xff] }
  0xcc   : > { %2103 = vmatprep.subr.bf16.mxu0 %v2973_v31  ;;  %2232 = vmatprep.subr.bf16.mxu1 %v2975_v32  ;;  %v268_v31 = vld [vmem:[#allocation2 + $0x1b0] sm:$0xff]  ;;  %v265_v32 = vld [vmem:[#allocation2 + $0x198] sm:$0xff] }
  0xcd   : > { %v2753_v37 = vcombine.high %v264_v30, %v268_v31  ;;  %v2752_v43 = vcombine.low %v264_v30, %v268_v31  ;;  %v2754_v44 = vcombine.low %v265_v32, %v269_v33  ;;  %v325_v30 = vld [vmem:[#allocation2 + $0x378] sm:$0xff] }
  0xcf   : > { %2104 = vmatpush1.bf16.msra.mxu0 %v2972_v38  ;;  %2233 = vmatpush1.bf16.msra.mxu1 %v2974_v39  ;;  %v2755_v38 = vcombine.high %v265_v32, %v269_v33  ;;  %v272_v39 = vld [vmem:[#allocation2 + $0x1d0] sm:$0xff] }
  0xd0   : > { %2105 = vmatprep.subr.bf16.mxu0 %v2981_v40  ;;  %2234 = vmatprep.subr.bf16.mxu1 %v2983_v41  ;;  %v276_v40 = vld [vmem:[#allocation2 + $0x1f0] sm:$0xff]  ;;  %v273_v41 = vld [vmem:[#allocation2 + $0x1d8] sm:$0xff] }
  0xd1   : > { %v2761_v45 = vcombine.high %v272_v39, %v276_v40  ;;  %v2760_v51 = vcombine.low %v272_v39, %v276_v40  ;;  %v2762_v53 = vcombine.low %v273_v41, %v277_v42  ;;  %v333_v39 = vld [vmem:[#allocation2 + $0x3b8] sm:$0xff] }
  0xd3   : > { %2106 = vmatpush1.bf16.msra.mxu0 %v2980_v46  ;;  %2235 = vmatpush1.bf16.msra.mxu1 %v2982_v47  ;;  %v2763_v46 = vcombine.high %v273_v41, %v277_v42  ;;  %v280_v47 = vld [vmem:[#allocation2 + $0x210] sm:$0xff] }
  0xd4   : > { %2271 = vmatprep.subr.bf16.mxu0 %v2705_v48  ;;  %2400 = vmatprep.subr.bf16.mxu1 %v2707_v49  ;;  %v284_v48 = vld [vmem:[#allocation2 + $0x230] sm:$0xff]  ;;  %v281_v49 = vld [vmem:[#allocation2 + $0x218] sm:$0xff] }
  0xd5   : > { %v2769_v54 = vcombine.high %v280_v47, %v284_v48  ;;  %v2768_v61 = vcombine.low %v280_v47, %v284_v48  ;;  %v2770_v62 = vcombine.low %v281_v49, %v285_v50  ;;  %v341_v47 = vld [vmem:[#allocation2 + $0x3f8] sm:$0xff] }
  0xd6   : > { %2988 = vmatmul.mubr.msk.bf16.vlgmr.msra.gmra.mrb[0].mxu0 %vm2009_vm0, %v3314_v52  ;;  %2989 = vmatmul.mubr.msk.bf16.vlgmr.msra.gmra.mrb[0].mxu1 %vm2009_vm0, %v3314_v52 }
  0xd7   : > { %2272 = vmatpush1.bf16.msra.mxu0 %v2704_v55  ;;  %2401 = vmatpush1.bf16.msra.mxu1 %v2706_v57  ;;  %v2771_v55 = vcombine.high %v281_v49, %v285_v50  ;;  %v288_v57 = vld [vmem:[#allocation2 + $0x250] sm:$0xff] }
  0xd8   : > { %2273 = vmatprep.subr.bf16.mxu0 %v2713_v58  ;;  %2402 = vmatprep.subr.bf16.mxu1 %v2715_v59  ;;  %v292_v58 = vld [vmem:[#allocation2 + $0x270] sm:$0xff]  ;;  %v289_v59 = vld [vmem:[#allocation2 + $0x258] sm:$0xff] }
  0xd9   : > { %2303 = vmatprep.mubr.bf16.mxu0 %v3292_v56  ;;  %2432 = vmatprep.mubr.bf16.mxu1 %v3292_v56  ;;  %v2739_v56 = vcombine.high %v249_v15, %v253_v16  ;;  %v2777_v63 = vcombine.high %v288_v57, %v292_v58  ;;  %v2776_v5 = vcombine.low %v288_v57, %v292_v58  ;;  %v349_v57 = vld [vmem:[#allocation2 + $0x438] sm:$0xff] }
  0xda   : > { %v2778_v6 = vcombine.low %v289_v59, %v293_v60 }
  0xdb   : > { %2274 = vmatpush1.bf16.msra.mxu0 %v2712_v0  ;;  %2403 = vmatpush1.bf16.msra.mxu1 %v2714_v1  ;;  %v2779_v0 = vcombine.high %v289_v59, %v293_v60  ;;  %v296_v1 = vld [vmem:[#allocation2 + $0x290] sm:$0xff] }
  0xdc   : > { %2275 = vmatprep.subr.bf16.mxu0 %v2721_v2  ;;  %2404 = vmatprep.subr.bf16.mxu1 %v2723_v3  ;;  %v300_v2 = vld [vmem:[#allocation2 + $0x2b0] sm:$0xff]  ;;  %v297_v3 = vld [vmem:[#allocation2 + $0x298] sm:$0xff] }
  0xdd   : > { %v2785_v7 = vcombine.high %v296_v1, %v300_v2  ;;  %v2784_v14 = vcombine.low %v296_v1, %v300_v2  ;;  %v2786_v15 = vcombine.low %v297_v3, %v301_v4  ;;  %v357_v1 = vld [vmem:[#allocation2 + $0x478] sm:$0xff] }
  0xdf   : > { %2276 = vmatpush1.bf16.msra.mxu0 %v2720_v8  ;;  %2405 = vmatpush1.bf16.msra.mxu1 %v2722_v9  ;;  %v2787_v8 = vcombine.high %v297_v3, %v301_v4  ;;  %v304_v9 = vld [vmem:[#allocation2 + $0x2d0] sm:$0xff] }
  0xe0   : > { %2277 = vmatprep.subr.bf16.mxu0 %v2729_v11  ;;  %2406 = vmatprep.subr.bf16.mxu1 %v2731_v12  ;;  %v308_v11 = vld [vmem:[#allocation2 + $0x2f0] sm:$0xff]  ;;  %v305_v12 = vld [vmem:[#allocation2 + $0x2d8] sm:$0xff] }
  0xe1   : > { %v2793_v16 = vcombine.high %v304_v9, %v308_v11  ;;  %v2792_v23 = vcombine.low %v304_v9, %v308_v11  ;;  %v2794_v24 = vcombine.low %v305_v12, %v309_v13  ;;  %v365_v9 = vld [vmem:[#allocation2 + $0x4b8] sm:$0xff] }
  0xe3   : > { %2278 = vmatpush1.bf16.msra.mxu0 %v2728_v18  ;;  %2407 = vmatpush1.bf16.msra.mxu1 %v2730_v20  ;;  %v2795_v18 = vcombine.high %v305_v12, %v309_v13  ;;  %v312_v20 = vld [vmem:[#allocation2 + $0x310] sm:$0xff] }
  0xe4   : > { %2279 = vmatprep.subr.bf16.mxu0 %v2737_v21  ;;  %2408 = vmatprep.subr.bf16.mxu1 %v2739_v56  ;;  %v316_v21 = vld [vmem:[#allocation2 + $0x330] sm:$0xff]  ;;  %v313_v56 = vld [vmem:[#allocation2 + $0x318] sm:$0xff] }
  0xe5   : > { %v2801_v25 = vcombine.high %v312_v20, %v316_v21  ;;  %v2800_v31 = vcombine.low %v312_v20, %v316_v21  ;;  %v2802_v32 = vcombine.low %v313_v56, %v317_v22  ;;  %v373_v20 = vld [vmem:[#allocation2 + $0x4f8] sm:$0xff] }
  0xe7   : > { %2280 = vmatpush1.bf16.msra.mxu0 %v2736_v26  ;;  %2409 = vmatpush1.bf16.msra.mxu1 %v2738_v27  ;;  %v2803_v26 = vcombine.high %v313_v56, %v317_v22  ;;  %v320_v27 = vld [vmem:[#allocation2 + $0x350] sm:$0xff] }
  0xe8   : > { %2281 = vmatprep.subr.bf16.mxu0 %v2745_v28  ;;  %2410 = vmatprep.subr.bf16.mxu1 %v2747_v29  ;;  %v324_v28 = vld [vmem:[#allocation2 + $0x370] sm:$0xff]  ;;  %v321_v29 = vld [vmem:[#allocation2 + $0x358] sm:$0xff] }
  0xe9   : > { %v2809_v33 = vcombine.high %v320_v27, %v324_v28  ;;  %v2808_v40 = vcombine.low %v320_v27, %v324_v28  ;;  %v2810_v41 = vcombine.low %v321_v29, %v325_v30 }
  0xeb   : > { %2282 = vmatpush1.bf16.msra.mxu0 %v2744_v34  ;;  %2411 = vmatpush1.bf16.msra.mxu1 %v2746_v36  ;;  %v2811_v34 = vcombine.high %v321_v29, %v325_v30  ;;  %v328_v36 = vld [vmem:[#allocation2 + $0x390] sm:$0xff] }
  0xec   : > { %2283 = vmatprep.subr.bf16.mxu0 %v2753_v37  ;;  %2412 = vmatprep.subr.bf16.mxu1 %v2755_v38  ;;  %v332_v37 = vld [vmem:[#allocation2 + $0x3b0] sm:$0xff]  ;;  %v329_v38 = vld [vmem:[#allocation2 + $0x398] sm:$0xff] }
  0xed   : > { %v2817_v42 = vcombine.high %v328_v36, %v332_v37  ;;  %v2816_v48 = vcombine.low %v328_v36, %v332_v37  ;;  %v2818_v49 = vcombine.low %v329_v38, %v333_v39  ;;  %v384_v30 = vld [vmem:[#allocation2 + $0x550] sm:$0xff] }
  0xef   : > { %2284 = vmatpush1.bf16.msra.mxu0 %v2752_v43  ;;  %2413 = vmatpush1.bf16.msra.mxu1 %v2754_v44  ;;  %v2819_v43 = vcombine.high %v329_v38, %v333_v39  ;;  %v336_v44 = vld [vmem:[#allocation2 + $0x3d0] sm:$0xff] }
  0xf0   : > { %2285 = vmatprep.subr.bf16.mxu0 %v2761_v45  ;;  %2414 = vmatprep.subr.bf16.mxu1 %v2763_v46  ;;  %v340_v45 = vld [vmem:[#allocation2 + $0x3f0] sm:$0xff]  ;;  %v337_v46 = vld [vmem:[#allocation2 + $0x3d8] sm:$0xff] }
  0xf1   : > { %v2825_v50 = vcombine.high %v336_v44, %v340_v45  ;;  %v2824_v58 = vcombine.low %v336_v44, %v340_v45  ;;  %v2826_v59 = vcombine.low %v337_v46, %v341_v47  ;;  %v392_v39 = vld [vmem:[#allocation2 + $0x590] sm:$0xff] }
  0xf3   : > { %2286 = vmatpush1.bf16.msra.mxu0 %v2760_v51  ;;  %2415 = vmatpush1.bf16.msra.mxu1 %v2762_v53  ;;  %v2827_v51 = vcombine.high %v337_v46, %v341_v47  ;;  %v344_v53 = vld [vmem:[#allocation2 + $0x410] sm:$0xff] }
  0xf4   : > { %2287 = vmatprep.subr.bf16.mxu0 %v2769_v54  ;;  %2416 = vmatprep.subr.bf16.mxu1 %v2771_v55  ;;  %v348_v54 = vld [vmem:[#allocation2 + $0x430] sm:$0xff]  ;;  %v345_v55 = vld [vmem:[#allocation2 + $0x418] sm:$0xff] }
  0xf5   : > { %v2833_v60 = vcombine.high %v344_v53, %v348_v54  ;;  %v2832_v2 = vcombine.low %v344_v53, %v348_v54  ;;  %v2834_v3 = vcombine.low %v345_v55, %v349_v57  ;;  %v400_v47 = vld [vmem:[#allocation2 + $0x5d0] sm:$0xff] }
  0xf7   : > { %2288 = vmatpush1.bf16.msra.mxu0 %v2768_v61  ;;  %2417 = vmatpush1.bf16.msra.mxu1 %v2770_v62  ;;  %v2835_v61 = vcombine.high %v345_v55, %v349_v57  ;;  %v352_v62 = vld [vmem:[#allocation2 + $0x450] sm:$0xff] }
  0xf8   : > { %2289 = vmatprep.subr.bf16.mxu0 %v2777_v63  ;;  %2418 = vmatprep.subr.bf16.mxu1 %v2779_v0  ;;  %v356_v63 = vld [vmem:[#allocation2 + $0x470] sm:$0xff]  ;;  %v353_v0 = vld [vmem:[#allocation2 + $0x458] sm:$0xff] }
  0xf9   : > { %v2841_v4 = vcombine.high %v352_v62, %v356_v63  ;;  %v2840_v11 = vcombine.low %v352_v62, %v356_v63  ;;  %v2842_v12 = vcombine.low %v353_v0, %v357_v1  ;;  %v408_v57 = vld [vmem:[#allocation2 + $0x610] sm:$0xff] }
  0xfb   : > { %2290 = vmatpush1.bf16.msra.mxu0 %v2776_v5  ;;  %2419 = vmatpush1.bf16.msra.mxu1 %v2778_v6  ;;  %v2843_v5 = vcombine.high %v353_v0, %v357_v1  ;;  %v360_v6 = vld [vmem:[#allocation2 + $0x490] sm:$0xff] }
  0xfc   : > { %2291 = vmatprep.subr.bf16.mxu0 %v2785_v7  ;;  %2420 = vmatprep.subr.bf16.mxu1 %v2787_v8  ;;  %v364_v7 = vld [vmem:[#allocation2 + $0x4b0] sm:$0xff]  ;;  %v361_v8 = vld [vmem:[#allocation2 + $0x498] sm:$0xff] }
  0xfd   : > { %v2849_v13 = vcombine.high %v360_v6, %v364_v7  ;;  %v2848_v21 = vcombine.low %v360_v6, %v364_v7  ;;  %v416_v1 = vld [vmem:[#allocation2 + $0x650] sm:$0xff] }
  0xff   : > { %2292 = vmatpush1.bf16.msra.mxu0 %v2784_v14  ;;  %2421 = vmatpush1.bf16.msra.mxu1 %v2786_v15  ;;  %v2851_v14 = vcombine.high %v361_v8, %v365_v9  ;;  %v368_v15 = vld [vmem:[#allocation2 + $0x4d0] sm:$0xff] }
 0x100   : > { %2293 = vmatprep.subr.bf16.mxu0 %v2793_v16  ;;  %2422 = vmatprep.subr.bf16.mxu1 %v2795_v18  ;;  %v372_v16 = vld [vmem:[#allocation2 + $0x4f0] sm:$0xff]  ;;  %v369_v18 = vld [vmem:[#allocation2 + $0x4d8] sm:$0xff] }
 0x101   : > { %v2857_v56 = vcombine.high %v368_v15, %v372_v16  ;;  %v2859_v22 = vcombine.high %v369_v18, %v373_v20  ;;  %v2856_v27 = vcombine.low %v368_v15, %v372_v16  ;;  %v2858_v28 = vcombine.low %v369_v18, %v373_v20  ;;  %v432_v20 = vld [vmem:[#allocation2 + $0x6d0] sm:$0xff] }
 0x103   : > { %2294 = vmatpush1.bf16.msra.mxu0 %v2792_v23  ;;  %2423 = vmatpush1.bf16.msra.mxu1 %v2794_v24  ;;  %v376_v23 = vld [vmem:[#allocation2 + $0x510] sm:$0xff] }
 0x104   : > { %2295 = vmatprep.subr.bf16.mxu0 %v2801_v25  ;;  %2424 = vmatprep.subr.bf16.mxu1 %v2803_v26  ;;  %v380_v24 = vld [vmem:[#allocation2 + $0x530] sm:$0xff]  ;;  %v377_v25 = vld [vmem:[#allocation2 + $0x518] sm:$0xff] }
 0x105   : > { %v381_v26 = vld [vmem:[#allocation2 + $0x538] sm:$0xff]  ;;  %v2865_v29 = vcombine.high %v376_v23, %v380_v24 }
 0x106   : > { %v2866_v36 = vcombine.low %v377_v25, %v381_v26 }
 0x107   : > { %2296 = vmatpush1.bf16.msra.mxu0 %v2800_v31  ;;  %2425 = vmatpush1.bf16.msra.mxu1 %v2802_v32  ;;  %v388_v31 = vld [vmem:[#allocation2 + $0x570] sm:$0xff]  ;;  %v385_v32 = vld [vmem:[#allocation2 + $0x558] sm:$0xff] }
 0x108   : > { %2297 = vmatprep.subr.bf16.mxu0 %v2809_v33  ;;  %2426 = vmatprep.subr.bf16.mxu1 %v2811_v34  ;;  %v389_v33 = vld [vmem:[#allocation2 + $0x578] sm:$0xff]  ;;  %v2864_v34 = vcombine.low %v376_v23, %v380_v24  ;;  %v2873_v37 = vcombine.high %v384_v30, %v388_v31 }
 0x109   : > { %v2875_v38 = vcombine.high %v385_v32, %v389_v33  ;;  %v2874_v44 = vcombine.low %v385_v32, %v389_v33  ;;  %v448_v33 = vld [vmem:[#allocation2 + $0x750] sm:$0xff] }
 0x10b   : > { %2298 = vmatpush1.bf16.msra.mxu0 %v2808_v40  ;;  %2427 = vmatpush1.bf16.msra.mxu1 %v2810_v41  ;;  %v396_v40 = vld [vmem:[#allocation2 + $0x5b0] sm:$0xff]  ;;  %v393_v41 = vld [vmem:[#allocation2 + $0x598] sm:$0xff] }
 0x10c   : > { %2299 = vmatprep.subr.bf16.mxu0 %v2817_v42  ;;  %2428 = vmatprep.subr.bf16.mxu1 %v2819_v43  ;;  %v397_v42 = vld [vmem:[#allocation2 + $0x5b8] sm:$0xff]  ;;  %v2872_v43 = vcombine.low %v384_v30, %v388_v31  ;;  %v2881_v45 = vcombine.high %v392_v39, %v396_v40 }
 0x10d   : > { %v2883_v46 = vcombine.high %v393_v41, %v397_v42  ;;  %v2882_v53 = vcombine.low %v393_v41, %v397_v42  ;;  %v456_v42 = vld [vmem:[#allocation2 + $0x790] sm:$0xff] }
 0x10f   : > { %2300 = vmatpush1.bf16.msra.mxu0 %v2816_v48  ;;  %2429 = vmatpush1.bf16.msra.mxu1 %v2818_v49  ;;  %v404_v48 = vld [vmem:[#allocation2 + $0x5f0] sm:$0xff]  ;;  %v401_v49 = vld [vmem:[#allocation2 + $0x5d8] sm:$0xff] }
 0x110   : > { %2301 = vmatprep.subr.bf16.mxu0 %v2825_v50  ;;  %2430 = vmatprep.subr.bf16.mxu1 %v2827_v51  ;;  %v405_v50 = vld [vmem:[#allocation2 + $0x5f8] sm:$0xff]  ;;  %v2880_v51 = vcombine.low %v392_v39, %v396_v40  ;;  %v2889_v54 = vcombine.high %v400_v47, %v404_v48 }
 0x111   : > { %v2891_v55 = vcombine.high %v401_v49, %v405_v50  ;;  %v2890_v62 = vcombine.low %v401_v49, %v405_v50  ;;  %v464_v50 = vld [vmem:[#allocation2 + $0x7d0] sm:$0xff] }
 0x113   : > { %2302 = vmatpush1.bf16.msra.mxu0 %v2824_v58  ;;  %2431 = vmatpush1.bf16.msra.mxu1 %v2826_v59  ;;  %v412_v58 = vld [vmem:[#allocation2 + $0x630] sm:$0xff]  ;;  %v409_v59 = vld [vmem:[#allocation2 + $0x618] sm:$0xff] }
 0x114   : > { %2314 = vmatprep.subr.bf16.mxu0 %v2833_v60  ;;  %2443 = vmatprep.subr.bf16.mxu1 %v2835_v61  ;;  %v413_v60 = vld [vmem:[#allocation2 + $0x638] sm:$0xff]  ;;  %v2888_v61 = vcombine.low %v400_v47, %v404_v48  ;;  %v2897_v63 = vcombine.high %v408_v57, %v412_v58 }
 0x115   : > { %v2899_v0 = vcombine.high %v409_v59, %v413_v60  ;;  %v2898_v6 = vcombine.low %v409_v59, %v413_v60  ;;  %v472_v60 = vld [vmem:[#allocation2 + $0x810] sm:$0xff] }
 0x116   : > { %2304 = vmatmul.mubr.bf16.vlgmr.msra.gmra.mrb[4].mxu0 %v3297_v10  ;;  %2433 = vmatmul.mubr.bf16.vlgmr.msra.gmra.mrb[4].mxu1 %v3297_v10  ;;  %v2850_v10 = vcombine.low %v361_v8, %v365_v9  ;;  %v424_v9 = vld [vmem:[#allocation2 + $0x690] sm:$0xff] }
 0x117   : > { %2315 = vmatpush1.bf16.msra.mxu0 %v2832_v2  ;;  %2444 = vmatpush1.bf16.msra.mxu1 %v2834_v3  ;;  %v420_v2 = vld [vmem:[#allocation2 + $0x670] sm:$0xff]  ;;  %v417_v3 = vld [vmem:[#allocation2 + $0x658] sm:$0xff] }
 0x118   : > { %2316 = vmatprep.subr.bf16.mxu0 %v2841_v4  ;;  %2445 = vmatprep.subr.bf16.mxu1 %v2843_v5  ;;  %v421_v4 = vld [vmem:[#allocation2 + $0x678] sm:$0xff]  ;;  %v2896_v5 = vcombine.low %v408_v57, %v412_v58  ;;  %v2905_v7 = vcombine.high %v416_v1, %v420_v2 }
 0x119   : > { %2346 = vmatprep.mubr.bf16.mxu0 %v3300_v19  ;;  %2475 = vmatprep.mubr.bf16.mxu1 %v3300_v19  ;;  %v2867_v19 = vcombine.high %v377_v25, %v381_v26  ;;  %v2907_v8 = vcombine.high %v417_v3, %v421_v4  ;;  %v2906_v15 = vcombine.low %v417_v3, %v421_v4  ;;  %v440_v26 = vld [vmem:[#allocation2 + $0x710] sm:$0xff] }
 0x11a   : > { %v480_v4 = vld [vmem:[#allocation2 + $0x850] sm:$0xff] }
 0x11b   : > { %2317 = vmatpush1.bf16.msra.mxu0 %v2840_v11  ;;  %2446 = vmatpush1.bf16.msra.mxu1 %v2842_v12  ;;  %v428_v11 = vld [vmem:[#allocation2 + $0x6b0] sm:$0xff]  ;;  %v425_v12 = vld [vmem:[#allocation2 + $0x698] sm:$0xff] }
 0x11c   : > { %2318 = vmatprep.subr.bf16.mxu0 %v2849_v13  ;;  %2447 = vmatprep.subr.bf16.mxu1 %v2851_v14  ;;  %v429_v13 = vld [vmem:[#allocation2 + $0x6b8] sm:$0xff]  ;;  %v2904_v14 = vcombine.low %v416_v1, %v420_v2  ;;  %v2913_v16 = vcombine.high %v424_v9, %v428_v11 }
 0x11d   : > { %v2915_v18 = vcombine.high %v425_v12, %v429_v13  ;;  %v2914_v23 = vcombine.low %v425_v12, %v429_v13  ;;  %v488_v13 = vld [vmem:[#allocation2 + $0x890] sm:$0xff] }
 0x11f   : > { %2319 = vmatpush1.bf16.msra.mxu0 %v2848_v21  ;;  %2448 = vmatpush1.bf16.msra.mxu1 %v2850_v10  ;;  %v436_v21 = vld [vmem:[#allocation2 + $0x6f0] sm:$0xff]  ;;  %v433_v10 = vld [vmem:[#allocation2 + $0x6d8] sm:$0xff] }
 0x120   : > { %2320 = vmatprep.subr.bf16.mxu0 %v2857_v56  ;;  %2449 = vmatprep.subr.bf16.mxu1 %v2859_v22  ;;  %v437_v56 = vld [vmem:[#allocation2 + $0x6f8] sm:$0xff]  ;;  %v2912_v22 = vcombine.low %v424_v9, %v428_v11  ;;  %v2921_v24 = vcombine.high %v432_v20, %v436_v21 }
 0x121   : > { %v2923_v25 = vcombine.high %v433_v10, %v437_v56  ;;  %v2922_v30 = vcombine.low %v433_v10, %v437_v56  ;;  %v496_v56 = vld [vmem:[#allocation2 + $0x8d0] sm:$0xff] }
 0x123   : > { %2321 = vmatpush1.bf16.msra.mxu0 %v2856_v27  ;;  %2450 = vmatpush1.bf16.msra.mxu1 %v2858_v28  ;;  %v444_v27 = vld [vmem:[#allocation2 + $0x730] sm:$0xff]  ;;  %v441_v28 = vld [vmem:[#allocation2 + $0x718] sm:$0xff] }
 0x124   : > { %2322 = vmatprep.subr.bf16.mxu0 %v2865_v29  ;;  %2451 = vmatprep.subr.bf16.mxu1 %v2867_v19  ;;  %v445_v29 = vld [vmem:[#allocation2 + $0x738] sm:$0xff]  ;;  %v2920_v19 = vcombine.low %v432_v20, %v436_v21  ;;  %v2929_v31 = vcombine.high %v440_v26, %v444_v27 }
 0x125   : > { %v2931_v32 = vcombine.high %v441_v28, %v445_v29  ;;  %v2930_v39 = vcombine.low %v441_v28, %v445_v29 }
 0x127   : > { %2323 = vmatpush1.bf16.msra.mxu0 %v2864_v34  ;;  %2452 = vmatpush1.bf16.msra.mxu1 %v2866_v36  ;;  %v452_v34 = vld [vmem:[#allocation2 + $0x770] sm:$0xff]  ;;  %v449_v36 = vld [vmem:[#allocation2 + $0x758] sm:$0xff] }
 0x128   : > { %2324 = vmatprep.subr.bf16.mxu0 %v2873_v37  ;;  %2453 = vmatprep.subr.bf16.mxu1 %v2875_v38  ;;  %v453_v37 = vld [vmem:[#allocation2 + $0x778] sm:$0xff]  ;;  %v2928_v38 = vcombine.low %v440_v26, %v444_v27  ;;  %v2937_v40 = vcombine.high %v448_v33, %v452_v34 }
 0x129   : > { %v2939_v41 = vcombine.high %v449_v36, %v453_v37  ;;  %v2938_v47 = vcombine.low %v449_v36, %v453_v37 }
 0x12b   : > { %2325 = vmatpush1.bf16.msra.mxu0 %v2872_v43  ;;  %2454 = vmatpush1.bf16.msra.mxu1 %v2874_v44  ;;  %v460_v43 = vld [vmem:[#allocation2 + $0x7b0] sm:$0xff]  ;;  %v457_v44 = vld [vmem:[#allocation2 + $0x798] sm:$0xff] }
 0x12c   : > { %2326 = vmatprep.subr.bf16.mxu0 %v2881_v45  ;;  %2455 = vmatprep.subr.bf16.mxu1 %v2883_v46  ;;  %v461_v45 = vld [vmem:[#allocation2 + $0x7b8] sm:$0xff]  ;;  %v2936_v46 = vcombine.low %v448_v33, %v452_v34  ;;  %v2945_v48 = vcombine.high %v456_v42, %v460_v43 }
 0x12d   : > { %v2947_v49 = vcombine.high %v457_v44, %v461_v45  ;;  %v2946_v57 = vcombine.low %v457_v44, %v461_v45 }
 0x12f   : > { %2327 = vmatpush1.bf16.msra.mxu0 %v2880_v51  ;;  %2456 = vmatpush1.bf16.msra.mxu1 %v2882_v53  ;;  %v468_v51 = vld [vmem:[#allocation2 + $0x7f0] sm:$0xff]  ;;  %v465_v53 = vld [vmem:[#allocation2 + $0x7d8] sm:$0xff] }
 0x130   : > { %2328 = vmatprep.subr.bf16.mxu0 %v2889_v54  ;;  %2457 = vmatprep.subr.bf16.mxu1 %v2891_v55  ;;  %v469_v54 = vld [vmem:[#allocation2 + $0x7f8] sm:$0xff]  ;;  %v2944_v55 = vcombine.low %v456_v42, %v460_v43  ;;  %v2953_v58 = vcombine.high %v464_v50, %v468_v51 }
 0x131   : > { %v2955_v59 = vcombine.high %v465_v53, %v469_v54  ;;  %v2954_v1 = vcombine.low %v465_v53, %v469_v54 }
 0x133   : > { %2329 = vmatpush1.bf16.msra.mxu0 %v2888_v61  ;;  %2458 = vmatpush1.bf16.msra.mxu1 %v2890_v62  ;;  %v476_v61 = vld [vmem:[#allocation2 + $0x830] sm:$0xff]  ;;  %v473_v62 = vld [vmem:[#allocation2 + $0x818] sm:$0xff] }
 0x134   : > { %2330 = vmatprep.subr.bf16.mxu0 %v2897_v63  ;;  %2459 = vmatprep.subr.bf16.mxu1 %v2899_v0  ;;  %v477_v63 = vld [vmem:[#allocation2 + $0x838] sm:$0xff]  ;;  %v2952_v0 = vcombine.low %v464_v50, %v468_v51  ;;  %v2961_v2 = vcombine.high %v472_v60, %v476_v61 }
 0x135   : > { %v2963_v3 = vcombine.high %v473_v62, %v477_v63  ;;  %v2962_v9 = vcombine.low %v473_v62, %v477_v63 }
 0x137   : > { %2331 = vmatpush1.bf16.msra.mxu0 %v2896_v5  ;;  %2460 = vmatpush1.bf16.msra.mxu1 %v2898_v6  ;;  %v484_v5 = vld [vmem:[#allocation2 + $0x870] sm:$0xff]  ;;  %v481_v6 = vld [vmem:[#allocation2 + $0x858] sm:$0xff] }
 0x138   : > { %2332 = vmatprep.subr.bf16.mxu0 %v2905_v7  ;;  %2461 = vmatprep.subr.bf16.mxu1 %v2907_v8  ;;  %v485_v7 = vld [vmem:[#allocation2 + $0x878] sm:$0xff]  ;;  %v2960_v8 = vcombine.low %v472_v60, %v476_v61  ;;  %v2969_v11 = vcombine.high %v480_v4, %v484_v5 }
 0x139   : > { %v2971_v12 = vcombine.high %v481_v6, %v485_v7  ;;  %v2970_v20 = vcombine.low %v481_v6, %v485_v7 }
 0x13b   : > { %2333 = vmatpush1.bf16.msra.mxu0 %v2904_v14  ;;  %2462 = vmatpush1.bf16.msra.mxu1 %v2906_v15  ;;  %v492_v14 = vld [vmem:[#allocation2 + $0x8b0] sm:$0xff]  ;;  %v489_v15 = vld [vmem:[#allocation2 + $0x898] sm:$0xff] }
 0x13c   : > { %2334 = vmatprep.subr.bf16.mxu0 %v2913_v16  ;;  %2463 = vmatprep.subr.bf16.mxu1 %v2915_v18  ;;  %v493_v16 = vld [vmem:[#allocation2 + $0x8b8] sm:$0xff]  ;;  %v2968_v18 = vcombine.low %v480_v4, %v484_v5  ;;  %v2977_v21 = vcombine.high %v488_v13, %v492_v14 }
 0x13d   : > { %v2979_v10 = vcombine.high %v489_v15, %v493_v16 }
 0x13f   : > { %2335 = vmatpush1.bf16.msra.mxu0 %v2912_v22  ;;  %2464 = vmatpush1.bf16.msra.mxu1 %v2914_v23  ;;  %v500_v22 = vld [vmem:[#allocation2 + $0x8f0] sm:$0xff]  ;;  %v497_v23 = vld [vmem:[#allocation2 + $0x8d8] sm:$0xff] }
 0x140   : > { %2336 = vmatprep.subr.bf16.mxu0 %v2921_v24  ;;  %2465 = vmatprep.subr.bf16.mxu1 %v2923_v25  ;;  %v501_v24 = vld [vmem:[#allocation2 + $0x8f8] sm:$0xff]  ;;  %v2976_v25 = vcombine.low %v488_v13, %v492_v14  ;;  %v2985_v26 = vcombine.high %v496_v56, %v500_v22  ;;  %v2984_v28 = vcombine.low %v496_v56, %v500_v22 }
 0x141   : > { %v2987_v27 = vcombine.high %v497_v23, %v501_v24  ;;  %v2986_v29 = vcombine.low %v497_v23, %v501_v24 }
 0x143   : > { %2337 = vmatpush1.bf16.msra.mxu0 %v2920_v19  ;;  %2466 = vmatpush1.bf16.msra.mxu1 %v2922_v30 }
 0x144   : > { %2338 = vmatprep.subr.bf16.mxu0 %v2929_v31  ;;  %2467 = vmatprep.subr.bf16.mxu1 %v2931_v32  ;;  %v502_v31 = vld [vmem:[#allocation4] sm:$0xff] }
 0x147   : > { %2339 = vmatpush1.bf16.msra.mxu0 %v2928_v38  ;;  %2468 = vmatpush1.bf16.msra.mxu1 %v2930_v39 }
 0x148   : > { %2340 = vmatprep.subr.bf16.mxu0 %v2937_v40  ;;  %2469 = vmatprep.subr.bf16.mxu1 %v2939_v41 }
 0x14b   : > { %2341 = vmatpush1.bf16.msra.mxu0 %v2936_v46  ;;  %2470 = vmatpush1.bf16.msra.mxu1 %v2938_v47 }
 0x14c   : > { %2342 = vmatprep.subr.bf16.mxu0 %v2945_v48  ;;  %2471 = vmatprep.subr.bf16.mxu1 %v2947_v49 }
 0x14f   : > { %2343 = vmatpush1.bf16.msra.mxu0 %v2944_v55  ;;  %2472 = vmatpush1.bf16.msra.mxu1 %v2946_v57 }
 0x150   : > { %2344 = vmatprep.subr.bf16.mxu0 %v2953_v58  ;;  %2473 = vmatprep.subr.bf16.mxu1 %v2955_v59 }
 0x153   : > { %2345 = vmatpush1.bf16.msra.mxu0 %v2952_v0  ;;  %2474 = vmatpush1.bf16.msra.mxu1 %v2954_v1 }
 0x154   : > { %2357 = vmatprep.subr.bf16.mxu0 %v2961_v2  ;;  %2486 = vmatprep.subr.bf16.mxu1 %v2963_v3 }
 0x156   : > { %2347 = vmatmul.mubr.bf16.vlgmr.msra.gmra.mrb[4].mxu0 %v3307_v17  ;;  %2476 = vmatmul.mubr.bf16.vlgmr.msra.gmra.mrb[4].mxu1 %v3307_v17  ;;  %v2978_v17 = vcombine.low %v489_v15, %v493_v16 }
 0x157   : > { %2358 = vmatpush1.bf16.msra.mxu0 %v2960_v8  ;;  %2487 = vmatpush1.bf16.msra.mxu1 %v2962_v9 }
 0x158   : > { %2359 = vmatprep.subr.bf16.mxu0 %v2969_v11  ;;  %2488 = vmatprep.subr.bf16.mxu1 %v2971_v12 }
 0x159   : > { %2389 = vmatprep.mubr.bf16.mxu0 %v3175_v35  ;;  %2518 = vmatprep.mubr.bf16.mxu1 %v3175_v35  ;;  %v504_v35 = vlaneseq }
 0x15b   : > { %2360 = vmatpush1.bf16.msra.mxu0 %v2968_v18  ;;  %2489 = vmatpush1.bf16.msra.mxu1 %v2970_v20  ;;  %v505_v19 = vshrl.u32 %v504_v35, 7 }
 0x15c   : > { %2361 = vmatprep.subr.bf16.mxu0 %v2977_v21  ;;  %2490 = vmatprep.subr.bf16.mxu1 %v2979_v10 }
 0x15d   : > { %v506_v30 = vsub.s32 0, %v505_v19  ;;  %v514_v32 = vsub.s32 2, %v505_v19  ;;  %v510_v33 = vsub.s32 1, %v505_v19  ;;  %v518_v34 = vsub.s32 3, %v505_v19 }
 0x15e   : > { %v522_v5 = vsub.s32 4, %v505_v19  ;;  %v530_v6 = vsub.s32 6, %v505_v19  ;;  %v526_v7 = vsub.s32 5, %v505_v19  ;;  %v534_v8 = vsub.s32 7, %v505_v19 }
 0x15f   : > { %2362 = vmatpush1.bf16.msra.mxu0 %v2976_v25  ;;  %2491 = vmatpush1.bf16.msra.mxu1 %v2978_v17  ;;  %v507_v36 = vrot.slane %v502_v31, %v506_v30  ;;  %v515_v37 = vrot.slane %v502_v31, %v514_v32  ;;  %v511_v38 = vrot.slane %v502_v31, %v510_v33 }
 0x160   : > { %2363 = vmatprep.subr.bf16.mxu0 %v2985_v26  ;;  %2492 = vmatprep.subr.bf16.mxu1 %v2987_v27  ;;  %v519_v39 = vrot.slane %v502_v31, %v518_v34  ;;  %v523_v9 = vrot.slane %v502_v31, %v522_v5  ;;  %v531_v11 = vrot.slane %v502_v31, %v530_v6 }
 0x161   : > { %v527_v12 = vrot.slane %v502_v31, %v526_v7  ;;  %v535_v13 = vrot.slane %v502_v31, %v534_v8 }
 0x163   : > { %2364 = vmatpush1.bf16.msra.mxu0 %v2984_v28  ;;  %2493 = vmatpush1.bf16.msra.mxu1 %v2986_v29 }
 0x166   : > { %2990 = vmatmul.mubr.msk.bf16.vlgmr.msra.gmra.mrb[4].mxu0 %vm2009_vm0, %v3314_v52  ;;  %2991 = vmatmul.mubr.msk.bf16.vlgmr.msra.gmra.mrb[4].mxu1 %vm2009_vm0, %v3314_v52 }
 0x1a9   : > { %v2133_v40 = vpop.f32.mrb[0].mxu0  ;;  %v2262_v42 = vpop.f32.mrb[0].mxu1 }
 0x1aa   : > { %v3011_v41 = vadd.f32 %v2133_v40, %v507_v36  ;;  %v2135_v43 = vpop.f32.mrb[1].mxu0  ;;  %v3015_v44 = vadd.f32 %v2262_v42, %v515_v37  ;;  %v2264_v52 = vpop.f32.mrb[1].mxu1 }
 0x1ab   : > { %v3012_v45 = vadd.f32 %v2135_v43, %v511_v38  ;;  %v2137_v46 = vpop.f32.mrb[2].mxu0  ;;  %v3016_v48 = vadd.f32 %v2264_v52, %v519_v39  ;;  %v2266_v50 = vpop.f32.mrb[2].mxu1 }
 0x1ac   : > { %v2529_v47 = vmax.f32 %v3011_v41, 0.0  ;;  %v3013_v49 = vadd.f32 %v2137_v46, %v507_v36  ;;  %v2139_v51 = vpop.f32.mrb[3].mxu0  ;;  %v2531_v53 = vmax.f32 %v3015_v44, 0.0  ;;  %v3017_v55 = vadd.f32 %v2266_v50, %v515_v37  ;;  %v2268_v58 = vpop.f32.mrb[3].mxu1 }
 0x1ad   : > { %v2530_v54 = vmax.f32 %v3012_v45, 0.0  ;;  %v3014_v57 = vadd.f32 %v2139_v51, %v511_v38  ;;  %v2532_v59 = vmax.f32 %v3016_v48, 0.0  ;;  %v3018_v61 = vadd.f32 %v2268_v58, %v519_v39 }
 0x1ae   : > { %v2537_v60 = vmax.f32 %v3013_v49, 0.0  ;;  %v2539_v63 = vmax.f32 %v3017_v55, 0.0 }
 0x1af   : > { %v3003_v62 = vpack.c.bf16 %v2530_v54, %v2529_v47  ;;  %v2538_v0 = vmax.f32 %v3014_v57, 0.0  ;;  %v3004_v1 = vpack.c.bf16 %v2532_v59, %v2531_v53  ;;  %v2540_v2 = vmax.f32 %v3018_v61, 0.0 }
 0x1b1   : > { %2593 = vst [vmem:[%s3338_s25] sm:$0xff] %v3003_v62  ;;  %v3007_v3 = vpack.c.bf16 %v2538_v0, %v2537_v60  ;;  %2594 = vst [vmem:[%s3338_s25 + $0x8] sm:$0xff] %v3004_v1  ;;  %v3008_v4 = vpack.c.bf16 %v2540_v2, %v2539_v63 }
 0x1b3   : > { %2597 = vst [vmem:[%s3338_s25 + $0x20] sm:$0xff] %v3007_v3  ;;  %2598 = vst [vmem:[%s3338_s25 + $0x28] sm:$0xff] %v3008_v4 }
 0x239   : > { %v2391_v14 = vpop.f32.mrb[4].mxu0  ;;  %v2520_v16 = vpop.f32.mrb[4].mxu1 }
 0x23a   : > { %v3019_v15 = vadd.f32 %v2391_v14, %v523_v9  ;;  %v2393_v18 = vpop.f32.mrb[5].mxu0  ;;  %v3023_v20 = vadd.f32 %v2520_v16, %v531_v11  ;;  %v2522_v10 = vpop.f32.mrb[5].mxu1 }
 0x23b   : > { %v3020_v21 = vadd.f32 %v2393_v18, %v527_v12  ;;  %v2395_v56 = vpop.f32.mrb[6].mxu0  ;;  %v3024_v23 = vadd.f32 %v2522_v10, %v535_v13  ;;  %v2524_v25 = vpop.f32.mrb[6].mxu1 }
 0x23c   : > { %v2533_v22 = vmax.f32 %v3019_v15, 0.0  ;;  %v3021_v24 = vadd.f32 %v2395_v56, %v523_v9  ;;  %v2397_v17 = vpop.f32.mrb[7].mxu0  ;;  %v2535_v26 = vmax.f32 %v3023_v20, 0.0  ;;  %v3025_v28 = vadd.f32 %v2524_v25, %v531_v11  ;;  %v2526_v35 = vpop.f32.mrb[7].mxu1 }
 0x23d   : > { %v2534_v27 = vmax.f32 %v3020_v21, 0.0  ;;  %v3022_v29 = vadd.f32 %v2397_v17, %v527_v12  ;;  %v2536_v19 = vmax.f32 %v3024_v23, 0.0  ;;  %v3026_v31 = vadd.f32 %v2526_v35, %v535_v13 }
 0x23e   : > { %v2541_v30 = vmax.f32 %v3021_v24, 0.0  ;;  %v2543_v33 = vmax.f32 %v3025_v28, 0.0 }
 0x23f   : > { %v3005_v32 = vpack.c.bf16 %v2534_v27, %v2533_v22  ;;  %v2542_v34 = vmax.f32 %v3022_v29, 0.0  ;;  %v3006_v36 = vpack.c.bf16 %v2536_v19, %v2535_v26  ;;  %v2544_v37 = vmax.f32 %v3026_v31, 0.0 }
 0x241   : > { %2595 = vst [vmem:[%s3338_s25 + $0x10] sm:$0xff] %v3005_v32  ;;  %v3009_v38 = vpack.c.bf16 %v2542_v34, %v2541_v30  ;;  %2596 = vst [vmem:[%s3338_s25 + $0x18] sm:$0xff] %v3006_v36  ;;  %v3010_v39 = vpack.c.bf16 %v2544_v37, %v2543_v33 }
 0x243   : > { %2599 = vst [vmem:[%s3338_s25 + $0x30] sm:$0xff] %v3009_v38  ;;  %2600 = vst [vmem:[%s3338_s25 + $0x38] sm:$0xff] %v3010_v39 }
 0x244 PF: > { %s15_s12 = sadd.s32 1, %s3169_s12  }
 0x245   : > { %p12_p7 = scmp.ge.s32.totalorder %s15_s12, 4  }
 0x247   :  { %14 = sbr.rel (!%p12_p7) target bundleno = 2 (0x2), region = 71 }
 0x24e   :  { %2625 = vsyncpa [#allocation3], 1 }
 0x24f   :  { %2627 = vsyncpa [#allocation3 + $0x1], 1 }
 0x250   :  { %2628 = vsyncpa [#allocation5], 1 }

// kernel: decoder_forward.6
= control target key start
LH: loop header
LB: loop body
LE: loop exit
PB: predicated region body
PF: predicated region fallthrough
CT: control target
= control target key end

     0   :  { %s2822_s12 = smov 0   ;;  %s3480_s0 = inlined_call_operand.vmem [shape: bf16[512,576], index: 0, kind: input, shape index: {}]   ;;  %s3481_s1 = inlined_call_operand.vmem [shape: bf16[576,256], index: 1, kind: input, shape index: {}]   ;;  %s3482_s2 = inlined_call_operand.vmem [shape: f32[1,256], index: 2, kind: input, shape index: {}]   ;;  %s3483_s3 = inlined_call_operand.vmem [shape: bf16[512,256], index: 3, kind: output, shape index: {}]  }
   0x1 LB: > { %s2094_s13 = sadd.s32 4294967295, %s2799_s12   ;;  %p2098_p0 = scmp.ge.s32.totalorder %s2799_s12, 1  ;;  %s2799_s12 = sphi %s2822_s12, %s13_s12  }
   0x2   : > { %p139_p1 = scmp.lt.s32.totalorder %s2799_s12, 3 }
   0x4   : > { %p140_p2 = pnand %p2098_p0, %p139_p1 }
   0x5   : > { %v2573_v0 = vld [vmem:[%s3481_s1 + $0x4] ss:$8 sps:$4 sm:$0xff] (!%p140_p2)   ;;  %v2577_v2 = vld [vmem:[%s3481_s1] ss:$8 sps:$4 sm:$0xff] (!%p140_p2)   ;;  %v2579_v4 = vld [vmem:[%s3481_s1 + $0x14] ss:$8 sps:$4 sm:$0xff] (!%p140_p2)  }
   0x6   : > { %143 = sbr.rel (%p140_p2) target bundleno = 478 (0x1de), region = 32  ;;  %v2836_v1 = vld [vmem:[%s3481_s1 + $0x104] ss:$8 sps:$4 sm:$0xff] (!%p140_p2)   ;;  %1169 = vmatprep.subr.bf16.mxu1 (!%p140_p2), %v2573_v0  ;;  %v2844_v3 = vld [vmem:[%s3481_s1 + $0x100] ss:$8 sps:$4 sm:$0xff] (!%p140_p2)   ;;  %s2099_s24 = sshll.u32 (!%p140_p2), %s2094_s13, 5 }
   0x7   : > { %1362 = vmatprep.subr.bf16.mxu0 (!%p140_p2), %v2836_v1  ;;  %1170 = vmatpush1.bf16.msra.mxu1 (!%p140_p2), %v2577_v2  ;;  %v2854_v5 = vld [vmem:[%s3481_s1 + $0x114] ss:$8 sps:$4 sm:$0xff] (!%p140_p2)   ;;  %v2583_v6 = vld [vmem:[%s3481_s1 + $0x10] ss:$8 sps:$4 sm:$0xff] (!%p140_p2)   ;;  %v2585_v8 = vld [vmem:[%s3481_s1 + $0x24] ss:$8 sps:$4 sm:$0xff] (!%p140_p2)  }
   0x8   : > { %1363 = vmatpush1.bf16.msra.mxu0 (!%p140_p2), %v2844_v3  ;;  %1171 = vmatprep.subr.bf16.mxu1 (!%p140_p2), %v2579_v4  ;;  %v2862_v7 = vld [vmem:[%s3481_s1 + $0x110] ss:$8 sps:$4 sm:$0xff] (!%p140_p2)   ;;  %v2871_v9 = vld [vmem:[%s3481_s1 + $0x124] ss:$8 sps:$4 sm:$0xff] (!%p140_p2)   ;;  %v2589_v10 = vld [vmem:[%s3481_s1 + $0x20] ss:$8 sps:$4 sm:$0xff] (!%p140_p2)  }
   0x9   : > { %1364 = vmatprep.subr.bf16.mxu0 (!%p140_p2), %v2854_v5  ;;  %v2879_v11 = vld [vmem:[%s3481_s1 + $0x120] ss:$8 sps:$4 sm:$0xff] (!%p140_p2)   ;;  %v2591_v12 = vld [vmem:[%s3481_s1 + $0x34] ss:$8 sps:$4 sm:$0xff] (!%p140_p2)   ;;  %v2595_v14 = vld [vmem:[%s3481_s1 + $0x30] ss:$8 sps:$4 sm:$0xff] (!%p140_p2)  }
   0xa   : > { %v2889_v13 = vld [vmem:[%s3481_s1 + $0x134] ss:$8 sps:$4 sm:$0xff] (!%p140_p2)   ;;  %v2898_v15 = vld [vmem:[%s3481_s1 + $0x130] ss:$8 sps:$4 sm:$0xff] (!%p140_p2)   ;;  %v2597_v16 = vld [vmem:[%s3481_s1 + $0x44] ss:$8 sps:$4 sm:$0xff] (!%p140_p2)  }
   0xb   : > { %1172 = vmatpush1.bf16.msra.mxu1 (!%p140_p2), %v2583_v6  ;;  %v2907_v17 = vld [vmem:[%s3481_s1 + $0x144] ss:$8 sps:$4 sm:$0xff] (!%p140_p2)   ;;  %v2601_v18 = vld [vmem:[%s3481_s1 + $0x40] ss:$8 sps:$4 sm:$0xff] (!%p140_p2)   ;;  %v2603_v20 = vld [vmem:[%s3481_s1 + $0x54] ss:$8 sps:$4 sm:$0xff] (!%p140_p2)  }
   0xc   : > { %1365 = vmatpush1.bf16.msra.mxu0 (!%p140_p2), %v2862_v7  ;;  %1173 = vmatprep.subr.bf16.mxu1 (!%p140_p2), %v2585_v8  ;;  %v2915_v19 = vld [vmem:[%s3481_s1 + $0x140] ss:$8 sps:$4 sm:$0xff] (!%p140_p2)   ;;  %v2925_v21 = vld [vmem:[%s3481_s1 + $0x154] ss:$8 sps:$4 sm:$0xff] (!%p140_p2)   ;;  %v2607_v22 = vld [vmem:[%s3481_s1 + $0x50] ss:$8 sps:$4 sm:$0xff] (!%p140_p2)  }
   0xd   : > { %1366 = vmatprep.subr.bf16.mxu0 %v2871_v9  ;;  %v2934_v23 = vld [vmem:[%s3481_s1 + $0x150] ss:$8 sps:$4 sm:$0xff]   ;;  %v2609_v24 = vld [vmem:[%s3481_s1 + $0x64] ss:$8 sps:$4 sm:$0xff]   ;;  %v2613_v26 = vld [vmem:[%s3481_s1 + $0x60] ss:$8 sps:$4 sm:$0xff]  }
   0xe   : > { %v2943_v25 = vld [vmem:[%s3481_s1 + $0x164] ss:$8 sps:$4 sm:$0xff]   ;;  %v2951_v27 = vld [vmem:[%s3481_s1 + $0x160] ss:$8 sps:$4 sm:$0xff]   ;;  %v2615_v28 = vld [vmem:[%s3481_s1 + $0x74] ss:$8 sps:$4 sm:$0xff]  }
   0xf   : > { %1174 = vmatpush1.bf16.msra.mxu1 %v2589_v10  ;;  %v2961_v29 = vld [vmem:[%s3481_s1 + $0x174] ss:$8 sps:$4 sm:$0xff]   ;;  %v2619_v30 = vld [vmem:[%s3481_s1 + $0x70] ss:$8 sps:$4 sm:$0xff]   ;;  %v2621_v32 = vld [vmem:[%s3481_s1 + $0x84] ss:$8 sps:$4 sm:$0xff]  }
  0x10   : > { %1367 = vmatpush1.bf16.msra.mxu0 %v2879_v11  ;;  %1175 = vmatprep.subr.bf16.mxu1 %v2591_v12  ;;  %v2972_v31 = vld [vmem:[%s3481_s1 + $0x170] ss:$8 sps:$4 sm:$0xff]   ;;  %p166_p3 = scmp.lt.s32.totalorder %s2099_s24, 63  ;;  %v2981_v33 = vld [vmem:[%s3481_s1 + $0x184] ss:$8 sps:$4 sm:$0xff]   ;;  %vm1120_vm0 = vcmask 523264  }
  0x11   : > { %1368 = vmatprep.subr.bf16.mxu0 %v2889_v13  ;;  %v2625_v34 = vld [vmem:[%s3481_s1 + $0x80] ss:$8 sps:$4 sm:$0xff]   ;;  %v2627_v36 = vld [vmem:[%s3481_s1 + $0x94] ss:$8 sps:$4 sm:$0xff]   ;;  %v2631_v38 = vld [vmem:[%s3481_s1 + $0x90] ss:$8 sps:$4 sm:$0xff]  }
  0x12   : > { %v2989_v35 = vld [vmem:[%s3481_s1 + $0x180] ss:$8 sps:$4 sm:$0xff]   ;;  %s3485_s24 = smov (!%p166_p3, %s2099_s24), 63  ;;  %v3001_v37 = vld [vmem:[%s3481_s1 + $0x194] ss:$8 sps:$4 sm:$0xff]  }
  0x13   : > { %1176 = vmatpush1.bf16.msra.mxu1 %v2595_v14  ;;  %v3010_v39 = vld [vmem:[%s3481_s1 + $0x190] ss:$8 sps:$4 sm:$0xff]   ;;  %v2633_v40 = vld [vmem:[%s3481_s1 + $0xa4] ss:$8 sps:$4 sm:$0xff]   ;;  %s2563_s21 = smul.u32 20, %s3485_s24  ;;  %s2306_s15 = sshll.u32 %s3485_s24, 3 }
  0x14   : > { %1369 = vmatpush1.bf16.msra.mxu0 %v2898_v15  ;;  %1177 = vmatprep.subr.bf16.mxu1 %v2597_v16  ;;  %v3020_v41 = vld [vmem:[%s3481_s1 + $0x1a4] ss:$8 sps:$4 sm:$0xff]   ;;  %v2637_v42 = vld [vmem:[%s3481_s1 + $0xa0] ss:$8 sps:$4 sm:$0xff]   ;;  %v2639_v44 = vld [vmem:[%s3481_s1 + $0xb4] ss:$8 sps:$4 sm:$0xff]   ;;  %s3359_s18 = scalar_lea.vmem %s3483_s3, %s2306_s15 }
  0x15   : > { %1370 = vmatprep.subr.bf16.mxu0 %v2907_v17  ;;  %v3028_v43 = vld [vmem:[%s3481_s1 + $0x1a0] ss:$8 sps:$4 sm:$0xff]   ;;  %s3037_s5 = scalar_lea.vmem %s3480_s0, %s2563_s21  ;;  %v3043_v45 = vld [vmem:[%s3481_s1 + $0x1b4] ss:$8 sps:$4 sm:$0xff]   ;;  %v2643_v46 = vld [vmem:[%s3481_s1 + $0xb0] ss:$8 sps:$4 sm:$0xff]  }
  0x16   : > { %v3051_v47 = vld [vmem:[%s3481_s1 + $0x1b0] ss:$8 sps:$4 sm:$0xff]   ;;  %v2645_v48 = vld [vmem:[%s3481_s1 + $0xc4] ss:$8 sps:$4 sm:$0xff]   ;;  %v2649_v52 = vld [vmem:[%s3481_s1 + $0xc0] ss:$8 sps:$4 sm:$0xff]  }
  0x17   : > { %1178 = vmatpush1.bf16.msra.mxu1 %v2601_v18  ;;  %v2671_v49 = vld [vmem:[%s3037_s5 + $0x4] ss:$20 sps:$4 sm:$0xff]   ;;  %v2674_v51 = vld [vmem:[%s3037_s5 + $0xc] ss:$20 sps:$4 sm:$0xff]   ;;  %v2651_v54 = vld [vmem:[%s3481_s1 + $0xd4] ss:$8 sps:$4 sm:$0xff]  }
  0x18   : > { %1371 = vmatpush1.bf16.msra.mxu0 %v2915_v19  ;;  %1179 = vmatprep.subr.bf16.mxu1 %v2603_v20  ;;  %v3061_v50 = vld [vmem:[%s3481_s1 + $0x1c4] ss:$8 sps:$4 sm:$0xff]   ;;  %v3072_v53 = vld [vmem:[%s3481_s1 + $0x1c0] ss:$8 sps:$4 sm:$0xff]   ;;  %v3081_v55 = vld [vmem:[%s3481_s1 + $0x1d4] ss:$8 sps:$4 sm:$0xff]  }
  0x19   : > { %1372 = vmatprep.subr.bf16.mxu0 %v2925_v21  ;;  %1201 = vmatprep.mubr.bf16.mxu1 %v2671_v49  ;;  %v2655_v56 = vld [vmem:[%s3481_s1 + $0xd0] ss:$8 sps:$4 sm:$0xff]   ;;  %v2657_v58 = vld [vmem:[%s3481_s1 + $0xe4] ss:$8 sps:$4 sm:$0xff]   ;;  %v2661_v60 = vld [vmem:[%s3481_s1 + $0xe0] ss:$8 sps:$4 sm:$0xff]  }
  0x1a   : > { %1394 = vmatprep.mubr.bf16.mxu0 %v2674_v51  ;;  %v3089_v57 = vld [vmem:[%s3481_s1 + $0x1d0] ss:$8 sps:$4 sm:$0xff]   ;;  %v3099_v59 = vld [vmem:[%s3481_s1 + $0x1e4] ss:$8 sps:$4 sm:$0xff]   ;;  %v3107_v61 = vld [vmem:[%s3481_s1 + $0x1e0] ss:$8 sps:$4 sm:$0xff]  }
  0x1b   : > { %1180 = vmatpush1.bf16.msra.mxu1 %v2607_v22  ;;  %v2663_v62 = vld [vmem:[%s3481_s1 + $0xf4] ss:$8 sps:$4 sm:$0xff]   ;;  %v2667_v0 = vld [vmem:[%s3481_s1 + $0xf0] ss:$8 sps:$4 sm:$0xff]   ;;  %v2677_v4 = vld [vmem:[%s3481_s1 + $0x204] ss:$8 sps:$4 sm:$0xff]  }
  0x1c   : > { %1373 = vmatpush1.bf16.msra.mxu0 %v2934_v23  ;;  %1181 = vmatprep.subr.bf16.mxu1 %v2609_v24  ;;  %v3117_v63 = vld [vmem:[%s3481_s1 + $0x1f4] ss:$8 sps:$4 sm:$0xff]   ;;  %v3126_v2 = vld [vmem:[%s3481_s1 + $0x1f0] ss:$8 sps:$4 sm:$0xff]   ;;  %v2675_v10 = vld [vmem:[%s3481_s1 + $0x200] ss:$8 sps:$4 sm:$0xff]  }
  0x1d   : > { %1374 = vmatprep.subr.bf16.mxu0 %v2943_v25  ;;  %v2669_v6 = vld [vmem:[%s3037_s5] ss:$20 sps:$4 sm:$0xff]   ;;  %v2672_v8 = vld [vmem:[%s3037_s5 + $0x8] ss:$20 sps:$4 sm:$0xff]   ;;  %v2690_v18 = vld [vmem:[%s3481_s1 + $0x210] ss:$8 sps:$4 sm:$0xff]  }
  0x1e   : > { %v2678_v12 = vld [vmem:[%s3037_s5 + $0x2c] ss:$20 sps:$4 sm:$0xff]   ;;  %v2680_v14 = vld [vmem:[%s3037_s5 + $0x34] ss:$20 sps:$4 sm:$0xff]   ;;  %v2683_v22 = vld [vmem:[%s3037_s5 + $0x30] ss:$20 sps:$4 sm:$0xff]  }
  0x1f   : > { %1182 = vmatpush1.bf16.msra.mxu1 %v2613_v26  ;;  %v2692_v16 = vld [vmem:[%s3481_s1 + $0x214] ss:$8 sps:$4 sm:$0xff]   ;;  %v2705_v26 = vld [vmem:[%s3481_s1 + $0x220] ss:$8 sps:$4 sm:$0xff]   ;;  %v2743_v51 = vld [vmem:[%s3037_s5 + $0x1b8] ss:$20 sps:$4 sm:$0xff]  }
  0x20   : > { %1375 = vmatpush1.bf16.msra.mxu0 %v2951_v27  ;;  %1183 = vmatprep.subr.bf16.mxu1 %v2615_v28  ;;  %v2682_v20 = vld [vmem:[%s3037_s5 + $0x28] ss:$20 sps:$4 sm:$0xff]   ;;  %v2689_v28 = vld [vmem:[%s3037_s5 + $0x58] ss:$20 sps:$4 sm:$0xff]   ;;  %v2740_v49 = vld [vmem:[%s3037_s5 + $0x60] ss:$20 sps:$4 sm:$0xff]  }
  0x21   : > { %1376 = vmatprep.subr.bf16.mxu0 %v2961_v29  ;;  %v2686_v24 = vld [vmem:[%s3037_s5 + $0x5c] ss:$20 sps:$4 sm:$0xff]  }
  0x23   : > { %1184 = vmatpush1.bf16.msra.mxu1 %v2619_v30  ;;  %v2693_v30 = vld [vmem:[%s3037_s5 + $0x7c] ss:$20 sps:$4 sm:$0xff]  }
  0x24   : > { %1377 = vmatpush1.bf16.msra.mxu0 %v2972_v31  ;;  %1185 = vmatprep.subr.bf16.mxu1 %v2621_v32  ;;  %v2695_v32 = vld [vmem:[%s3037_s5 + $0x84] ss:$20 sps:$4 sm:$0xff]  }
  0x25   : > { %1378 = vmatprep.subr.bf16.mxu0 %v2981_v33 }
  0x27   : > { %1186 = vmatpush1.bf16.msra.mxu1 %v2625_v34  ;;  %v2699_v34 = vld [vmem:[%s3037_s5 + $0xa4] ss:$20 sps:$4 sm:$0xff]  }
  0x28   : > { %1379 = vmatpush1.bf16.msra.mxu0 %v2989_v35  ;;  %1187 = vmatprep.subr.bf16.mxu1 %v2627_v36  ;;  %v2701_v36 = vld [vmem:[%s3037_s5 + $0xac] ss:$20 sps:$4 sm:$0xff]  }
  0x29   : > { %1380 = vmatprep.subr.bf16.mxu0 %v3001_v37 }
  0x2b   : > { %1188 = vmatpush1.bf16.msra.mxu1 %v2631_v38  ;;  %v2727_v38 = vld [vmem:[%s3037_s5 + $0x118] ss:$20 sps:$4 sm:$0xff]  }
  0x2c   : > { %1381 = vmatpush1.bf16.msra.mxu0 %v3010_v39  ;;  %1189 = vmatprep.subr.bf16.mxu1 %v2633_v40  ;;  %v2729_v40 = vld [vmem:[%s3037_s5 + $0x144] ss:$20 sps:$4 sm:$0xff]  }
  0x2d   : > { %1382 = vmatprep.subr.bf16.mxu0 %v3020_v41 }
  0x2f   : > { %1190 = vmatpush1.bf16.msra.mxu1 %v2637_v42  ;;  %v2731_v42 = vld [vmem:[%s3037_s5 + $0x140] ss:$20 sps:$4 sm:$0xff]  }
  0x30   : > { %1383 = vmatpush1.bf16.msra.mxu0 %v3028_v43  ;;  %1191 = vmatprep.subr.bf16.mxu1 %v2639_v44  ;;  %v2733_v44 = vld [vmem:[%s3037_s5 + $0x16c] ss:$20 sps:$4 sm:$0xff]  }
  0x31   : > { %1384 = vmatprep.subr.bf16.mxu0 %v3043_v45 }
  0x33   : > { %1192 = vmatpush1.bf16.msra.mxu1 %v2643_v46  ;;  %v2736_v46 = vld [vmem:[%s3037_s5 + $0x38] ss:$20 sps:$4 sm:$0xff]  }
  0x34   : > { %1385 = vmatpush1.bf16.msra.mxu0 %v3051_v47  ;;  %1193 = vmatprep.subr.bf16.mxu1 %v2645_v48  ;;  %v2739_v48 = vld [vmem:[%s3037_s5 + $0x190] ss:$20 sps:$4 sm:$0xff]  }
  0x35   : > { %1386 = vmatprep.subr.bf16.mxu0 %v3061_v50 }
  0x37   : > { %1194 = vmatpush1.bf16.msra.mxu1 %v2649_v52  ;;  %v2744_v52 = vld [vmem:[%s3037_s5 + $0x88] ss:$20 sps:$4 sm:$0xff]  }
  0x38   : > { %1387 = vmatpush1.bf16.msra.mxu0 %v3072_v53  ;;  %1195 = vmatprep.subr.bf16.mxu1 %v2651_v54  ;;  %v2747_v54 = vld [vmem:[%s3037_s5 + $0x1e0] ss:$20 sps:$4 sm:$0xff]  }
  0x39   : > { %1388 = vmatprep.subr.bf16.mxu0 %v3081_v55 }
  0x3b   : > { %1196 = vmatpush1.bf16.msra.mxu1 %v2655_v56  ;;  %v2749_v56 = vld [vmem:[%s3037_s5 + $0x20c] ss:$20 sps:$4 sm:$0xff]  }
  0x3c   : > { %1389 = vmatpush1.bf16.msra.mxu0 %v3089_v57  ;;  %1197 = vmatprep.subr.bf16.mxu1 %v2657_v58  ;;  %v2752_v58 = vld [vmem:[%s3037_s5 + $0xd8] ss:$20 sps:$4 sm:$0xff]  }
  0x3d   : > { %1390 = vmatprep.subr.bf16.mxu0 %v3099_v59 }
  0x3f   : > { %1198 = vmatpush1.bf16.msra.mxu1 %v2661_v60  ;;  %v2755_v60 = vld [vmem:[%s3037_s5 + $0x230] ss:$20 sps:$4 sm:$0xff]  }
  0x40   : > { %1391 = vmatpush1.bf16.msra.mxu0 %v3107_v61  ;;  %1199 = vmatprep.subr.bf16.mxu1 %v2663_v62  ;;  %v2757_v62 = vld [vmem:[%s3037_s5 + $0x25c] ss:$20 sps:$4 sm:$0xff]  }
  0x41   : > { %1392 = vmatprep.subr.bf16.mxu0 %v3117_v63 }
  0x43   : > { %1200 = vmatpush1.bf16.msra.mxu1 %v2667_v0  ;;  %v2760_v0 = vld [vmem:[%s3037_s5 + $0x128] ss:$20 sps:$4 sm:$0xff]  }
  0x44   : > { %1393 = vmatpush1.bf16.msra.mxu0 %v3126_v2  ;;  %2339 = vmatprep.subr.bf16.mxu1 %v2836_v1  ;;  %v2707_v1 = vld [vmem:[%s3481_s1 + $0x224] ss:$8 sps:$4 sm:$0xff]  }
  0x45   : > { %1555 = vmatprep.subr.bf16.mxu0 %v2677_v4  ;;  %v2761_v4 = vld [vmem:[%s3037_s5 + $0x148] ss:$20 sps:$4 sm:$0xff]  }
  0x46   : > { %1202 = vmatmul.mubr.bf16.vlgmr.msra.gmra.mrb[0].mxu1 %v2669_v6  ;;  %v2764_v6 = vld [vmem:[%s3037_s5 + $0x150] ss:$20 sps:$4 sm:$0xff]  }
  0x47   : > { %1395 = vmatmul.mubr.bf16.vlgmr.msra.gmra.mrb[0].mxu0 %v2672_v8  ;;  %2355 = vmatpush1.bf16.msra.mxu1 %v2844_v3  ;;  %v2684_v3 = vld [vmem:[%s3037_s5 + $0x54] ss:$20 sps:$4 sm:$0xff]  }
  0x48   : > { %1556 = vmatpush1.bf16.msra.mxu0 %v2675_v10  ;;  %1211 = vmatprep.mubr.bf16.mxu1 %v2678_v12  ;;  %v2765_v8 = vld [vmem:[%s3037_s5 + $0x174] ss:$20 sps:$4 sm:$0xff]   ;;  %v2767_v10 = vld [vmem:[%s3037_s5 + $0x170] ss:$20 sps:$4 sm:$0xff]   ;;  %v2768_v12 = vld [vmem:[%s3037_s5 + $0x178] ss:$20 sps:$4 sm:$0xff]  }
  0x49   : > { %1404 = vmatprep.mubr.bf16.mxu0 %v2680_v14  ;;  %2340 = vmatprep.subr.bf16.mxu1 %v2854_v5  ;;  %v2722_v5 = vld [vmem:[%s3481_s1 + $0x234] ss:$8 sps:$4 sm:$0xff]  }
  0x4a   : > { %1557 = vmatprep.subr.bf16.mxu0 %v2692_v16  ;;  %v2769_v14 = vld [vmem:[%s3037_s5 + $0x19c] ss:$20 sps:$4 sm:$0xff]   ;;  %v2771_v16 = vld [vmem:[%s3037_s5 + $0x198] ss:$20 sps:$4 sm:$0xff]  }
  0x4b   : > { %2356 = vmatpush1.bf16.msra.mxu1 %v2862_v7  ;;  %v2720_v7 = vld [vmem:[%s3481_s1 + $0x230] ss:$8 sps:$4 sm:$0xff]  }
  0x4c   : > { %1558 = vmatpush1.bf16.msra.mxu0 %v2690_v18  ;;  %2341 = vmatprep.subr.bf16.mxu1 %v2871_v9  ;;  %v2688_v9 = vld [vmem:[%s3037_s5 + $0x50] ss:$20 sps:$4 sm:$0xff]   ;;  %v2772_v18 = vld [vmem:[%s3037_s5 + $0x1a0] ss:$20 sps:$4 sm:$0xff]  }
  0x4d   : > { %1559 = vmatprep.subr.bf16.mxu0 %v2707_v1  ;;  %v2773_v1 = vld [vmem:[%s3037_s5 + $0x1c4] ss:$20 sps:$4 sm:$0xff]  }
  0x4e   : > { %1212 = vmatmul.mubr.bf16.gmra.mrb[4].mxu1 %v2682_v20  ;;  %v2775_v20 = vld [vmem:[%s3037_s5 + $0x1c0] ss:$20 sps:$4 sm:$0xff]  }
  0x4f   : > { %1405 = vmatmul.mubr.bf16.gmra.mrb[4].mxu0 %v2683_v22  ;;  %1221 = vmatprep.mubr.bf16.mxu1 %v2684_v3  ;;  %v2776_v22 = vld [vmem:[%s3037_s5 + $0x1c8] ss:$20 sps:$4 sm:$0xff]   ;;  %v2777_v3 = vld [vmem:[%s3037_s5 + $0x1ec] ss:$20 sps:$4 sm:$0xff]  }
  0x50   : > { %1414 = vmatprep.mubr.bf16.mxu0 %v2686_v24  ;;  %2357 = vmatpush1.bf16.msra.mxu1 %v2879_v11  ;;  %v2697_v11 = vld [vmem:[%s3037_s5 + $0x78] ss:$20 sps:$4 sm:$0xff]   ;;  %v2779_v24 = vld [vmem:[%s3037_s5 + $0x1e8] ss:$20 sps:$4 sm:$0xff]  }
  0x51   : > { %1560 = vmatpush1.bf16.msra.mxu0 %v2705_v26  ;;  %2342 = vmatprep.subr.bf16.mxu1 %v2889_v13  ;;  %v2698_v13 = vld [vmem:[%s3037_s5 + $0x80] ss:$20 sps:$4 sm:$0xff]   ;;  %v2780_v26 = vld [vmem:[%s3037_s5 + $0x1f0] ss:$20 sps:$4 sm:$0xff]  }
  0x52   : > { %1561 = vmatprep.subr.bf16.mxu0 %v2722_v5  ;;  %v2781_v5 = vld [vmem:[%s3037_s5 + $0x214] ss:$20 sps:$4 sm:$0xff]  }
  0x54   : > { %2358 = vmatpush1.bf16.msra.mxu1 %v2898_v15  ;;  %v2703_v15 = vld [vmem:[%s3037_s5 + $0xa0] ss:$20 sps:$4 sm:$0xff]  }
  0x55   : > { %1562 = vmatpush1.bf16.msra.mxu0 %v2720_v7  ;;  %2343 = vmatprep.subr.bf16.mxu1 %v2907_v17  ;;  %v2704_v17 = vld [vmem:[%s3037_s5 + $0xa8] ss:$20 sps:$4 sm:$0xff]   ;;  %v2783_v7 = vld [vmem:[%s3037_s5 + $0x210] ss:$20 sps:$4 sm:$0xff]  }
  0x56   : > { %1222 = vmatmul.mubr.bf16.gmra.mrb[8].mxu1 %v2688_v9  ;;  %v2784_v9 = vld [vmem:[%s3037_s5 + $0x218] ss:$20 sps:$4 sm:$0xff]  }
  0x57   : > { %1415 = vmatmul.mubr.bf16.gmra.mrb[8].mxu0 %v2689_v28  ;;  %1231 = vmatprep.mubr.bf16.mxu1 %v2693_v30  ;;  %v2785_v28 = vld [vmem:[%s3037_s5 + $0x23c] ss:$20 sps:$4 sm:$0xff]   ;;  %v2787_v30 = vld [vmem:[%s3037_s5 + $0x238] ss:$20 sps:$4 sm:$0xff]  }
  0x58   : > { %1424 = vmatprep.mubr.bf16.mxu0 %v2695_v32  ;;  %2359 = vmatpush1.bf16.msra.mxu1 %v2915_v19  ;;  %v2708_v19 = vld [vmem:[%s3037_s5 + $0xcc] ss:$20 sps:$4 sm:$0xff]  }
  0x59   : > { %2344 = vmatprep.subr.bf16.mxu1 %v2925_v21  ;;  %v2710_v21 = vld [vmem:[%s3037_s5 + $0xd4] ss:$20 sps:$4 sm:$0xff]  }
  0x5a   : > { %v2788_v32 = vld [vmem:[%s3037_s5 + $0x240] ss:$20 sps:$4 sm:$0xff]  }
  0x5c   : > { %2360 = vmatpush1.bf16.msra.mxu1 %v2934_v23  ;;  %v2712_v23 = vld [vmem:[%s3037_s5 + $0xc8] ss:$20 sps:$4 sm:$0xff]  }
  0x5d   : > { %2345 = vmatprep.subr.bf16.mxu1 %v2943_v25  ;;  %v2713_v25 = vld [vmem:[%s3037_s5 + $0xd0] ss:$20 sps:$4 sm:$0xff]  }
  0x5e   : > { %1232 = vmatmul.mubr.bf16.gmra.mrb[12].mxu1 %v2697_v11  ;;  %v2789_v11 = vld [vmem:[%s3037_s5 + $0x264] ss:$20 sps:$4 sm:$0xff]  }
  0x5f   : > { %1425 = vmatmul.mubr.bf16.gmra.mrb[12].mxu0 %v2698_v13  ;;  %1241 = vmatprep.mubr.bf16.mxu1 %v2699_v34  ;;  %v2791_v13 = vld [vmem:[%s3037_s5 + $0x260] ss:$20 sps:$4 sm:$0xff]   ;;  %v2792_v34 = vld [vmem:[%s3037_s5 + $0x268] ss:$20 sps:$4 sm:$0xff]  }
  0x60   : > { %1434 = vmatprep.mubr.bf16.mxu0 %v2701_v36  ;;  %2361 = vmatpush1.bf16.msra.mxu1 %v2951_v27  ;;  %v2714_v27 = vld [vmem:[%s3037_s5 + $0xf4] ss:$20 sps:$4 sm:$0xff]  }
  0x61   : > { %2346 = vmatprep.subr.bf16.mxu1 %v2961_v29  ;;  %v2716_v29 = vld [vmem:[%s3037_s5 + $0xfc] ss:$20 sps:$4 sm:$0xff]  }
  0x64   : > { %2362 = vmatpush1.bf16.msra.mxu1 %v2972_v31  ;;  %v2718_v31 = vld [vmem:[%s3037_s5 + $0xf0] ss:$20 sps:$4 sm:$0xff]  }
  0x65   : > { %2347 = vmatprep.subr.bf16.mxu1 %v2981_v33  ;;  %v2719_v33 = vld [vmem:[%s3037_s5 + $0xf8] ss:$20 sps:$4 sm:$0xff]  }
  0x66   : > { %1242 = vmatmul.mubr.bf16.gmra.mrb[16].mxu1 %v2703_v15 }
  0x67   : > { %1435 = vmatmul.mubr.bf16.gmra.mrb[16].mxu0 %v2704_v17  ;;  %1251 = vmatprep.mubr.bf16.mxu1 %v2708_v19 }
  0x68   : > { %1444 = vmatprep.mubr.bf16.mxu0 %v2710_v21  ;;  %2363 = vmatpush1.bf16.msra.mxu1 %v2989_v35  ;;  %v2723_v35 = vld [vmem:[%s3037_s5 + $0x11c] ss:$20 sps:$4 sm:$0xff]  }
  0x69   : > { %2348 = vmatprep.subr.bf16.mxu1 %v3001_v37  ;;  %v2725_v37 = vld [vmem:[%s3037_s5 + $0x124] ss:$20 sps:$4 sm:$0xff]  }
  0x6c   : > { %2364 = vmatpush1.bf16.msra.mxu1 %v3010_v39  ;;  %v2728_v39 = vld [vmem:[%s3037_s5 + $0x120] ss:$20 sps:$4 sm:$0xff]  }
  0x6d   : > { %2349 = vmatprep.subr.bf16.mxu1 %v3020_v41  ;;  %v2801_v41 = vmov 0  }
  0x6e   : > { %1252 = vmatmul.mubr.bf16.gmra.mrb[20].mxu1 %v2712_v23 }
  0x6f   : > { %1445 = vmatmul.mubr.bf16.gmra.mrb[20].mxu0 %v2713_v25  ;;  %1261 = vmatprep.mubr.bf16.mxu1 %v2714_v27 }
  0x70   : > { %1454 = vmatprep.mubr.bf16.mxu0 %v2716_v29  ;;  %2365 = vmatpush1.bf16.msra.mxu1 %v3028_v43  ;;  %v2732_v43 = vld [vmem:[%s3037_s5 + $0x10] ss:$20 sps:$4 sm:$0xff]  }
  0x71   : > { %2350 = vmatprep.subr.bf16.mxu1 %v3043_v45  ;;  %v2735_v45 = vld [vmem:[%s3037_s5 + $0x168] ss:$20 sps:$4 sm:$0xff]  }
  0x74   : > { %2366 = vmatpush1.bf16.msra.mxu1 %v3051_v47  ;;  %v2737_v47 = vld [vmem:[%s3037_s5 + $0x194] ss:$20 sps:$4 sm:$0xff]  }
  0x75   : > { %2351 = vmatprep.subr.bf16.mxu1 %v3061_v50  ;;  %v2741_v50 = vld [vmem:[%s3037_s5 + $0x1bc] ss:$20 sps:$4 sm:$0xff]  }
  0x76   : > { %1262 = vmatmul.mubr.bf16.gmra.mrb[24].mxu1 %v2718_v31 }
  0x77   : > { %1455 = vmatmul.mubr.bf16.gmra.mrb[24].mxu0 %v2719_v33  ;;  %1271 = vmatprep.mubr.bf16.mxu1 %v2723_v35 }
  0x78   : > { %1464 = vmatprep.mubr.bf16.mxu0 %v2725_v37  ;;  %2367 = vmatpush1.bf16.msra.mxu1 %v3072_v53  ;;  %v2745_v53 = vld [vmem:[%s3037_s5 + $0x1e4] ss:$20 sps:$4 sm:$0xff]  }
  0x79   : > { %2352 = vmatprep.subr.bf16.mxu1 %v3081_v55  ;;  %v2748_v55 = vld [vmem:[%s3037_s5 + $0xb0] ss:$20 sps:$4 sm:$0xff]  }
  0x7c   : > { %2368 = vmatpush1.bf16.msra.mxu1 %v3089_v57  ;;  %v2751_v57 = vld [vmem:[%s3037_s5 + $0x208] ss:$20 sps:$4 sm:$0xff]  }
  0x7d   : > { %2353 = vmatprep.subr.bf16.mxu1 %v3099_v59  ;;  %v2753_v59 = vld [vmem:[%s3037_s5 + $0x234] ss:$20 sps:$4 sm:$0xff]  }
  0x7e   : > { %1272 = vmatmul.mubr.bf16.gmra.mrb[28].mxu1 %v2727_v38 }
  0x7f   : > { %1465 = vmatmul.mubr.bf16.gmra.mrb[28].mxu0 %v2728_v39  ;;  %1281 = vmatprep.mubr.bf16.mxu1 %v2729_v40 }
  0x80   : > { %1587 = vmatprep.mubr.bf16.mxu0 %v2801_v41  ;;  %2369 = vmatpush1.bf16.msra.mxu1 %v3107_v61  ;;  %v2756_v61 = vld [vmem:[%s3037_s5 + $0x100] ss:$20 sps:$4 sm:$0xff]  }
  0x81   : > { %2354 = vmatprep.subr.bf16.mxu1 %v3117_v63  ;;  %v2759_v63 = vld [vmem:[%s3037_s5 + $0x258] ss:$20 sps:$4 sm:$0xff]  }
  0x84   : > { %2370 = vmatpush1.bf16.msra.mxu1 %v3126_v2  ;;  %v2763_v2 = vld [vmem:[%s3037_s5 + $0x14c] ss:$20 sps:$4 sm:$0xff]  }
  0x86   : > { %1282 = vmatmul.mubr.bf16.gmra.mrb[32].mxu1 %v2731_v42 }
  0x87   : > { %2256 = vmatmul.mubr.msk.bf16.vlgmr.msra.gmra.mrb[0].mxu0 %vm1120_vm0, %v2732_v43  ;;  %1291 = vmatprep.mubr.bf16.mxu1 %v2733_v44 }
  0x88   : > { %1597 = vmatprep.mubr.bf16.mxu0 %v2801_v41 }
  0x8e   : > { %1292 = vmatmul.mubr.bf16.gmra.mrb[36].mxu1 %v2735_v45 }
  0x8f   : > { %2257 = vmatmul.mubr.msk.bf16.gmra.mrb[4].mxu0 %vm1120_vm0, %v2736_v46  ;;  %1301 = vmatprep.mubr.bf16.mxu1 %v2737_v47 }
  0x90   : > { %1607 = vmatprep.mubr.bf16.mxu0 %v2801_v41 }
  0x96   : > { %1302 = vmatmul.mubr.bf16.gmra.mrb[40].mxu1 %v2739_v48 }
  0x97   : > { %2258 = vmatmul.mubr.msk.bf16.gmra.mrb[8].mxu0 %vm1120_vm0, %v2740_v49  ;;  %1311 = vmatprep.mubr.bf16.mxu1 %v2741_v50  ;;  %v350_v49 = vlaneseq }
  0x98   : > { %1617 = vmatprep.mubr.bf16.mxu0 %v2801_v41 }
  0x9e   : > { %1312 = vmatmul.mubr.bf16.gmra.mrb[44].mxu1 %v2743_v51 }
  0x9f   : > { %2259 = vmatmul.mubr.msk.bf16.gmra.mrb[12].mxu0 %vm1120_vm0, %v2744_v52  ;;  %1321 = vmatprep.mubr.bf16.mxu1 %v2745_v53  ;;  %v351_v53 = vshrl.u32 %v350_v49, 7 }
  0xa0   : > { %1627 = vmatprep.mubr.bf16.mxu0 %v2801_v41 }
  0xa6   : > { %1322 = vmatmul.mubr.bf16.gmra.mrb[48].mxu1 %v2747_v54 }
  0xa7   : > { %2260 = vmatmul.mubr.msk.bf16.gmra.mrb[16].mxu0 %vm1120_vm0, %v2748_v55  ;;  %1331 = vmatprep.mubr.bf16.mxu1 %v2749_v56  ;;  %v352_v55 = vsub.s32 0, %v351_v53  ;;  %v348_v56 = vld [vmem:[%s3482_s2] sm:$0x3] }
  0xa8   : > { %1637 = vmatprep.mubr.bf16.mxu0 %v2801_v41 }
  0xae   : > { %1332 = vmatmul.mubr.bf16.gmra.mrb[52].mxu1 %v2751_v57  ;;  %v356_v57 = vsub.s32 1, %v351_v53 }
  0xaf   : > { %2261 = vmatmul.mubr.msk.bf16.gmra.mrb[20].mxu0 %vm1120_vm0, %v2752_v58  ;;  %1341 = vmatprep.mubr.bf16.mxu1 %v2753_v59 }
  0xb0   : > { %1647 = vmatprep.mubr.bf16.mxu0 %v2801_v41 }
  0xb6   : > { %1342 = vmatmul.mubr.bf16.gmra.mrb[56].mxu1 %v2755_v60 }
  0xb7   : > { %2262 = vmatmul.mubr.msk.bf16.gmra.mrb[24].mxu0 %vm1120_vm0, %v2756_v61  ;;  %1351 = vmatprep.mubr.bf16.mxu1 %v2757_v62  ;;  %v3345_v61 = vrot.slane %v348_v56, %v352_v55 }
  0xb8   : > { %1657 = vmatprep.mubr.bf16.mxu0 %v2801_v41 }
  0xbe   : > { %1352 = vmatmul.mubr.bf16.gmra.mrb[60].mxu1 %v2759_v63  ;;  %v3349_v63 = vrot.slane %v348_v56, %v356_v57 }
  0xbf   : > { %2263 = vmatmul.mubr.msk.bf16.gmra.mrb[28].mxu0 %vm1120_vm0, %v2760_v0  ;;  %1474 = vmatprep.mubr.bf16.mxu1 %v2763_v2 }
  0xc0   : > { %1667 = vmatprep.mubr.bf16.mxu0 %v2801_v41 }
  0xc6   : > { %1475 = vmatmul.mubr.bf16.vlgmr.msra.gmra.mrb[32].mxu1 %v2761_v4 }
  0xc7   : > { %2264 = vmatmul.mubr.msk.bf16.gmra.mrb[32].mxu0 %vm1120_vm0, %v2764_v6  ;;  %1484 = vmatprep.mubr.bf16.mxu1 %v2765_v8 }
  0xc8   : > { %1677 = vmatprep.mubr.bf16.mxu0 %v2801_v41 }
  0xce   : > { %1485 = vmatmul.mubr.bf16.gmra.mrb[36].mxu1 %v2767_v10 }
  0xcf   : > { %2265 = vmatmul.mubr.msk.bf16.gmra.mrb[36].mxu0 %vm1120_vm0, %v2768_v12  ;;  %1494 = vmatprep.mubr.bf16.mxu1 %v2769_v14 }
  0xd0   : > { %1687 = vmatprep.mubr.bf16.mxu0 %v2801_v41 }
  0xd6   : > { %1495 = vmatmul.mubr.bf16.gmra.mrb[40].mxu1 %v2771_v16 }
  0xd7   : > { %2266 = vmatmul.mubr.msk.bf16.gmra.mrb[40].mxu0 %vm1120_vm0, %v2772_v18  ;;  %1504 = vmatprep.mubr.bf16.mxu1 %v2773_v1 }
  0xd8   : > { %1697 = vmatprep.mubr.bf16.mxu0 %v2801_v41 }
  0xde   : > { %1505 = vmatmul.mubr.bf16.gmra.mrb[44].mxu1 %v2775_v20 }
  0xdf   : > { %2267 = vmatmul.mubr.msk.bf16.gmra.mrb[44].mxu0 %vm1120_vm0, %v2776_v22  ;;  %1514 = vmatprep.mubr.bf16.mxu1 %v2777_v3 }
  0xe0   : > { %1707 = vmatprep.mubr.bf16.mxu0 %v2801_v41 }
  0xe6   : > { %1515 = vmatmul.mubr.bf16.gmra.mrb[48].mxu1 %v2779_v24 }
  0xe7   : > { %2268 = vmatmul.mubr.msk.bf16.gmra.mrb[48].mxu0 %vm1120_vm0, %v2780_v26  ;;  %1524 = vmatprep.mubr.bf16.mxu1 %v2781_v5 }
  0xe8   : > { %1717 = vmatprep.mubr.bf16.mxu0 %v2801_v41 }
  0xee   : > { %1525 = vmatmul.mubr.bf16.gmra.mrb[52].mxu1 %v2783_v7 }
  0xef   : > { %2269 = vmatmul.mubr.msk.bf16.gmra.mrb[52].mxu0 %vm1120_vm0, %v2784_v9  ;;  %1534 = vmatprep.mubr.bf16.mxu1 %v2785_v28 }
  0xf0   : > { %1727 = vmatprep.mubr.bf16.mxu0 %v2801_v41 }
  0xf6   : > { %1535 = vmatmul.mubr.bf16.gmra.mrb[56].mxu1 %v2787_v30 }
  0xf7   : > { %2270 = vmatmul.mubr.msk.bf16.gmra.mrb[56].mxu0 %vm1120_vm0, %v2788_v32  ;;  %1544 = vmatprep.mubr.bf16.mxu1 %v2789_v11 }
  0xf8   : > { %1737 = vmatprep.mubr.bf16.mxu0 %v2801_v41 }
  0xfe   : > { %1545 = vmatmul.mubr.bf16.gmra.mrb[60].mxu1 %v2791_v13 }
  0xff   : > { %2271 = vmatmul.mubr.msk.bf16.gmra.mrb[60].mxu0 %vm1120_vm0, %v2792_v34 }
 0x119   : > { %v1203_v36 = vpop.f32.mrb[0].mxu1 }
 0x11a   : > { %v1205_v15 = vpop.f32.mrb[1].mxu1  ;;  %v1204_v0 = vadd.f32 %v1203_v36, %v3345_v61 }
 0x11b   : > { %v1207_v17 = vpop.f32.mrb[2].mxu1  ;;  %v1206_v2 = vadd.f32 %v1205_v15, %v3349_v63 }
 0x11c   : > { %v1209_v19 = vpop.f32.mrb[3].mxu1  ;;  %v1208_v6 = vadd.f32 %v1207_v17, %v3345_v61 }
 0x11d   : > { %v1210_v12 = vadd.f32 %v1209_v19, %v3349_v63 }
 0x121   : > { %v1213_v21 = vpop.f32.mrb[4].mxu1 }
 0x122   : > { %v1215_v23 = vpop.f32.mrb[5].mxu1  ;;  %v1214_v7 = vadd.f32 %v1213_v21, %v3345_v61 }
 0x123   : > { %v1217_v25 = vpop.f32.mrb[6].mxu1  ;;  %v1216_v9 = vadd.f32 %v1215_v23, %v3349_v63 }
 0x124   : > { %v1219_v27 = vpop.f32.mrb[7].mxu1  ;;  %v1218_v32 = vadd.f32 %v1217_v25, %v3345_v61 }
 0x125   : > { %v1220_v34 = vadd.f32 %v1219_v27, %v3349_v63 }
 0x129   : > { %v3296_v29 = vpop.f32.mrb[8].mxu1 }
 0x12a   : > { %v3298_v31 = vpop.f32.mrb[9].mxu1  ;;  %v1224_v25 = vadd.f32 %v3296_v29, %v3345_v61 }
 0x12b   : > { %v3300_v33 = vpop.f32.mrb[10].mxu1  ;;  %v1226_v57 = vadd.f32 %v3298_v31, %v3349_v63 }
 0x12c   : > { %v3302_v35 = vpop.f32.mrb[11].mxu1 }
 0x131   : > { %v3304_v37 = vpop.f32.mrb[12].mxu1 }
 0x132   : > { %v3306_v38 = vpop.f32.mrb[13].mxu1 }
 0x133   : > { %v3308_v39 = vpop.f32.mrb[14].mxu1 }
 0x134   : > { %v3310_v40 = vpop.f32.mrb[15].mxu1 }
 0x139   : > { %v3312_v41 = vpop.f32.mrb[16].mxu1 }
 0x13a   : > { %v3314_v42 = vpop.f32.mrb[17].mxu1 }
 0x13b   : > { %v3316_v43 = vpop.f32.mrb[18].mxu1 }
 0x13c   : > { %v3318_v44 = vpop.f32.mrb[19].mxu1 }
 0x141   : > { %v3320_v45 = vpop.f32.mrb[20].mxu1 }
 0x142   : > { %v3322_v46 = vpop.f32.mrb[21].mxu1 }
 0x143   : > { %v3324_v47 = vpop.f32.mrb[22].mxu1 }
 0x144   : > { %v3326_v48 = vpop.f32.mrb[23].mxu1 }
 0x149   : > { %v3328_v50 = vpop.f32.mrb[24].mxu1 }
 0x14a   : > { %v3330_v51 = vpop.f32.mrb[25].mxu1 }
 0x14b   : > { %v3332_v52 = vpop.f32.mrb[26].mxu1 }
 0x14c   : > { %v3334_v54 = vpop.f32.mrb[27].mxu1 }
 0x151   : > { %v3339_v58 = vpop.f32.mrb[28].mxu1 }
 0x152   : > { %v3341_v59 = vpop.f32.mrb[29].mxu1 }
 0x153   : > { %v3343_v60 = vpop.f32.mrb[30].mxu1 }
 0x154   : > { %v3347_v62 = vpop.f32.mrb[31].mxu1 }
 0x15a   : > { %v1589_v4 = vpop.f32.mrb[0].mxu0 }
 0x15b   : > { %v2372_v8 = vadd.f32 %v1589_v4, %v1204_v0  ;;  %v1591_v10 = vpop.f32.mrb[1].mxu0 }
 0x15c   : > { %v2374_v14 = vadd.f32 %v1591_v10, %v1206_v2  ;;  %v1593_v16 = vpop.f32.mrb[2].mxu0  ;;  %v1228_v2 = vadd.f32 %v3300_v33, %v3345_v61  ;;  %v1234_v33 = vadd.f32 %v3304_v37, %v3345_v61 }
 0x15d   : > { %v1748_v18 = vmax.f32 %v2372_v8, 0.0  ;;  %v2376_v1 = vadd.f32 %v1593_v16, %v1208_v6  ;;  %v1595_v20 = vpop.f32.mrb[3].mxu0  ;;  %v1230_v8 = vadd.f32 %v3302_v35, %v3349_v63 }
 0x15e   : > { %v1749_v22 = vmax.f32 %v2374_v14, 0.0  ;;  %v2378_v3 = vadd.f32 %v1595_v20, %v1210_v12 }
 0x15f   : > { %v1750_v24 = vmax.f32 %v2376_v1, 0.0 }
 0x160   : > { %v2307_v26 = vpack.c.bf16 %v1749_v22, %v1748_v18  ;;  %v1751_v5 = vmax.f32 %v2378_v3, 0.0  ;;  %v1236_v3 = vadd.f32 %v3306_v38, %v3349_v63 }
 0x162   : > { %2004 = vst [vmem:[%s3359_s18] sm:$0xff] %v2307_v26  ;;  %v2308_v28 = vpack.c.bf16 %v1751_v5, %v1750_v24  ;;  %v1599_v30 = vpop.f32.mrb[4].mxu0  ;;  %v1238_v26 = vadd.f32 %v3308_v39, %v3345_v61  ;;  %v1244_v39 = vadd.f32 %v3312_v41, %v3345_v61 }
 0x163   : > { %v2380_v11 = vadd.f32 %v1599_v30, %v1214_v7  ;;  %v1601_v13 = vpop.f32.mrb[5].mxu0 }
 0x164   : > { %2005 = vst [vmem:[%s3359_s18 + $0x8] sm:$0xff] %v2308_v28  ;;  %v2382_v36 = vadd.f32 %v1601_v13, %v1216_v9  ;;  %v1603_v15 = vpop.f32.mrb[6].mxu0  ;;  %v1240_v9 = vadd.f32 %v3310_v40, %v3349_v63 }
 0x165   : > { %v1752_v17 = vmax.f32 %v2380_v11, 0.0  ;;  %v2384_v19 = vadd.f32 %v1603_v15, %v1218_v32  ;;  %v1605_v49 = vpop.f32.mrb[7].mxu0 }
 0x166   : > { %v1753_v21 = vmax.f32 %v2382_v36, 0.0  ;;  %v2386_v53 = vadd.f32 %v1605_v49, %v1220_v34  ;;  %v1248_v49 = vadd.f32 %v3316_v43, %v3345_v61  ;;  %v1254_v43 = vadd.f32 %v3320_v45, %v3345_v61 }
 0x167   : > { %v1754_v23 = vmax.f32 %v2384_v19, 0.0 }
 0x168   : > { %v2309_v55 = vpack.c.bf16 %v1753_v21, %v1752_v17  ;;  %v1755_v56 = vmax.f32 %v2386_v53, 0.0  ;;  %v1246_v17 = vadd.f32 %v3314_v42, %v3349_v63 }
 0x16a   : > { %2006 = vst [vmem:[%s3359_s18 + $0x10] sm:$0xff] %v2309_v55  ;;  %v2310_v27 = vpack.c.bf16 %v1755_v56, %v1754_v23  ;;  %v1609_v0 = vpop.f32.mrb[8].mxu0  ;;  %v1250_v23 = vadd.f32 %v3318_v44, %v3349_v63 }
 0x16b   : > { %v2388_v4 = vadd.f32 %v1609_v0, %v1224_v25  ;;  %v1611_v6 = vpop.f32.mrb[9].mxu0 }
 0x16c   : > { %2007 = vst [vmem:[%s3359_s18 + $0x18] sm:$0xff] %v2310_v27  ;;  %v2390_v10 = vadd.f32 %v1611_v6, %v1226_v57  ;;  %v1613_v12 = vpop.f32.mrb[10].mxu0  ;;  %v1256_v6 = vadd.f32 %v3322_v46, %v3349_v63 }
 0x16d   : > { %v1756_v14 = vmax.f32 %v2388_v4, 0.0  ;;  %v2392_v29 = vadd.f32 %v1613_v12, %v1228_v2  ;;  %v1615_v16 = vpop.f32.mrb[11].mxu0 }
 0x16e   : > { %v1757_v31 = vmax.f32 %v2390_v10, 0.0  ;;  %v2394_v18 = vadd.f32 %v1615_v16, %v1230_v8  ;;  %v1258_v10 = vadd.f32 %v3324_v47, %v3345_v61  ;;  %v1264_v47 = vadd.f32 %v3328_v50, %v3345_v61 }
 0x16f   : > { %v1758_v1 = vmax.f32 %v2392_v29, 0.0  ;;  %v1260_v29 = vadd.f32 %v3326_v48, %v3349_v63 }
 0x170   : > { %v2311_v20 = vpack.c.bf16 %v1757_v31, %v1756_v14  ;;  %v1759_v22 = vmax.f32 %v2394_v18, 0.0 }
 0x172   : > { %2008 = vst [vmem:[%s3359_s18 + $0x20] sm:$0xff] %v2311_v20  ;;  %v2312_v35 = vpack.c.bf16 %v1759_v22, %v1758_v1  ;;  %v1619_v24 = vpop.f32.mrb[12].mxu0 }
 0x173   : > { %v2396_v5 = vadd.f32 %v1619_v24, %v1234_v33  ;;  %v1621_v7 = vpop.f32.mrb[13].mxu0 }
 0x174   : > { %2009 = vst [vmem:[%s3359_s18 + $0x28] sm:$0xff] %v2312_v35  ;;  %v2398_v28 = vadd.f32 %v1621_v7, %v1236_v3  ;;  %v1623_v30 = vpop.f32.mrb[14].mxu0  ;;  %v1266_v35 = vadd.f32 %v3330_v51, %v3349_v63 }
 0x175   : > { %v1760_v32 = vmax.f32 %v2396_v5, 0.0  ;;  %v2400_v37 = vadd.f32 %v1623_v30, %v1238_v26  ;;  %v1625_v11 = vpop.f32.mrb[15].mxu0  ;;  %v1268_v26 = vadd.f32 %v3332_v52, %v3345_v61  ;;  %v1274_v52 = vadd.f32 %v3339_v58, %v3345_v61 }
 0x176   : > { %v1761_v38 = vmax.f32 %v2398_v28, 0.0  ;;  %v2402_v13 = vadd.f32 %v1625_v11, %v1240_v9  ;;  %v1270_v9 = vadd.f32 %v3334_v54, %v3349_v63 }
 0x177   : > { %v1762_v34 = vmax.f32 %v2400_v37, 0.0 }
 0x178   : > { %v2313_v36 = vpack.c.bf16 %v1761_v38, %v1760_v32  ;;  %v1763_v15 = vmax.f32 %v2402_v13, 0.0 }
 0x17a   : > { %2010 = vst [vmem:[%s3359_s18 + $0x30] sm:$0xff] %v2313_v36  ;;  %v2314_v40 = vpack.c.bf16 %v1763_v15, %v1762_v34  ;;  %v1629_v19 = vpop.f32.mrb[16].mxu0  ;;  %v1276_v36 = vadd.f32 %v3341_v59, %v3349_v63 }
 0x17b   : > { %v2404_v21 = vadd.f32 %v1629_v19, %v1244_v39  ;;  %v1631_v53 = vpop.f32.mrb[17].mxu0  ;;  %v1278_v39 = vadd.f32 %v3343_v60, %v3345_v61  ;;  %v1280_v19 = vadd.f32 %v3347_v62, %v3349_v63 }
 0x17c   : > { %2011 = vst [vmem:[%s3359_s18 + $0x38] sm:$0xff] %v2314_v40  ;;  %v2406_v55 = vadd.f32 %v1631_v53, %v1246_v17  ;;  %v1633_v56 = vpop.f32.mrb[18].mxu0 }
 0x17d   : > { %v1764_v25 = vmax.f32 %v2404_v21, 0.0  ;;  %v2408_v41 = vadd.f32 %v1633_v56, %v1248_v49  ;;  %v1635_v57 = vpop.f32.mrb[19].mxu0 }
 0x17e   : > { %v1765_v42 = vmax.f32 %v2406_v55, 0.0  ;;  %v2410_v27 = vadd.f32 %v1635_v57, %v1250_v23 }
 0x17f   : > { %v1766_v0 = vmax.f32 %v2408_v41, 0.0 }
 0x180   : > { %v2315_v2 = vpack.c.bf16 %v1765_v42, %v1764_v25  ;;  %v1767_v4 = vmax.f32 %v2410_v27, 0.0 }
 0x182   : > { %2012 = vst [vmem:[%s3359_s18 + $0x40] sm:$0xff] %v2315_v2  ;;  %v2316_v44 = vpack.c.bf16 %v1767_v4, %v1766_v0  ;;  %v1639_v8 = vpop.f32.mrb[20].mxu0 }
 0x183   : > { %v2412_v12 = vadd.f32 %v1639_v8, %v1254_v43  ;;  %v1641_v14 = vpop.f32.mrb[21].mxu0 }
 0x184   : > { %2013 = vst [vmem:[%s3359_s18 + $0x48] sm:$0xff] %v2316_v44  ;;  %v2414_v16 = vadd.f32 %v1641_v14, %v1256_v6  ;;  %v1643_v31 = vpop.f32.mrb[22].mxu0 }
 0x185   : > { %v1768_v18 = vmax.f32 %v2412_v12, 0.0  ;;  %v2416_v45 = vadd.f32 %v1643_v31, %v1258_v10  ;;  %v1645_v1 = vpop.f32.mrb[23].mxu0 }
 0x186   : > { %v1769_v46 = vmax.f32 %v2414_v16, 0.0  ;;  %v2418_v20 = vadd.f32 %v1645_v1, %v1260_v29 }
 0x187   : > { %v1770_v22 = vmax.f32 %v2416_v45, 0.0 }
 0x188   : > { %v2317_v33 = vpack.c.bf16 %v1769_v46, %v1768_v18  ;;  %v1771_v3 = vmax.f32 %v2418_v20, 0.0 }
 0x18a   : > { %2014 = vst [vmem:[%s3359_s18 + $0x50] sm:$0xff] %v2317_v33  ;;  %v2318_v48 = vpack.c.bf16 %v1771_v3, %v1770_v22  ;;  %v1649_v24 = vpop.f32.mrb[24].mxu0 }
 0x18b   : > { %v2420_v5 = vadd.f32 %v1649_v24, %v1264_v47  ;;  %v1651_v7 = vpop.f32.mrb[25].mxu0 }
 0x18c   : > { %2015 = vst [vmem:[%s3359_s18 + $0x58] sm:$0xff] %v2318_v48  ;;  %v2422_v28 = vadd.f32 %v1651_v7, %v1266_v35  ;;  %v1653_v30 = vpop.f32.mrb[26].mxu0 }
 0x18d   : > { %v1772_v32 = vmax.f32 %v2420_v5, 0.0  ;;  %v2424_v50 = vadd.f32 %v1653_v30, %v1268_v26  ;;  %v1655_v37 = vpop.f32.mrb[27].mxu0 }
 0x18e   : > { %v1773_v51 = vmax.f32 %v2422_v28, 0.0  ;;  %v2426_v11 = vadd.f32 %v1655_v37, %v1270_v9 }
 0x18f   : > { %v1774_v38 = vmax.f32 %v2424_v50, 0.0 }
 0x190   : > { %v2319_v13 = vpack.c.bf16 %v1773_v51, %v1772_v32  ;;  %v1775_v34 = vmax.f32 %v2426_v11, 0.0 }
 0x192   : > { %2016 = vst [vmem:[%s3359_s18 + $0x60] sm:$0xff] %v2319_v13  ;;  %v2320_v54 = vpack.c.bf16 %v1775_v34, %v1774_v38  ;;  %v1659_v15 = vpop.f32.mrb[28].mxu0 }
 0x193   : > { %v2428_v17 = vadd.f32 %v1659_v15, %v1274_v52  ;;  %v1661_v40 = vpop.f32.mrb[29].mxu0 }
 0x194   : > { %2017 = vst [vmem:[%s3359_s18 + $0x68] sm:$0xff] %v2320_v54  ;;  %v2430_v49 = vadd.f32 %v1661_v40, %v1276_v36  ;;  %v1663_v21 = vpop.f32.mrb[30].mxu0 }
 0x195   : > { %v1776_v58 = vmax.f32 %v2428_v17, 0.0  ;;  %v2432_v53 = vadd.f32 %v1663_v21, %v1278_v39  ;;  %v1665_v23 = vpop.f32.mrb[31].mxu0 }
 0x196   : > { %v1777_v59 = vmax.f32 %v2430_v49, 0.0  ;;  %v2434_v55 = vadd.f32 %v1665_v23, %v1280_v19 }
 0x197   : > { %v1778_v56 = vmax.f32 %v2432_v53, 0.0 }
 0x198   : > { %v2321_v25 = vpack.c.bf16 %v1777_v59, %v1776_v58  ;;  %v1779_v41 = vmax.f32 %v2434_v55, 0.0 }
 0x199   : > { %v1476_v60 = vpop.f32.mrb[32].mxu1 }
 0x19a   : > { %2018 = vst [vmem:[%s3359_s18 + $0x70] sm:$0xff] %v2321_v25  ;;  %v2322_v57 = vpack.c.bf16 %v1779_v41, %v1778_v56  ;;  %v1669_v42 = vpop.f32.mrb[32].mxu0  ;;  %v2435_v27 = vadd.f32 %v1476_v60, %v3345_v61  ;;  %v1478_v0 = vpop.f32.mrb[33].mxu1 }
 0x19b   : > { %v1671_v62 = vpop.f32.mrb[33].mxu0  ;;  %v2437_v2 = vadd.f32 %v1478_v0, %v3349_v63  ;;  %v1480_v4 = vpop.f32.mrb[34].mxu1 }
 0x19c   : > { %2019 = vst [vmem:[%s3359_s18 + $0x78] sm:$0xff] %v2322_v57  ;;  %v1673_v43 = vpop.f32.mrb[34].mxu0  ;;  %v2436_v6 = vadd.f32 %v2435_v27, %v1669_v42  ;;  %v2439_v44 = vadd.f32 %v1480_v4, %v3345_v61  ;;  %v1482_v8 = vpop.f32.mrb[35].mxu1 }
 0x19d   : > { %v1675_v10 = vpop.f32.mrb[35].mxu0  ;;  %v2438_v12 = vadd.f32 %v2437_v2, %v1671_v62  ;;  %v2441_v14 = vadd.f32 %v1482_v8, %v3349_v63 }
 0x19e   : > { %v1780_v29 = vmax.f32 %v2436_v6, 0.0  ;;  %v2440_v16 = vadd.f32 %v2439_v44, %v1673_v43 }
 0x19f   : > { %v1781_v31 = vmax.f32 %v2438_v12, 0.0  ;;  %v2442_v18 = vadd.f32 %v2441_v14, %v1675_v10 }
 0x1a0   : > { %v1782_v45 = vmax.f32 %v2440_v16, 0.0 }
 0x1a1   : > { %v2323_v1 = vpack.c.bf16 %v1781_v31, %v1780_v29  ;;  %v1783_v46 = vmax.f32 %v2442_v18, 0.0  ;;  %v1486_v20 = vpop.f32.mrb[36].mxu1 }
 0x1a2   : > { %v1679_v22 = vpop.f32.mrb[36].mxu0  ;;  %v2443_v33 = vadd.f32 %v1486_v20, %v3345_v61  ;;  %v1488_v3 = vpop.f32.mrb[37].mxu1 }
 0x1a3   : > { %v1681_v47 = vpop.f32.mrb[37].mxu0  ;;  %2020 = vst [vmem:[%s3359_s18 + $0x80] sm:$0xff] %v2323_v1  ;;  %v2324_v35 = vpack.c.bf16 %v1783_v46, %v1782_v45  ;;  %v2445_v48 = vadd.f32 %v1488_v3, %v3349_v63  ;;  %v1490_v24 = vpop.f32.mrb[38].mxu1 }
 0x1a4   : > { %v1683_v26 = vpop.f32.mrb[38].mxu0  ;;  %v2444_v5 = vadd.f32 %v2443_v33, %v1679_v22  ;;  %v2447_v7 = vadd.f32 %v1490_v24, %v3345_v61  ;;  %v1492_v9 = vpop.f32.mrb[39].mxu1 }
 0x1a5   : > { %v1685_v28 = vpop.f32.mrb[39].mxu0  ;;  %2021 = vst [vmem:[%s3359_s18 + $0x88] sm:$0xff] %v2324_v35  ;;  %v2446_v30 = vadd.f32 %v2445_v48, %v1681_v47  ;;  %v2449_v32 = vadd.f32 %v1492_v9, %v3349_v63 }
 0x1a6   : > { %v1784_v50 = vmax.f32 %v2444_v5, 0.0  ;;  %v2448_v37 = vadd.f32 %v2447_v7, %v1683_v26 }
 0x1a7   : > { %v1785_v51 = vmax.f32 %v2446_v30, 0.0  ;;  %v2450_v11 = vadd.f32 %v2449_v32, %v1685_v28 }
 0x1a8   : > { %v1786_v38 = vmax.f32 %v2448_v37, 0.0 }
 0x1a9   : > { %v2325_v13 = vpack.c.bf16 %v1785_v51, %v1784_v50  ;;  %v1787_v34 = vmax.f32 %v2450_v11, 0.0  ;;  %v1496_v52 = vpop.f32.mrb[40].mxu1 }
 0x1aa   : > { %v1689_v36 = vpop.f32.mrb[40].mxu0  ;;  %v2451_v54 = vadd.f32 %v1496_v52, %v3345_v61  ;;  %v1498_v15 = vpop.f32.mrb[41].mxu1 }
 0x1ab   : > { %v1691_v39 = vpop.f32.mrb[41].mxu0  ;;  %2022 = vst [vmem:[%s3359_s18 + $0x90] sm:$0xff] %v2325_v13  ;;  %v2326_v17 = vpack.c.bf16 %v1787_v34, %v1786_v38  ;;  %v2453_v40 = vadd.f32 %v1498_v15, %v3349_v63  ;;  %v1500_v19 = vpop.f32.mrb[42].mxu1 }
 0x1ac   : > { %v1693_v49 = vpop.f32.mrb[42].mxu0  ;;  %v2452_v21 = vadd.f32 %v2451_v54, %v1689_v36  ;;  %v2455_v58 = vadd.f32 %v1500_v19, %v3345_v61  ;;  %v1502_v53 = vpop.f32.mrb[43].mxu1 }
 0x1ad   : > { %v1695_v23 = vpop.f32.mrb[43].mxu0  ;;  %2023 = vst [vmem:[%s3359_s18 + $0x98] sm:$0xff] %v2326_v17  ;;  %v2454_v59 = vadd.f32 %v2453_v40, %v1691_v39  ;;  %v2457_v55 = vadd.f32 %v1502_v53, %v3349_v63 }
 0x1ae   : > { %v1788_v56 = vmax.f32 %v2452_v21, 0.0  ;;  %v2456_v25 = vadd.f32 %v2455_v58, %v1693_v49 }
 0x1af   : > { %v1789_v41 = vmax.f32 %v2454_v59, 0.0  ;;  %v2458_v57 = vadd.f32 %v2457_v55, %v1695_v23 }
 0x1b0   : > { %v1790_v60 = vmax.f32 %v2456_v25, 0.0 }
 0x1b1   : > { %v2327_v42 = vpack.c.bf16 %v1789_v41, %v1788_v56  ;;  %v1791_v27 = vmax.f32 %v2458_v57, 0.0  ;;  %v1506_v0 = vpop.f32.mrb[44].mxu1 }
 0x1b2   : > { %v1699_v62 = vpop.f32.mrb[44].mxu0  ;;  %v2459_v2 = vadd.f32 %v1506_v0, %v3345_v61  ;;  %v1508_v4 = vpop.f32.mrb[45].mxu1 }
 0x1b3   : > { %v1701_v43 = vpop.f32.mrb[45].mxu0  ;;  %2024 = vst [vmem:[%s3359_s18 + $0xa0] sm:$0xff] %v2327_v42  ;;  %v2328_v6 = vpack.c.bf16 %v1791_v27, %v1790_v60  ;;  %v2461_v44 = vadd.f32 %v1508_v4, %v3349_v63  ;;  %v1510_v8 = vpop.f32.mrb[46].mxu1 }
 0x1b4   : > { %v1703_v10 = vpop.f32.mrb[46].mxu0  ;;  %v2460_v12 = vadd.f32 %v2459_v2, %v1699_v62  ;;  %v2463_v14 = vadd.f32 %v1510_v8, %v3345_v61  ;;  %v1512_v29 = vpop.f32.mrb[47].mxu1 }
 0x1b5   : > { %v1705_v16 = vpop.f32.mrb[47].mxu0  ;;  %2025 = vst [vmem:[%s3359_s18 + $0xa8] sm:$0xff] %v2328_v6  ;;  %v2462_v31 = vadd.f32 %v2461_v44, %v1701_v43  ;;  %v2465_v18 = vadd.f32 %v1512_v29, %v3349_v63 }
 0x1b6   : > { %v1792_v45 = vmax.f32 %v2460_v12, 0.0  ;;  %v2464_v1 = vadd.f32 %v2463_v14, %v1703_v10 }
 0x1b7   : > { %v1793_v46 = vmax.f32 %v2462_v31, 0.0  ;;  %v2466_v20 = vadd.f32 %v2465_v18, %v1705_v16 }
 0x1b8   : > { %v1794_v22 = vmax.f32 %v2464_v1, 0.0 }
 0x1b9   : > { %v2329_v33 = vpack.c.bf16 %v1793_v46, %v1792_v45  ;;  %v1795_v3 = vmax.f32 %v2466_v20, 0.0  ;;  %v1516_v47 = vpop.f32.mrb[48].mxu1 }
 0x1ba   : > { %v1709_v35 = vpop.f32.mrb[48].mxu0  ;;  %v2467_v48 = vadd.f32 %v1516_v47, %v3345_v61  ;;  %v1518_v24 = vpop.f32.mrb[49].mxu1 }
 0x1bb   : > { %v1711_v26 = vpop.f32.mrb[49].mxu0  ;;  %2026 = vst [vmem:[%s3359_s18 + $0xb0] sm:$0xff] %v2329_v33  ;;  %v2330_v5 = vpack.c.bf16 %v1795_v3, %v1794_v22  ;;  %v2469_v7 = vadd.f32 %v1518_v24, %v3349_v63  ;;  %v1520_v9 = vpop.f32.mrb[50].mxu1 }
 0x1bc   : > { %v1713_v28 = vpop.f32.mrb[50].mxu0  ;;  %v2468_v30 = vadd.f32 %v2467_v48, %v1709_v35  ;;  %v2471_v32 = vadd.f32 %v1520_v9, %v3345_v61  ;;  %v1522_v50 = vpop.f32.mrb[51].mxu1 }
 0x1bd   : > { %v1715_v37 = vpop.f32.mrb[51].mxu0  ;;  %2027 = vst [vmem:[%s3359_s18 + $0xb8] sm:$0xff] %v2330_v5  ;;  %v2470_v51 = vadd.f32 %v2469_v7, %v1711_v26  ;;  %v2473_v11 = vadd.f32 %v1522_v50, %v3349_v63 }
 0x1be   : > { %v1796_v38 = vmax.f32 %v2468_v30, 0.0  ;;  %v2472_v13 = vadd.f32 %v2471_v32, %v1713_v28 }
 0x1bf   : > { %v1797_v34 = vmax.f32 %v2470_v51, 0.0  ;;  %v2474_v52 = vadd.f32 %v2473_v11, %v1715_v37 }
 0x1c0   : > { %v1798_v36 = vmax.f32 %v2472_v13, 0.0 }
 0x1c1   : > { %v2331_v54 = vpack.c.bf16 %v1797_v34, %v1796_v38  ;;  %v1799_v15 = vmax.f32 %v2474_v52, 0.0  ;;  %v1526_v39 = vpop.f32.mrb[52].mxu1 }
 0x1c2   : > { %v1719_v17 = vpop.f32.mrb[52].mxu0  ;;  %v2475_v40 = vadd.f32 %v1526_v39, %v3345_v61  ;;  %v1528_v19 = vpop.f32.mrb[53].mxu1 }
 0x1c3   : > { %v1721_v49 = vpop.f32.mrb[53].mxu0  ;;  %2028 = vst [vmem:[%s3359_s18 + $0xc0] sm:$0xff] %v2331_v54  ;;  %v2332_v21 = vpack.c.bf16 %v1799_v15, %v1798_v36  ;;  %v2477_v58 = vadd.f32 %v1528_v19, %v3349_v63  ;;  %v1530_v53 = vpop.f32.mrb[54].mxu1 }
 0x1c4   : > { %v1723_v23 = vpop.f32.mrb[54].mxu0  ;;  %v2476_v59 = vadd.f32 %v2475_v40, %v1719_v17  ;;  %v2479_v55 = vadd.f32 %v1530_v53, %v3345_v61  ;;  %v1532_v56 = vpop.f32.mrb[55].mxu1 }
 0x1c5   : > { %v1725_v25 = vpop.f32.mrb[55].mxu0  ;;  %2029 = vst [vmem:[%s3359_s18 + $0xc8] sm:$0xff] %v2332_v21  ;;  %v2478_v41 = vadd.f32 %v2477_v58, %v1721_v49  ;;  %v2481_v57 = vadd.f32 %v1532_v56, %v3349_v63 }
 0x1c6   : > { %v1800_v60 = vmax.f32 %v2476_v59, 0.0  ;;  %v2480_v42 = vadd.f32 %v2479_v55, %v1723_v23 }
 0x1c7   : > { %v1801_v27 = vmax.f32 %v2478_v41, 0.0  ;;  %v2482_v0 = vadd.f32 %v2481_v57, %v1725_v25 }
 0x1c8   : > { %v1802_v62 = vmax.f32 %v2480_v42, 0.0 }
 0x1c9   : > { %v2333_v2 = vpack.c.bf16 %v1801_v27, %v1800_v60  ;;  %v1803_v4 = vmax.f32 %v2482_v0, 0.0  ;;  %v1536_v43 = vpop.f32.mrb[56].mxu1 }
 0x1ca   : > { %v1729_v6 = vpop.f32.mrb[56].mxu0  ;;  %v2483_v44 = vadd.f32 %v1536_v43, %v3345_v61  ;;  %v1538_v8 = vpop.f32.mrb[57].mxu1 }
 0x1cb   : > { %v1731_v10 = vpop.f32.mrb[57].mxu0  ;;  %2030 = vst [vmem:[%s3359_s18 + $0xd0] sm:$0xff] %v2333_v2  ;;  %v2334_v12 = vpack.c.bf16 %v1803_v4, %v1802_v62  ;;  %v2485_v14 = vadd.f32 %v1538_v8, %v3349_v63  ;;  %v1540_v29 = vpop.f32.mrb[58].mxu1 }
 0x1cc   : > { %v1733_v16 = vpop.f32.mrb[58].mxu0  ;;  %v2484_v31 = vadd.f32 %v2483_v44, %v1729_v6  ;;  %v2487_v18 = vadd.f32 %v1540_v29, %v3345_v61  ;;  %v1542_v45 = vpop.f32.mrb[59].mxu1 }
 0x1cd   : > { %v1735_v1 = vpop.f32.mrb[59].mxu0  ;;  %2031 = vst [vmem:[%s3359_s18 + $0xd8] sm:$0xff] %v2334_v12  ;;  %v2486_v46 = vadd.f32 %v2485_v14, %v1731_v10  ;;  %v2489_v20 = vadd.f32 %v1542_v45, %v3349_v63 }
 0x1ce   : > { %v1804_v22 = vmax.f32 %v2484_v31, 0.0  ;;  %v2488_v33 = vadd.f32 %v2487_v18, %v1733_v16 }
 0x1cf   : > { %v1805_v3 = vmax.f32 %v2486_v46, 0.0  ;;  %v2490_v47 = vadd.f32 %v2489_v20, %v1735_v1 }
 0x1d0   : > { %v1806_v35 = vmax.f32 %v2488_v33, 0.0 }
 0x1d1   : > { %v2335_v48 = vpack.c.bf16 %v1805_v3, %v1804_v22  ;;  %v1807_v24 = vmax.f32 %v2490_v47, 0.0  ;;  %v1546_v26 = vpop.f32.mrb[60].mxu1 }
 0x1d2   : > { %v1739_v5 = vpop.f32.mrb[60].mxu0  ;;  %v2491_v7 = vadd.f32 %v1546_v26, %v3345_v61  ;;  %v1548_v9 = vpop.f32.mrb[61].mxu1 }
 0x1d3   : > { %v1741_v28 = vpop.f32.mrb[61].mxu0  ;;  %2032 = vst [vmem:[%s3359_s18 + $0xe0] sm:$0xff] %v2335_v48  ;;  %v2336_v30 = vpack.c.bf16 %v1807_v24, %v1806_v35  ;;  %v2493_v32 = vadd.f32 %v1548_v9, %v3349_v63  ;;  %v1550_v50 = vpop.f32.mrb[62].mxu1 }
 0x1d4   : > { %v1743_v37 = vpop.f32.mrb[62].mxu0  ;;  %v2492_v51 = vadd.f32 %v2491_v7, %v1739_v5  ;;  %v2495_v11 = vadd.f32 %v1550_v50, %v3345_v61  ;;  %v1552_v38 = vpop.f32.mrb[63].mxu1 }
 0x1d5   : > { %v1745_v13 = vpop.f32.mrb[63].mxu0  ;;  %2033 = vst [vmem:[%s3359_s18 + $0xe8] sm:$0xff] %v2336_v30  ;;  %v2494_v34 = vadd.f32 %v2493_v32, %v1741_v28  ;;  %v2497_v52 = vadd.f32 %v1552_v38, %v3349_v63 }
 0x1d6   : > { %v1808_v36 = vmax.f32 %v2492_v51, 0.0  ;;  %v2496_v54 = vadd.f32 %v2495_v11, %v1743_v37 }
 0x1d7   : > { %v1809_v15 = vmax.f32 %v2494_v34, 0.0  ;;  %v2498_v39 = vadd.f32 %v2497_v52, %v1745_v13 }
 0x1d8   : > { %v1810_v17 = vmax.f32 %v2496_v54, 0.0 }
 0x1d9   : > { %v2337_v40 = vpack.c.bf16 %v1809_v15, %v1808_v36  ;;  %v1811_v19 = vmax.f32 %v2498_v39, 0.0 }
 0x1db   : > { %2034 = vst [vmem:[%s3359_s18 + $0xf0] sm:$0xff] %v2337_v40  ;;  %v2338_v49 = vpack.c.bf16 %v1811_v19, %v1810_v17 }
 0x1dd   : > { %2035 = vst [vmem:[%s3359_s18 + $0xf8] sm:$0xff] %v2338_v49 }
 0x1de PF: > { %s13_s12 = sadd.s32 1, %s2799_s12  }
 0x1df   : > { %p10_p4 = scmp.ge.s32.totalorder %s13_s12, 4  }
 0x1e1   :  { %12 = sbr.rel (!%p10_p4) target bundleno = 1 (0x1), region = 62 }

// kernel: decoder_forward.7
= control target key start
LH: loop header
LB: loop body
LE: loop exit
PB: predicated region body
PF: predicated region fallthrough
CT: control target
= control target key end

     0   :  { %s7359_s12 = smov 0   ;;  %s8854_s0 = inlined_call_operand.vmem [shape: bf16[2048,576], index: 0, kind: input, shape index: {}]   ;;  %s8855_s1 = inlined_call_operand.vmem [shape: bf16[576,128], index: 1, kind: input, shape index: {}]   ;;  %s8856_s2 = inlined_call_operand.vmem [shape: f32[1,128], index: 2, kind: input, shape index: {}]   ;;  %s8857_s3 = inlined_call_operand.vmem [shape: f32[2048,128], index: 3, kind: output, shape index: {}]  }
   0x1 LB: > { %s5237_s13 = sadd.s32 4294967295, %s7336_s12   ;;  %p5241_p0 = scmp.ge.s32.totalorder %s7336_s12, 1  ;;  %s7336_s12 = sphi %s7359_s12, %s13_s12  }
   0x2   : > { %p139_p1 = scmp.lt.s32.totalorder %s7336_s12, 3 }
   0x4   : > { %p140_p2 = pnand %p5241_p0, %p139_p1 }
   0x6   : > { %143 = sbr.rel (%p140_p2) target bundleno = 964 (0x3c4), region = 32 }
   0xd   : > { %v6331_v0 = vld [vmem:[%s8855_s1] sm:$0xff]   ;;  %v7338_v1 = vmov 0   ;;  %s5242_s16 = sshll.u32 %s5237_s13, 7  ;;  %v6332_v2 = vld [vmem:[%s8855_s1 + $0x8] sm:$0xff]   ;;  %v6333_v3 = vld [vmem:[%s8855_s1 + $0x10] sm:$0xff]   ;;  %vm2457_vm0 = vcmask 523264  }
   0xe   : > { %2650 = vmatprep.subr.bf16.mxu0 %v7338_v1  ;;  %6001 = vmatprep.subr.bf16.mxu1 %v7338_v1  ;;  %p165_p3 = scmp.lt.s32.totalorder %s5242_s16, 255  ;;  %v6334_v4 = vld [vmem:[%s8855_s1 + $0x18] sm:$0xff]   ;;  %v6335_v5 = vld [vmem:[%s8855_s1 + $0x20] sm:$0xff]   ;;  %v6336_v7 = vld [vmem:[%s8855_s1 + $0x28] sm:$0xff]  }
   0xf   : > { %2651 = vmatpush1.bf16.msra.mxu0 %v6331_v0  ;;  %6017 = vmatpush1.bf16.msra.mxu1 %v6331_v0  ;;  %v6337_v9 = vld [vmem:[%s8855_s1 + $0x30] sm:$0xff]   ;;  %v6338_v10 = vld [vmem:[%s8855_s1 + $0x38] sm:$0xff]   ;;  %v6339_v11 = vld [vmem:[%s8855_s1 + $0x40] sm:$0xff]  }
  0x10   : > { %2652 = vmatprep.subr.bf16.mxu0 %v7338_v1  ;;  %6002 = vmatprep.subr.bf16.mxu1 %v7338_v1  ;;  %s9033_s16 = smov (!%p165_p3, %s5242_s16), 255  ;;  %v6340_v12 = vld [vmem:[%s8855_s1 + $0x48] sm:$0xff]   ;;  %v6341_v13 = vld [vmem:[%s8855_s1 + $0x50] sm:$0xff]   ;;  %v6342_v14 = vld [vmem:[%s8855_s1 + $0x58] sm:$0xff]  }
  0x11   : > { %s6321_s23 = smul.u32 20, %s9033_s16  ;;  %v6343_v15 = vld [vmem:[%s8855_s1 + $0x60] sm:$0xff]   ;;  %v6344_v16 = vld [vmem:[%s8855_s1 + $0x68] sm:$0xff]   ;;  %v6345_v17 = vld [vmem:[%s8855_s1 + $0x70] sm:$0xff]   ;;  %s5245_s20 = sshll.u32 %s9033_s16, 3 }
  0x12   : > { %v6346_v18 = vld [vmem:[%s8855_s1 + $0x78] sm:$0xff]   ;;  %v6354_v19 = vld [vmem:[%s8855_s1 + $0x100] sm:$0xff]   ;;  %v6439_v25 = vld [vmem:[%s8855_s1 + $0x108] sm:$0xff]   ;;  %s8364_s22 = scalar_lea.vmem %s8857_s3, %s5245_s20 }
  0x13   : > { %2653 = vmatpush1.bf16.msra.mxu0 %v6332_v2  ;;  %6018 = vmatpush1.bf16.msra.mxu1 %v6332_v2  ;;  %s7396_s28 = scalar_lea.vmem %s8854_s0, %s6321_s23  ;;  %v6353_v22 = vld [vmem:[%s8855_s1 + $0x80] sm:$0xff]   ;;  %v6361_v26 = vld [vmem:[%s8855_s1 + $0x88] sm:$0xff]   ;;  %v6368_v31 = vld [vmem:[%s8855_s1 + $0x90] sm:$0xff]  }
  0x14   : > { %2654 = vmatprep.subr.bf16.mxu0 %v7338_v1  ;;  %6003 = vmatprep.subr.bf16.mxu1 %v7338_v1  ;;  %v6349_v6 = vld [vmem:[%s7396_s28 + $0x4] ss:$20 sps:$4 sm:$0xff]   ;;  %v6347_v20 = vld [vmem:[%s7396_s28] ss:$20 sps:$4 sm:$0xff]   ;;  %v6359_v27 = vld [vmem:[%s7396_s28 + $0x28] ss:$20 sps:$4 sm:$0xff]  }
  0x15   : > { %v6352_v8 = vld [vmem:[%s7396_s28 + $0x284] ss:$20 sps:$4 sm:$0xff]   ;;  %2682 = vmatprep.mubr.bf16.mxu0 %v6349_v6  ;;  %v6350_v21 = vld [vmem:[%s7396_s28 + $0x280] ss:$20 sps:$4 sm:$0xff]   ;;  %v6360_v28 = vld [vmem:[%s7396_s28 + $0x2a8] ss:$20 sps:$4 sm:$0xff]  }
  0x16   : > { %2810 = vmatprep.mubr.bf16.mxu1 %v6352_v8  ;;  %v6355_v23 = vld [vmem:[%s7396_s28 + $0x2c] ss:$20 sps:$4 sm:$0xff]   ;;  %v6362_v29 = vld [vmem:[%s7396_s28 + $0x54] ss:$20 sps:$4 sm:$0xff]   ;;  %v6375_v32 = vld [vmem:[%s8855_s1 + $0x98] sm:$0xff]  }
  0x17   : > { %2655 = vmatpush1.bf16.msra.mxu0 %v6333_v3  ;;  %6019 = vmatpush1.bf16.msra.mxu1 %v6333_v3  ;;  %v6357_v24 = vld [vmem:[%s7396_s28 + $0x2ac] ss:$20 sps:$4 sm:$0xff]   ;;  %v6364_v30 = vld [vmem:[%s7396_s28 + $0x2d4] ss:$20 sps:$4 sm:$0xff]   ;;  %v6366_v33 = vld [vmem:[%s7396_s28 + $0x50] ss:$20 sps:$4 sm:$0xff]  }
  0x18   : > { %2656 = vmatprep.subr.bf16.mxu0 %v7338_v1  ;;  %6004 = vmatprep.subr.bf16.mxu1 %v7338_v1  ;;  %v6367_v34 = vld [vmem:[%s7396_s28 + $0x2d0] ss:$20 sps:$4 sm:$0xff]   ;;  %v6389_v38 = vld [vmem:[%s8855_s1 + $0xa8] sm:$0xff]   ;;  %v6403_v44 = vld [vmem:[%s8855_s1 + $0xb8] sm:$0xff]  }
  0x19   : > { %v6369_v35 = vld [vmem:[%s7396_s28 + $0x7c] ss:$20 sps:$4 sm:$0xff]   ;;  %v6382_v37 = vld [vmem:[%s8855_s1 + $0xa0] sm:$0xff]   ;;  %v6373_v39 = vld [vmem:[%s7396_s28 + $0x78] ss:$20 sps:$4 sm:$0xff]  }
  0x1a   : > { %v6371_v36 = vld [vmem:[%s7396_s28 + $0x2fc] ss:$20 sps:$4 sm:$0xff]   ;;  %v6374_v40 = vld [vmem:[%s7396_s28 + $0x2f8] ss:$20 sps:$4 sm:$0xff]   ;;  %v6380_v45 = vld [vmem:[%s7396_s28 + $0xa0] ss:$20 sps:$4 sm:$0xff]  }
  0x1b   : > { %2657 = vmatpush1.bf16.msra.mxu0 %v6334_v4  ;;  %6020 = vmatpush1.bf16.msra.mxu1 %v6334_v4  ;;  %v6376_v41 = vld [vmem:[%s7396_s28 + $0xa4] ss:$20 sps:$4 sm:$0xff]   ;;  %v6396_v43 = vld [vmem:[%s8855_s1 + $0xb0] sm:$0xff]   ;;  %v6383_v47 = vld [vmem:[%s7396_s28 + $0xcc] ss:$20 sps:$4 sm:$0xff]  }
  0x1c   : > { %2658 = vmatprep.subr.bf16.mxu0 %v7338_v1  ;;  %6005 = vmatprep.subr.bf16.mxu1 %v7338_v1  ;;  %v6378_v42 = vld [vmem:[%s7396_s28 + $0x324] ss:$20 sps:$4 sm:$0xff]   ;;  %v6381_v46 = vld [vmem:[%s7396_s28 + $0x320] ss:$20 sps:$4 sm:$0xff]   ;;  %v6417_v50 = vld [vmem:[%s8855_s1 + $0xc8] sm:$0xff]  }
  0x1d   : > { %v6385_v48 = vld [vmem:[%s7396_s28 + $0x34c] ss:$20 sps:$4 sm:$0xff]   ;;  %v6387_v51 = vld [vmem:[%s7396_s28 + $0xc8] ss:$20 sps:$4 sm:$0xff]   ;;  %v6424_v55 = vld [vmem:[%s8855_s1 + $0xd0] sm:$0xff]  }
  0x1e   : > { %v6410_v49 = vld [vmem:[%s8855_s1 + $0xc0] sm:$0xff]   ;;  %v6388_v52 = vld [vmem:[%s7396_s28 + $0x348] ss:$20 sps:$4 sm:$0xff]   ;;  %v6401_v63 = vld [vmem:[%s7396_s28 + $0x118] ss:$20 sps:$4 sm:$0xff]  }
  0x1f   : > { %2659 = vmatpush1.bf16.msra.mxu0 %v6335_v5  ;;  %6021 = vmatpush1.bf16.msra.mxu1 %v6335_v5  ;;  %v6390_v53 = vld [vmem:[%s7396_s28 + $0xf4] ss:$20 sps:$4 sm:$0xff]   ;;  %v6431_v56 = vld [vmem:[%s8855_s1 + $0xd8] sm:$0xff]   ;;  %v6394_v57 = vld [vmem:[%s7396_s28 + $0xf0] ss:$20 sps:$4 sm:$0xff]  }
  0x20   : > { %2660 = vmatprep.subr.bf16.mxu0 %v7338_v1  ;;  %6006 = vmatprep.subr.bf16.mxu1 %v7338_v1  ;;  %v6392_v54 = vld [vmem:[%s7396_s28 + $0x374] ss:$20 sps:$4 sm:$0xff]   ;;  %v6395_v58 = vld [vmem:[%s7396_s28 + $0x370] ss:$20 sps:$4 sm:$0xff]   ;;  %v6402_v0 = vld [vmem:[%s7396_s28 + $0x398] ss:$20 sps:$4 sm:$0xff]  }
  0x21   : > { %v6397_v59 = vld [vmem:[%s7396_s28 + $0x11c] ss:$20 sps:$4 sm:$0xff]   ;;  %v6438_v61 = vld [vmem:[%s8855_s1 + $0xe0] sm:$0xff]   ;;  %v6446_v62 = vld [vmem:[%s8855_s1 + $0xe8] sm:$0xff]  }
  0x22   : > { %v6399_v60 = vld [vmem:[%s7396_s28 + $0x39c] ss:$20 sps:$4 sm:$0xff]   ;;  %v6404_v2 = vld [vmem:[%s7396_s28 + $0x144] ss:$20 sps:$4 sm:$0xff]   ;;  %v6408_v6 = vld [vmem:[%s7396_s28 + $0x140] ss:$20 sps:$4 sm:$0xff]  }
  0x23   : > { %2661 = vmatpush1.bf16.msra.mxu0 %v6336_v7  ;;  %6022 = vmatpush1.bf16.msra.mxu1 %v6336_v7  ;;  %v6406_v3 = vld [vmem:[%s7396_s28 + $0x3c4] ss:$20 sps:$4 sm:$0xff]   ;;  %v6453_v4 = vld [vmem:[%s8855_s1 + $0xf0] sm:$0xff]   ;;  %v6411_v8 = vld [vmem:[%s7396_s28 + $0x16c] ss:$20 sps:$4 sm:$0xff]  }
  0x24   : > { %2662 = vmatprep.subr.bf16.mxu0 %v7338_v1  ;;  %6007 = vmatprep.subr.bf16.mxu1 %v7338_v1  ;;  %v6460_v5 = vld [vmem:[%s8855_s1 + $0xf8] sm:$0xff]   ;;  %v6409_v7 = vld [vmem:[%s7396_s28 + $0x3c0] ss:$20 sps:$4 sm:$0xff]  }
  0x27   : > { %2663 = vmatpush1.bf16.msra.mxu0 %v6337_v9  ;;  %6023 = vmatpush1.bf16.msra.mxu1 %v6337_v9  ;;  %v6413_v9 = vld [vmem:[%s7396_s28 + $0x3ec] ss:$20 sps:$4 sm:$0xff]  }
  0x28   : > { %2664 = vmatprep.subr.bf16.mxu0 %v7338_v1  ;;  %6008 = vmatprep.subr.bf16.mxu1 %v7338_v1 }
  0x2b   : > { %2665 = vmatpush1.bf16.msra.mxu0 %v6338_v10  ;;  %6024 = vmatpush1.bf16.msra.mxu1 %v6338_v10  ;;  %v6515_v10 = vld [vmem:[%s8855_s1 + $0x110] sm:$0xff]  }
  0x2c   : > { %2666 = vmatprep.subr.bf16.mxu0 %v7338_v1  ;;  %6009 = vmatprep.subr.bf16.mxu1 %v7338_v1 }
  0x2f   : > { %2667 = vmatpush1.bf16.msra.mxu0 %v6339_v11  ;;  %6025 = vmatpush1.bf16.msra.mxu1 %v6339_v11  ;;  %v6415_v11 = vld [vmem:[%s7396_s28 + $0x168] ss:$20 sps:$4 sm:$0xff]  }
  0x30   : > { %2668 = vmatprep.subr.bf16.mxu0 %v7338_v1  ;;  %6010 = vmatprep.subr.bf16.mxu1 %v7338_v1 }
  0x33   : > { %2669 = vmatpush1.bf16.msra.mxu0 %v6340_v12  ;;  %6026 = vmatpush1.bf16.msra.mxu1 %v6340_v12  ;;  %v6416_v12 = vld [vmem:[%s7396_s28 + $0x3e8] ss:$20 sps:$4 sm:$0xff]  }
  0x34   : > { %2670 = vmatprep.subr.bf16.mxu0 %v7338_v1  ;;  %6011 = vmatprep.subr.bf16.mxu1 %v7338_v1 }
  0x37   : > { %2671 = vmatpush1.bf16.msra.mxu0 %v6341_v13  ;;  %6027 = vmatpush1.bf16.msra.mxu1 %v6341_v13  ;;  %v6418_v13 = vld [vmem:[%s7396_s28 + $0x194] ss:$20 sps:$4 sm:$0xff]  }
  0x38   : > { %2672 = vmatprep.subr.bf16.mxu0 %v7338_v1  ;;  %6012 = vmatprep.subr.bf16.mxu1 %v7338_v1 }
  0x3b   : > { %2673 = vmatpush1.bf16.msra.mxu0 %v6342_v14  ;;  %6028 = vmatpush1.bf16.msra.mxu1 %v6342_v14  ;;  %v6422_v14 = vld [vmem:[%s7396_s28 + $0x190] ss:$20 sps:$4 sm:$0xff]  }
  0x3c   : > { %2674 = vmatprep.subr.bf16.mxu0 %v7338_v1  ;;  %6013 = vmatprep.subr.bf16.mxu1 %v7338_v1 }
  0x3f   : > { %2675 = vmatpush1.bf16.msra.mxu0 %v6343_v15  ;;  %6029 = vmatpush1.bf16.msra.mxu1 %v6343_v15  ;;  %v6423_v15 = vld [vmem:[%s7396_s28 + $0x410] ss:$20 sps:$4 sm:$0xff]  }
  0x40   : > { %2676 = vmatprep.subr.bf16.mxu0 %v7338_v1  ;;  %6014 = vmatprep.subr.bf16.mxu1 %v7338_v1 }
  0x43   : > { %2677 = vmatpush1.bf16.msra.mxu0 %v6344_v16  ;;  %6030 = vmatpush1.bf16.msra.mxu1 %v6344_v16  ;;  %v6425_v16 = vld [vmem:[%s7396_s28 + $0x1bc] ss:$20 sps:$4 sm:$0xff]  }
  0x44   : > { %2678 = vmatprep.subr.bf16.mxu0 %v7338_v1  ;;  %6015 = vmatprep.subr.bf16.mxu1 %v7338_v1 }
  0x47   : > { %2679 = vmatpush1.bf16.msra.mxu0 %v6345_v17  ;;  %6031 = vmatpush1.bf16.msra.mxu1 %v6345_v17  ;;  %v6427_v17 = vld [vmem:[%s7396_s28 + $0x43c] ss:$20 sps:$4 sm:$0xff]  }
  0x48   : > { %2680 = vmatprep.subr.bf16.mxu0 %v7338_v1  ;;  %6016 = vmatprep.subr.bf16.mxu1 %v7338_v1 }
  0x4b   : > { %2681 = vmatpush1.bf16.msra.mxu0 %v6346_v18  ;;  %6032 = vmatpush1.bf16.msra.mxu1 %v6346_v18  ;;  %v6429_v18 = vld [vmem:[%s7396_s28 + $0x1b8] ss:$20 sps:$4 sm:$0xff]  }
  0x4c   : > { %3195 = vmatprep.subr.bf16.mxu0 %v7338_v1  ;;  %5865 = vmatprep.subr.bf16.mxu1 %v6354_v19 }
  0x4e   : > { %2683 = vmatmul.mubr.bf16.vlgmr.msra.gmra.mrb[0].mxu0 %v6347_v20  ;;  %2811 = vmatmul.mubr.bf16.vlgmr.msra.gmra.mrb[0].mxu1 %v6350_v21  ;;  %v6432_v20 = vld [vmem:[%s7396_s28 + $0x1e4] ss:$20 sps:$4 sm:$0xff]  }
  0x4f   : > { %3196 = vmatpush1.bf16.msra.mxu0 %v6353_v22  ;;  %5866 = vmatpush3.bf16.msra.mxu1 %v6354_v19  ;;  %v6430_v19 = vld [vmem:[%s7396_s28 + $0x438] ss:$20 sps:$4 sm:$0xff]   ;;  %v6436_v22 = vld [vmem:[%s7396_s28 + $0x1e0] ss:$20 sps:$4 sm:$0xff]  }
  0x50   : > { %2690 = vmatprep.mubr.bf16.mxu0 %v6355_v23  ;;  %2818 = vmatprep.mubr.bf16.mxu1 %v6357_v24  ;;  %v6434_v21 = vld [vmem:[%s7396_s28 + $0x464] ss:$20 sps:$4 sm:$0xff]   ;;  %v6437_v23 = vld [vmem:[%s7396_s28 + $0x460] ss:$20 sps:$4 sm:$0xff]  }
  0x51   : > { %3197 = vmatprep.subr.bf16.mxu0 %v7338_v1  ;;  %5867 = vmatprep.subr.bf16.mxu1 %v6439_v25  ;;  %v6440_v24 = vld [vmem:[%s7396_s28 + $0x20c] ss:$20 sps:$4 sm:$0xff]  }
  0x53   : > { %3198 = vmatpush1.bf16.msra.mxu0 %v6361_v26  ;;  %5868 = vmatpush3.bf16.msra.mxu1 %v6439_v25  ;;  %v6442_v25 = vld [vmem:[%s7396_s28 + $0x48c] ss:$20 sps:$4 sm:$0xff]   ;;  %v6444_v26 = vld [vmem:[%s7396_s28 + $0x208] ss:$20 sps:$4 sm:$0xff]  }
  0x54   : > { %3199 = vmatprep.subr.bf16.mxu0 %v7338_v1  ;;  %5869 = vmatprep.subr.bf16.mxu1 %v6515_v10 }
  0x56   : > { %2691 = vmatmul.mubr.bf16.gmra.mrb[4].mxu0 %v6359_v27  ;;  %2819 = vmatmul.mubr.bf16.gmra.mrb[4].mxu1 %v6360_v28  ;;  %v6445_v27 = vld [vmem:[%s7396_s28 + $0x488] ss:$20 sps:$4 sm:$0xff]  }
  0x57   : > { %2698 = vmatprep.mubr.bf16.mxu0 %v6362_v29  ;;  %2826 = vmatprep.mubr.bf16.mxu1 %v6364_v30  ;;  %v6447_v28 = vld [vmem:[%s7396_s28 + $0x234] ss:$20 sps:$4 sm:$0xff]   ;;  %v6451_v30 = vld [vmem:[%s7396_s28 + $0x230] ss:$20 sps:$4 sm:$0xff]  }
  0x58   : > { %3200 = vmatpush1.bf16.msra.mxu0 %v6368_v31  ;;  %5870 = vmatpush3.bf16.msra.mxu1 %v6515_v10  ;;  %v6449_v29 = vld [vmem:[%s7396_s28 + $0x4b4] ss:$20 sps:$4 sm:$0xff]   ;;  %v6452_v31 = vld [vmem:[%s7396_s28 + $0x4b0] ss:$20 sps:$4 sm:$0xff]   ;;  %v6516_v10 = vld [vmem:[%s7396_s28 + $0x66c] ss:$20 sps:$4 sm:$0xff]  }
  0x59   : > { %3201 = vmatprep.subr.bf16.mxu0 %v7338_v1 }
  0x5c   : > { %3202 = vmatpush1.bf16.msra.mxu0 %v6375_v32  ;;  %v6454_v32 = vld [vmem:[%s7396_s28 + $0x25c] ss:$20 sps:$4 sm:$0xff]  }
  0x5d   : > { %3203 = vmatprep.subr.bf16.mxu0 %v7338_v1 }
  0x5e   : > { %2699 = vmatmul.mubr.bf16.gmra.mrb[8].mxu0 %v6366_v33  ;;  %2827 = vmatmul.mubr.bf16.gmra.mrb[8].mxu1 %v6367_v34  ;;  %v6456_v33 = vld [vmem:[%s7396_s28 + $0x4dc] ss:$20 sps:$4 sm:$0xff]   ;;  %v6458_v34 = vld [vmem:[%s7396_s28 + $0x258] ss:$20 sps:$4 sm:$0xff]  }
  0x5f   : > { %2706 = vmatprep.mubr.bf16.mxu0 %v6369_v35  ;;  %2834 = vmatprep.mubr.bf16.mxu1 %v6371_v36  ;;  %v6459_v35 = vld [vmem:[%s7396_s28 + $0x4d8] ss:$20 sps:$4 sm:$0xff]  }
  0x60   : > { %3204 = vmatpush1.bf16.msra.mxu0 %v6382_v37  ;;  %v6461_v36 = vld [vmem:[%s7396_s28 + $0x504] ss:$20 sps:$4 sm:$0xff]   ;;  %v6465_v37 = vld [vmem:[%s7396_s28 + $0xc] ss:$20 sps:$4 sm:$0xff]  }
  0x61   : > { %3205 = vmatprep.subr.bf16.mxu0 %v7338_v1 }
  0x64   : > { %3206 = vmatpush1.bf16.msra.mxu0 %v6389_v38  ;;  %v6463_v38 = vld [vmem:[%s7396_s28 + $0x8] ss:$20 sps:$4 sm:$0xff]  }
  0x65   : > { %3207 = vmatprep.subr.bf16.mxu0 %v7338_v1 }
  0x66   : > { %2707 = vmatmul.mubr.bf16.gmra.mrb[12].mxu0 %v6373_v39  ;;  %2835 = vmatmul.mubr.bf16.gmra.mrb[12].mxu1 %v6374_v40  ;;  %v6466_v39 = vld [vmem:[%s7396_s28 + $0x500] ss:$20 sps:$4 sm:$0xff]  }
  0x67   : > { %2714 = vmatprep.mubr.bf16.mxu0 %v6376_v41  ;;  %2842 = vmatprep.mubr.bf16.mxu1 %v6378_v42  ;;  %v6467_v40 = vld [vmem:[%s7396_s28 + $0x52c] ss:$20 sps:$4 sm:$0xff]   ;;  %v6469_v41 = vld [vmem:[%s7396_s28 + $0x34] ss:$20 sps:$4 sm:$0xff]  }
  0x68   : > { %3208 = vmatpush1.bf16.msra.mxu0 %v6396_v43  ;;  %v6471_v42 = vld [vmem:[%s7396_s28 + $0x528] ss:$20 sps:$4 sm:$0xff]   ;;  %v6472_v43 = vld [vmem:[%s7396_s28 + $0x30] ss:$20 sps:$4 sm:$0xff]  }
  0x69   : > { %3209 = vmatprep.subr.bf16.mxu0 %v7338_v1 }
  0x6c   : > { %3210 = vmatpush1.bf16.msra.mxu0 %v6403_v44  ;;  %v6473_v44 = vld [vmem:[%s7396_s28 + $0x554] ss:$20 sps:$4 sm:$0xff]  }
  0x6d   : > { %3211 = vmatprep.subr.bf16.mxu0 %v7338_v1 }
  0x6e   : > { %2715 = vmatmul.mubr.bf16.gmra.mrb[16].mxu0 %v6380_v45  ;;  %2843 = vmatmul.mubr.bf16.gmra.mrb[16].mxu1 %v6381_v46  ;;  %v6475_v45 = vld [vmem:[%s7396_s28 + $0x5c] ss:$20 sps:$4 sm:$0xff]  }
  0x6f   : > { %2722 = vmatprep.mubr.bf16.mxu0 %v6383_v47  ;;  %2850 = vmatprep.mubr.bf16.mxu1 %v6385_v48  ;;  %v6477_v46 = vld [vmem:[%s7396_s28 + $0x550] ss:$20 sps:$4 sm:$0xff]   ;;  %v6478_v47 = vld [vmem:[%s7396_s28 + $0x58] ss:$20 sps:$4 sm:$0xff]  }
  0x70   : > { %3212 = vmatpush1.bf16.msra.mxu0 %v6410_v49  ;;  %v6479_v48 = vld [vmem:[%s7396_s28 + $0x57c] ss:$20 sps:$4 sm:$0xff]   ;;  %v6481_v49 = vld [vmem:[%s7396_s28 + $0x84] ss:$20 sps:$4 sm:$0xff]  }
  0x71   : > { %3213 = vmatprep.subr.bf16.mxu0 %v7338_v1 }
  0x74   : > { %3214 = vmatpush1.bf16.msra.mxu0 %v6417_v50  ;;  %v6483_v50 = vld [vmem:[%s7396_s28 + $0x578] ss:$20 sps:$4 sm:$0xff]  }
  0x75   : > { %3215 = vmatprep.subr.bf16.mxu0 %v7338_v1 }
  0x76   : > { %2723 = vmatmul.mubr.bf16.gmra.mrb[20].mxu0 %v6387_v51  ;;  %2851 = vmatmul.mubr.bf16.gmra.mrb[20].mxu1 %v6388_v52  ;;  %v6484_v51 = vld [vmem:[%s7396_s28 + $0x80] ss:$20 sps:$4 sm:$0xff]   ;;  %v6485_v52 = vld [vmem:[%s7396_s28 + $0x5a4] ss:$20 sps:$4 sm:$0xff]  }
  0x77   : > { %2730 = vmatprep.mubr.bf16.mxu0 %v6390_v53  ;;  %2858 = vmatprep.mubr.bf16.mxu1 %v6392_v54  ;;  %v6487_v53 = vld [vmem:[%s7396_s28 + $0xac] ss:$20 sps:$4 sm:$0xff]  }
  0x78   : > { %3216 = vmatpush1.bf16.msra.mxu0 %v6424_v55  ;;  %v6489_v54 = vld [vmem:[%s7396_s28 + $0x5a0] ss:$20 sps:$4 sm:$0xff]   ;;  %v6490_v55 = vld [vmem:[%s7396_s28 + $0xa8] ss:$20 sps:$4 sm:$0xff]  }
  0x79   : > { %3217 = vmatprep.subr.bf16.mxu0 %v7338_v1 }
  0x7c   : > { %3218 = vmatpush1.bf16.msra.mxu0 %v6431_v56  ;;  %v6491_v56 = vld [vmem:[%s7396_s28 + $0x5cc] ss:$20 sps:$4 sm:$0xff]  }
  0x7d   : > { %3219 = vmatprep.subr.bf16.mxu0 %v7338_v1 }
  0x7e   : > { %2731 = vmatmul.mubr.bf16.gmra.mrb[24].mxu0 %v6394_v57  ;;  %2859 = vmatmul.mubr.bf16.gmra.mrb[24].mxu1 %v6395_v58  ;;  %v6493_v57 = vld [vmem:[%s7396_s28 + $0xd4] ss:$20 sps:$4 sm:$0xff]   ;;  %v6588_v58 = vld [vmem:[%s8855_s1 + $0x118] sm:$0xff]  }
  0x7f   : > { %2738 = vmatprep.mubr.bf16.mxu0 %v6397_v59  ;;  %2866 = vmatprep.mubr.bf16.mxu1 %v6399_v60  ;;  %v6495_v59 = vld [vmem:[%s7396_s28 + $0x5c8] ss:$20 sps:$4 sm:$0xff]   ;;  %v6496_v60 = vld [vmem:[%s7396_s28 + $0xd0] ss:$20 sps:$4 sm:$0xff]  }
  0x80   : > { %3220 = vmatpush1.bf16.msra.mxu0 %v6438_v61  ;;  %5871 = vmatprep.subr.bf16.mxu1 %v6588_v58  ;;  %v6497_v61 = vld [vmem:[%s7396_s28 + $0x5f4] ss:$20 sps:$4 sm:$0xff]  }
  0x81   : > { %3221 = vmatprep.subr.bf16.mxu0 %v7338_v1  ;;  %5872 = vmatpush3.bf16.msra.mxu1 %v6588_v58 }
  0x84   : > { %3222 = vmatpush1.bf16.msra.mxu0 %v6446_v62  ;;  %v6499_v62 = vld [vmem:[%s7396_s28 + $0xfc] ss:$20 sps:$4 sm:$0xff]  }
  0x85   : > { %3223 = vmatprep.subr.bf16.mxu0 %v7338_v1 }
  0x86   : > { %2739 = vmatmul.mubr.bf16.gmra.mrb[28].mxu0 %v6401_v63  ;;  %2867 = vmatmul.mubr.bf16.gmra.mrb[28].mxu1 %v6402_v0  ;;  %v6501_v63 = vld [vmem:[%s7396_s28 + $0x5f0] ss:$20 sps:$4 sm:$0xff]   ;;  %v6502_v0 = vld [vmem:[%s7396_s28 + $0xf8] ss:$20 sps:$4 sm:$0xff]  }
  0x87   : > { %2746 = vmatprep.mubr.bf16.mxu0 %v6404_v2  ;;  %2874 = vmatprep.mubr.bf16.mxu1 %v6406_v3  ;;  %v6503_v2 = vld [vmem:[%s7396_s28 + $0x61c] ss:$20 sps:$4 sm:$0xff]   ;;  %v6505_v3 = vld [vmem:[%s7396_s28 + $0x124] ss:$20 sps:$4 sm:$0xff]  }
  0x88   : > { %3224 = vmatpush1.bf16.msra.mxu0 %v6453_v4  ;;  %v6507_v4 = vld [vmem:[%s7396_s28 + $0x618] ss:$20 sps:$4 sm:$0xff]  }
  0x89   : > { %3225 = vmatprep.subr.bf16.mxu0 %v7338_v1  ;;  %v6420_v1 = vld [vmem:[%s7396_s28 + $0x414] ss:$20 sps:$4 sm:$0xff]  }
  0x8c   : > { %3226 = vmatpush1.bf16.msra.mxu0 %v6460_v5  ;;  %v6508_v5 = vld [vmem:[%s7396_s28 + $0x120] ss:$20 sps:$4 sm:$0xff]  }
  0x8e   : > { %2747 = vmatmul.mubr.bf16.gmra.mrb[32].mxu0 %v6408_v6  ;;  %2875 = vmatmul.mubr.bf16.gmra.mrb[32].mxu1 %v6409_v7  ;;  %v6509_v6 = vld [vmem:[%s7396_s28 + $0x644] ss:$20 sps:$4 sm:$0xff]   ;;  %v6511_v7 = vld [vmem:[%s7396_s28 + $0x14c] ss:$20 sps:$4 sm:$0xff]  }
  0x8f   : > { %2754 = vmatprep.mubr.bf16.mxu0 %v6411_v8  ;;  %2882 = vmatprep.mubr.bf16.mxu1 %v6413_v9  ;;  %v6513_v8 = vld [vmem:[%s7396_s28 + $0x640] ss:$20 sps:$4 sm:$0xff]   ;;  %v6514_v9 = vld [vmem:[%s7396_s28 + $0x148] ss:$20 sps:$4 sm:$0xff]  }
  0x96   : > { %2755 = vmatmul.mubr.bf16.gmra.mrb[36].mxu0 %v6415_v11  ;;  %2883 = vmatmul.mubr.bf16.gmra.mrb[36].mxu1 %v6416_v12  ;;  %v6518_v11 = vld [vmem:[%s7396_s28 + $0x174] ss:$20 sps:$4 sm:$0xff]  }
  0x97   : > { %2762 = vmatprep.mubr.bf16.mxu0 %v6418_v13  ;;  %2890 = vmatprep.mubr.bf16.mxu1 %v6420_v1  ;;  %v6520_v12 = vld [vmem:[%s7396_s28 + $0x668] ss:$20 sps:$4 sm:$0xff]   ;;  %v6521_v13 = vld [vmem:[%s7396_s28 + $0x170] ss:$20 sps:$4 sm:$0xff]  }
  0x98   : > { %v6522_v1 = vld [vmem:[%s7396_s28 + $0x694] ss:$20 sps:$4 sm:$0xff]  }
  0x9e   : > { %2763 = vmatmul.mubr.bf16.gmra.mrb[40].mxu0 %v6422_v14  ;;  %2891 = vmatmul.mubr.bf16.gmra.mrb[40].mxu1 %v6423_v15  ;;  %v6524_v14 = vld [vmem:[%s7396_s28 + $0x19c] ss:$20 sps:$4 sm:$0xff]  }
  0x9f   : > { %2770 = vmatprep.mubr.bf16.mxu0 %v6425_v16  ;;  %2898 = vmatprep.mubr.bf16.mxu1 %v6427_v17  ;;  %v6526_v15 = vld [vmem:[%s7396_s28 + $0x690] ss:$20 sps:$4 sm:$0xff]   ;;  %v6527_v16 = vld [vmem:[%s7396_s28 + $0x198] ss:$20 sps:$4 sm:$0xff]  }
  0xa0   : > { %v6528_v17 = vld [vmem:[%s7396_s28 + $0x6bc] ss:$20 sps:$4 sm:$0xff]  }
  0xa6   : > { %2771 = vmatmul.mubr.bf16.gmra.mrb[44].mxu0 %v6429_v18  ;;  %2899 = vmatmul.mubr.bf16.gmra.mrb[44].mxu1 %v6430_v19  ;;  %v6530_v18 = vld [vmem:[%s7396_s28 + $0x1c4] ss:$20 sps:$4 sm:$0xff]  }
  0xa7   : > { %2778 = vmatprep.mubr.bf16.mxu0 %v6432_v20  ;;  %2906 = vmatprep.mubr.bf16.mxu1 %v6434_v21  ;;  %v6532_v21 = vld [vmem:[%s7396_s28 + $0x6b8] ss:$20 sps:$4 sm:$0xff]  }
  0xae   : > { %2779 = vmatmul.mubr.bf16.gmra.mrb[48].mxu0 %v6436_v22  ;;  %2907 = vmatmul.mubr.bf16.gmra.mrb[48].mxu1 %v6437_v23  ;;  %v6533_v22 = vld [vmem:[%s7396_s28 + $0x1c0] ss:$20 sps:$4 sm:$0xff]  }
  0xaf   : > { %2786 = vmatprep.mubr.bf16.mxu0 %v6440_v24  ;;  %2914 = vmatprep.mubr.bf16.mxu1 %v6442_v25  ;;  %v6534_v24 = vld [vmem:[%s7396_s28 + $0x6e4] ss:$20 sps:$4 sm:$0xff]   ;;  %v6536_v25 = vld [vmem:[%s7396_s28 + $0x1ec] ss:$20 sps:$4 sm:$0xff]  }
  0xb6   : > { %2787 = vmatmul.mubr.bf16.gmra.mrb[52].mxu0 %v6444_v26  ;;  %2915 = vmatmul.mubr.bf16.gmra.mrb[52].mxu1 %v6445_v27 }
  0xb7   : > { %2794 = vmatprep.mubr.bf16.mxu0 %v6447_v28  ;;  %2922 = vmatprep.mubr.bf16.mxu1 %v6449_v29  ;;  %v6538_v29 = vld [vmem:[%s7396_s28 + $0x6e0] ss:$20 sps:$4 sm:$0xff]  }
  0xbe   : > { %2795 = vmatmul.mubr.bf16.gmra.mrb[56].mxu0 %v6451_v30  ;;  %2923 = vmatmul.mubr.bf16.gmra.mrb[56].mxu1 %v6452_v31  ;;  %v6539_v30 = vld [vmem:[%s7396_s28 + $0x1e8] ss:$20 sps:$4 sm:$0xff]  }
  0xbf   : > { %2802 = vmatprep.mubr.bf16.mxu0 %v6454_v32  ;;  %2930 = vmatprep.mubr.bf16.mxu1 %v6456_v33  ;;  %v6540_v32 = vld [vmem:[%s7396_s28 + $0x70c] ss:$20 sps:$4 sm:$0xff]   ;;  %v6542_v33 = vld [vmem:[%s7396_s28 + $0x214] ss:$20 sps:$4 sm:$0xff]  }
  0xc6   : > { %2803 = vmatmul.mubr.bf16.gmra.mrb[60].mxu0 %v6458_v34  ;;  %2931 = vmatmul.mubr.bf16.gmra.mrb[60].mxu1 %v6459_v35 }
  0xc7   : > { %2938 = vmatprep.mubr.bf16.mxu1 %v6461_v36  ;;  %3227 = vmatprep.mubr.bf16.mxu0 %v6465_v37  ;;  %v6544_v37 = vld [vmem:[%s7396_s28 + $0x708] ss:$20 sps:$4 sm:$0xff]  }
  0xce   : > { %2939 = vmatmul.mubr.bf16.gmra.mrb[64].mxu1 %v6466_v39  ;;  %3228 = vmatmul.mubr.bf16.vlgmr.msra.gmra.mrb[0].mxu0 %v6463_v38  ;;  %v6545_v38 = vld [vmem:[%s7396_s28 + $0x210] ss:$20 sps:$4 sm:$0xff]  }
  0xcf   : > { %2946 = vmatprep.mubr.bf16.mxu1 %v6467_v40  ;;  %3235 = vmatprep.mubr.bf16.mxu0 %v6469_v41  ;;  %v6546_v40 = vld [vmem:[%s7396_s28 + $0x734] ss:$20 sps:$4 sm:$0xff]   ;;  %v6548_v41 = vld [vmem:[%s7396_s28 + $0x23c] ss:$20 sps:$4 sm:$0xff]  }
  0xd6   : > { %2947 = vmatmul.mubr.bf16.gmra.mrb[68].mxu1 %v6471_v42  ;;  %3236 = vmatmul.mubr.bf16.gmra.mrb[4].mxu0 %v6472_v43 }
  0xd7   : > { %2954 = vmatprep.mubr.bf16.mxu1 %v6473_v44  ;;  %3243 = vmatprep.mubr.bf16.mxu0 %v6475_v45  ;;  %v6550_v45 = vld [vmem:[%s7396_s28 + $0x730] ss:$20 sps:$4 sm:$0xff]  }
  0xde   : > { %2955 = vmatmul.mubr.bf16.gmra.mrb[72].mxu1 %v6477_v46  ;;  %3244 = vmatmul.mubr.bf16.gmra.mrb[8].mxu0 %v6478_v47  ;;  %v6551_v46 = vld [vmem:[%s7396_s28 + $0x238] ss:$20 sps:$4 sm:$0xff]  }
  0xdf   : > { %2962 = vmatprep.mubr.bf16.mxu1 %v6479_v48  ;;  %3251 = vmatprep.mubr.bf16.mxu0 %v6481_v49  ;;  %v6552_v48 = vld [vmem:[%s7396_s28 + $0x75c] ss:$20 sps:$4 sm:$0xff]   ;;  %v6554_v49 = vld [vmem:[%s7396_s28 + $0x264] ss:$20 sps:$4 sm:$0xff]  }
  0xe6   : > { %2963 = vmatmul.mubr.bf16.gmra.mrb[76].mxu1 %v6483_v50  ;;  %3252 = vmatmul.mubr.bf16.gmra.mrb[12].mxu0 %v6484_v51 }
  0xe7   : > { %2970 = vmatprep.mubr.bf16.mxu1 %v6485_v52  ;;  %3259 = vmatprep.mubr.bf16.mxu0 %v6487_v53  ;;  %v6556_v53 = vld [vmem:[%s7396_s28 + $0x758] ss:$20 sps:$4 sm:$0xff]  }
  0xee   : > { %2971 = vmatmul.mubr.bf16.gmra.mrb[80].mxu1 %v6489_v54  ;;  %3260 = vmatmul.mubr.bf16.gmra.mrb[16].mxu0 %v6490_v55  ;;  %v6557_v54 = vld [vmem:[%s7396_s28 + $0x260] ss:$20 sps:$4 sm:$0xff]  }
  0xef   : > { %2978 = vmatprep.mubr.bf16.mxu1 %v6491_v56  ;;  %3267 = vmatprep.mubr.bf16.mxu0 %v6493_v57  ;;  %v6558_v56 = vld [vmem:[%s7396_s28 + $0x784] ss:$20 sps:$4 sm:$0xff]   ;;  %v6560_v57 = vld [vmem:[%s7396_s28 + $0x28c] ss:$20 sps:$4 sm:$0xff]  }
  0xf6   : > { %2979 = vmatmul.mubr.bf16.gmra.mrb[84].mxu1 %v6495_v59  ;;  %3268 = vmatmul.mubr.bf16.gmra.mrb[20].mxu0 %v6496_v60 }
  0xf7   : > { %2986 = vmatprep.mubr.bf16.mxu1 %v6497_v61  ;;  %3275 = vmatprep.mubr.bf16.mxu0 %v6499_v62  ;;  %v6562_v61 = vld [vmem:[%s7396_s28 + $0x780] ss:$20 sps:$4 sm:$0xff]   ;;  %v6563_v62 = vld [vmem:[%s7396_s28 + $0x288] ss:$20 sps:$4 sm:$0xff]  }
  0xfe   : > { %2987 = vmatmul.mubr.bf16.gmra.mrb[88].mxu1 %v6501_v63  ;;  %3276 = vmatmul.mubr.bf16.gmra.mrb[24].mxu0 %v6502_v0  ;;  %v6564_v0 = vld [vmem:[%s7396_s28 + $0x7ac] ss:$20 sps:$4 sm:$0xff]  }
  0xff   : > { %2994 = vmatprep.mubr.bf16.mxu1 %v6503_v2  ;;  %3283 = vmatprep.mubr.bf16.mxu0 %v6505_v3  ;;  %v6566_v2 = vld [vmem:[%s7396_s28 + $0x2b4] ss:$20 sps:$4 sm:$0xff]  }
 0x106   : > { %2995 = vmatmul.mubr.bf16.gmra.mrb[92].mxu1 %v6507_v4  ;;  %3284 = vmatmul.mubr.bf16.gmra.mrb[28].mxu0 %v6508_v5 }
 0x107   : > { %3002 = vmatprep.mubr.bf16.mxu1 %v6509_v6  ;;  %3291 = vmatprep.mubr.bf16.mxu0 %v6511_v7  ;;  %v6568_v6 = vld [vmem:[%s7396_s28 + $0x7a8] ss:$20 sps:$4 sm:$0xff]   ;;  %v6569_v7 = vld [vmem:[%s7396_s28 + $0x2b0] ss:$20 sps:$4 sm:$0xff]  }
 0x10e   : > { %3003 = vmatmul.mubr.bf16.gmra.mrb[96].mxu1 %v6513_v8  ;;  %3292 = vmatmul.mubr.bf16.gmra.mrb[32].mxu0 %v6514_v9  ;;  %v6570_v9 = vld [vmem:[%s7396_s28 + $0x7d4] ss:$20 sps:$4 sm:$0xff]  }
 0x10f   : > { %3010 = vmatprep.mubr.bf16.mxu1 %v6516_v10  ;;  %3299 = vmatprep.mubr.bf16.mxu0 %v6518_v11  ;;  %v6572_v10 = vld [vmem:[%s7396_s28 + $0x2dc] ss:$20 sps:$4 sm:$0xff]  }
 0x116   : > { %3011 = vmatmul.mubr.bf16.gmra.mrb[100].mxu1 %v6520_v12  ;;  %3300 = vmatmul.mubr.bf16.gmra.mrb[36].mxu0 %v6521_v13 }
 0x117   : > { %3018 = vmatprep.mubr.bf16.mxu1 %v6522_v1  ;;  %3307 = vmatprep.mubr.bf16.mxu0 %v6524_v14  ;;  %v6574_v1 = vld [vmem:[%s7396_s28 + $0x7d0] ss:$20 sps:$4 sm:$0xff]   ;;  %v6575_v14 = vld [vmem:[%s7396_s28 + $0x2d8] ss:$20 sps:$4 sm:$0xff]  }
 0x11e   : > { %3019 = vmatmul.mubr.bf16.gmra.mrb[104].mxu1 %v6526_v15  ;;  %3308 = vmatmul.mubr.bf16.gmra.mrb[40].mxu0 %v6527_v16  ;;  %v6576_v16 = vld [vmem:[%s7396_s28 + $0x7fc] ss:$20 sps:$4 sm:$0xff]  }
 0x11f   : > { %3026 = vmatprep.mubr.bf16.mxu1 %v6528_v17  ;;  %3315 = vmatprep.mubr.bf16.mxu0 %v6530_v18  ;;  %v6578_v17 = vld [vmem:[%s7396_s28 + $0x304] ss:$20 sps:$4 sm:$0xff]  }
 0x121   : > { %v7641_v19 = vpop.f32.mrb[0].mxu1 }
 0x122   : > { %v2814_v20 = vpop.f32.mrb[1].mxu1 }
 0x123   : > { %v7645_v23 = vpop.f32.mrb[2].mxu1 }
 0x124   : > { %v2817_v26 = vpop.f32.mrb[3].mxu1 }
 0x125   : > { %v6582_v26 = vld [vmem:[%s7396_s28 + $0x824] ss:$20 sps:$4 sm:$0xff]  }
 0x126   : > { %3027 = vmatmul.mubr.bf16.gmra.mrb[108].mxu1 %v6532_v21  ;;  %3316 = vmatmul.mubr.bf16.gmra.mrb[44].mxu0 %v6533_v22  ;;  %v6580_v22 = vld [vmem:[%s7396_s28 + $0x7f8] ss:$20 sps:$4 sm:$0xff]  }
 0x127   : > { %3034 = vmatprep.mubr.bf16.mxu1 %v6534_v24  ;;  %3323 = vmatprep.mubr.bf16.mxu0 %v6536_v25  ;;  %v6581_v24 = vld [vmem:[%s7396_s28 + $0x300] ss:$20 sps:$4 sm:$0xff]  }
 0x129   : > { %v7649_v27 = vpop.f32.mrb[4].mxu1 }
 0x12a   : > { %v2822_v28 = vpop.f32.mrb[5].mxu1 }
 0x12b   : > { %v7653_v31 = vpop.f32.mrb[6].mxu1  ;;  %v6584_v28 = vld [vmem:[%s7396_s28 + $0x32c] ss:$20 sps:$4 sm:$0xff]  }
 0x12c   : > { %v2825_v34 = vpop.f32.mrb[7].mxu1 }
 0x12d   : > { %v6587_v34 = vld [vmem:[%s7396_s28 + $0x328] ss:$20 sps:$4 sm:$0xff]  }
 0x12e   : > { %3035 = vmatmul.mubr.bf16.gmra.mrb[112].mxu1 %v6538_v29  ;;  %3324 = vmatmul.mubr.bf16.gmra.mrb[48].mxu0 %v6539_v30 }
 0x12f   : > { %3042 = vmatprep.mubr.bf16.mxu1 %v6540_v32  ;;  %3331 = vmatprep.mubr.bf16.mxu0 %v6542_v33  ;;  %v6586_v33 = vld [vmem:[%s7396_s28 + $0x820] ss:$20 sps:$4 sm:$0xff]  }
 0x131   : > { %v7657_v35 = vpop.f32.mrb[8].mxu1 }
 0x132   : > { %v2830_v36 = vpop.f32.mrb[9].mxu1 }
 0x133   : > { %v7661_v39 = vpop.f32.mrb[10].mxu1 }
 0x134   : > { %v2833_v42 = vpop.f32.mrb[11].mxu1 }
 0x136   : > { %3043 = vmatmul.mubr.bf16.gmra.mrb[116].mxu1 %v6544_v37  ;;  %3332 = vmatmul.mubr.bf16.gmra.mrb[52].mxu0 %v6545_v38  ;;  %v6589_v37 = vld [vmem:[%s7396_s28 + $0x84c] ss:$20 sps:$4 sm:$0xff]   ;;  %v6591_v38 = vld [vmem:[%s7396_s28 + $0x354] ss:$20 sps:$4 sm:$0xff]  }
 0x137   : > { %3050 = vmatprep.mubr.bf16.mxu1 %v6546_v40  ;;  %3339 = vmatprep.mubr.bf16.mxu0 %v6548_v41 }
 0x139   : > { %v7665_v43 = vpop.f32.mrb[12].mxu1 }
 0x13a   : > { %v2838_v44 = vpop.f32.mrb[13].mxu1 }
 0x13b   : > { %v7669_v47 = vpop.f32.mrb[14].mxu1  ;;  %v6593_v44 = vld [vmem:[%s7396_s28 + $0x848] ss:$20 sps:$4 sm:$0xff]  }
 0x13c   : > { %v2841_v50 = vpop.f32.mrb[15].mxu1 }
 0x13e   : > { %3051 = vmatmul.mubr.bf16.gmra.mrb[120].mxu1 %v6550_v45  ;;  %3340 = vmatmul.mubr.bf16.gmra.mrb[56].mxu0 %v6551_v46  ;;  %v6594_v45 = vld [vmem:[%s7396_s28 + $0x350] ss:$20 sps:$4 sm:$0xff]  }
 0x13f   : > { %3058 = vmatprep.mubr.bf16.mxu1 %v6552_v48  ;;  %3347 = vmatprep.mubr.bf16.mxu0 %v6554_v49  ;;  %v6595_v48 = vld [vmem:[%s7396_s28 + $0x874] ss:$20 sps:$4 sm:$0xff]   ;;  %v6597_v49 = vld [vmem:[%s7396_s28 + $0x37c] ss:$20 sps:$4 sm:$0xff]  }
 0x141   : > { %v7673_v51 = vpop.f32.mrb[16].mxu1 }
 0x142   : > { %v2846_v52 = vpop.f32.mrb[17].mxu1 }
 0x143   : > { %v7677_v55 = vpop.f32.mrb[18].mxu1 }
 0x144   : > { %v2849_v58 = vpop.f32.mrb[19].mxu1 }
 0x145   : > { %v6601_v58 = vld [vmem:[%s7396_s28 + $0x89c] ss:$20 sps:$4 sm:$0xff]  }
 0x146   : > { %3059 = vmatmul.mubr.bf16.gmra.mrb[124].mxu1 %v6556_v53  ;;  %3348 = vmatmul.mubr.bf16.gmra.mrb[60].mxu0 %v6557_v54  ;;  %v6599_v54 = vld [vmem:[%s7396_s28 + $0x870] ss:$20 sps:$4 sm:$0xff]  }
 0x147   : > { %3066 = vmatprep.mubr.bf16.mxu1 %v6558_v56  ;;  %3355 = vmatprep.mubr.bf16.mxu0 %v6560_v57  ;;  %v6600_v56 = vld [vmem:[%s7396_s28 + $0x378] ss:$20 sps:$4 sm:$0xff]  }
 0x149   : > { %v7681_v59 = vpop.f32.mrb[20].mxu1 }
 0x14a   : > { %v2854_v60 = vpop.f32.mrb[21].mxu1 }
 0x14b   : > { %v7685_v63 = vpop.f32.mrb[22].mxu1  ;;  %v6603_v60 = vld [vmem:[%s7396_s28 + $0x3a4] ss:$20 sps:$4 sm:$0xff]  }
 0x14c   : > { %v2857_v3 = vpop.f32.mrb[23].mxu1 }
 0x14d   : > { %v6606_v3 = vld [vmem:[%s7396_s28 + $0x3a0] ss:$20 sps:$4 sm:$0xff]  }
 0x14e   : > { %3067 = vmatmul.mubr.bf16.gmra.mrb[128].mxu1 %v6562_v61  ;;  %3356 = vmatmul.mubr.bf16.gmra.mrb[64].mxu0 %v6563_v62 }
 0x14f   : > { %3074 = vmatprep.mubr.bf16.mxu1 %v6564_v0  ;;  %3363 = vmatprep.mubr.bf16.mxu0 %v6566_v2  ;;  %v6605_v2 = vld [vmem:[%s7396_s28 + $0x898] ss:$20 sps:$4 sm:$0xff]  }
 0x151   : > { %v7689_v4 = vpop.f32.mrb[24].mxu1 }
 0x152   : > { %v2862_v5 = vpop.f32.mrb[25].mxu1 }
 0x153   : > { %v7693_v8 = vpop.f32.mrb[26].mxu1 }
 0x154   : > { %v2865_v11 = vpop.f32.mrb[27].mxu1 }
 0x156   : > { %3075 = vmatmul.mubr.bf16.gmra.mrb[132].mxu1 %v6568_v6  ;;  %3364 = vmatmul.mubr.bf16.gmra.mrb[68].mxu0 %v6569_v7  ;;  %v6607_v6 = vld [vmem:[%s7396_s28 + $0x8c4] ss:$20 sps:$4 sm:$0xff]   ;;  %v6609_v7 = vld [vmem:[%s7396_s28 + $0x3cc] ss:$20 sps:$4 sm:$0xff]  }
 0x157   : > { %3082 = vmatprep.mubr.bf16.mxu1 %v6570_v9  ;;  %3371 = vmatprep.mubr.bf16.mxu0 %v6572_v10 }
 0x159   : > { %v7697_v12 = vpop.f32.mrb[28].mxu1 }
 0x15a   : > { %v2870_v13 = vpop.f32.mrb[29].mxu1 }
 0x15b   : > { %v7701_v15 = vpop.f32.mrb[30].mxu1  ;;  %v6611_v13 = vld [vmem:[%s7396_s28 + $0x8c0] ss:$20 sps:$4 sm:$0xff]  }
 0x15c   : > { %v2873_v18 = vpop.f32.mrb[31].mxu1 }
 0x15e   : > { %3083 = vmatmul.mubr.bf16.gmra.mrb[136].mxu1 %v6574_v1  ;;  %3372 = vmatmul.mubr.bf16.gmra.mrb[72].mxu0 %v6575_v14  ;;  %v6612_v1 = vld [vmem:[%s7396_s28 + $0x3c8] ss:$20 sps:$4 sm:$0xff]  }
 0x15f   : > { %3090 = vmatprep.mubr.bf16.mxu1 %v6576_v16  ;;  %3379 = vmatprep.mubr.bf16.mxu0 %v6578_v17  ;;  %v6613_v16 = vld [vmem:[%s7396_s28 + $0x8ec] ss:$20 sps:$4 sm:$0xff]   ;;  %v6615_v17 = vld [vmem:[%s7396_s28 + $0x3f4] ss:$20 sps:$4 sm:$0xff]  }
 0x161   : > { %v7705_v20 = vpop.f32.mrb[32].mxu1 }
 0x162   : > { %v2878_v21 = vpop.f32.mrb[33].mxu1 }
 0x163   : > { %v7709_v25 = vpop.f32.mrb[34].mxu1 }
 0x164   : > { %v2881_v29 = vpop.f32.mrb[35].mxu1 }
 0x165   : > { %v6619_v29 = vld [vmem:[%s7396_s28 + $0x914] ss:$20 sps:$4 sm:$0xff]  }
 0x166   : > { %3091 = vmatmul.mubr.bf16.gmra.mrb[140].mxu1 %v6580_v22  ;;  %3380 = vmatmul.mubr.bf16.gmra.mrb[76].mxu0 %v6581_v24  ;;  %v6617_v24 = vld [vmem:[%s7396_s28 + $0x8e8] ss:$20 sps:$4 sm:$0xff]  }
 0x167   : > { %3098 = vmatprep.mubr.bf16.mxu1 %v6582_v26  ;;  %3387 = vmatprep.mubr.bf16.mxu0 %v6584_v28  ;;  %v6618_v26 = vld [vmem:[%s7396_s28 + $0x3f0] ss:$20 sps:$4 sm:$0xff]  }
 0x169   : > { %v7713_v30 = vpop.f32.mrb[36].mxu1 }
 0x16a   : > { %v2886_v32 = vpop.f32.mrb[37].mxu1 }
 0x16b   : > { %v7717_v36 = vpop.f32.mrb[38].mxu1  ;;  %v6621_v32 = vld [vmem:[%s7396_s28 + $0x41c] ss:$20 sps:$4 sm:$0xff]  }
 0x16c   : > { %v2889_v40 = vpop.f32.mrb[39].mxu1 }
 0x16d   : > { %v6624_v40 = vld [vmem:[%s7396_s28 + $0x418] ss:$20 sps:$4 sm:$0xff]  }
 0x16e   : > { %3099 = vmatmul.mubr.bf16.gmra.mrb[144].mxu1 %v6586_v33  ;;  %3388 = vmatmul.mubr.bf16.gmra.mrb[80].mxu0 %v6587_v34 }
 0x16f   : > { %3106 = vmatprep.mubr.bf16.mxu1 %v6589_v37  ;;  %3395 = vmatprep.mubr.bf16.mxu0 %v6591_v38  ;;  %v6623_v38 = vld [vmem:[%s7396_s28 + $0x910] ss:$20 sps:$4 sm:$0xff]  }
 0x171   : > { %v7721_v41 = vpop.f32.mrb[40].mxu1 }
 0x172   : > { %v2894_v42 = vpop.f32.mrb[41].mxu1 }
 0x173   : > { %v7725_v46 = vpop.f32.mrb[42].mxu1 }
 0x174   : > { %v2897_v50 = vpop.f32.mrb[43].mxu1 }
 0x176   : > { %3107 = vmatmul.mubr.bf16.gmra.mrb[148].mxu1 %v6593_v44  ;;  %3396 = vmatmul.mubr.bf16.gmra.mrb[84].mxu0 %v6594_v45  ;;  %v6625_v44 = vld [vmem:[%s7396_s28 + $0x93c] ss:$20 sps:$4 sm:$0xff]   ;;  %v6627_v45 = vld [vmem:[%s7396_s28 + $0x444] ss:$20 sps:$4 sm:$0xff]  }
 0x177   : > { %3114 = vmatprep.mubr.bf16.mxu1 %v6595_v48  ;;  %3403 = vmatprep.mubr.bf16.mxu0 %v6597_v49 }
 0x179   : > { %v7729_v52 = vpop.f32.mrb[44].mxu1 }
 0x17a   : > { %v2902_v53 = vpop.f32.mrb[45].mxu1 }
 0x17b   : > { %v7733_v57 = vpop.f32.mrb[46].mxu1 }
 0x17c   : > { %v2905_v61 = vpop.f32.mrb[47].mxu1 }
 0x17e   : > { %3115 = vmatmul.mubr.bf16.gmra.mrb[152].mxu1 %v6599_v54  ;;  %3404 = vmatmul.mubr.bf16.gmra.mrb[88].mxu0 %v6600_v56  ;;  %v6629_v56 = vld [vmem:[%s7396_s28 + $0x938] ss:$20 sps:$4 sm:$0xff]  }
 0x17f   : > { %3122 = vmatprep.mubr.bf16.mxu1 %v6601_v58  ;;  %3411 = vmatprep.mubr.bf16.mxu0 %v6603_v60  ;;  %v6630_v58 = vld [vmem:[%s7396_s28 + $0x440] ss:$20 sps:$4 sm:$0xff]  }
 0x181   : > { %v7737_v62 = vpop.f32.mrb[48].mxu1 }
 0x182   : > { %v2910_v0 = vpop.f32.mrb[49].mxu1 }
 0x183   : > { %v7741_v5 = vpop.f32.mrb[50].mxu1  ;;  %v6631_v0 = vld [vmem:[%s7396_s28 + $0x964] ss:$20 sps:$4 sm:$0xff]  }
 0x184   : > { %v2913_v9 = vpop.f32.mrb[51].mxu1 }
 0x186   : > { %3123 = vmatmul.mubr.bf16.gmra.mrb[156].mxu1 %v6605_v2  ;;  %3412 = vmatmul.mubr.bf16.gmra.mrb[92].mxu0 %v6606_v3  ;;  %v6633_v2 = vld [vmem:[%s7396_s28 + $0x46c] ss:$20 sps:$4 sm:$0xff]  }
 0x187   : > { %3130 = vmatprep.mubr.bf16.mxu1 %v6607_v6  ;;  %3419 = vmatprep.mubr.bf16.mxu0 %v6609_v7 }
 0x189   : > { %v7745_v10 = vpop.f32.mrb[52].mxu1 }
 0x18a   : > { %v2918_v11 = vpop.f32.mrb[53].mxu1 }
 0x18b   : > { %v7749_v14 = vpop.f32.mrb[54].mxu1 }
 0x18c   : > { %v2921_v18 = vpop.f32.mrb[55].mxu1 }
 0x18e   : > { %3131 = vmatmul.mubr.bf16.gmra.mrb[160].mxu1 %v6611_v13  ;;  %3420 = vmatmul.mubr.bf16.gmra.mrb[96].mxu0 %v6612_v1  ;;  %v6635_v1 = vld [vmem:[%s7396_s28 + $0x960] ss:$20 sps:$4 sm:$0xff]  }
 0x18f   : > { %3138 = vmatprep.mubr.bf16.mxu1 %v6613_v16  ;;  %3427 = vmatprep.mubr.bf16.mxu0 %v6615_v17  ;;  %v6636_v16 = vld [vmem:[%s7396_s28 + $0x468] ss:$20 sps:$4 sm:$0xff]  }
 0x191   : > { %v7753_v21 = vpop.f32.mrb[56].mxu1 }
 0x192   : > { %v2926_v22 = vpop.f32.mrb[57].mxu1 }
 0x193   : > { %v7757_v28 = vpop.f32.mrb[58].mxu1  ;;  %v6637_v22 = vld [vmem:[%s7396_s28 + $0x98c] ss:$20 sps:$4 sm:$0xff]  }
 0x194   : > { %v2929_v33 = vpop.f32.mrb[59].mxu1 }
 0x196   : > { %3139 = vmatmul.mubr.bf16.gmra.mrb[164].mxu1 %v6617_v24  ;;  %3428 = vmatmul.mubr.bf16.gmra.mrb[100].mxu0 %v6618_v26  ;;  %v6639_v24 = vld [vmem:[%s7396_s28 + $0x494] ss:$20 sps:$4 sm:$0xff]  }
 0x197   : > { %3146 = vmatprep.mubr.bf16.mxu1 %v6619_v29  ;;  %3435 = vmatprep.mubr.bf16.mxu0 %v6621_v32 }
 0x199   : > { %v7761_v34 = vpop.f32.mrb[60].mxu1 }
 0x19a   : > { %v2934_v37 = vpop.f32.mrb[61].mxu1 }
 0x19b   : > { %v7765_v42 = vpop.f32.mrb[62].mxu1 }
 0x19c   : > { %v2937_v48 = vpop.f32.mrb[63].mxu1 }
 0x19e   : > { %3147 = vmatmul.mubr.bf16.gmra.mrb[168].mxu1 %v6623_v38  ;;  %3436 = vmatmul.mubr.bf16.gmra.mrb[104].mxu0 %v6624_v40  ;;  %v6641_v40 = vld [vmem:[%s7396_s28 + $0x988] ss:$20 sps:$4 sm:$0xff]  }
 0x19f   : > { %3154 = vmatprep.mubr.bf16.mxu1 %v6625_v44  ;;  %3443 = vmatprep.mubr.bf16.mxu0 %v6627_v45  ;;  %v6642_v44 = vld [vmem:[%s7396_s28 + $0x490] ss:$20 sps:$4 sm:$0xff]  }
 0x1a1   : > { %v7769_v49 = vpop.f32.mrb[64].mxu1  ;;  %v7771_v50 = vpop.f32.mrb[0].mxu0 }
 0x1a2   : > { %v2942_v53 = vpop.f32.mrb[65].mxu1  ;;  %v3231_v54 = vpop.f32.mrb[1].mxu0 }
 0x1a3   : > { %v7775_v60 = vpop.f32.mrb[66].mxu1  ;;  %v7777_v61 = vpop.f32.mrb[2].mxu0  ;;  %v6643_v53 = vld [vmem:[%s7396_s28 + $0x9b4] ss:$20 sps:$4 sm:$0xff]   ;;  %v6645_v54 = vld [vmem:[%s7396_s28 + $0x4bc] ss:$20 sps:$4 sm:$0xff]  }
 0x1a4   : > { %v2945_v3 = vpop.f32.mrb[67].mxu1  ;;  %v3234_v6 = vpop.f32.mrb[3].mxu0 }
 0x1a6   : > { %3155 = vmatmul.mubr.bf16.gmra.mrb[172].mxu1 %v6629_v56  ;;  %3444 = vmatmul.mubr.bf16.gmra.mrb[108].mxu0 %v6630_v58 }
 0x1a7   : > { %3162 = vmatprep.mubr.bf16.mxu1 %v6631_v0  ;;  %3451 = vmatprep.mubr.bf16.mxu0 %v6633_v2 }
 0x1a9   : > { %v7781_v7 = vpop.f32.mrb[68].mxu1  ;;  %v7783_v9 = vpop.f32.mrb[4].mxu0 }
 0x1aa   : > { %v2950_v11 = vpop.f32.mrb[69].mxu1  ;;  %v3239_v13 = vpop.f32.mrb[5].mxu0 }
 0x1ab   : > { %v7787_v17 = vpop.f32.mrb[70].mxu1  ;;  %v7789_v18 = vpop.f32.mrb[6].mxu0  ;;  %v6647_v11 = vld [vmem:[%s7396_s28 + $0x9b0] ss:$20 sps:$4 sm:$0xff]   ;;  %v6648_v13 = vld [vmem:[%s7396_s28 + $0x4b8] ss:$20 sps:$4 sm:$0xff]  }
 0x1ac   : > { %v2953_v26 = vpop.f32.mrb[71].mxu1  ;;  %v3242_v29 = vpop.f32.mrb[7].mxu0 }
 0x1ae   : > { %3163 = vmatmul.mubr.bf16.gmra.mrb[176].mxu1 %v6635_v1  ;;  %3452 = vmatmul.mubr.bf16.gmra.mrb[112].mxu0 %v6636_v16 }
 0x1af   : > { %3170 = vmatprep.mubr.bf16.mxu1 %v6637_v22  ;;  %3459 = vmatprep.mubr.bf16.mxu0 %v6639_v24  ;;  %v6649_v22 = vld [vmem:[%s7396_s28 + $0x9dc] ss:$20 sps:$4 sm:$0xff]   ;;  %v6651_v24 = vld [vmem:[%s7396_s28 + $0x4e4] ss:$20 sps:$4 sm:$0xff]  }
 0x1b1   : > { %v7793_v32 = vpop.f32.mrb[72].mxu1  ;;  %v7795_v33 = vpop.f32.mrb[8].mxu0 }
 0x1b2   : > { %v2958_v37 = vpop.f32.mrb[73].mxu1  ;;  %v3247_v38 = vpop.f32.mrb[9].mxu0 }
 0x1b3   : > { %v7799_v45 = vpop.f32.mrb[74].mxu1  ;;  %v7801_v48 = vpop.f32.mrb[10].mxu0 }
 0x1b4   : > { %v2961_v56 = vpop.f32.mrb[75].mxu1  ;;  %v3250_v58 = vpop.f32.mrb[11].mxu0 }
 0x1b6   : > { %3171 = vmatmul.mubr.bf16.gmra.mrb[180].mxu1 %v6641_v40  ;;  %3460 = vmatmul.mubr.bf16.gmra.mrb[116].mxu0 %v6642_v44 }
 0x1b7   : > { %3178 = vmatprep.mubr.bf16.mxu1 %v6643_v53  ;;  %3467 = vmatprep.mubr.bf16.mxu0 %v6645_v54  ;;  %v6653_v53 = vld [vmem:[%s7396_s28 + $0x9d8] ss:$20 sps:$4 sm:$0xff]   ;;  %v6654_v54 = vld [vmem:[%s7396_s28 + $0x4e0] ss:$20 sps:$4 sm:$0xff]  }
 0x1b9   : > { %v7805_v0 = vpop.f32.mrb[76].mxu1  ;;  %v7807_v2 = vpop.f32.mrb[12].mxu0 }
 0x1ba   : > { %8858 = vst [vmem:[#allocation2_spill] sm:$0xff] %v7805_v0  ;;  %v2966_v3 = vpop.f32.mrb[77].mxu1  ;;  %v3255_v6 = vpop.f32.mrb[13].mxu0 }
 0x1bb   : > { %v7811_v1 = vpop.f32.mrb[78].mxu1  ;;  %v7813_v16 = vpop.f32.mrb[14].mxu0  ;;  %v6655_v3 = vld [vmem:[%s7396_s28 + $0x50c] ss:$20 sps:$4 sm:$0xff]   ;;  %v6657_v6 = vld [vmem:[%s7396_s28 + $0x10] ss:$20 sps:$4 sm:$0xff]  }
 0x1bc   : > { %8859 = vst [vmem:[#allocation3_spill] sm:$0xff] %v7811_v1  ;;  %v2969_v26 = vpop.f32.mrb[79].mxu1  ;;  %v3258_v29 = vpop.f32.mrb[15].mxu0 }
 0x1be   : > { %3179 = vmatmul.mubr.bf16.gmra.mrb[184].mxu1 %v6647_v11  ;;  %3468 = vmatmul.mubr.bf16.gmra.mrb[120].mxu0 %v6648_v13 }
 0x1bf   : > { %3186 = vmatprep.mubr.bf16.mxu1 %v6649_v22  ;;  %3475 = vmatprep.mubr.bf16.mxu0 %v6651_v24 }
 0x1c1   : > { %v7817_v37 = vpop.f32.mrb[80].mxu1  ;;  %v7819_v38 = vpop.f32.mrb[16].mxu0 }
 0x1c2   : > { %8860 = vst [vmem:[#allocation4_spill] sm:$0xff] %v7817_v37  ;;  %v2974_v40 = vpop.f32.mrb[81].mxu1  ;;  %v3263_v44 = vpop.f32.mrb[17].mxu0  ;;  %v6664_v37 = vld [vmem:[%s7396_s28 + $0x88] ss:$20 sps:$4 sm:$0xff]  }
 0x1c3   : > { %v7823_v56 = vpop.f32.mrb[82].mxu1  ;;  %v7825_v58 = vpop.f32.mrb[18].mxu0  ;;  %v6658_v40 = vld [vmem:[%s7396_s28 + $0x508] ss:$20 sps:$4 sm:$0xff]   ;;  %v6659_v44 = vld [vmem:[%s7396_s28 + $0x38] ss:$20 sps:$4 sm:$0xff]  }
 0x1c4   : > { %8861 = vst [vmem:[#allocation5_spill] sm:$0xff] %v7823_v56  ;;  %v2977_v11 = vpop.f32.mrb[83].mxu1  ;;  %v3266_v13 = vpop.f32.mrb[19].mxu0 }
 0x1c5   : > { %v6660_v13 = vld [vmem:[%s7396_s28 + $0x534] ss:$20 sps:$4 sm:$0xff]  }
 0x1c6   : > { %3187 = vmatmul.mubr.bf16.gmra.mrb[188].mxu1 %v6653_v53  ;;  %3476 = vmatmul.mubr.bf16.gmra.mrb[124].mxu0 %v6654_v54  ;;  %v6662_v53 = vld [vmem:[%s7396_s28 + $0x60] ss:$20 sps:$4 sm:$0xff]  }
 0x1c7   : > { %3483 = vmatprep.mubr.bf16.mxu0 %v6655_v3  ;;  %5873 = vmatprep.mubr.msk.bf16.mxu1 %vm2457_vm0, %v6657_v6 }
 0x1c9   : > { %v7830_v22 = vpop.f32.mrb[84].mxu1  ;;  %v7832_v24 = vpop.f32.mrb[20].mxu0 }
 0x1ca   : > { %8862 = vst [vmem:[#allocation6_spill] sm:$0xff] %v7830_v22  ;;  %v2982_v26 = vpop.f32.mrb[85].mxu1  ;;  %v3271_v29 = vpop.f32.mrb[21].mxu0  ;;  %v6663_v22 = vld [vmem:[%s7396_s28 + $0x530] ss:$20 sps:$4 sm:$0xff]  }
 0x1cb   : > { %v7836_v56 = vpop.f32.mrb[86].mxu1  ;;  %v7838_v11 = vpop.f32.mrb[22].mxu0 }
 0x1cc   : > { %8863 = vst [vmem:[#allocation7_spill] sm:$0xff] %v7836_v56  ;;  %8864 = vst [vmem:[#allocation8_spill] sm:$0xff] %v7838_v11  ;;  %v2985_v54 = vpop.f32.mrb[87].mxu1  ;;  %v3274_v3 = vpop.f32.mrb[23].mxu0 }
 0x1ce   : > { %3484 = vmatmul.mubr.bf16.gmra.mrb[128].mxu0 %v6658_v40  ;;  %5874 = vmatmul.mubr.msk.bf16.vlgmr.msra.gmra.mrb[192].mxu1 %vm2457_vm0, %v6659_v44  ;;  %v6665_v40 = vld [vmem:[%s7396_s28 + $0x55c] ss:$20 sps:$4 sm:$0xff]  }
 0x1cf   : > { %3491 = vmatprep.mubr.bf16.mxu0 %v6660_v13  ;;  %5877 = vmatprep.mubr.msk.bf16.mxu1 %vm2457_vm0, %v6662_v53  ;;  %v6667_v44 = vld [vmem:[%s7396_s28 + $0xb0] ss:$20 sps:$4 sm:$0xff]  }
 0x1d1   : > { %v7844_v6 = vpop.f32.mrb[88].mxu1  ;;  %v7846_v26 = vpop.f32.mrb[24].mxu0 }
 0x1d2   : > { %8865 = vst [vmem:[#allocation9_spill] sm:$0xff] %v7844_v6  ;;  %8866 = vst [vmem:[#allocation10_spill] sm:$0xff] %v7846_v26  ;;  %v2990_v29 = vpop.f32.mrb[89].mxu1  ;;  %v3279_v56 = vpop.f32.mrb[25].mxu0  ;;  %v6668_v6 = vld [vmem:[%s7396_s28 + $0x558] ss:$20 sps:$4 sm:$0xff]  }
 0x1d3   : > { %v7850_v1 = vpop.f32.mrb[90].mxu1  ;;  %v7852_v54 = vpop.f32.mrb[26].mxu0 }
 0x1d4   : > { %8867 = vst [vmem:[#allocation11_spill] sm:$0xff] %v7850_v1  ;;  %8868 = vst [vmem:[#allocation12_spill] sm:$0xff] %v7852_v54  ;;  %v2993_v13 = vpop.f32.mrb[91].mxu1  ;;  %v3282_v53 = vpop.f32.mrb[27].mxu0  ;;  %v6669_v54 = vld [vmem:[%s7396_s28 + $0xd8] ss:$20 sps:$4 sm:$0xff]  }
 0x1d6   : > { %3492 = vmatmul.mubr.bf16.gmra.mrb[132].mxu0 %v6663_v22  ;;  %5878 = vmatmul.mubr.msk.bf16.gmra.mrb[196].mxu1 %vm2457_vm0, %v6664_v37  ;;  %v6670_v22 = vld [vmem:[%s7396_s28 + $0x584] ss:$20 sps:$4 sm:$0xff]   ;;  %v6672_v37 = vld [vmem:[%s7396_s28 + $0x100] ss:$20 sps:$4 sm:$0xff]  }
 0x1d7   : > { %3499 = vmatprep.mubr.bf16.mxu0 %v6665_v40  ;;  %5881 = vmatprep.mubr.msk.bf16.mxu1 %vm2457_vm0, %v6667_v44 }
 0x1d9   : > { %v7858_v56 = vpop.f32.mrb[92].mxu1  ;;  %v7860_v3 = vpop.f32.mrb[28].mxu0 }
 0x1da   : > { %8869 = vst [vmem:[#allocation13_spill] sm:$0xff] %v7858_v56  ;;  %8870 = vst [vmem:[#allocation14_spill] sm:$0xff] %v7860_v3  ;;  %v2998_v29 = vpop.f32.mrb[93].mxu1  ;;  %v3287_v1 = vpop.f32.mrb[29].mxu0  ;;  %v6673_v56 = vld [vmem:[%s7396_s28 + $0x580] ss:$20 sps:$4 sm:$0xff]  }
 0x1db   : > { %v7864_v26 = vpop.f32.mrb[94].mxu1  ;;  %v7866_v13 = vpop.f32.mrb[30].mxu0 }
 0x1dc   : > { %8871 = vst [vmem:[#allocation15_spill] sm:$0xff] %v7864_v26  ;;  %8872 = vst [vmem:[#allocation16_spill] sm:$0xff] %v7866_v13  ;;  %v3001_v40 = vpop.f32.mrb[95].mxu1  ;;  %v3290_v44 = vpop.f32.mrb[31].mxu0  ;;  %v6674_v13 = vld [vmem:[%s7396_s28 + $0x128] ss:$20 sps:$4 sm:$0xff]  }
 0x1de   : > { %3500 = vmatmul.mubr.bf16.gmra.mrb[136].mxu0 %v6668_v6  ;;  %5882 = vmatmul.mubr.msk.bf16.gmra.mrb[200].mxu1 %vm2457_vm0, %v6669_v54  ;;  %v6675_v6 = vld [vmem:[%s7396_s28 + $0x5ac] ss:$20 sps:$4 sm:$0xff]   ;;  %v6677_v54 = vld [vmem:[%s7396_s28 + $0x150] ss:$20 sps:$4 sm:$0xff]  }
 0x1df   : > { %3507 = vmatprep.mubr.bf16.mxu0 %v6670_v22  ;;  %5885 = vmatprep.mubr.msk.bf16.mxu1 %vm2457_vm0, %v6672_v37 }
 0x1e1   : > { %v7872_v1 = vpop.f32.mrb[96].mxu1  ;;  %v7874_v53 = vpop.f32.mrb[32].mxu0 }
 0x1e2   : > { %8873 = vst [vmem:[#allocation17_spill] sm:$0xff] %v7872_v1  ;;  %8874 = vst [vmem:[#allocation18_spill] sm:$0xff] %v7874_v53  ;;  %v3006_v29 = vpop.f32.mrb[97].mxu1  ;;  %v3295_v26 = vpop.f32.mrb[33].mxu0  ;;  %v6678_v1 = vld [vmem:[%s7396_s28 + $0x5a8] ss:$20 sps:$4 sm:$0xff]  }
 0x1e3   : > { %v7878_v3 = vpop.f32.mrb[98].mxu1  ;;  %v7880_v40 = vpop.f32.mrb[34].mxu0 }
 0x1e4   : > { %8875 = vst [vmem:[#allocation19_spill] sm:$0xff] %v7878_v3  ;;  %8876 = vst [vmem:[#allocation20_spill] sm:$0xff] %v7880_v40  ;;  %v3009_v22 = vpop.f32.mrb[99].mxu1  ;;  %v3298_v37 = vpop.f32.mrb[35].mxu0  ;;  %v6679_v40 = vld [vmem:[%s7396_s28 + $0x178] ss:$20 sps:$4 sm:$0xff]  }
 0x1e6   : > { %3508 = vmatmul.mubr.bf16.gmra.mrb[140].mxu0 %v6673_v56  ;;  %5886 = vmatmul.mubr.msk.bf16.gmra.mrb[204].mxu1 %vm2457_vm0, %v6674_v13  ;;  %v6680_v56 = vld [vmem:[%s7396_s28 + $0x5d4] ss:$20 sps:$4 sm:$0xff]  }
 0x1e7   : > { %3515 = vmatprep.mubr.bf16.mxu0 %v6675_v6  ;;  %5889 = vmatprep.mubr.msk.bf16.mxu1 %vm2457_vm0, %v6677_v54  ;;  %v6682_v13 = vld [vmem:[%s7396_s28 + $0x1a0] ss:$20 sps:$4 sm:$0xff]  }
 0x1e9   : > { %v7886_v26 = vpop.f32.mrb[100].mxu1  ;;  %v7888_v44 = vpop.f32.mrb[36].mxu0 }
 0x1ea   : > { %8877 = vst [vmem:[#allocation21_spill] sm:$0xff] %v7886_v26  ;;  %8878 = vst [vmem:[#allocation22_spill] sm:$0xff] %v7888_v44  ;;  %v3014_v29 = vpop.f32.mrb[101].mxu1  ;;  %v3303_v3 = vpop.f32.mrb[37].mxu0  ;;  %v6683_v26 = vld [vmem:[%s7396_s28 + $0x5d0] ss:$20 sps:$4 sm:$0xff]  }
 0x1eb   : > { %v7892_v53 = vpop.f32.mrb[102].mxu1  ;;  %v7894_v22 = vpop.f32.mrb[38].mxu0 }
 0x1ec   : > { %8879 = vst [vmem:[#allocation23_spill] sm:$0xff] %v7892_v53  ;;  %8880 = vst [vmem:[#allocation24_spill] sm:$0xff] %v7894_v22  ;;  %v3017_v6 = vpop.f32.mrb[103].mxu1  ;;  %v3306_v54 = vpop.f32.mrb[39].mxu0  ;;  %v6684_v22 = vld [vmem:[%s7396_s28 + $0x1c8] ss:$20 sps:$4 sm:$0xff]  }
 0x1ee   : > { %3516 = vmatmul.mubr.bf16.gmra.mrb[144].mxu0 %v6678_v1  ;;  %5890 = vmatmul.mubr.msk.bf16.gmra.mrb[208].mxu1 %vm2457_vm0, %v6679_v40  ;;  %v6685_v1 = vld [vmem:[%s7396_s28 + $0x5fc] ss:$20 sps:$4 sm:$0xff]  }
 0x1ef   : > { %3523 = vmatprep.mubr.bf16.mxu0 %v6680_v56  ;;  %5893 = vmatprep.mubr.msk.bf16.mxu1 %vm2457_vm0, %v6682_v13  ;;  %v6687_v40 = vld [vmem:[%s7396_s28 + $0x1f0] ss:$20 sps:$4 sm:$0xff]  }
 0x1f1   : > { %v7900_v3 = vpop.f32.mrb[104].mxu1  ;;  %v7902_v37 = vpop.f32.mrb[40].mxu0 }
 0x1f2   : > { %8881 = vst [vmem:[#allocation25_spill] sm:$0xff] %v7900_v3  ;;  %8882 = vst [vmem:[#allocation26_spill] sm:$0xff] %v7902_v37  ;;  %v3022_v29 = vpop.f32.mrb[105].mxu1  ;;  %v3311_v53 = vpop.f32.mrb[41].mxu0  ;;  %v6688_v3 = vld [vmem:[%s7396_s28 + $0x5f8] ss:$20 sps:$4 sm:$0xff]  }
 0x1f3   : > { %v7906_v44 = vpop.f32.mrb[106].mxu1  ;;  %v7908_v6 = vpop.f32.mrb[42].mxu0 }
 0x1f4   : > { %8883 = vst [vmem:[#allocation27_spill] sm:$0xff] %v7906_v44  ;;  %8884 = vst [vmem:[#allocation28_spill] sm:$0xff] %v7908_v6  ;;  %v3025_v56 = vpop.f32.mrb[107].mxu1  ;;  %v3314_v13 = vpop.f32.mrb[43].mxu0  ;;  %v6689_v6 = vld [vmem:[%s7396_s28 + $0x218] ss:$20 sps:$4 sm:$0xff]  }
 0x1f6   : > { %3524 = vmatmul.mubr.bf16.gmra.mrb[148].mxu0 %v6683_v26  ;;  %5894 = vmatmul.mubr.msk.bf16.gmra.mrb[212].mxu1 %vm2457_vm0, %v6684_v22  ;;  %v6690_v26 = vld [vmem:[%s7396_s28 + $0x624] ss:$20 sps:$4 sm:$0xff]   ;;  %v6692_v22 = vld [vmem:[%s7396_s28 + $0x240] ss:$20 sps:$4 sm:$0xff]  }
 0x1f7   : > { %3531 = vmatprep.mubr.bf16.mxu0 %v6685_v1  ;;  %5897 = vmatprep.mubr.msk.bf16.mxu1 %vm2457_vm0, %v6687_v40 }
 0x1f9   : > { %v7914_v53 = vpop.f32.mrb[108].mxu1  ;;  %v7916_v54 = vpop.f32.mrb[44].mxu0 }
 0x1fa   : > { %8885 = vst [vmem:[#allocation29_spill] sm:$0xff] %v7914_v53  ;;  %8886 = vst [vmem:[#allocation30_spill] sm:$0xff] %v7916_v54  ;;  %v3030_v29 = vpop.f32.mrb[109].mxu1  ;;  %v3319_v44 = vpop.f32.mrb[45].mxu0  ;;  %v6693_v53 = vld [vmem:[%s7396_s28 + $0x620] ss:$20 sps:$4 sm:$0xff]  }
 0x1fb   : > { %v7920_v37 = vpop.f32.mrb[110].mxu1  ;;  %v7922_v56 = vpop.f32.mrb[46].mxu0 }
 0x1fc   : > { %8887 = vst [vmem:[#allocation31_spill] sm:$0xff] %v7920_v37  ;;  %8888 = vst [vmem:[#allocation32_spill] sm:$0xff] %v7922_v56  ;;  %v3033_v1 = vpop.f32.mrb[111].mxu1  ;;  %v3322_v40 = vpop.f32.mrb[47].mxu0  ;;  %v6694_v56 = vld [vmem:[%s7396_s28 + $0x268] ss:$20 sps:$4 sm:$0xff]  }
 0x1fe   : > { %3532 = vmatmul.mubr.bf16.gmra.mrb[152].mxu0 %v6688_v3  ;;  %5898 = vmatmul.mubr.msk.bf16.gmra.mrb[216].mxu1 %vm2457_vm0, %v6689_v6  ;;  %v6695_v3 = vld [vmem:[%s7396_s28 + $0x64c] ss:$20 sps:$4 sm:$0xff]   ;;  %v6697_v6 = vld [vmem:[%s7396_s28 + $0x290] ss:$20 sps:$4 sm:$0xff]  }
 0x1ff   : > { %3539 = vmatprep.mubr.bf16.mxu0 %v6690_v26  ;;  %5901 = vmatprep.mubr.msk.bf16.mxu1 %vm2457_vm0, %v6692_v22 }
 0x201   : > { %v7928_v44 = vpop.f32.mrb[112].mxu1  ;;  %v7930_v13 = vpop.f32.mrb[48].mxu0 }
 0x202   : > { %8889 = vst [vmem:[#allocation33_spill] sm:$0xff] %v7928_v44  ;;  %8890 = vst [vmem:[#allocation34_spill] sm:$0xff] %v7930_v13  ;;  %v3038_v29 = vpop.f32.mrb[113].mxu1  ;;  %v3327_v37 = vpop.f32.mrb[49].mxu0  ;;  %v6698_v44 = vld [vmem:[%s7396_s28 + $0x648] ss:$20 sps:$4 sm:$0xff]  }
 0x203   : > { %v7934_v54 = vpop.f32.mrb[114].mxu1  ;;  %v7936_v1 = vpop.f32.mrb[50].mxu0 }
 0x204   : > { %8891 = vst [vmem:[#allocation35_spill] sm:$0xff] %v7934_v54  ;;  %8892 = vst [vmem:[#allocation36_spill] sm:$0xff] %v7936_v1  ;;  %v3041_v26 = vpop.f32.mrb[115].mxu1  ;;  %v3330_v22 = vpop.f32.mrb[51].mxu0  ;;  %v6699_v1 = vld [vmem:[%s7396_s28 + $0x2b8] ss:$20 sps:$4 sm:$0xff]  }
 0x206   : > { %3540 = vmatmul.mubr.bf16.gmra.mrb[156].mxu0 %v6693_v53  ;;  %5902 = vmatmul.mubr.msk.bf16.gmra.mrb[220].mxu1 %vm2457_vm0, %v6694_v56  ;;  %v6700_v53 = vld [vmem:[%s7396_s28 + $0x674] ss:$20 sps:$4 sm:$0xff]  }
 0x207   : > { %3547 = vmatprep.mubr.bf16.mxu0 %v6695_v3  ;;  %5905 = vmatprep.mubr.msk.bf16.mxu1 %vm2457_vm0, %v6697_v6  ;;  %v6702_v56 = vld [vmem:[%s7396_s28 + $0x2e0] ss:$20 sps:$4 sm:$0xff]  }
 0x209   : > { %v7942_v37 = vpop.f32.mrb[116].mxu1  ;;  %v7944_v40 = vpop.f32.mrb[52].mxu0 }
 0x20a   : > { %8893 = vst [vmem:[#allocation37_spill] sm:$0xff] %v7942_v37  ;;  %8894 = vst [vmem:[#allocation38_spill] sm:$0xff] %v7944_v40  ;;  %v3046_v29 = vpop.f32.mrb[117].mxu1  ;;  %v3335_v54 = vpop.f32.mrb[53].mxu0  ;;  %v6703_v37 = vld [vmem:[%s7396_s28 + $0x670] ss:$20 sps:$4 sm:$0xff]  }
 0x20b   : > { %v7948_v13 = vpop.f32.mrb[118].mxu1  ;;  %v7950_v26 = vpop.f32.mrb[54].mxu0 }
 0x20c   : > { %8895 = vst [vmem:[#allocation39_spill] sm:$0xff] %v7948_v13  ;;  %8896 = vst [vmem:[#allocation40_spill] sm:$0xff] %v7950_v26  ;;  %v3049_v3 = vpop.f32.mrb[119].mxu1  ;;  %v3338_v6 = vpop.f32.mrb[55].mxu0  ;;  %v6704_v26 = vld [vmem:[%s7396_s28 + $0x308] ss:$20 sps:$4 sm:$0xff]  }
 0x20e   : > { %3548 = vmatmul.mubr.bf16.gmra.mrb[160].mxu0 %v6698_v44  ;;  %5906 = vmatmul.mubr.msk.bf16.gmra.mrb[224].mxu1 %vm2457_vm0, %v6699_v1  ;;  %v6705_v44 = vld [vmem:[%s7396_s28 + $0x69c] ss:$20 sps:$4 sm:$0xff]  }
 0x20f   : > { %3555 = vmatprep.mubr.bf16.mxu0 %v6700_v53  ;;  %5909 = vmatprep.mubr.msk.bf16.mxu1 %vm2457_vm0, %v6702_v56  ;;  %v6707_v1 = vld [vmem:[%s7396_s28 + $0x330] ss:$20 sps:$4 sm:$0xff]  }
 0x211   : > { %v7956_v54 = vpop.f32.mrb[120].mxu1  ;;  %v7958_v22 = vpop.f32.mrb[56].mxu0 }
 0x212   : > { %8897 = vst [vmem:[#allocation41_spill] sm:$0xff] %v7956_v54  ;;  %8898 = vst [vmem:[#allocation42_spill] sm:$0xff] %v7958_v22  ;;  %v3054_v29 = vpop.f32.mrb[121].mxu1  ;;  %v3343_v13 = vpop.f32.mrb[57].mxu0  ;;  %v6708_v54 = vld [vmem:[%s7396_s28 + $0x698] ss:$20 sps:$4 sm:$0xff]  }
 0x213   : > { %v7962_v40 = vpop.f32.mrb[122].mxu1  ;;  %v7964_v3 = vpop.f32.mrb[58].mxu0 }
 0x214   : > { %8899 = vst [vmem:[#allocation43_spill] sm:$0xff] %v7962_v40  ;;  %8900 = vst [vmem:[#allocation44_spill] sm:$0xff] %v7964_v3  ;;  %v3057_v53 = vpop.f32.mrb[123].mxu1  ;;  %v3346_v56 = vpop.f32.mrb[59].mxu0  ;;  %v6709_v3 = vld [vmem:[%s7396_s28 + $0x358] ss:$20 sps:$4 sm:$0xff]  }
 0x215   : > { %v6710_v53 = vld [vmem:[%s7396_s28 + $0x6c4] ss:$20 sps:$4 sm:$0xff]  }
 0x216   : > { %3556 = vmatmul.mubr.bf16.gmra.mrb[164].mxu0 %v6703_v37  ;;  %5910 = vmatmul.mubr.msk.bf16.gmra.mrb[228].mxu1 %vm2457_vm0, %v6704_v26  ;;  %v6712_v37 = vld [vmem:[%s7396_s28 + $0x380] ss:$20 sps:$4 sm:$0xff]  }
 0x217   : > { %3563 = vmatprep.mubr.bf16.mxu0 %v6705_v44  ;;  %5913 = vmatprep.mubr.msk.bf16.mxu1 %vm2457_vm0, %v6707_v1  ;;  %v7985_v1 = vld [vmem:[%s8856_s2] ss:$0 sm:$0xff] }
 0x219   : > { %v7970_v13 = vpop.f32.mrb[124].mxu1  ;;  %v7972_v6 = vpop.f32.mrb[60].mxu0 }
 0x21a   : > { %8901 = vst [vmem:[#allocation45_spill] sm:$0xff] %v7970_v13  ;;  %8902 = vst [vmem:[#allocation46_spill] sm:$0xff] %v7972_v6  ;;  %v3062_v29 = vpop.f32.mrb[125].mxu1  ;;  %v3351_v40 = vpop.f32.mrb[61].mxu0  ;;  %v2816_v13 = vadd.f32 %v7985_v1, %v7645_v23  ;;  %v2821_v23 = vadd.f32 %v7985_v1, %v7649_v27 }
 0x21b   : > { %v7976_v22 = vpop.f32.mrb[126].mxu1  ;;  %v7978_v0 = vpop.f32.mrb[62].mxu0  ;;  %v2813_v40 = vadd.f32 %v7985_v1, %v7641_v19 }
 0x21c   : > { %8903 = vst [vmem:[#allocation47_spill] sm:$0xff] %v7976_v22  ;;  %8904 = vst [vmem:[#allocation48_spill] sm:$0xff] %v7978_v0  ;;  %v3065_v26 = vpop.f32.mrb[127].mxu1  ;;  %v3354_v44 = vpop.f32.mrb[63].mxu0  ;;  %v6714_v0 = vld [vmem:[%s7396_s28 + $0x3a8] ss:$20 sps:$4 sm:$0xff]  }
 0x21e   : > { %3564 = vmatmul.mubr.bf16.gmra.mrb[168].mxu0 %v6708_v54  ;;  %5914 = vmatmul.mubr.msk.bf16.gmra.mrb[232].mxu1 %vm2457_vm0, %v6709_v3  ;;  %v6713_v54 = vld [vmem:[%s7396_s28 + $0x6c0] ss:$20 sps:$4 sm:$0xff]  }
 0x21f   : > { %3571 = vmatprep.mubr.bf16.mxu0 %v6710_v53  ;;  %5917 = vmatprep.mubr.msk.bf16.mxu1 %vm2457_vm0, %v6712_v37  ;;  %v6715_v53 = vld [vmem:[%s7396_s28 + $0x6ec] ss:$20 sps:$4 sm:$0xff]   ;;  %v6717_v37 = vld [vmem:[%s7396_s28 + $0x3d0] ss:$20 sps:$4 sm:$0xff]  }
 0x221   : > { %v7991_v56 = vpop.f32.mrb[128].mxu1  ;;  %v3357_v29 = vpop.f32.mrb[64].mxu0 }
 0x222   : > { %8905 = vst [vmem:[#allocation49_spill] sm:$0xff] %v7991_v56  ;;  %v7993_v26 = vadd.f32 %v3357_v29, %v2813_v40  ;;  %v3070_v44 = vpop.f32.mrb[129].mxu1  ;;  %v3359_v22 = vpop.f32.mrb[65].mxu0 }
 0x223   : > { %v7999_v6 = vpop.f32.mrb[130].mxu1  ;;  %v3360_v3 = vpop.f32.mrb[66].mxu0 }
 0x224   : > { %8906 = vst [vmem:[#allocation50_spill] sm:$0xff] %v7999_v6  ;;  %v8003_v19 = vadd.f32 %v3360_v3, %v2816_v13  ;;  %v3073_v56 = vpop.f32.mrb[131].mxu1  ;;  %v3362_v11 = vpop.f32.mrb[67].mxu0 }
 0x225   : > { %v2824_v11 = vadd.f32 %v7985_v1, %v7653_v31  ;;  %v6718_v56 = vld [vmem:[%s7396_s28 + $0x6e8] ss:$20 sps:$4 sm:$0xff]   ;;  %v2829_v31 = vadd.f32 %v7985_v1, %v7657_v35 }
 0x226   : > { %3572 = vmatmul.mubr.bf16.gmra.mrb[172].mxu0 %v6713_v54  ;;  %5918 = vmatmul.mubr.msk.bf16.gmra.mrb[236].mxu1 %vm2457_vm0, %v6714_v0  ;;  %v6719_v54 = vld [vmem:[%s7396_s28 + $0x3f8] ss:$20 sps:$4 sm:$0xff]  }
 0x227   : > { %3579 = vmatprep.mubr.bf16.mxu0 %v6715_v53  ;;  %5921 = vmatprep.mubr.msk.bf16.mxu1 %vm2457_vm0, %v6717_v37  ;;  %v6720_v53 = vld [vmem:[%s7396_s28 + $0x714] ss:$20 sps:$4 sm:$0xff]  }
 0x228   : > { %v6722_v37 = vld [vmem:[%s7396_s28 + $0x420] ss:$20 sps:$4 sm:$0xff]  }
 0x229   : > { %v8009_v22 = vpop.f32.mrb[132].mxu1  ;;  %v3365_v40 = vpop.f32.mrb[68].mxu0 }
 0x22a   : > { %8907 = vst [vmem:[#allocation51_spill] sm:$0xff] %v8009_v22  ;;  %v8011_v29 = vadd.f32 %v3365_v40, %v2821_v23  ;;  %v3078_v13 = vpop.f32.mrb[133].mxu1  ;;  %v3367_v44 = vpop.f32.mrb[69].mxu0 }
 0x22b   : > { %v8017_v3 = vpop.f32.mrb[134].mxu1  ;;  %v3368_v0 = vpop.f32.mrb[70].mxu0 }
 0x22c   : > { %8908 = vst [vmem:[#allocation52_spill] sm:$0xff] %v8017_v3  ;;  %v8021_v27 = vadd.f32 %v3368_v0, %v2824_v11  ;;  %v3081_v22 = vpop.f32.mrb[135].mxu1  ;;  %v3370_v6 = vpop.f32.mrb[71].mxu0 }
 0x22d   : > { %v2832_v6 = vadd.f32 %v7985_v1, %v7661_v39  ;;  %v6723_v22 = vld [vmem:[%s7396_s28 + $0x710] ss:$20 sps:$4 sm:$0xff]   ;;  %v2837_v39 = vadd.f32 %v7985_v1, %v7665_v43 }
 0x22e   : > { %3580 = vmatmul.mubr.bf16.gmra.mrb[176].mxu0 %v6718_v56  ;;  %5922 = vmatmul.mubr.msk.bf16.gmra.mrb[240].mxu1 %vm2457_vm0, %v6719_v54  ;;  %v6724_v56 = vld [vmem:[%s7396_s28 + $0x448] ss:$20 sps:$4 sm:$0xff]  }
 0x22f   : > { %3587 = vmatprep.mubr.bf16.mxu0 %v6720_v53  ;;  %5925 = vmatprep.mubr.msk.bf16.mxu1 %vm2457_vm0, %v6722_v37  ;;  %v6725_v53 = vld [vmem:[%s7396_s28 + $0x73c] ss:$20 sps:$4 sm:$0xff]  }
 0x230   : > { %v6727_v37 = vld [vmem:[%s7396_s28 + $0x470] ss:$20 sps:$4 sm:$0xff]  }
 0x231   : > { %v8027_v23 = vpop.f32.mrb[136].mxu1  ;;  %v3373_v40 = vpop.f32.mrb[72].mxu0 }
 0x232   : > { %8909 = vst [vmem:[#allocation53_spill] sm:$0xff] %v8027_v23  ;;  %v8029_v13 = vadd.f32 %v3373_v40, %v2829_v31  ;;  %v3086_v44 = vpop.f32.mrb[137].mxu1  ;;  %v3375_v11 = vpop.f32.mrb[73].mxu0 }
 0x233   : > { %v8035_v0 = vpop.f32.mrb[138].mxu1  ;;  %v3376_v54 = vpop.f32.mrb[74].mxu0 }
 0x234   : > { %8910 = vst [vmem:[#allocation54_spill] sm:$0xff] %v8035_v0  ;;  %v8039_v35 = vadd.f32 %v3376_v54, %v2832_v6  ;;  %v3089_v23 = vpop.f32.mrb[139].mxu1  ;;  %v3378_v3 = vpop.f32.mrb[75].mxu0 }
 0x235   : > { %v2840_v3 = vadd.f32 %v7985_v1, %v7669_v47  ;;  %v6728_v23 = vld [vmem:[%s7396_s28 + $0x738] ss:$20 sps:$4 sm:$0xff]   ;;  %v2845_v47 = vadd.f32 %v7985_v1, %v7673_v51 }
 0x236   : > { %3588 = vmatmul.mubr.bf16.gmra.mrb[180].mxu0 %v6723_v22  ;;  %5926 = vmatmul.mubr.msk.bf16.gmra.mrb[244].mxu1 %vm2457_vm0, %v6724_v56  ;;  %v6729_v22 = vld [vmem:[%s7396_s28 + $0x498] ss:$20 sps:$4 sm:$0xff]  }
 0x237   : > { %3595 = vmatprep.mubr.bf16.mxu0 %v6725_v53  ;;  %5929 = vmatprep.mubr.msk.bf16.mxu1 %vm2457_vm0, %v6727_v37  ;;  %v6730_v53 = vld [vmem:[%s7396_s28 + $0x764] ss:$20 sps:$4 sm:$0xff]   ;;  %v6732_v37 = vld [vmem:[%s7396_s28 + $0x4c0] ss:$20 sps:$4 sm:$0xff]  }
 0x239   : > { %v8045_v31 = vpop.f32.mrb[140].mxu1  ;;  %v3381_v40 = vpop.f32.mrb[76].mxu0 }
 0x23a   : > { %8911 = vst [vmem:[#allocation55_spill] sm:$0xff] %v8045_v31  ;;  %v8047_v44 = vadd.f32 %v3381_v40, %v2837_v39  ;;  %v3094_v11 = vpop.f32.mrb[141].mxu1  ;;  %v3383_v6 = vpop.f32.mrb[77].mxu0 }
 0x23b   : > { %v8053_v54 = vpop.f32.mrb[142].mxu1  ;;  %v3384_v56 = vpop.f32.mrb[78].mxu0 }
 0x23c   : > { %8912 = vst [vmem:[#allocation56_spill] sm:$0xff] %v8053_v54  ;;  %v8057_v43 = vadd.f32 %v3384_v56, %v2840_v3  ;;  %v3097_v31 = vpop.f32.mrb[143].mxu1  ;;  %v3386_v0 = vpop.f32.mrb[79].mxu0 }
 0x23d   : > { %v2848_v0 = vadd.f32 %v7985_v1, %v7677_v55  ;;  %v6733_v31 = vld [vmem:[%s7396_s28 + $0x760] ss:$20 sps:$4 sm:$0xff]   ;;  %v2853_v55 = vadd.f32 %v7985_v1, %v7681_v59 }
 0x23e   : > { %3596 = vmatmul.mubr.bf16.gmra.mrb[184].mxu0 %v6728_v23  ;;  %5930 = vmatmul.mubr.msk.bf16.gmra.mrb[248].mxu1 %vm2457_vm0, %v6729_v22  ;;  %v6734_v23 = vld [vmem:[%s7396_s28 + $0x4e8] ss:$20 sps:$4 sm:$0xff]  }
 0x23f   : > { %3603 = vmatprep.mubr.bf16.mxu0 %v6730_v53  ;;  %5933 = vmatprep.mubr.msk.bf16.mxu1 %vm2457_vm0, %v6732_v37  ;;  %v6735_v53 = vld [vmem:[%s7396_s28 + $0x78c] ss:$20 sps:$4 sm:$0xff]   ;;  %v6737_v37 = vld [vmem:[%s7396_s28 + $0x510] ss:$20 sps:$4 sm:$0xff]  }
 0x241   : > { %v8063_v39 = vpop.f32.mrb[144].mxu1  ;;  %v3389_v40 = vpop.f32.mrb[80].mxu0 }
 0x242   : > { %8913 = vst [vmem:[#allocation57_spill] sm:$0xff] %v8063_v39  ;;  %v8065_v11 = vadd.f32 %v3389_v40, %v2845_v47  ;;  %v3102_v6 = vpop.f32.mrb[145].mxu1  ;;  %v3391_v3 = vpop.f32.mrb[81].mxu0 }
 0x243   : > { %v8071_v56 = vpop.f32.mrb[146].mxu1  ;;  %v3392_v22 = vpop.f32.mrb[82].mxu0 }
 0x244   : > { %8914 = vst [vmem:[#allocation58_spill] sm:$0xff] %v8071_v56  ;;  %v8075_v51 = vadd.f32 %v3392_v22, %v2848_v0  ;;  %v3105_v39 = vpop.f32.mrb[147].mxu1  ;;  %v3394_v54 = vpop.f32.mrb[83].mxu0 }
 0x245   : > { %v2856_v54 = vadd.f32 %v7985_v1, %v7685_v63  ;;  %v6738_v39 = vld [vmem:[%s7396_s28 + $0x788] ss:$20 sps:$4 sm:$0xff]   ;;  %v2861_v63 = vadd.f32 %v7985_v1, %v7689_v4 }
 0x246   : > { %3604 = vmatmul.mubr.bf16.gmra.mrb[188].mxu0 %v6733_v31  ;;  %5934 = vmatmul.mubr.msk.bf16.gmra.mrb[252].mxu1 %vm2457_vm0, %v6734_v23  ;;  %v6739_v31 = vld [vmem:[%s7396_s28 + $0x538] ss:$20 sps:$4 sm:$0xff]  }
 0x247   : > { %3611 = vmatprep.mubr.bf16.mxu0 %v6735_v53  ;;  %5937 = vmatprep.mubr.msk.bf16.mxu1 %vm2457_vm0, %v6737_v37  ;;  %v6740_v53 = vld [vmem:[%s7396_s28 + $0x7b4] ss:$20 sps:$4 sm:$0xff]  }
 0x248   : > { %v6742_v37 = vld [vmem:[%s7396_s28 + $0x560] ss:$20 sps:$4 sm:$0xff]  }
 0x249   : > { %v8081_v47 = vpop.f32.mrb[148].mxu1  ;;  %v3397_v40 = vpop.f32.mrb[84].mxu0 }
 0x24a   : > { %8915 = vst [vmem:[#allocation59_spill] sm:$0xff] %v8081_v47  ;;  %v8083_v6 = vadd.f32 %v3397_v40, %v2853_v55  ;;  %v3110_v3 = vpop.f32.mrb[149].mxu1  ;;  %v3399_v0 = vpop.f32.mrb[85].mxu0 }
 0x24b   : > { %v8089_v22 = vpop.f32.mrb[150].mxu1  ;;  %v3400_v23 = vpop.f32.mrb[86].mxu0 }
 0x24c   : > { %8916 = vst [vmem:[#allocation60_spill] sm:$0xff] %v8089_v22  ;;  %v8093_v59 = vadd.f32 %v3400_v23, %v2856_v54  ;;  %v3113_v47 = vpop.f32.mrb[151].mxu1  ;;  %v3402_v56 = vpop.f32.mrb[87].mxu0 }
 0x24d   : > { %v2864_v56 = vadd.f32 %v7985_v1, %v7693_v8  ;;  %v6743_v47 = vld [vmem:[%s7396_s28 + $0x7b0] ss:$20 sps:$4 sm:$0xff]   ;;  %v2869_v8 = vadd.f32 %v7985_v1, %v7697_v12 }
 0x24e   : > { %3612 = vmatmul.mubr.bf16.gmra.mrb[192].mxu0 %v6738_v39  ;;  %5938 = vmatmul.mubr.msk.bf16.gmra.mrb[0].mxu1 %vm2457_vm0, %v6739_v31  ;;  %v6744_v39 = vld [vmem:[%s7396_s28 + $0x588] ss:$20 sps:$4 sm:$0xff]  }
 0x24f   : > { %3619 = vmatprep.mubr.bf16.mxu0 %v6740_v53  ;;  %5941 = vmatprep.mubr.msk.bf16.mxu1 %vm2457_vm0, %v6742_v37  ;;  %v6745_v53 = vld [vmem:[%s7396_s28 + $0x7dc] ss:$20 sps:$4 sm:$0xff]  }
 0x250   : > { %v6747_v37 = vld [vmem:[%s7396_s28 + $0x5b0] ss:$20 sps:$4 sm:$0xff]  }
 0x251   : > { %v8099_v55 = vpop.f32.mrb[152].mxu1  ;;  %v3405_v40 = vpop.f32.mrb[88].mxu0 }
 0x252   : > { %8917 = vst [vmem:[#allocation61_spill] sm:$0xff] %v8099_v55  ;;  %v8101_v3 = vadd.f32 %v3405_v40, %v2861_v63  ;;  %v3118_v0 = vpop.f32.mrb[153].mxu1  ;;  %v3407_v54 = vpop.f32.mrb[89].mxu0 }
 0x253   : > { %v8107_v23 = vpop.f32.mrb[154].mxu1  ;;  %v3408_v31 = vpop.f32.mrb[90].mxu0 }
 0x254   : > { %8918 = vst [vmem:[#allocation62_spill] sm:$0xff] %v8107_v23  ;;  %v8111_v4 = vadd.f32 %v3408_v31, %v2864_v56  ;;  %v3121_v55 = vpop.f32.mrb[155].mxu1  ;;  %v3410_v22 = vpop.f32.mrb[91].mxu0 }
 0x255   : > { %v2872_v22 = vadd.f32 %v7985_v1, %v7701_v15  ;;  %v6748_v55 = vld [vmem:[%s7396_s28 + $0x7d8] ss:$20 sps:$4 sm:$0xff]   ;;  %v2877_v15 = vadd.f32 %v7985_v1, %v7705_v20 }
 0x256   : > { %3620 = vmatmul.mubr.bf16.gmra.mrb[196].mxu0 %v6743_v47  ;;  %5942 = vmatmul.mubr.msk.bf16.gmra.mrb[4].mxu1 %vm2457_vm0, %v6744_v39  ;;  %v6749_v47 = vld [vmem:[%s7396_s28 + $0x5d8] ss:$20 sps:$4 sm:$0xff]  }
 0x257   : > { %3627 = vmatprep.mubr.bf16.mxu0 %v6745_v53  ;;  %5945 = vmatprep.mubr.msk.bf16.mxu1 %vm2457_vm0, %v6747_v37  ;;  %v6750_v53 = vld [vmem:[%s7396_s28 + $0x804] ss:$20 sps:$4 sm:$0xff]   ;;  %v6752_v37 = vld [vmem:[%s7396_s28 + $0x600] ss:$20 sps:$4 sm:$0xff]  }
 0x259   : > { %v8117_v63 = vpop.f32.mrb[156].mxu1  ;;  %v3413_v40 = vpop.f32.mrb[92].mxu0 }
 0x25a   : > { %8919 = vst [vmem:[#allocation63_spill] sm:$0xff] %v8117_v63  ;;  %v8119_v0 = vadd.f32 %v3413_v40, %v2869_v8  ;;  %v3126_v54 = vpop.f32.mrb[157].mxu1  ;;  %v3415_v56 = vpop.f32.mrb[93].mxu0 }
 0x25b   : > { %v8125_v31 = vpop.f32.mrb[158].mxu1  ;;  %v3416_v39 = vpop.f32.mrb[94].mxu0 }
 0x25c   : > { %8920 = vst [vmem:[#allocation64_spill] sm:$0xff] %v8125_v31  ;;  %v8129_v12 = vadd.f32 %v3416_v39, %v2872_v22  ;;  %v3129_v63 = vpop.f32.mrb[159].mxu1  ;;  %v3418_v23 = vpop.f32.mrb[95].mxu0 }
 0x25d   : > { %v2880_v23 = vadd.f32 %v7985_v1, %v7709_v25  ;;  %v6753_v63 = vld [vmem:[%s7396_s28 + $0x800] ss:$20 sps:$4 sm:$0xff]   ;;  %v2885_v25 = vadd.f32 %v7985_v1, %v7713_v30 }
 0x25e   : > { %3628 = vmatmul.mubr.bf16.gmra.mrb[200].mxu0 %v6748_v55  ;;  %5946 = vmatmul.mubr.msk.bf16.gmra.mrb[8].mxu1 %vm2457_vm0, %v6749_v47  ;;  %v6754_v55 = vld [vmem:[%s7396_s28 + $0x628] ss:$20 sps:$4 sm:$0xff]  }
 0x25f   : > { %3635 = vmatprep.mubr.bf16.mxu0 %v6750_v53  ;;  %5949 = vmatprep.mubr.msk.bf16.mxu1 %vm2457_vm0, %v6752_v37  ;;  %v6755_v53 = vld [vmem:[%s7396_s28 + $0x82c] ss:$20 sps:$4 sm:$0xff]   ;;  %v6757_v37 = vld [vmem:[%s7396_s28 + $0x650] ss:$20 sps:$4 sm:$0xff]  }
 0x261   : > { %v8135_v8 = vpop.f32.mrb[160].mxu1  ;;  %v3421_v40 = vpop.f32.mrb[96].mxu0 }
 0x262   : > { %8921 = vst [vmem:[#allocation65_spill] sm:$0xff] %v8135_v8  ;;  %v8137_v54 = vadd.f32 %v3421_v40, %v2877_v15  ;;  %v3134_v56 = vpop.f32.mrb[161].mxu1  ;;  %v3423_v22 = vpop.f32.mrb[97].mxu0 }
 0x263   : > { %v8143_v39 = vpop.f32.mrb[162].mxu1  ;;  %v3424_v47 = vpop.f32.mrb[98].mxu0 }
 0x264   : > { %8922 = vst [vmem:[#allocation66_spill] sm:$0xff] %v8143_v39  ;;  %v8147_v20 = vadd.f32 %v3424_v47, %v2880_v23  ;;  %v3137_v8 = vpop.f32.mrb[163].mxu1  ;;  %v3426_v31 = vpop.f32.mrb[99].mxu0 }
 0x265   : > { %v2888_v31 = vadd.f32 %v7985_v1, %v7717_v36  ;;  %v6758_v8 = vld [vmem:[%s7396_s28 + $0x828] ss:$20 sps:$4 sm:$0xff]   ;;  %v2893_v36 = vadd.f32 %v7985_v1, %v7721_v41 }
 0x266   : > { %3636 = vmatmul.mubr.bf16.gmra.mrb[204].mxu0 %v6753_v63  ;;  %5950 = vmatmul.mubr.msk.bf16.gmra.mrb[12].mxu1 %vm2457_vm0, %v6754_v55  ;;  %v6759_v63 = vld [vmem:[%s7396_s28 + $0x678] ss:$20 sps:$4 sm:$0xff]  }
 0x267   : > { %3643 = vmatprep.mubr.bf16.mxu0 %v6755_v53  ;;  %5953 = vmatprep.mubr.msk.bf16.mxu1 %vm2457_vm0, %v6757_v37  ;;  %v6760_v53 = vld [vmem:[%s7396_s28 + $0x854] ss:$20 sps:$4 sm:$0xff]  }
 0x268   : > { %v6762_v37 = vld [vmem:[%s7396_s28 + $0x6a0] ss:$20 sps:$4 sm:$0xff]  }
 0x269   : > { %v8153_v15 = vpop.f32.mrb[164].mxu1  ;;  %v3429_v40 = vpop.f32.mrb[100].mxu0 }
 0x26a   : > { %8923 = vst [vmem:[#allocation67_spill] sm:$0xff] %v8153_v15  ;;  %v8155_v56 = vadd.f32 %v3429_v40, %v2885_v25  ;;  %v3142_v22 = vpop.f32.mrb[165].mxu1  ;;  %v3431_v23 = vpop.f32.mrb[101].mxu0 }
 0x26b   : > { %v8161_v47 = vpop.f32.mrb[166].mxu1  ;;  %v3432_v55 = vpop.f32.mrb[102].mxu0 }
 0x26c   : > { %8924 = vst [vmem:[#allocation68_spill] sm:$0xff] %v8161_v47  ;;  %v8165_v30 = vadd.f32 %v3432_v55, %v2888_v31  ;;  %v3145_v15 = vpop.f32.mrb[167].mxu1  ;;  %v3434_v39 = vpop.f32.mrb[103].mxu0 }
 0x26d   : > { %v2896_v39 = vadd.f32 %v7985_v1, %v7725_v46  ;;  %v6763_v15 = vld [vmem:[%s7396_s28 + $0x850] ss:$20 sps:$4 sm:$0xff]   ;;  %v2901_v46 = vadd.f32 %v7985_v1, %v7729_v52 }
 0x26e   : > { %3644 = vmatmul.mubr.bf16.gmra.mrb[208].mxu0 %v6758_v8  ;;  %5954 = vmatmul.mubr.msk.bf16.gmra.mrb[16].mxu1 %vm2457_vm0, %v6759_v63  ;;  %v6764_v8 = vld [vmem:[%s7396_s28 + $0x6c8] ss:$20 sps:$4 sm:$0xff]  }
 0x26f   : > { %3651 = vmatprep.mubr.bf16.mxu0 %v6760_v53  ;;  %5957 = vmatprep.mubr.msk.bf16.mxu1 %vm2457_vm0, %v6762_v37  ;;  %v6765_v53 = vld [vmem:[%s7396_s28 + $0x87c] ss:$20 sps:$4 sm:$0xff]  }
 0x270   : > { %v6767_v37 = vld [vmem:[%s7396_s28 + $0x6f0] ss:$20 sps:$4 sm:$0xff]  }
 0x271   : > { %v8171_v25 = vpop.f32.mrb[168].mxu1  ;;  %v3437_v40 = vpop.f32.mrb[104].mxu0 }
 0x272   : > { %8925 = vst [vmem:[#allocation69_spill] sm:$0xff] %v8171_v25  ;;  %v8173_v22 = vadd.f32 %v3437_v40, %v2893_v36  ;;  %v3150_v23 = vpop.f32.mrb[169].mxu1  ;;  %v3439_v31 = vpop.f32.mrb[105].mxu0 }
 0x273   : > { %v8179_v55 = vpop.f32.mrb[170].mxu1  ;;  %v3440_v63 = vpop.f32.mrb[106].mxu0 }
 0x274   : > { %8926 = vst [vmem:[#allocation70_spill] sm:$0xff] %v8179_v55  ;;  %v8183_v41 = vadd.f32 %v3440_v63, %v2896_v39  ;;  %v3153_v25 = vpop.f32.mrb[171].mxu1  ;;  %v3442_v47 = vpop.f32.mrb[107].mxu0 }
 0x275   : > { %v2904_v47 = vadd.f32 %v7985_v1, %v7733_v57  ;;  %v6768_v25 = vld [vmem:[%s7396_s28 + $0x878] ss:$20 sps:$4 sm:$0xff]   ;;  %v2909_v57 = vadd.f32 %v7985_v1, %v7737_v62 }
 0x276   : > { %3652 = vmatmul.mubr.bf16.gmra.mrb[212].mxu0 %v6763_v15  ;;  %5958 = vmatmul.mubr.msk.bf16.gmra.mrb[20].mxu1 %vm2457_vm0, %v6764_v8  ;;  %v6769_v15 = vld [vmem:[%s7396_s28 + $0x718] ss:$20 sps:$4 sm:$0xff]  }
 0x277   : > { %3659 = vmatprep.mubr.bf16.mxu0 %v6765_v53  ;;  %5961 = vmatprep.mubr.msk.bf16.mxu1 %vm2457_vm0, %v6767_v37  ;;  %v6770_v53 = vld [vmem:[%s7396_s28 + $0x8a4] ss:$20 sps:$4 sm:$0xff]   ;;  %v6772_v37 = vld [vmem:[%s7396_s28 + $0x740] ss:$20 sps:$4 sm:$0xff]  }
 0x279   : > { %v8189_v36 = vpop.f32.mrb[172].mxu1  ;;  %v3445_v40 = vpop.f32.mrb[108].mxu0 }
 0x27a   : > { %8927 = vst [vmem:[#allocation71_spill] sm:$0xff] %v8189_v36  ;;  %v8191_v23 = vadd.f32 %v3445_v40, %v2901_v46  ;;  %v3158_v31 = vpop.f32.mrb[173].mxu1  ;;  %v3447_v39 = vpop.f32.mrb[109].mxu0 }
 0x27b   : > { %v8197_v63 = vpop.f32.mrb[174].mxu1  ;;  %v3448_v8 = vpop.f32.mrb[110].mxu0 }
 0x27c   : > { %8928 = vst [vmem:[#allocation72_spill] sm:$0xff] %v8197_v63  ;;  %v8201_v52 = vadd.f32 %v3448_v8, %v2904_v47  ;;  %v3161_v36 = vpop.f32.mrb[175].mxu1  ;;  %v3450_v55 = vpop.f32.mrb[111].mxu0 }
 0x27d   : > { %v2912_v55 = vadd.f32 %v7985_v1, %v7741_v5  ;;  %v6773_v36 = vld [vmem:[%s7396_s28 + $0x8a0] ss:$20 sps:$4 sm:$0xff]   ;;  %v2917_v5 = vadd.f32 %v7985_v1, %v7745_v10 }
 0x27e   : > { %3660 = vmatmul.mubr.bf16.gmra.mrb[216].mxu0 %v6768_v25  ;;  %5962 = vmatmul.mubr.msk.bf16.gmra.mrb[24].mxu1 %vm2457_vm0, %v6769_v15  ;;  %v6774_v25 = vld [vmem:[%s7396_s28 + $0x768] ss:$20 sps:$4 sm:$0xff]  }
 0x27f   : > { %3667 = vmatprep.mubr.bf16.mxu0 %v6770_v53  ;;  %5965 = vmatprep.mubr.msk.bf16.mxu1 %vm2457_vm0, %v6772_v37  ;;  %v6775_v53 = vld [vmem:[%s7396_s28 + $0x8cc] ss:$20 sps:$4 sm:$0xff]   ;;  %v6777_v37 = vld [vmem:[%s7396_s28 + $0x790] ss:$20 sps:$4 sm:$0xff]  }
 0x281   : > { %v8207_v46 = vpop.f32.mrb[176].mxu1  ;;  %v3453_v40 = vpop.f32.mrb[112].mxu0 }
 0x282   : > { %8929 = vst [vmem:[#allocation73_spill] sm:$0xff] %v8207_v46  ;;  %v8209_v31 = vadd.f32 %v3453_v40, %v2909_v57  ;;  %v3166_v39 = vpop.f32.mrb[177].mxu1  ;;  %v3455_v47 = vpop.f32.mrb[113].mxu0 }
 0x283   : > { %v8215_v8 = vpop.f32.mrb[178].mxu1  ;;  %v3456_v15 = vpop.f32.mrb[114].mxu0 }
 0x284   : > { %8930 = vst [vmem:[#allocation74_spill] sm:$0xff] %v8215_v8  ;;  %v8219_v62 = vadd.f32 %v3456_v15, %v2912_v55  ;;  %v3169_v46 = vpop.f32.mrb[179].mxu1  ;;  %v3458_v63 = vpop.f32.mrb[115].mxu0 }
 0x285   : > { %v2920_v63 = vadd.f32 %v7985_v1, %v7749_v14  ;;  %v6778_v46 = vld [vmem:[%s7396_s28 + $0x8c8] ss:$20 sps:$4 sm:$0xff]   ;;  %v2925_v14 = vadd.f32 %v7985_v1, %v7753_v21 }
 0x286   : > { %3668 = vmatmul.mubr.bf16.gmra.mrb[220].mxu0 %v6773_v36  ;;  %5966 = vmatmul.mubr.msk.bf16.gmra.mrb[28].mxu1 %vm2457_vm0, %v6774_v25  ;;  %v6779_v36 = vld [vmem:[%s7396_s28 + $0x7b8] ss:$20 sps:$4 sm:$0xff]  }
 0x287   : > { %3675 = vmatprep.mubr.bf16.mxu0 %v6775_v53  ;;  %5969 = vmatprep.mubr.msk.bf16.mxu1 %vm2457_vm0, %v6777_v37  ;;  %v6780_v53 = vld [vmem:[%s7396_s28 + $0x8f4] ss:$20 sps:$4 sm:$0xff]  }
 0x288   : > { %v6782_v37 = vld [vmem:[%s7396_s28 + $0x7e0] ss:$20 sps:$4 sm:$0xff]  }
 0x289   : > { %v8225_v57 = vpop.f32.mrb[180].mxu1  ;;  %v3461_v40 = vpop.f32.mrb[116].mxu0 }
 0x28a   : > { %8931 = vst [vmem:[#allocation75_spill] sm:$0xff] %v8225_v57  ;;  %v8227_v39 = vadd.f32 %v3461_v40, %v2917_v5  ;;  %v3174_v47 = vpop.f32.mrb[181].mxu1  ;;  %v3463_v55 = vpop.f32.mrb[117].mxu0 }
 0x28b   : > { %v8233_v15 = vpop.f32.mrb[182].mxu1  ;;  %v3464_v25 = vpop.f32.mrb[118].mxu0 }
 0x28c   : > { %8932 = vst [vmem:[#allocation76_spill] sm:$0xff] %v8233_v15  ;;  %v8237_v10 = vadd.f32 %v3464_v25, %v2920_v63  ;;  %v3177_v57 = vpop.f32.mrb[183].mxu1  ;;  %v3466_v8 = vpop.f32.mrb[119].mxu0 }
 0x28d   : > { %v2928_v8 = vadd.f32 %v7985_v1, %v7757_v28  ;;  %v6783_v57 = vld [vmem:[%s7396_s28 + $0x8f0] ss:$20 sps:$4 sm:$0xff]   ;;  %v2933_v28 = vadd.f32 %v7985_v1, %v7761_v34 }
 0x28e   : > { %3676 = vmatmul.mubr.bf16.gmra.mrb[224].mxu0 %v6778_v46  ;;  %5970 = vmatmul.mubr.msk.bf16.gmra.mrb[32].mxu1 %vm2457_vm0, %v6779_v36  ;;  %v6784_v46 = vld [vmem:[%s7396_s28 + $0x808] ss:$20 sps:$4 sm:$0xff]  }
 0x28f   : > { %3683 = vmatprep.mubr.bf16.mxu0 %v6780_v53  ;;  %5973 = vmatprep.mubr.msk.bf16.mxu1 %vm2457_vm0, %v6782_v37  ;;  %v6785_v53 = vld [vmem:[%s7396_s28 + $0x91c] ss:$20 sps:$4 sm:$0xff]  }
 0x290   : > { %v6787_v37 = vld [vmem:[%s7396_s28 + $0x830] ss:$20 sps:$4 sm:$0xff]  }
 0x291   : > { %v8243_v5 = vpop.f32.mrb[184].mxu1  ;;  %v3469_v40 = vpop.f32.mrb[120].mxu0 }
 0x292   : > { %8933 = vst [vmem:[#allocation77_spill] sm:$0xff] %v8243_v5  ;;  %v8245_v47 = vadd.f32 %v3469_v40, %v2925_v14  ;;  %v3182_v55 = vpop.f32.mrb[185].mxu1  ;;  %v3471_v63 = vpop.f32.mrb[121].mxu0 }
 0x293   : > { %v8251_v25 = vpop.f32.mrb[186].mxu1  ;;  %v3472_v36 = vpop.f32.mrb[122].mxu0 }
 0x294   : > { %8934 = vst [vmem:[#allocation78_spill] sm:$0xff] %v8245_v47  ;;  %8935 = vst [vmem:[#allocation79_spill] sm:$0xff] %v8251_v25  ;;  %v8255_v21 = vadd.f32 %v3472_v36, %v2928_v8  ;;  %v3185_v5 = vpop.f32.mrb[187].mxu1  ;;  %v3474_v15 = vpop.f32.mrb[123].mxu0 }
 0x295   : > { %v2936_v15 = vadd.f32 %v7985_v1, %v7765_v42  ;;  %v6788_v5 = vld [vmem:[%s7396_s28 + $0x918] ss:$20 sps:$4 sm:$0xff]   ;;  %v2941_v42 = vadd.f32 %v7985_v1, %v7769_v49 }
 0x296   : > { %8936 = vst [vmem:[#allocation80_spill] sm:$0xff] %v8255_v21  ;;  %3684 = vmatmul.mubr.bf16.gmra.mrb[228].mxu0 %v6783_v57  ;;  %5974 = vmatmul.mubr.msk.bf16.gmra.mrb[36].mxu1 %vm2457_vm0, %v6784_v46  ;;  %v6789_v57 = vld [vmem:[%s7396_s28 + $0x858] ss:$20 sps:$4 sm:$0xff]  }
 0x297   : > { %3691 = vmatprep.mubr.bf16.mxu0 %v6785_v53  ;;  %5977 = vmatprep.mubr.msk.bf16.mxu1 %vm2457_vm0, %v6787_v37  ;;  %v6790_v53 = vld [vmem:[%s7396_s28 + $0x944] ss:$20 sps:$4 sm:$0xff]   ;;  %v6792_v37 = vld [vmem:[%s7396_s28 + $0x880] ss:$20 sps:$4 sm:$0xff]  }
 0x299   : > { %v8261_v14 = vpop.f32.mrb[188].mxu1  ;;  %v3477_v40 = vpop.f32.mrb[124].mxu0 }
 0x29a   : > { %8937 = vst [vmem:[#allocation81_spill] sm:$0xff] %v8261_v14  ;;  %v8263_v55 = vadd.f32 %v3477_v40, %v2933_v28  ;;  %v3190_v63 = vpop.f32.mrb[189].mxu1  ;;  %v3479_v8 = vpop.f32.mrb[125].mxu0  ;;  %v6035_v28 = vadd.f32 %v7985_v1, %v7783_v9  ;;  %v6033_v40 = vadd.f32 %v7985_v1, %v7771_v50  ;;  %v6794_v9 = vld [vmem:[%s7396_s28 + $0x8a8] ss:$20 sps:$4 sm:$0xff]  }
 0x29b   : > { %v8269_v36 = vpop.f32.mrb[190].mxu1  ;;  %v3480_v46 = vpop.f32.mrb[126].mxu0  ;;  %v2944_v8 = vadd.f32 %v7985_v1, %v7775_v60  ;;  %v6795_v14 = vld [vmem:[%s7396_s28 + $0x96c] ss:$20 sps:$4 sm:$0xff]  }
 0x29c   : > { %8938 = vst [vmem:[#allocation82_spill] sm:$0xff] %v8263_v55  ;;  %8939 = vst [vmem:[#allocation83_spill] sm:$0xff] %v8269_v36  ;;  %v8273_v25 = vadd.f32 %v3480_v46, %v2936_v15  ;;  %v3193_v34 = vpop.f32.mrb[191].mxu1  ;;  %v3482_v21 = vpop.f32.mrb[127].mxu0  ;;  %v6036_v15 = vadd.f32 %v7985_v1, %v7789_v18 }
 0x29e   : > { %8940 = vst [vmem:[#allocation84_spill] sm:$0xff] %v8273_v25  ;;  %3692 = vmatmul.mubr.bf16.gmra.mrb[232].mxu0 %v6788_v5  ;;  %5978 = vmatmul.mubr.msk.bf16.gmra.mrb[40].mxu1 %vm2457_vm0, %v6789_v57  ;;  %v6797_v25 = vld [vmem:[%s7396_s28 + $0x8d0] ss:$20 sps:$4 sm:$0xff]  }
 0x29f   : > { %3699 = vmatprep.mubr.bf16.mxu0 %v6790_v53  ;;  %5981 = vmatprep.mubr.msk.bf16.mxu1 %vm2457_vm0, %v6792_v37  ;;  %v6793_v53 = vld [vmem:[%s7396_s28 + $0x940] ss:$20 sps:$4 sm:$0xff]   ;;  %v6034_v37 = vadd.f32 %v7985_v1, %v7777_v61 }
 0x2a1   : > { %v3485_v21 = vpop.f32.mrb[128].mxu0  ;;  %v5875_v63 = vpop.f32.mrb[192].mxu1 }
 0x2a2   : > { %v8287_v5 = vadd.f32 %v3485_v21, %v2941_v42  ;;  %v3783_v57 = vadd.f32 %v6035_v28, %v5875_v63  ;;  %v3487_v49 = vpop.f32.mrb[129].mxu0  ;;  %v3774_v46 = vpop.f32.mrb[193].mxu1 }
 0x2a3   : > { %v3775_v50 = vadd.f32 %v6033_v40, %v3774_v46  ;;  %v3488_v34 = vpop.f32.mrb[130].mxu0  ;;  %v5876_v36 = vpop.f32.mrb[194].mxu1  ;;  %v2949_v40 = vadd.f32 %v7985_v1, %v7781_v7  ;;  %v6798_v49 = vld [vmem:[%s7396_s28 + $0x968] ss:$20 sps:$4 sm:$0xff]   ;;  %v6799_v46 = vld [vmem:[%s7396_s28 + $0x8f8] ss:$20 sps:$4 sm:$0xff]  }
 0x2a4   : > { %v5669_v47 = vmul.f32 -1.442695, %v3783_v57  ;;  %v8295_v60 = vadd.f32 %v3488_v34, %v2944_v8  ;;  %v3786_v55 = vadd.f32 %v6036_v15, %v5876_v36  ;;  %v3490_v18 = vpop.f32.mrb[131].mxu0  ;;  %v3777_v42 = vpop.f32.mrb[195].mxu1  ;;  %v6039_v36 = vadd.f32 %v7985_v1, %v7807_v2  ;;  %v6802_v34 = vld [vmem:[%s7396_s28 + $0x920] ss:$20 sps:$4 sm:$0xff]  }
 0x2a5   : > { %v5667_v21 = vmul.f32 -1.442695, %v3775_v50  ;;  %v3778_v28 = vadd.f32 %v6034_v37, %v3777_v42  ;;  %v6800_v50 = vld [vmem:[%s7396_s28 + $0x994] ss:$20 sps:$4 sm:$0xff]  }
 0x2a6   : > { %6815 = vpow2.f32 %v5669_v47  ;;  %v5670_v63 = vmul.f32 -1.442695, %v3786_v55  ;;  %3700 = vmatmul.mubr.bf16.gmra.mrb[236].mxu0 %v6793_v53  ;;  %5982 = vmatmul.mubr.msk.bf16.gmra.mrb[44].mxu1 %vm2457_vm0, %v6794_v9  ;;  %v6037_v47 = vadd.f32 %v7985_v1, %v7795_v33  ;;  %v6038_v33 = vadd.f32 %v7985_v1, %v7801_v48 }
 0x2a7   : > { %6817 = vpow2.f32 %v5667_v21  ;;  %v5668_v61 = vmul.f32 -1.442695, %v3778_v28  ;;  %3707 = vmatprep.mubr.bf16.mxu0 %v6795_v14  ;;  %5985 = vmatprep.mubr.msk.bf16.mxu1 %vm2457_vm0, %v6797_v25  ;;  %v2952_v14 = vadd.f32 %v7985_v1, %v7787_v17  ;;  %v6040_v25 = vadd.f32 %v7985_v1, %v7813_v16 }
 0x2a8   : > { %6819 = vpow2.f32 %v5670_v63 }
 0x2a9   : > { %6821 = vpow2.f32 %v5668_v61  ;;  %v3493_v55 = vpop.f32.mrb[132].mxu0  ;;  %v5879_v8 = vpop.f32.mrb[196].mxu1 }
 0x2aa   : > { %v8309_v15 = vadd.f32 %v3493_v55, %v2949_v40  ;;  %v3799_v7 = vadd.f32 %v6039_v36, %v5879_v8  ;;  %v3495_v57 = vpop.f32.mrb[133].mxu0  ;;  %v3790_v2 = vpop.f32.mrb[197].mxu1  ;;  %v2957_v36 = vadd.f32 %v7985_v1, %v7793_v32  ;;  %v6803_v55 = vld [vmem:[%s7396_s28 + $0x990] ss:$20 sps:$4 sm:$0xff]  }
 0x2ab   : > { %v3791_v53 = vadd.f32 %v6037_v47, %v3790_v2  ;;  %v3496_v9 = vpop.f32.mrb[134].mxu0  ;;  %v5880_v37 = vpop.f32.mrb[198].mxu1  ;;  %v6043_v47 = vadd.f32 %v7985_v1, %v7832_v24  ;;  %v6042_v24 = vadd.f32 %v7985_v1, %v7825_v58 }
 0x2ac   : > { %v5673_v18 = vmul.f32 -1.442695, %v3799_v7  ;;  %v8317_v17 = vadd.f32 %v3496_v9, %v2952_v14  ;;  %v3802_v42 = vadd.f32 %v6040_v25, %v5880_v37  ;;  %v3498_v16 = vpop.f32.mrb[135].mxu0  ;;  %v3793_v21 = vpop.f32.mrb[199].mxu1  ;;  %v2960_v14 = vadd.f32 %v7985_v1, %v7799_v45  ;;  %v6805_v45 = vld [vmem:[%s7396_s28 + $0x9bc] ss:$20 sps:$4 sm:$0xff]  }
 0x2ad   : > { %v5671_v28 = vmul.f32 -1.442695, %v3791_v53  ;;  %v3794_v63 = vadd.f32 %v6038_v33, %v3793_v21  ;;  %v6041_v25 = vadd.f32 %v7985_v1, %v7819_v38 }
 0x2ae   : > { %6823 = vpow2.f32 %v5673_v18  ;;  %v5674_v61 = vmul.f32 -1.442695, %v3802_v42  ;;  %3708 = vmatmul.mubr.bf16.gmra.mrb[240].mxu0 %v6798_v49  ;;  %5986 = vmatmul.mubr.msk.bf16.gmra.mrb[48].mxu1 %vm2457_vm0, %v6799_v46  ;;  %v6804_v49 = vld [vmem:[%s7396_s28 + $0x948] ss:$20 sps:$4 sm:$0xff]  }
 0x2af   : > { %6825 = vpow2.f32 %v5671_v28  ;;  %v5672_v48 = vmul.f32 -1.442695, %v3794_v63  ;;  %3715 = vmatprep.mubr.bf16.mxu0 %v6800_v50  ;;  %5989 = vmatprep.mubr.msk.bf16.mxu1 %vm2457_vm0, %v6802_v34  ;;  %v8941_v34 = vld [vmem:[#allocation8_spill] sm:$0xff] }
 0x2b0   : > { %v6816_v40 = vpop.eup %6815  ;;  %6827 = vpow2.f32 %v5674_v61  ;;  %v6044_v38 = vadd.f32 %v7985_v1, %v8941_v34  ;;  %v6807_v28 = vld [vmem:[%s7396_s28 + $0x970] ss:$20 sps:$4 sm:$0xff]  }
 0x2b1   : > { %v6818_v8 = vpop.eup %6817  ;;  %v4671_v7 = vadd.f32 1.0, %v6816_v40  ;;  %6829 = vpow2.f32 %v5672_v48  ;;  %v3501_v57 = vpop.f32.mrb[136].mxu0 }
 0x2b2   : > { %v5883_v2 = vpop.f32.mrb[200].mxu1  ;;  %v6820_v32 = vpop.eup %6819  ;;  %v4669_v46 = vadd.f32 1.0, %v6818_v8  ;;  %v8333_v33 = vadd.f32 %v3501_v57, %v2957_v36  ;;  %v8942_v57 = vld [vmem:[#allocation2_spill] sm:$0xff] }
 0x2b3   : > { %v3815_v53 = vadd.f32 %v6043_v47, %v5883_v2  ;;  %v3503_v9 = vpop.f32.mrb[137].mxu0  ;;  %v3806_v37 = vpop.f32.mrb[201].mxu1  ;;  %6831 = vrcp.f32 %v4671_v7  ;;  %v4672_v18 = vadd.f32 1.0, %v6820_v32  ;;  %v2965_v2 = vadd.f32 %v7985_v1, %v8942_v57  ;;  %v8943_v32 = vld [vmem:[#allocation3_spill] sm:$0xff] }
 0x2b4   : > { %v6822_v50 = vpop.eup %6821  ;;  %v3807_v42 = vadd.f32 %v6041_v25, %v3806_v37  ;;  %v3504_v16 = vpop.f32.mrb[138].mxu0  ;;  %6833 = vrcp.f32 %v4669_v46  ;;  %v2968_v46 = vadd.f32 %v7985_v1, %v8943_v32  ;;  %v8945_v9 = vld [vmem:[#allocation10_spill] sm:$0xff] }
 0x2b5   : > { %v5884_v21 = vpop.f32.mrb[202].mxu1  ;;  %v4670_v63 = vadd.f32 1.0, %v6822_v50  ;;  %v5677_v58 = vmul.f32 -1.442695, %v3815_v53  ;;  %v8339_v61 = vadd.f32 %v3504_v16, %v2960_v14  ;;  %v3506_v48 = vpop.f32.mrb[139].mxu0  ;;  %6835 = vrcp.f32 %v4672_v18  ;;  %v8944_v53 = vld [vmem:[#allocation14_spill] sm:$0xff] }
 0x2b6   : > { %v3809_v40 = vpop.f32.mrb[203].mxu1  ;;  %v5675_v36 = vmul.f32 -1.442695, %v3807_v42  ;;  %v3818_v47 = vadd.f32 %v6044_v38, %v5884_v21  ;;  %3716 = vmatmul.mubr.bf16.gmra.mrb[244].mxu0 %v6803_v55  ;;  %5990 = vmatmul.mubr.msk.bf16.gmra.mrb[52].mxu1 %vm2457_vm0, %v6804_v49  ;;  %v6808_v55 = vld [vmem:[%s7396_s28 + $0x9b8] ss:$20 sps:$4 sm:$0xff]   ;;  %v6045_v37 = vadd.f32 %v7985_v1, %v8945_v9 }
 0x2b7   : > { %v3810_v8 = vadd.f32 %v6042_v24, %v3809_v40  ;;  %6837 = vrcp.f32 %v4670_v63  ;;  %3723 = vmatprep.mubr.bf16.mxu0 %v6805_v45  ;;  %5993 = vmatprep.mubr.msk.bf16.mxu1 %vm2457_vm0, %v6807_v28  ;;  %v6047_v24 = vadd.f32 %v7985_v1, %v8944_v53  ;;  %v8946_v45 = vld [vmem:[#allocation12_spill] sm:$0xff]  ;;  %v6809_v42 = vld [vmem:[%s7396_s28 + $0x998] ss:$20 sps:$4 sm:$0xff]  }
 0x2b8   : > { %6839 = vpow2.f32 %v5677_v58  ;;  %v5678_v25 = vmul.f32 -1.442695, %v3818_v47  ;;  %v6824_v14 = vpop.eup %6823  ;;  %v6046_v50 = vadd.f32 %v7985_v1, %v8946_v45  ;;  %v6810_v40 = vld [vmem:[%s7396_s28 + $0x9e4] ss:$20 sps:$4 sm:$0xff]   ;;  %v8947_v47 = vld [vmem:[#allocation16_spill] sm:$0xff] }
 0x2b9   : > { %v5676_v7 = vmul.f32 -1.442695, %v3810_v8  ;;  %6841 = vpow2.f32 %v5675_v36  ;;  %v6826_v49 = vpop.eup %6825  ;;  %v4675_v34 = vadd.f32 1.0, %v6824_v14  ;;  %v3509_v38 = vpop.f32.mrb[140].mxu0  ;;  %v6048_v8 = vadd.f32 %v7985_v1, %v8947_v47 }
 0x2ba   : > { %6843 = vpow2.f32 %v5678_v25  ;;  %v5887_v18 = vpop.f32.mrb[204].mxu1  ;;  %v6828_v16 = vpop.eup %6827  ;;  %v4673_v21 = vadd.f32 1.0, %v6826_v49  ;;  %v8356_v28 = vadd.f32 %v3509_v38, %v2965_v2  ;;  %v6812_v2 = vld [vmem:[%s7396_s28 + $0x9c0] ss:$20 sps:$4 sm:$0xff]  }
 0x2bb   : > { %6845 = vpow2.f32 %v5676_v7  ;;  %v3831_v63 = vadd.f32 %v6047_v24, %v5887_v18  ;;  %v3511_v58 = vpop.f32.mrb[141].mxu0  ;;  %v3822_v48 = vpop.f32.mrb[205].mxu1  ;;  %v4676_v25 = vadd.f32 1.0, %v6828_v16 }
 0x2bc   : > { %v6830_v36 = vpop.eup %6829  ;;  %6847 = vrcp.f32 %v4675_v34  ;;  %v3823_v14 = vadd.f32 %v6045_v37, %v3822_v48  ;;  %v3512_v7 = vpop.f32.mrb[142].mxu0  ;;  %v8949_v48 = vld [vmem:[#allocation22_spill] sm:$0xff] }
 0x2bd   : > { %v5888_v57 = vpop.f32.mrb[206].mxu1  ;;  %6849 = vrcp.f32 %v4673_v21  ;;  %v4674_v32 = vadd.f32 1.0, %v6830_v36  ;;  %v5681_v53 = vmul.f32 -1.442695, %v3831_v63  ;;  %v8367_v24 = vadd.f32 %v3512_v7, %v2968_v46  ;;  %v3514_v49 = vpop.f32.mrb[143].mxu0  ;;  %v8948_v63 = vld [vmem:[#allocation4_spill] sm:$0xff] }
 0x2be   : > { %v3825_v9 = vpop.f32.mrb[207].mxu1  ;;  %v6832_v45 = vpop.eup %6831  ;;  %6851 = vrcp.f32 %v4676_v25  ;;  %v5679_v38 = vmul.f32 -1.442695, %v3823_v14  ;;  %v3834_v18 = vadd.f32 %v6048_v8, %v5888_v57  ;;  %3724 = vmatmul.mubr.bf16.gmra.mrb[248].mxu0 %v6808_v55  ;;  %5994 = vmatmul.mubr.msk.bf16.gmra.mrb[56].mxu1 %vm2457_vm0, %v6809_v42  ;;  %v6051_v36 = vadd.f32 %v7985_v1, %v8949_v48  ;;  %v8950_v42 = vld [vmem:[#allocation5_spill] sm:$0xff]  ;;  %v8951_v8 = vld [vmem:[#allocation18_spill] sm:$0xff] }
 0x2bf   : > { %v3826_v58 = vadd.f32 %v6046_v50, %v3825_v9  ;;  %v6834_v34 = vpop.eup %6833  ;;  %5055 = vst [vmem:[%s8364_s22 + $0x10] sm:$0xff] %v6832_v45  ;;  %6853 = vrcp.f32 %v4674_v32  ;;  %3731 = vmatprep.mubr.bf16.mxu0 %v6810_v40  ;;  %5997 = vmatprep.mubr.msk.bf16.mxu1 %vm2457_vm0, %v6812_v2  ;;  %v2973_v50 = vadd.f32 %v7985_v1, %v8948_v63  ;;  %v6813_v7 = vld [vmem:[%s7396_s28 + $0x9e0] ss:$20 sps:$4 sm:$0xff]   ;;  %v6814_v45 = vld [vmem:[%s7396_s28 + $0x9e8] ss:$20 sps:$4 sm:$0xff]  }
 0x2c0   : > { %v6836_v37 = vpop.eup %6835  ;;  %5053 = vst [vmem:[%s8364_s22] sm:$0xff] %v6834_v34  ;;  %6855 = vpow2.f32 %v5681_v53  ;;  %v5682_v46 = vmul.f32 -1.442695, %v3834_v18  ;;  %v2976_v47 = vadd.f32 %v7985_v1, %v8950_v42  ;;  %v6049_v25 = vadd.f32 %v7985_v1, %v8951_v8  ;;  %v8390_v18 = vld [vmem:[%s8856_s2] ss:$0 sm:$0xff]  ;;  %v8952_v1 = vld [vmem:[#allocation20_spill] sm:$0xff] }
 0x2c1   : > { %v5680_v16 = vmul.f32 -1.442695, %v3826_v58  ;;  %v6838_v21 = vpop.eup %6837  ;;  %5056 = vst [vmem:[%s8364_s22 + $0x18] sm:$0xff] %v6836_v37  ;;  %6857 = vpow2.f32 %v5679_v38  ;;  %v3517_v40 = vpop.f32.mrb[144].mxu0  ;;  %v6050_v58 = vadd.f32 %v8390_v18, %v8952_v1  ;;  %v8953_v34 = vld [vmem:[#allocation24_spill] sm:$0xff] }
 0x2c2   : > { %v6840_v55 = vpop.eup %6839  ;;  %5054 = vst [vmem:[%s8364_s22 + $0x8] sm:$0xff] %v6838_v21  ;;  %6859 = vpow2.f32 %v5682_v46  ;;  %v5891_v14 = vpop.f32.mrb[208].mxu1  ;;  %v8384_v32 = vadd.f32 %v3517_v40, %v2973_v50  ;;  %v6052_v37 = vadd.f32 %v8390_v18, %v8953_v34  ;;  %v8956_v34 = vld [vmem:[#allocation30_spill] sm:$0xff] }
 0x2c3   : > { %v6842_v57 = vpop.eup %6841  ;;  %v4679_v2 = vadd.f32 1.0, %v6840_v55  ;;  %6861 = vpow2.f32 %v5680_v16  ;;  %v3847_v53 = vadd.f32 %v6051_v36, %v5891_v14  ;;  %v3519_v49 = vpop.f32.mrb[145].mxu0 }
 0x2c4   : > { %v3838_v9 = vpop.f32.mrb[209].mxu1  ;;  %v6844_v38 = vpop.eup %6843  ;;  %v4677_v46 = vadd.f32 1.0, %v6842_v57 }
 0x2c5   : > { %v3839_v16 = vadd.f32 %v6049_v25, %v3838_v9  ;;  %v3520_v21 = vpop.f32.mrb[146].mxu0  ;;  %v5892_v63 = vpop.f32.mrb[210].mxu1  ;;  %6863 = vrcp.f32 %v4679_v2  ;;  %v4680_v48 = vadd.f32 1.0, %v6844_v38  ;;  %v5685_v36 = vmul.f32 -1.442695, %v3847_v53  ;;  %v8955_v9 = vld [vmem:[#allocation6_spill] sm:$0xff] }
 0x2c6   : > { %v6846_v50 = vpop.eup %6845  ;;  %v8396_v55 = vadd.f32 %v3520_v21, %v2976_v47  ;;  %v3522_v42 = vpop.f32.mrb[147].mxu0  ;;  %6865 = vrcp.f32 %v4677_v46  ;;  %v3850_v1 = vadd.f32 %v6052_v37, %v5892_v63  ;;  %3732 = vmatmul.mubr.bf16.gmra.mrb[252].mxu0 %v6813_v7  ;;  %5998 = vmatmul.mubr.msk.bf16.gmra.mrb[60].mxu1 %vm2457_vm0, %v6814_v45  ;;  %v2981_v38 = vadd.f32 %v8390_v18, %v8955_v9  ;;  %v8958_v21 = vld [vmem:[#allocation26_spill] sm:$0xff]  ;;  %v8959_v63 = vld [vmem:[#allocation28_spill] sm:$0xff] }
 0x2c7   : > { %v3841_v8 = vpop.f32.mrb[211].mxu1  ;;  %v6848_v40 = vpop.eup %6847  ;;  %v4678_v14 = vadd.f32 1.0, %v6846_v50  ;;  %v5683_v49 = vmul.f32 -1.442695, %v3839_v16  ;;  %6867 = vrcp.f32 %v4680_v48  ;;  %v6055_v46 = vadd.f32 %v8390_v18, %v8956_v34 }
 0x2c8   : > { %8954 = vst [vmem:[#allocation8_spill] sm:$0xff] %v8396_v55  ;;  %v6850_v57 = vpop.eup %6849  ;;  %5059 = vst [vmem:[%s8364_s22 + $0x30] sm:$0xff] %v6848_v40  ;;  %v3842_v25 = vadd.f32 %v6050_v58, %v3841_v8  ;;  %v5686_v47 = vmul.f32 -1.442695, %v3850_v1  ;;  %v8957_v58 = vld [vmem:[#allocation7_spill] sm:$0xff]  ;;  %v6053_v45 = vadd.f32 %v8390_v18, %v8958_v21  ;;  %v6054_v50 = vadd.f32 %v8390_v18, %v8959_v63 }
 0x2c9   : > { %v6852_v2 = vpop.eup %6851  ;;  %5057 = vst [vmem:[%s8364_s22 + $0x20] sm:$0xff] %v6850_v57  ;;  %6869 = vrcp.f32 %v4678_v14  ;;  %v2984_v7 = vadd.f32 %v8390_v18, %v8957_v58  ;;  %v3525_v48 = vpop.f32.mrb[148].mxu0 }
 0x2ca   : > { %v6854_v53 = vpop.eup %6853  ;;  %5060 = vst [vmem:[%s8364_s22 + $0x38] sm:$0xff] %v6852_v2  ;;  %6871 = vpow2.f32 %v5685_v36  ;;  %v5684_v37 = vmul.f32 -1.442695, %v3842_v25  ;;  %v5895_v42 = vpop.f32.mrb[212].mxu1  ;;  %v8413_v14 = vadd.f32 %v3525_v48, %v2981_v38  ;;  %v8960_v2 = vld [vmem:[#allocation32_spill] sm:$0xff] }
 0x2cb   : > { %v6856_v16 = vpop.eup %6855  ;;  %5058 = vst [vmem:[%s8364_s22 + $0x28] sm:$0xff] %v6854_v53  ;;  %6873 = vpow2.f32 %v5683_v49  ;;  %v3863_v36 = vadd.f32 %v6055_v46, %v5895_v42  ;;  %v3527_v1 = vpop.f32.mrb[149].mxu0  ;;  %v6056_v9 = vadd.f32 %v8390_v18, %v8960_v2 }
 0x2cc   : > { %v6858_v8 = vpop.eup %6857  ;;  %v4683_v40 = vadd.f32 1.0, %v6856_v16  ;;  %6875 = vpow2.f32 %v5686_v47  ;;  %v3854_v57 = vpop.f32.mrb[213].mxu1 }
 0x2cd   : > { %v6860_v25 = vpop.eup %6859  ;;  %v4681_v34 = vadd.f32 1.0, %v6858_v8  ;;  %6877 = vpow2.f32 %v5684_v37  ;;  %v3855_v58 = vadd.f32 %v6053_v45, %v3854_v57  ;;  %v3528_v21 = vpop.f32.mrb[150].mxu0  ;;  %v5689_v16 = vmul.f32 -1.442695, %v3863_v36  ;;  %v8962_v36 = vld [vmem:[#allocation9_spill] sm:$0xff]  ;;  %v8963_v57 = vld [vmem:[#allocation38_spill] sm:$0xff] }
 0x2ce   : > { %v5896_v53 = vpop.f32.mrb[214].mxu1  ;;  %v6862_v49 = vpop.eup %6861  ;;  %6879 = vrcp.f32 %v4683_v40  ;;  %v4684_v63 = vadd.f32 1.0, %v6860_v25  ;;  %v8417_v47 = vadd.f32 %v3528_v21, %v2984_v7  ;;  %v2989_v7 = vadd.f32 %v8390_v18, %v8962_v36  ;;  %v8968_v36 = vld [vmem:[#allocation36_spill] sm:$0xff] }
 0x2cf   : > { %v3530_v38 = vpop.f32.mrb[151].mxu0  ;;  %v3857_v46 = vpop.f32.mrb[215].mxu1  ;;  %6881 = vrcp.f32 %v4681_v34  ;;  %v4682_v48 = vadd.f32 1.0, %v6862_v49  ;;  %v5687_v42 = vmul.f32 -1.442695, %v3855_v58  ;;  %v3866_v1 = vadd.f32 %v6056_v9, %v5896_v53  ;;  %v8964_v58 = vld [vmem:[#allocation11_spill] sm:$0xff] }
 0x2d0   : > { %8961 = vst [vmem:[#allocation2_spill] sm:$0xff] %v8417_v47  ;;  %v6864_v2 = vpop.eup %6863  ;;  %6883 = vrcp.f32 %v4684_v63  ;;  %v3858_v37 = vadd.f32 %v6054_v50, %v3857_v46  ;;  %v6059_v25 = vadd.f32 %v8390_v18, %v8963_v57  ;;  %v2992_v21 = vadd.f32 %v8390_v18, %v8964_v58  ;;  %v8965_v50 = vld [vmem:[#allocation34_spill] sm:$0xff]  ;;  %v8966_v46 = vld [vmem:[#allocation40_spill] sm:$0xff] }
 0x2d1   : > { %v6866_v45 = vpop.eup %6865  ;;  %5063 = vst [vmem:[%s8364_s22 + $0x50] sm:$0xff] %v6864_v2  ;;  %6885 = vrcp.f32 %v4682_v48  ;;  %v5690_v8 = vmul.f32 -1.442695, %v3866_v1  ;;  %v6057_v53 = vadd.f32 %v8390_v18, %v8965_v50  ;;  %v3533_v49 = vpop.f32.mrb[152].mxu0  ;;  %v6060_v48 = vadd.f32 %v8390_v18, %v8966_v46 }
 0x2d2   : > { %v6868_v40 = vpop.eup %6867  ;;  %5061 = vst [vmem:[%s8364_s22 + $0x40] sm:$0xff] %v6866_v45  ;;  %6887 = vpow2.f32 %v5689_v16  ;;  %v5688_v34 = vmul.f32 -1.442695, %v3858_v37  ;;  %v5899_v63 = vpop.f32.mrb[216].mxu1  ;;  %v8433_v1 = vadd.f32 %v3533_v49, %v2989_v7  ;;  %v6058_v57 = vadd.f32 %v8390_v18, %v8968_v36 }
 0x2d3   : > { %v6870_v9 = vpop.eup %6869  ;;  %5064 = vst [vmem:[%s8364_s22 + $0x58] sm:$0xff] %v6868_v40  ;;  %6889 = vpow2.f32 %v5687_v42  ;;  %v3879_v16 = vadd.f32 %v6059_v25, %v5899_v63  ;;  %v3535_v2 = vpop.f32.mrb[153].mxu0 }
 0x2d4   : > { %v6872_v38 = vpop.eup %6871  ;;  %5062 = vst [vmem:[%s8364_s22 + $0x48] sm:$0xff] %v6870_v9  ;;  %6891 = vpow2.f32 %v5690_v8  ;;  %8967 = vst [vmem:[#allocation3_spill] sm:$0xff] %v8433_v1  ;;  %v3870_v37 = vpop.f32.mrb[217].mxu1  ;;  %v8975_v1 = vld [vmem:[#allocation44_spill] sm:$0xff] }
 0x2d5   : > { %v6874_v45 = vpop.eup %6873  ;;  %v4687_v58 = vadd.f32 1.0, %v6872_v38  ;;  %6893 = vpow2.f32 %v5688_v34  ;;  %v3871_v42 = vadd.f32 %v6057_v53, %v3870_v37  ;;  %v3536_v40 = vpop.f32.mrb[154].mxu0  ;;  %v5693_v63 = vmul.f32 -1.442695, %v3879_v16 }
 0x2d6   : > { %v5900_v50 = vpop.f32.mrb[218].mxu1  ;;  %v6876_v55 = vpop.eup %6875  ;;  %v4685_v47 = vadd.f32 1.0, %v6874_v45  ;;  %v8437_v46 = vadd.f32 %v3536_v40, %v2992_v21  ;;  %v8971_v40 = vld [vmem:[#allocation46_spill] sm:$0xff] }
 0x2d7   : > { %v3882_v8 = vadd.f32 %v6060_v48, %v5900_v50  ;;  %v3538_v7 = vpop.f32.mrb[155].mxu0  ;;  %v3873_v9 = vpop.f32.mrb[219].mxu1  ;;  %6895 = vrcp.f32 %v4687_v58  ;;  %v4688_v49 = vadd.f32 1.0, %v6876_v55  ;;  %v5691_v53 = vmul.f32 -1.442695, %v3871_v42  ;;  %v8970_v48 = vld [vmem:[#allocation13_spill] sm:$0xff] }
 0x2d8   : > { %8969 = vst [vmem:[#allocation14_spill] sm:$0xff] %v8437_v46  ;;  %v6878_v25 = vpop.eup %6877  ;;  %v3874_v2 = vadd.f32 %v6058_v57, %v3873_v9  ;;  %6897 = vrcp.f32 %v4685_v47  ;;  %v2997_v45 = vadd.f32 %v8390_v18, %v8970_v48  ;;  %v6063_v58 = vadd.f32 %v8390_v18, %v8971_v40  ;;  %v8972_v57 = vld [vmem:[#allocation42_spill] sm:$0xff] }
 0x2d9   : > { %v6880_v36 = vpop.eup %6879  ;;  %v4686_v34 = vadd.f32 1.0, %v6878_v25  ;;  %6899 = vrcp.f32 %v4688_v49  ;;  %v5694_v21 = vmul.f32 -1.442695, %v3882_v8  ;;  %v6061_v47 = vadd.f32 %v8390_v18, %v8972_v57  ;;  %v3541_v42 = vpop.f32.mrb[156].mxu0  ;;  %v8973_v8 = vld [vmem:[#allocation15_spill] sm:$0xff] }
 0x2da   : > { %v6882_v38 = vpop.eup %6881  ;;  %5067 = vst [vmem:[%s8364_s22 + $0x70] sm:$0xff] %v6880_v36  ;;  %v5692_v55 = vmul.f32 -1.442695, %v3874_v2  ;;  %v5903_v50 = vpop.f32.mrb[220].mxu1  ;;  %v3000_v9 = vadd.f32 %v8390_v18, %v8973_v8  ;;  %v8451_v25 = vadd.f32 %v3541_v42, %v2997_v45  ;;  %v6062_v8 = vadd.f32 %v8390_v18, %v8975_v1 }
 0x2db   : > { %v6884_v37 = vpop.eup %6883  ;;  %5065 = vst [vmem:[%s8364_s22 + $0x60] sm:$0xff] %v6882_v38  ;;  %6901 = vrcp.f32 %v4686_v34  ;;  %v3895_v49 = vadd.f32 %v6063_v58, %v5903_v50  ;;  %v3543_v36 = vpop.f32.mrb[157].mxu0  ;;  %v8974_v38 = vld [vmem:[#allocation48_spill] sm:$0xff] }
 0x2dc   : > { %v6886_v16 = vpop.eup %6885  ;;  %5068 = vst [vmem:[%s8364_s22 + $0x78] sm:$0xff] %v6884_v37  ;;  %6903 = vpow2.f32 %v5693_v63  ;;  %v3886_v34 = vpop.f32.mrb[221].mxu1  ;;  %v6064_v48 = vadd.f32 %v8390_v18, %v8974_v38 }
 0x2dd   : > { %v6888_v7 = vpop.eup %6887  ;;  %5066 = vst [vmem:[%s8364_s22 + $0x68] sm:$0xff] %v6886_v16  ;;  %6905 = vpow2.f32 %v5691_v53  ;;  %v3887_v63 = vadd.f32 %v6061_v47, %v3886_v34  ;;  %v3544_v37 = vpop.f32.mrb[158].mxu0 }
 0x2de   : > { %v6890_v2 = vpop.eup %6889  ;;  %v4691_v40 = vadd.f32 1.0, %v6888_v7  ;;  %6907 = vpow2.f32 %v5694_v21  ;;  %v5904_v57 = vpop.f32.mrb[222].mxu1  ;;  %v8457_v53 = vadd.f32 %v3544_v37, %v3000_v9  ;;  %v5697_v7 = vmul.f32 -1.442695, %v3895_v49  ;;  %v8976_v9 = vld [vmem:[#allocation17_spill] sm:$0xff] }
 0x2df   : > { %v6892_v46 = vpop.eup %6891  ;;  %v4689_v16 = vadd.f32 1.0, %v6890_v2  ;;  %6909 = vpow2.f32 %v5692_v55  ;;  %v3546_v45 = vpop.f32.mrb[159].mxu0  ;;  %v3898_v21 = vadd.f32 %v6064_v48, %v5904_v57  ;;  %v5695_v36 = vmul.f32 -1.442695, %v3887_v63  ;;  %v8977_v63 = vld [vmem:[#allocation19_spill] sm:$0xff] }
 0x2e0   : > { %v3889_v58 = vpop.f32.mrb[223].mxu1  ;;  %v6894_v42 = vpop.eup %6893  ;;  %6911 = vrcp.f32 %v4691_v40  ;;  %v4692_v50 = vadd.f32 1.0, %v6892_v46  ;;  %v3005_v2 = vadd.f32 %v8390_v18, %v8976_v9  ;;  %v3008_v57 = vadd.f32 %v8390_v18, %v8977_v63 }
 0x2e1   : > { %6913 = vrcp.f32 %v4689_v16  ;;  %v4690_v47 = vadd.f32 1.0, %v6894_v42  ;;  %v3890_v34 = vadd.f32 %v6062_v8, %v3889_v58  ;;  %v6896_v38 = vpop.eup %6895  ;;  %v5698_v1 = vmul.f32 -1.442695, %v3898_v21  ;;  %v3549_v49 = vpop.f32.mrb[160].mxu0 }
 0x2e2   : > { %6915 = vrcp.f32 %v4692_v50  ;;  %v6898_v55 = vpop.eup %6897  ;;  %5071 = vst [vmem:[%s8364_s22 + $0x90] sm:$0xff] %v6896_v38  ;;  %v5907_v48 = vpop.f32.mrb[224].mxu1  ;;  %v8466_v8 = vadd.f32 %v3549_v49, %v3005_v2 }
 0x2e3   : > { %6917 = vrcp.f32 %v4690_v47  ;;  %v5696_v40 = vmul.f32 -1.442695, %v3890_v34  ;;  %v6900_v46 = vpop.eup %6899  ;;  %5069 = vst [vmem:[%s8364_s22 + $0x80] sm:$0xff] %v6898_v55  ;;  %v3911_v16 = vadd.f32 %v5907_v48, %v8011_v29  ;;  %v3551_v45 = vpop.f32.mrb[161].mxu0 }
 0x2e4   : > { %6919 = vpow2.f32 %v5697_v7  ;;  %5072 = vst [vmem:[%s8364_s22 + $0x98] sm:$0xff] %v6900_v46  ;;  %v3902_v58 = vpop.f32.mrb[225].mxu1  ;;  %v3552_v7 = vpop.f32.mrb[162].mxu0 }
 0x2e5   : > { %v6902_v37 = vpop.eup %6901  ;;  %6921 = vpow2.f32 %v5695_v36  ;;  %v3903_v50 = vadd.f32 %v3902_v58, %v7993_v26  ;;  %v5908_v21 = vpop.f32.mrb[226].mxu1  ;;  %v8471_v38 = vadd.f32 %v3552_v7, %v3008_v57  ;;  %v5701_v49 = vmul.f32 -1.442695, %v3911_v16  ;;  %v8978_v57 = vld [vmem:[#allocation21_spill] sm:$0xff] }
 0x2e6   : > { %v6904_v42 = vpop.eup %6903  ;;  %5070 = vst [vmem:[%s8364_s22 + $0x88] sm:$0xff] %v6902_v37  ;;  %6923 = vpow2.f32 %v5698_v1  ;;  %v3554_v55 = vpop.f32.mrb[163].mxu0  ;;  %v3914_v29 = vadd.f32 %v5908_v21, %v8021_v27  ;;  %v3013_v45 = vadd.f32 %v8390_v18, %v8978_v57  ;;  %v8979_v21 = vld [vmem:[#allocation23_spill] sm:$0xff] }
 0x2e7   : > { %v6906_v47 = vpop.eup %6905  ;;  %v4695_v34 = vadd.f32 1.0, %v6904_v42  ;;  %6925 = vpow2.f32 %v5696_v40  ;;  %v3905_v36 = vpop.f32.mrb[227].mxu1  ;;  %v5699_v37 = vmul.f32 -1.442695, %v3903_v50 }
 0x2e8   : > { %v6908_v9 = vpop.eup %6907  ;;  %v4693_v2 = vadd.f32 1.0, %v6906_v47  ;;  %v3906_v46 = vadd.f32 %v3905_v36, %v8003_v19  ;;  %v5702_v58 = vmul.f32 -1.442695, %v3914_v29  ;;  %v3016_v47 = vadd.f32 %v8390_v18, %v8979_v21 }
 0x2e9   : > { %v6910_v1 = vpop.eup %6909  ;;  %6927 = vrcp.f32 %v4695_v34  ;;  %v4696_v26 = vadd.f32 1.0, %v6908_v9  ;;  %v3557_v42 = vpop.f32.mrb[164].mxu0 }
 0x2ea   : > { %v6912_v48 = vpop.eup %6911  ;;  %6929 = vrcp.f32 %v4693_v2  ;;  %v4694_v40 = vadd.f32 1.0, %v6910_v1  ;;  %v5700_v19 = vmul.f32 -1.442695, %v3906_v46  ;;  %v5911_v7 = vpop.f32.mrb[228].mxu1  ;;  %v8482_v50 = vadd.f32 %v3557_v42, %v3013_v45 }
 0x2eb   : > { %v6914_v63 = vpop.eup %6913  ;;  %5075 = vst [vmem:[%s8364_s22 + $0xb0] sm:$0xff] %v6912_v48  ;;  %6931 = vrcp.f32 %v4696_v26  ;;  %v3927_v34 = vadd.f32 %v5911_v7, %v8047_v44  ;;  %v3559_v55 = vpop.f32.mrb[165].mxu0 }
 0x2ec   : > { %v6916_v27 = vpop.eup %6915  ;;  %5073 = vst [vmem:[%s8364_s22 + $0xa0] sm:$0xff] %v6914_v63  ;;  %6933 = vrcp.f32 %v4694_v40  ;;  %v3918_v36 = vpop.f32.mrb[229].mxu1 }
 0x2ed   : > { %v6918_v16 = vpop.eup %6917  ;;  %5076 = vst [vmem:[%s8364_s22 + $0xb8] sm:$0xff] %v6916_v27  ;;  %6935 = vpow2.f32 %v5701_v49  ;;  %v3919_v2 = vadd.f32 %v3918_v36, %v8029_v13  ;;  %v3560_v29 = vpop.f32.mrb[166].mxu0  ;;  %v5705_v27 = vmul.f32 -1.442695, %v3927_v34 }
 0x2ee   : > { %v6920_v9 = vpop.eup %6919  ;;  %5074 = vst [vmem:[%s8364_s22 + $0xa8] sm:$0xff] %v6918_v16  ;;  %6937 = vpow2.f32 %v5699_v37  ;;  %v5912_v46 = vpop.f32.mrb[230].mxu1  ;;  %v8487_v48 = vadd.f32 %v3560_v29, %v3016_v47  ;;  %v8980_v16 = vld [vmem:[#allocation25_spill] sm:$0xff] }
 0x2ef   : > { %v6922_v1 = vpop.eup %6921  ;;  %v4699_v26 = vadd.f32 1.0, %v6920_v9  ;;  %6939 = vpow2.f32 %v5702_v58  ;;  %v3562_v40 = vpop.f32.mrb[167].mxu0  ;;  %v3930_v44 = vadd.f32 %v5912_v46, %v8057_v43  ;;  %v5703_v58 = vmul.f32 -1.442695, %v3919_v2 }
 0x2f0   : > { %v3921_v49 = vpop.f32.mrb[231].mxu1  ;;  %v6924_v63 = vpop.eup %6923  ;;  %v4697_v57 = vadd.f32 1.0, %v6922_v1  ;;  %6941 = vpow2.f32 %v5700_v19  ;;  %v3021_v21 = vadd.f32 %v8390_v18, %v8980_v16 }
 0x2f1   : > { %v6926_v45 = vpop.eup %6925  ;;  %6943 = vrcp.f32 %v4699_v26  ;;  %v4700_v37 = vadd.f32 1.0, %v6924_v63  ;;  %v3922_v13 = vadd.f32 %v3921_v49, %v8039_v35  ;;  %v5706_v47 = vmul.f32 -1.442695, %v3930_v44  ;;  %v3565_v55 = vpop.f32.mrb[168].mxu0  ;;  %v8981_v35 = vld [vmem:[#allocation27_spill] sm:$0xff] }
 0x2f2   : > { %6945 = vrcp.f32 %v4697_v57  ;;  %v4698_v42 = vadd.f32 1.0, %v6926_v45  ;;  %v5915_v36 = vpop.f32.mrb[232].mxu1  ;;  %v3024_v9 = vadd.f32 %v8390_v18, %v8981_v35  ;;  %v8497_v2 = vadd.f32 %v3565_v55, %v3021_v21  ;;  %v3567_v46 = vpop.f32.mrb[169].mxu0  ;;  %v8982_v55 = vld [vmem:[#allocation29_spill] sm:$0xff] }
 0x2f3   : > { %v6928_v7 = vpop.eup %6927  ;;  %6947 = vrcp.f32 %v4700_v37  ;;  %v5704_v43 = vmul.f32 -1.442695, %v3922_v13  ;;  %v3943_v29 = vadd.f32 %v5915_v36, %v8083_v6  ;;  %v3934_v1 = vpop.f32.mrb[233].mxu1  ;;  %v8983_v46 = vld [vmem:[#allocation31_spill] sm:$0xff] }
 0x2f4   : > { %v6930_v19 = vpop.eup %6929  ;;  %5079 = vst [vmem:[%s8364_s22 + $0xd0] sm:$0xff] %v6928_v7  ;;  %6949 = vrcp.f32 %v4698_v42  ;;  %v3935_v40 = vadd.f32 %v3934_v1, %v8065_v11  ;;  %v3568_v49 = vpop.f32.mrb[170].mxu0  ;;  %v3032_v1 = vadd.f32 %v8390_v18, %v8983_v46 }
 0x2f5   : > { %v6932_v34 = vpop.eup %6931  ;;  %5077 = vst [vmem:[%s8364_s22 + $0xc0] sm:$0xff] %v6930_v19  ;;  %6951 = vpow2.f32 %v5705_v27  ;;  %v5916_v63 = vpop.f32.mrb[234].mxu1  ;;  %v5709_v44 = vmul.f32 -1.442695, %v3943_v29  ;;  %v8503_v45 = vadd.f32 %v3568_v49, %v3024_v9 }
 0x2f6   : > { %v6934_v26 = vpop.eup %6933  ;;  %5080 = vst [vmem:[%s8364_s22 + $0xd8] sm:$0xff] %v6932_v34  ;;  %6953 = vpow2.f32 %v5703_v58  ;;  %v3946_v37 = vadd.f32 %v5916_v63, %v8093_v59  ;;  %v3570_v27 = vpop.f32.mrb[171].mxu0  ;;  %v3029_v59 = vadd.f32 %v8390_v18, %v8982_v55 }
 0x2f7   : > { %v6936_v57 = vpop.eup %6935  ;;  %5078 = vst [vmem:[%s8364_s22 + $0xc8] sm:$0xff] %v6934_v26  ;;  %6955 = vpow2.f32 %v5706_v47  ;;  %v3937_v13 = vpop.f32.mrb[235].mxu1  ;;  %v5707_v47 = vmul.f32 -1.442695, %v3935_v40 }
 0x2f8   : > { %v6938_v6 = vpop.eup %6937  ;;  %v4703_v42 = vadd.f32 1.0, %v6936_v57  ;;  %6957 = vpow2.f32 %v5704_v43  ;;  %v3938_v58 = vadd.f32 %v3937_v13, %v8075_v51  ;;  %v5710_v34 = vmul.f32 -1.442695, %v3946_v37 }
 0x2f9   : > { %v6940_v7 = vpop.eup %6939  ;;  %v4701_v11 = vadd.f32 1.0, %v6938_v6  ;;  %6959 = vpow2.f32 %v5709_v44  ;;  %v3573_v43 = vpop.f32.mrb[172].mxu0 }
 0x2fa   : > { %v6942_v16 = vpop.eup %6941  ;;  %6961 = vrcp.f32 %v4703_v42  ;;  %v4704_v21 = vadd.f32 1.0, %v6940_v7  ;;  %v5708_v51 = vmul.f32 -1.442695, %v3938_v58  ;;  %v5919_v9 = vpop.f32.mrb[236].mxu1  ;;  %v8513_v26 = vadd.f32 %v3573_v43, %v3029_v59 }
 0x2fb   : > { %v6944_v19 = vpop.eup %6943  ;;  %6963 = vrcp.f32 %v4701_v11  ;;  %v4702_v36 = vadd.f32 1.0, %v6942_v16  ;;  %v3959_v40 = vadd.f32 %v5919_v9, %v8119_v0  ;;  %v3575_v49 = vpop.f32.mrb[173].mxu0  ;;  %v8985_v9 = vld [vmem:[#allocation35_spill] sm:$0xff] }
 0x2fc   : > { %v6946_v35 = vpop.eup %6945  ;;  %5083 = vst [vmem:[%s8364_s22 + $0xf0] sm:$0xff] %v6944_v19  ;;  %6965 = vrcp.f32 %v4704_v21  ;;  %v3950_v63 = vpop.f32.mrb[237].mxu1 }
 0x2fd   : > { %v6948_v29 = vpop.eup %6947  ;;  %5081 = vst [vmem:[%s8364_s22 + $0xe0] sm:$0xff] %v6946_v35  ;;  %6967 = vrcp.f32 %v4702_v36  ;;  %v3951_v44 = vadd.f32 %v3950_v63, %v8101_v3  ;;  %v3576_v37 = vpop.f32.mrb[174].mxu0  ;;  %v5713_v6 = vmul.f32 -1.442695, %v3959_v40  ;;  %v8984_v36 = vld [vmem:[#allocation33_spill] sm:$0xff] }
 0x2fe   : > { %v6950_v57 = vpop.eup %6949  ;;  %5084 = vst [vmem:[%s8364_s22 + $0xf8] sm:$0xff] %v6948_v29  ;;  %6969 = vpow2.f32 %v5707_v47  ;;  %v5920_v27 = vpop.f32.mrb[238].mxu1  ;;  %v8519_v42 = vadd.f32 %v3576_v37, %v3032_v1 }
 0x2ff   : > { %v6952_v13 = vpop.eup %6951  ;;  %5082 = vst [vmem:[%s8364_s22 + $0xe8] sm:$0xff] %v6950_v57  ;;  %6971 = vpow2.f32 %v5710_v34  ;;  %v3962_v58 = vadd.f32 %v5920_v27, %v8129_v12  ;;  %v3578_v7 = vpop.f32.mrb[175].mxu0  ;;  %v3037_v34 = vadd.f32 %v8390_v18, %v8984_v36  ;;  %v5711_v35 = vmul.f32 -1.442695, %v3951_v44 }
 0x300   : > { %v3953_v11 = vpop.f32.mrb[239].mxu1  ;;  %v6954_v0 = vpop.eup %6953  ;;  %v4707_v16 = vadd.f32 1.0, %v6952_v13  ;;  %6973 = vpow2.f32 %v5708_v51  ;;  %v3040_v51 = vadd.f32 %v8390_v18, %v8985_v9  ;;  %v8987_v9 = vld [vmem:[#allocation39_spill] sm:$0xff] }
 0x301   : > { %v3954_v21 = vadd.f32 %v3953_v11, %v8111_v4  ;;  %v6956_v47 = vpop.eup %6955  ;;  %v4705_v19 = vadd.f32 1.0, %v6954_v0  ;;  %6975 = vpow2.f32 %v5713_v6  ;;  %v5714_v29 = vmul.f32 -1.442695, %v3962_v58  ;;  %v3581_v46 = vpop.f32.mrb[176].mxu0 }
 0x302   : > { %v6958_v3 = vpop.eup %6957  ;;  %6977 = vrcp.f32 %v4707_v16  ;;  %v4708_v55 = vadd.f32 1.0, %v6956_v47  ;;  %v5923_v1 = vpop.f32.mrb[240].mxu1  ;;  %v8528_v63 = vadd.f32 %v3581_v46, %v3037_v34  ;;  %v8986_v34 = vld [vmem:[#allocation37_spill] sm:$0xff] }
 0x303   : > { %v6960_v59 = vpop.eup %6959  ;;  %6979 = vrcp.f32 %v4705_v19  ;;  %v4706_v12 = vadd.f32 1.0, %v6958_v3  ;;  %v5712_v49 = vmul.f32 -1.442695, %v3954_v21  ;;  %v3975_v57 = vadd.f32 %v5923_v1, %v8155_v56  ;;  %v3583_v44 = vpop.f32.mrb[177].mxu0 }
 0x304   : > { %v6962_v43 = vpop.eup %6961  ;;  %6981 = vrcp.f32 %v4708_v55  ;;  %v4711_v4 = vadd.f32 1.0, %v6960_v59  ;;  %v3966_v37 = vpop.f32.mrb[241].mxu1 }
 0x305   : > { %v6964_v40 = vpop.eup %6963  ;;  %5087 = vst [vmem:[%s8364_s22 + $0x110] sm:$0xff] %v6962_v43  ;;  %6983 = vrcp.f32 %v4706_v12  ;;  %v3967_v13 = vadd.f32 %v3966_v37, %v8137_v54  ;;  %v3584_v6 = vpop.f32.mrb[178].mxu0  ;;  %v5717_v11 = vmul.f32 -1.442695, %v3975_v57  ;;  %v3045_v12 = vadd.f32 %v8390_v18, %v8986_v34 }
 0x306   : > { %v6966_v27 = vpop.eup %6965  ;;  %5085 = vst [vmem:[%s8364_s22 + $0x100] sm:$0xff] %v6964_v40  ;;  %6985 = vrcp.f32 %v4711_v4  ;;  %v5924_v58 = vpop.f32.mrb[242].mxu1  ;;  %v8534_v0 = vadd.f32 %v3584_v6, %v3040_v51  ;;  %v3048_v51 = vadd.f32 %v8390_v18, %v8987_v9 }
 0x307   : > { %v6968_v7 = vpop.eup %6967  ;;  %5088 = vst [vmem:[%s8364_s22 + $0x118] sm:$0xff] %v6966_v27  ;;  %6987 = vpow2.f32 %v5711_v35  ;;  %v3978_v16 = vadd.f32 %v5924_v58, %v8165_v30  ;;  %v3586_v21 = vpop.f32.mrb[179].mxu0  ;;  %v5715_v35 = vmul.f32 -1.442695, %v3967_v13 }
 0x308   : > { %v3969_v56 = vpop.f32.mrb[243].mxu1  ;;  %v6970_v47 = vpop.eup %6969  ;;  %5086 = vst [vmem:[%s8364_s22 + $0x108] sm:$0xff] %v6968_v7  ;;  %6989 = vpow2.f32 %v5714_v29 }
 0x309   : > { %v3970_v19 = vadd.f32 %v3969_v56, %v8147_v20  ;;  %v6972_v3 = vpop.eup %6971  ;;  %v4709_v55 = vadd.f32 1.0, %v6970_v47  ;;  %6991 = vpow2.f32 %v5712_v49  ;;  %v5718_v4 = vmul.f32 -1.442695, %v3978_v16  ;;  %v3589_v29 = vpop.f32.mrb[180].mxu0 }
 0x30a   : > { %v6974_v54 = vpop.eup %6973  ;;  %v4712_v59 = vadd.f32 1.0, %v6972_v3  ;;  %6993 = vpow2.f32 %v5717_v11  ;;  %v5927_v46 = vpop.f32.mrb[244].mxu1  ;;  %v8544_v49 = vadd.f32 %v3589_v29, %v3045_v12 }
 0x30b   : > { %v6976_v36 = vpop.eup %6975  ;;  %6995 = vrcp.f32 %v4709_v55  ;;  %v4710_v30 = vadd.f32 1.0, %v6974_v54  ;;  %v5716_v40 = vmul.f32 -1.442695, %v3970_v19  ;;  %v3991_v57 = vadd.f32 %v5927_v46, %v8191_v23  ;;  %v3591_v44 = vpop.f32.mrb[181].mxu0 }
 0x30c   : > { %v6978_v43 = vpop.eup %6977  ;;  %6997 = vrcp.f32 %v4712_v59  ;;  %v4715_v20 = vadd.f32 1.0, %v6976_v36  ;;  %v3982_v37 = vpop.f32.mrb[245].mxu1  ;;  %v8988_v36 = vld [vmem:[#allocation41_spill] sm:$0xff] }
 0x30d   : > { %v6980_v1 = vpop.eup %6979  ;;  %5091 = vst [vmem:[%s8364_s22 + $0x130] sm:$0xff] %v6978_v43  ;;  %6999 = vrcp.f32 %v4710_v30  ;;  %v3983_v13 = vadd.f32 %v3982_v37, %v8173_v22  ;;  %v3592_v6 = vpop.f32.mrb[182].mxu0  ;;  %v5721_v11 = vmul.f32 -1.442695, %v3991_v57  ;;  %v3053_v34 = vadd.f32 %v8390_v18, %v8988_v36  ;;  %v8991_v36 = vld [vmem:[#allocation47_spill] sm:$0xff] }
 0x30e   : > { %v6982_v27 = vpop.eup %6981  ;;  %5089 = vst [vmem:[%s8364_s22 + $0x120] sm:$0xff] %v6980_v1  ;;  %7001 = vrcp.f32 %v4715_v20  ;;  %v5928_v58 = vpop.f32.mrb[246].mxu1  ;;  %v8550_v16 = vadd.f32 %v3592_v6, %v3048_v51 }
 0x30f   : > { %v6984_v7 = vpop.eup %6983  ;;  %5092 = vst [vmem:[%s8364_s22 + $0x138] sm:$0xff] %v6982_v27  ;;  %7003 = vpow2.f32 %v5715_v35  ;;  %v3994_v21 = vadd.f32 %v5928_v58, %v8201_v52  ;;  %v3594_v23 = vpop.f32.mrb[183].mxu0  ;;  %v5719_v19 = vmul.f32 -1.442695, %v3983_v13  ;;  %v8989_v35 = vld [vmem:[#allocation43_spill] sm:$0xff] }
 0x310   : > { %v3985_v56 = vpop.f32.mrb[247].mxu1  ;;  %v6986_v47 = vpop.eup %6985  ;;  %5090 = vst [vmem:[%s8364_s22 + $0x128] sm:$0xff] %v6984_v7  ;;  %7005 = vpow2.f32 %v5718_v4  ;;  %v3056_v43 = vadd.f32 %v8390_v18, %v8989_v35 }
 0x311   : > { %v3986_v3 = vadd.f32 %v3985_v56, %v8183_v41  ;;  %v6988_v22 = vpop.eup %6987  ;;  %5095 = vst [vmem:[%s8364_s22 + $0x150] sm:$0xff] %v6986_v47  ;;  %7007 = vpow2.f32 %v5716_v40  ;;  %v5722_v52 = vmul.f32 -1.442695, %v3994_v21  ;;  %v3597_v51 = vpop.f32.mrb[184].mxu0 }
 0x312   : > { %v6990_v55 = vpop.eup %6989  ;;  %v4713_v54 = vadd.f32 1.0, %v6988_v22  ;;  %7009 = vpow2.f32 %v5721_v11  ;;  %v5931_v20 = vpop.f32.mrb[248].mxu1  ;;  %v8560_v46 = vadd.f32 %v3597_v51, %v3053_v34  ;;  %v3064_v34 = vadd.f32 %v8390_v18, %v8991_v36 }
 0x313   : > { %v6992_v59 = vpop.eup %6991  ;;  %v4716_v12 = vadd.f32 1.0, %v6990_v55  ;;  %7011 = vpow2.f32 %v5719_v19  ;;  %v5720_v9 = vmul.f32 -1.442695, %v3986_v3  ;;  %v4007_v1 = vadd.f32 %v5931_v20, %v8227_v39  ;;  %v3599_v40 = vpop.f32.mrb[185].mxu0  ;;  %v8990_v55 = vld [vmem:[#allocation45_spill] sm:$0xff] }
 0x314   : > { %v6994_v30 = vpop.eup %6993  ;;  %7013 = vrcp.f32 %v4713_v54  ;;  %v4714_v41 = vadd.f32 1.0, %v6992_v59  ;;  %v3998_v57 = vpop.f32.mrb[249].mxu1  ;;  %v3061_v54 = vadd.f32 %v8390_v18, %v8990_v55  ;;  %v8993_v40 = vld [vmem:[#allocation78_spill] sm:$0xff] }
 0x315   : > { %v6996_v4 = vpop.eup %6995  ;;  %7015 = vrcp.f32 %v4716_v12  ;;  %v4719_v29 = vadd.f32 1.0, %v6994_v30  ;;  %v3999_v37 = vadd.f32 %v3998_v57, %v8209_v31  ;;  %v3600_v27 = vpop.f32.mrb[186].mxu0  ;;  %v5725_v58 = vmul.f32 -1.442695, %v4007_v1  ;;  %v8591_v55 = vld [vmem:[%s8856_s2] ss:$0 sm:$0xff] }
 0x316   : > { %v6998_v44 = vpop.eup %6997  ;;  %5093 = vst [vmem:[%s8364_s22 + $0x140] sm:$0xff] %v6996_v4  ;;  %7017 = vrcp.f32 %v4714_v41  ;;  %v5932_v13 = vpop.f32.mrb[250].mxu1  ;;  %v8566_v7 = vadd.f32 %v3600_v27, %v3056_v43 }
 0x317   : > { %v7000_v6 = vpop.eup %6999  ;;  %5096 = vst [vmem:[%s8364_s22 + $0x158] sm:$0xff] %v6998_v44  ;;  %7019 = vrcp.f32 %v4719_v29  ;;  %v4010_v11 = vadd.f32 %v5932_v13, %v8237_v10  ;;  %v3602_v39 = vpop.f32.mrb[187].mxu0  ;;  %v5723_v56 = vmul.f32 -1.442695, %v3999_v37 }
 0x318   : > { %v4001_v21 = vpop.f32.mrb[251].mxu1  ;;  %v7002_v23 = vpop.eup %7001  ;;  %5094 = vst [vmem:[%s8364_s22 + $0x148] sm:$0xff] %v7000_v6  ;;  %7021 = vpow2.f32 %v5722_v52 }
 0x319   : > { %v4002_v47 = vadd.f32 %v4001_v21, %v8219_v62  ;;  %v7004_v31 = vpop.eup %7003  ;;  %5099 = vst [vmem:[%s8364_s22 + $0x170] sm:$0xff] %v7002_v23  ;;  %7023 = vpow2.f32 %v5720_v9  ;;  %v5726_v52 = vmul.f32 -1.442695, %v4010_v11  ;;  %v3605_v62 = vpop.f32.mrb[188].mxu0  ;;  %v8992_v9 = vld [vmem:[#allocation82_spill] sm:$0xff] }
 0x31a   : > { %v7006_v19 = vpop.eup %7005  ;;  %v4717_v3 = vadd.f32 1.0, %v7004_v31  ;;  %7025 = vpow2.f32 %v5725_v58  ;;  %v5935_v30 = vpop.f32.mrb[252].mxu1  ;;  %v8576_v41 = vadd.f32 %v3605_v62, %v3061_v54  ;;  %v8994_v58 = vld [vmem:[#allocation84_spill] sm:$0xff]  ;;  %v8996_v54 = vld [vmem:[#allocation49_spill] sm:$0xff] }
 0x31b   : > { %v7008_v22 = vpop.eup %7007  ;;  %v4720_v59 = vadd.f32 1.0, %v7006_v19  ;;  %7027 = vpow2.f32 %v5723_v56  ;;  %v4023_v51 = vadd.f32 %v5935_v30, %v8992_v9  ;;  %v3607_v20 = vpop.f32.mrb[189].mxu0  ;;  %v5724_v18 = vmul.f32 -1.442695, %v4002_v47  ;;  %v8995_v47 = vld [vmem:[#allocation80_spill] sm:$0xff] }
 0x31c   : > { %v7010_v10 = vpop.eup %7009  ;;  %7029 = vrcp.f32 %v4717_v3  ;;  %v4718_v12 = vadd.f32 1.0, %v7008_v22  ;;  %v4014_v4 = vpop.f32.mrb[253].mxu1 }
 0x31d   : > { %v7012_v35 = vpop.eup %7011  ;;  %7031 = vrcp.f32 %v4720_v59  ;;  %v4723_v43 = vadd.f32 1.0, %v7010_v10  ;;  %v4015_v57 = vadd.f32 %v4014_v4, %v8993_v40  ;;  %v3608_v44 = vpop.f32.mrb[190].mxu0  ;;  %v5729_v13 = vmul.f32 -1.442695, %v4023_v51 }
 0x31e   : > { %v7014_v29 = vpop.eup %7013  ;;  %7033 = vrcp.f32 %v4718_v12  ;;  %v4721_v1 = vadd.f32 1.0, %v7012_v35  ;;  %v5936_v37 = vpop.f32.mrb[254].mxu1  ;;  %v8581_v6 = vadd.f32 %v3608_v44, %v3064_v34  ;;  %v3069_v59 = vadd.f32 %v8591_v55, %v8996_v54  ;;  %v8997_v34 = vld [vmem:[#allocation50_spill] sm:$0xff]  ;;  %v8999_v54 = vld [vmem:[#allocation52_spill] sm:$0xff] }
 0x31f   : > { %v7016_v27 = vpop.eup %7015  ;;  %5097 = vst [vmem:[%s8364_s22 + $0x160] sm:$0xff] %v7014_v29  ;;  %7035 = vrcp.f32 %v4723_v43  ;;  %v4026_v11 = vadd.f32 %v5936_v37, %v8994_v58  ;;  %v3610_v39 = vpop.f32.mrb[191].mxu0  ;;  %v5727_v56 = vmul.f32 -1.442695, %v4015_v57  ;;  %v3072_v12 = vadd.f32 %v8591_v55, %v8997_v34 }
 0x320   : > { %v4017_v21 = vpop.f32.mrb[255].mxu1  ;;  %v7018_v23 = vpop.eup %7017  ;;  %5100 = vst [vmem:[%s8364_s22 + $0x178] sm:$0xff] %v7016_v27  ;;  %7037 = vrcp.f32 %v4721_v1 }
 0x321   : > { %v4018_v31 = vadd.f32 %v4017_v21, %v8995_v47  ;;  %v7020_v19 = vpop.eup %7019  ;;  %5098 = vst [vmem:[%s8364_s22 + $0x168] sm:$0xff] %v7018_v23  ;;  %7039 = vpow2.f32 %v5726_v52  ;;  %v5730_v52 = vmul.f32 -1.442695, %v4026_v11  ;;  %v3613_v30 = vpop.f32.mrb[192].mxu0 }
 0x322   : > { %v7022_v3 = vpop.eup %7021  ;;  %5103 = vst [vmem:[%s8364_s22 + $0x190] sm:$0xff] %v7020_v19  ;;  %7041 = vpow2.f32 %v5724_v18  ;;  %v5939_v35 = vpop.f32.mrb[0].mxu1  ;;  %v8597_v51 = vadd.f32 %v3613_v30, %v3069_v59  ;;  %v3080_v59 = vadd.f32 %v8591_v55, %v8999_v54 }
 0x323   : > { %v7024_v22 = vpop.eup %7023  ;;  %v4724_v10 = vadd.f32 1.0, %v7022_v3  ;;  %7043 = vpow2.f32 %v5729_v13  ;;  %v4039_v20 = vadd.f32 %v5939_v35, %v8309_v15  ;;  %v3615_v4 = vpop.f32.mrb[193].mxu0  ;;  %v5728_v40 = vmul.f32 -1.442695, %v4018_v31  ;;  %v8998_v3 = vld [vmem:[#allocation51_spill] sm:$0xff] }
 0x324   : > { %v7026_v36 = vpop.eup %7025  ;;  %v4722_v62 = vadd.f32 1.0, %v7024_v22  ;;  %7045 = vpow2.f32 %v5727_v56  ;;  %v4030_v29 = vpop.f32.mrb[1].mxu1 }
 0x325   : > { %v7028_v43 = vpop.eup %7027  ;;  %7047 = vrcp.f32 %v4724_v10  ;;  %v4727_v9 = vadd.f32 1.0, %v7026_v36  ;;  %v4031_v57 = vadd.f32 %v4030_v29, %v8287_v5  ;;  %v3616_v44 = vpop.f32.mrb[194].mxu0  ;;  %v5733_v13 = vmul.f32 -1.442695, %v4039_v20 }
 0x326   : > { %v7030_v1 = vpop.eup %7029  ;;  %7049 = vrcp.f32 %v4722_v62  ;;  %v4725_v18 = vadd.f32 1.0, %v7028_v43  ;;  %v5940_v37 = vpop.f32.mrb[2].mxu1  ;;  %v8602_v58 = vadd.f32 %v3616_v44, %v3072_v12 }
 0x327   : > { %v7032_v27 = vpop.eup %7031  ;;  %5101 = vst [vmem:[%s8364_s22 + $0x180] sm:$0xff] %v7030_v1  ;;  %7051 = vrcp.f32 %v4727_v9  ;;  %v4042_v15 = vadd.f32 %v5940_v37, %v8317_v17  ;;  %v3618_v11 = vpop.f32.mrb[195].mxu0  ;;  %v5731_v23 = vmul.f32 -1.442695, %v4031_v57  ;;  %v3077_v17 = vadd.f32 %v8591_v55, %v8998_v3 }
 0x328   : > { %v4033_v39 = vpop.f32.mrb[3].mxu1  ;;  %v7034_v21 = vpop.eup %7033  ;;  %5104 = vst [vmem:[%s8364_s22 + $0x198] sm:$0xff] %v7032_v27  ;;  %7053 = vrcp.f32 %v4725_v18 }
 0x329   : > { %v4034_v5 = vadd.f32 %v4033_v39, %v8295_v60  ;;  %v7036_v56 = vpop.eup %7035  ;;  %5102 = vst [vmem:[%s8364_s22 + $0x188] sm:$0xff] %v7034_v21  ;;  %7055 = vpow2.f32 %v5730_v52  ;;  %v5734_v47 = vmul.f32 -1.442695, %v4042_v15  ;;  %v3621_v60 = vpop.f32.mrb[196].mxu0 }
 0x32a   : > { %v7038_v31 = vpop.eup %7037  ;;  %5107 = vst [vmem:[%s8364_s22 + $0x1b0] sm:$0xff] %v7036_v56  ;;  %7057 = vpow2.f32 %v5728_v40  ;;  %v5943_v36 = vpop.f32.mrb[4].mxu1  ;;  %v8614_v62 = vadd.f32 %v3621_v60, %v3077_v17 }
 0x32b   : > { %v7040_v19 = vpop.eup %7039  ;;  %5105 = vst [vmem:[%s8364_s22 + $0x1a0] sm:$0xff] %v7038_v31  ;;  %7059 = vpow2.f32 %v5733_v13  ;;  %v4055_v52 = vadd.f32 %v5943_v36, %v8356_v28  ;;  %v3623_v30 = vpop.f32.mrb[197].mxu0  ;;  %v5732_v20 = vmul.f32 -1.442695, %v4034_v5  ;;  %v9000_v5 = vld [vmem:[#allocation53_spill] sm:$0xff]  ;;  %v9001_v31 = vld [vmem:[#allocation54_spill] sm:$0xff] }
 0x32c   : > { %v7042_v22 = vpop.eup %7041  ;;  %v4728_v10 = vadd.f32 1.0, %v7040_v19  ;;  %7061 = vpow2.f32 %v5731_v23  ;;  %v4046_v35 = vpop.f32.mrb[5].mxu1  ;;  %v3085_v56 = vadd.f32 %v8591_v55, %v9000_v5  ;;  %v3088_v19 = vadd.f32 %v8591_v55, %v9001_v31 }
 0x32d   : > { %v7044_v34 = vpop.eup %7043  ;;  %v4726_v12 = vadd.f32 1.0, %v7042_v22  ;;  %7063 = vpow2.f32 %v5734_v47  ;;  %v4047_v4 = vadd.f32 %v4046_v35, %v8333_v33  ;;  %v3624_v29 = vpop.f32.mrb[198].mxu0  ;;  %v5737_v57 = vmul.f32 -1.442695, %v4055_v52 }
 0x32e   : > { %v7046_v43 = vpop.eup %7045  ;;  %7065 = vrcp.f32 %v4728_v10  ;;  %v4731_v9 = vadd.f32 1.0, %v7044_v34  ;;  %v5944_v1 = vpop.f32.mrb[6].mxu1  ;;  %v8618_v44 = vadd.f32 %v3624_v29, %v3080_v59 }
 0x32f   : > { %v7048_v18 = vpop.eup %7047  ;;  %7067 = vrcp.f32 %v4726_v12  ;;  %v4729_v40 = vadd.f32 1.0, %v7046_v43  ;;  %v3626_v28 = vpop.f32.mrb[199].mxu0  ;;  %v5735_v13 = vmul.f32 -1.442695, %v4047_v4  ;;  %v4058_v15 = vadd.f32 %v5944_v1, %v8367_v24 }
 0x330   : > { %v4049_v37 = vpop.f32.mrb[7].mxu1  ;;  %v7050_v27 = vpop.eup %7049  ;;  %5108 = vst [vmem:[%s8364_s22 + $0x1b8] sm:$0xff] %v7048_v18  ;;  %7069 = vrcp.f32 %v4731_v9 }
 0x331   : > { %v4050_v33 = vadd.f32 %v4049_v37, %v8339_v61  ;;  %v7052_v11 = vpop.eup %7051  ;;  %5106 = vst [vmem:[%s8364_s22 + $0x1a8] sm:$0xff] %v7050_v27  ;;  %7071 = vrcp.f32 %v4729_v40  ;;  %v5738_v21 = vmul.f32 -1.442695, %v4058_v15  ;;  %v3629_v61 = vpop.f32.mrb[200].mxu0  ;;  %v9002_v40 = vld [vmem:[#allocation2_spill] sm:$0xff]  ;;  %v9003_v37 = vld [vmem:[#allocation8_spill] sm:$0xff] }
 0x332   : > { %v7054_v39 = vpop.eup %7053  ;;  %5111 = vst [vmem:[%s8364_s22 + $0x1d0] sm:$0xff] %v7052_v11  ;;  %7073 = vpow2.f32 %v5732_v20  ;;  %v5947_v3 = vpop.f32.mrb[8].mxu1  ;;  %v8630_v54 = vadd.f32 %v3629_v61, %v3085_v56  ;;  %v9004_v11 = vld [vmem:[#allocation55_spill] sm:$0xff] }
 0x333   : > { %v7056_v23 = vpop.eup %7055  ;;  %5109 = vst [vmem:[%s8364_s22 + $0x1c0] sm:$0xff] %v7054_v39  ;;  %7075 = vpow2.f32 %v5737_v57  ;;  %v4071_v59 = vadd.f32 %v5947_v3, %v8413_v14  ;;  %v3631_v10 = vpop.f32.mrb[201].mxu0  ;;  %v5736_v9 = vmul.f32 -1.442695, %v4050_v33  ;;  %v3093_v39 = vadd.f32 %v8591_v55, %v9004_v11 }
 0x334   : > { %v7058_v47 = vpop.eup %7057  ;;  %v4732_v24 = vadd.f32 1.0, %v7056_v23  ;;  %7077 = vpow2.f32 %v5735_v13  ;;  %v4062_v60 = vpop.f32.mrb[9].mxu1  ;;  %v9005_v23 = vld [vmem:[#allocation56_spill] sm:$0xff]  ;;  %v9006_v10 = vld [vmem:[#allocation3_spill] sm:$0xff] }
 0x335   : > { %v7060_v17 = vpop.eup %7059  ;;  %v4730_v22 = vadd.f32 1.0, %v7058_v47  ;;  %7079 = vpow2.f32 %v5738_v21  ;;  %v4063_v12 = vadd.f32 %v4062_v60, %v8384_v32  ;;  %v3632_v52 = vpop.f32.mrb[202].mxu0  ;;  %v5741_v18 = vmul.f32 -1.442695, %v4071_v59 }
 0x336   : > { %v7062_v36 = vpop.eup %7061  ;;  %7081 = vrcp.f32 %v4732_v24  ;;  %v4735_v34 = vadd.f32 1.0, %v7060_v17  ;;  %v5948_v30 = vpop.f32.mrb[10].mxu1  ;;  %v8634_v20 = vadd.f32 %v3632_v52, %v3088_v19  ;;  %v3096_v5 = vadd.f32 %v8591_v55, %v9005_v23 }
 0x337   : > { %v7064_v35 = vpop.eup %7063  ;;  %7083 = vrcp.f32 %v4730_v22  ;;  %v4733_v43 = vadd.f32 1.0, %v7062_v36  ;;  %v3634_v4 = vpop.f32.mrb[203].mxu0  ;;  %v4074_v57 = vadd.f32 %v5948_v30, %v9002_v40  ;;  %v5739_v28 = vmul.f32 -1.442695, %v4063_v12  ;;  %v9007_v40 = vld [vmem:[#allocation14_spill] sm:$0xff] }
 0x338   : > { %v4065_v29 = vpop.f32.mrb[11].mxu1  ;;  %v7066_v14 = vpop.eup %7065  ;;  %7085 = vrcp.f32 %v4735_v34  ;;  %v4736_v1 = vadd.f32 1.0, %v7064_v35 }
 0x339   : > { %v7068_v32 = vpop.eup %7067  ;;  %5112 = vst [vmem:[%s8364_s22 + $0x1d8] sm:$0xff] %v7066_v14  ;;  %7087 = vrcp.f32 %v4733_v43  ;;  %v4066_v27 = vadd.f32 %v4065_v29, %v9003_v37  ;;  %v5742_v15 = vmul.f32 -1.442695, %v4074_v57  ;;  %v3637_v56 = vpop.f32.mrb[204].mxu0 }
 0x33a   : > { %v7070_v13 = vpop.eup %7069  ;;  %5110 = vst [vmem:[%s8364_s22 + $0x1c8] sm:$0xff] %v7068_v32  ;;  %7089 = vrcp.f32 %v4736_v1  ;;  %v5951_v47 = vpop.f32.mrb[12].mxu1  ;;  %v8646_v24 = vadd.f32 %v3637_v56, %v3093_v39 }
 0x33b   : > { %v7072_v33 = vpop.eup %7071  ;;  %5115 = vst [vmem:[%s8364_s22 + $0x1f0] sm:$0xff] %v7070_v13  ;;  %7091 = vpow2.f32 %v5736_v9  ;;  %v4087_v61 = vadd.f32 %v5951_v47, %v8451_v25  ;;  %v3639_v3 = vpop.f32.mrb[205].mxu0  ;;  %v5740_v30 = vmul.f32 -1.442695, %v4066_v27  ;;  %v9008_v27 = vld [vmem:[#allocation57_spill] sm:$0xff] }
 0x33c   : > { %v7074_v21 = vpop.eup %7073  ;;  %5113 = vst [vmem:[%s8364_s22 + $0x1e0] sm:$0xff] %v7072_v33  ;;  %7093 = vpow2.f32 %v5741_v18  ;;  %v4078_v17 = vpop.f32.mrb[13].mxu1  ;;  %v3101_v13 = vadd.f32 %v8591_v55, %v9008_v27 }
 0x33d   : > { %v7076_v31 = vpop.eup %7075  ;;  %v4734_v19 = vadd.f32 1.0, %v7074_v21  ;;  %7095 = vpow2.f32 %v5739_v28  ;;  %v4079_v60 = vadd.f32 %v4078_v17, %v9006_v10  ;;  %v3640_v36 = vpop.f32.mrb[206].mxu0  ;;  %v5745_v29 = vmul.f32 -1.442695, %v4087_v61  ;;  %v9009_v21 = vld [vmem:[#allocation58_spill] sm:$0xff] }
 0x33e   : > { %v7078_v22 = vpop.eup %7077  ;;  %v4739_v59 = vadd.f32 1.0, %v7076_v31  ;;  %7097 = vpow2.f32 %v5742_v15  ;;  %v5952_v34 = vpop.f32.mrb[14].mxu1  ;;  %v8650_v35 = vadd.f32 %v3640_v36, %v3096_v5  ;;  %v3104_v23 = vadd.f32 %v8591_v55, %v9009_v21 }
 0x33f   : > { %v7080_v12 = vpop.eup %7079  ;;  %7099 = vrcp.f32 %v4734_v19  ;;  %v4737_v52 = vadd.f32 1.0, %v7078_v22  ;;  %v3642_v43 = vpop.f32.mrb[207].mxu0  ;;  %v4090_v14 = vadd.f32 %v5952_v34, %v8457_v53  ;;  %v5743_v18 = vmul.f32 -1.442695, %v4079_v60 }
 0x340   : > { %v4081_v9 = vpop.f32.mrb[15].mxu1  ;;  %v7082_v25 = vpop.eup %7081  ;;  %7101 = vrcp.f32 %v4739_v59  ;;  %v4740_v4 = vadd.f32 1.0, %v7080_v12 }
 0x341   : > { %v7084_v1 = vpop.eup %7083  ;;  %5116 = vst [vmem:[%s8364_s22 + $0x1f8] sm:$0xff] %v7082_v25  ;;  %7103 = vrcp.f32 %v4737_v52  ;;  %v4082_v57 = vadd.f32 %v4081_v9, %v9007_v40  ;;  %v5746_v28 = vmul.f32 -1.442695, %v4090_v14  ;;  %v3645_v33 = vpop.f32.mrb[208].mxu0 }
 0x342   : > { %v7086_v32 = vpop.eup %7085  ;;  %5114 = vst [vmem:[%s8364_s22 + $0x1e8] sm:$0xff] %v7084_v1  ;;  %7105 = vrcp.f32 %v4740_v4  ;;  %v5955_v11 = vpop.f32.mrb[16].mxu1  ;;  %v8663_v5 = vadd.f32 %v3645_v33, %v3101_v13  ;;  %v9010_v1 = vld [vmem:[#allocation59_spill] sm:$0xff] }
 0x343   : > { %v7088_v37 = vpop.eup %7087  ;;  %5119 = vst [vmem:[%s8364_s22 + $0x210] sm:$0xff] %v7086_v32  ;;  %7107 = vpow2.f32 %v5740_v30  ;;  %v5744_v15 = vmul.f32 -1.442695, %v4082_v57  ;;  %v4103_v56 = vadd.f32 %v5955_v11, %v8482_v50  ;;  %v3647_v47 = vpop.f32.mrb[209].mxu0 }
 0x344   : > { %v7090_v53 = vpop.eup %7089  ;;  %5117 = vst [vmem:[%s8364_s22 + $0x200] sm:$0xff] %v7088_v37  ;;  %7109 = vpow2.f32 %v5745_v29  ;;  %v4094_v31 = vpop.f32.mrb[17].mxu1  ;;  %v9011_v37 = vld [vmem:[#allocation60_spill] sm:$0xff] }
 0x345   : > { %v7092_v39 = vpop.eup %7091  ;;  %5120 = vst [vmem:[%s8364_s22 + $0x218] sm:$0xff] %v7090_v53  ;;  %7111 = vpow2.f32 %v5743_v18  ;;  %v4095_v3 = vadd.f32 %v4094_v31, %v8466_v8  ;;  %v3648_v17 = vpop.f32.mrb[210].mxu0  ;;  %v5749_v52 = vmul.f32 -1.442695, %v4103_v56  ;;  %v3109_v18 = vadd.f32 %v8591_v55, %v9010_v1 }
 0x346   : > { %v7094_v19 = vpop.eup %7093  ;;  %v4738_v61 = vadd.f32 1.0, %v7092_v39  ;;  %7113 = vpow2.f32 %v5746_v28  ;;  %v5956_v22 = vpop.f32.mrb[18].mxu1  ;;  %v8667_v60 = vadd.f32 %v3648_v17, %v3104_v23 }
 0x347   : > { %v7096_v59 = vpop.eup %7095  ;;  %v4743_v10 = vadd.f32 1.0, %v7094_v19  ;;  %7115 = vpow2.f32 %v5744_v15  ;;  %v3650_v36 = vpop.f32.mrb[211].mxu0  ;;  %v4106_v30 = vadd.f32 %v5956_v22, %v8487_v48  ;;  %v5747_v9 = vmul.f32 -1.442695, %v4095_v3 }
 0x348   : > { %v4097_v34 = vpop.f32.mrb[19].mxu1  ;;  %v7098_v12 = vpop.eup %7097  ;;  %7117 = vrcp.f32 %v4738_v61  ;;  %v4741_v50 = vadd.f32 1.0, %v7096_v59 }
 0x349   : > { %v7100_v43 = vpop.eup %7099  ;;  %7119 = vrcp.f32 %v4743_v10  ;;  %v4744_v8 = vadd.f32 1.0, %v7098_v12  ;;  %v4098_v25 = vadd.f32 %v4097_v34, %v8471_v38  ;;  %v5750_v29 = vmul.f32 -1.442695, %v4106_v30  ;;  %v3653_v57 = vpop.f32.mrb[212].mxu0 }
 0x34a   : > { %v7102_v4 = vpop.eup %7101  ;;  %5118 = vst [vmem:[%s8364_s22 + $0x208] sm:$0xff] %v7100_v43  ;;  %7121 = vrcp.f32 %v4741_v50  ;;  %v5959_v32 = vpop.f32.mrb[20].mxu1  ;;  %v3112_v38 = vadd.f32 %v8591_v55, %v9011_v37  ;;  %v8679_v27 = vadd.f32 %v3653_v57, %v3109_v18 }
 0x34b   : > { %v7104_v14 = vpop.eup %7103  ;;  %5123 = vst [vmem:[%s8364_s22 + $0x230] sm:$0xff] %v7102_v4  ;;  %7123 = vrcp.f32 %v4744_v8  ;;  %v5748_v40 = vmul.f32 -1.442695, %v4098_v25  ;;  %v4119_v13 = vadd.f32 %v5959_v32, %v8513_v26  ;;  %v3655_v15 = vpop.f32.mrb[213].mxu0  ;;  %v9013_v4 = vld [vmem:[#allocation62_spill] sm:$0xff] }
 0x34c   : > { %v7106_v48 = vpop.eup %7105  ;;  %5121 = vst [vmem:[%s8364_s22 + $0x220] sm:$0xff] %v7104_v14  ;;  %7125 = vpow2.f32 %v5749_v52  ;;  %v4110_v53 = vpop.f32.mrb[21].mxu1  ;;  %v9012_v52 = vld [vmem:[#allocation61_spill] sm:$0xff] }
 0x34d   : > { %v7108_v28 = vpop.eup %7107  ;;  %5124 = vst [vmem:[%s8364_s22 + $0x238] sm:$0xff] %v7106_v48  ;;  %7127 = vpow2.f32 %v5747_v9  ;;  %v4111_v39 = vadd.f32 %v4110_v53, %v8497_v2  ;;  %v3656_v21 = vpop.f32.mrb[214].mxu0  ;;  %v5753_v2 = vmul.f32 -1.442695, %v4119_v13  ;;  %v3117_v30 = vadd.f32 %v8591_v55, %v9012_v52 }
 0x34e   : > { %v7110_v33 = vpop.eup %7109  ;;  %v4742_v11 = vadd.f32 1.0, %v7108_v28  ;;  %7129 = vpow2.f32 %v5750_v29  ;;  %v5960_v23 = vpop.f32.mrb[22].mxu1  ;;  %v8683_v31 = vadd.f32 %v3656_v21, %v3112_v38  ;;  %v3120_v29 = vadd.f32 %v8591_v55, %v9013_v4 }
 0x34f   : > { %v7112_v56 = vpop.eup %7111  ;;  %v4747_v47 = vadd.f32 1.0, %v7110_v33  ;;  %7131 = vpow2.f32 %v5748_v40  ;;  %v3658_v19 = vpop.f32.mrb[215].mxu0  ;;  %v4122_v17 = vadd.f32 %v5960_v23, %v8519_v42  ;;  %v5751_v12 = vmul.f32 -1.442695, %v4111_v39 }
 0x350   : > { %v4113_v61 = vpop.f32.mrb[23].mxu1  ;;  %v7114_v3 = vpop.eup %7113  ;;  %7133 = vrcp.f32 %v4742_v11  ;;  %v4745_v26 = vadd.f32 1.0, %v7112_v56 }
 0x351   : > { %v7116_v22 = vpop.eup %7115  ;;  %7135 = vrcp.f32 %v4747_v47  ;;  %v4748_v59 = vadd.f32 1.0, %v7114_v3  ;;  %v4114_v10 = vadd.f32 %v4113_v61, %v8503_v45  ;;  %v5754_v43 = vmul.f32 -1.442695, %v4122_v17  ;;  %v3661_v9 = vpop.f32.mrb[216].mxu0  ;;  %v9014_v3 = vld [vmem:[#allocation63_spill] sm:$0xff] }
 0x352   : > { %v7118_v36 = vpop.eup %7117  ;;  %7137 = vrcp.f32 %v4745_v26  ;;  %v4746_v34 = vadd.f32 1.0, %v7116_v22  ;;  %v5963_v25 = vpop.f32.mrb[24].mxu1  ;;  %v8694_v14 = vadd.f32 %v3661_v9, %v3117_v30  ;;  %v3125_v26 = vadd.f32 %v8591_v55, %v9014_v3 }
 0x353   : > { %v7120_v50 = vpop.eup %7119  ;;  %5122 = vst [vmem:[%s8364_s22 + $0x228] sm:$0xff] %v7118_v36  ;;  %7139 = vrcp.f32 %v4748_v59  ;;  %v5752_v8 = vmul.f32 -1.442695, %v4114_v10  ;;  %v4135_v1 = vadd.f32 %v5963_v25, %v8544_v49  ;;  %v3663_v18 = vpop.f32.mrb[217].mxu0  ;;  %v9015_v10 = vld [vmem:[#allocation64_spill] sm:$0xff] }
 0x354   : > { %v7122_v42 = vpop.eup %7121  ;;  %5127 = vst [vmem:[%s8364_s22 + $0x250] sm:$0xff] %v7120_v50  ;;  %7141 = vrcp.f32 %v4746_v34  ;;  %v4126_v40 = vpop.f32.mrb[25].mxu1  ;;  %v3128_v36 = vadd.f32 %v8591_v55, %v9015_v10 }
 0x355   : > { %v7124_v45 = vpop.eup %7123  ;;  %5125 = vst [vmem:[%s8364_s22 + $0x240] sm:$0xff] %v7122_v42  ;;  %7143 = vpow2.f32 %v5753_v2  ;;  %v4127_v57 = vadd.f32 %v4126_v40, %v8528_v63  ;;  %v3664_v32 = vpop.f32.mrb[218].mxu0  ;;  %v5757_v63 = vmul.f32 -1.442695, %v4135_v1 }
 0x356   : > { %v7126_v48 = vpop.eup %7125  ;;  %5128 = vst [vmem:[%s8364_s22 + $0x258] sm:$0xff] %v7124_v45  ;;  %7145 = vpow2.f32 %v5751_v12  ;;  %v5964_v28 = vpop.f32.mrb[26].mxu1  ;;  %v8699_v13 = vadd.f32 %v3664_v32, %v3120_v29 }
 0x357   : > { %v7128_v37 = vpop.eup %7127  ;;  %v4751_v38 = vadd.f32 1.0, %v7126_v48  ;;  %7147 = vpow2.f32 %v5754_v43  ;;  %v3666_v15 = vpop.f32.mrb[219].mxu0  ;;  %v4138_v49 = vadd.f32 %v5964_v28, %v8550_v16  ;;  %v5755_v19 = vmul.f32 -1.442695, %v4127_v57 }
 0x358   : > { %v4129_v53 = vpop.f32.mrb[27].mxu1  ;;  %v7130_v33 = vpop.eup %7129  ;;  %v4749_v11 = vadd.f32 1.0, %v7128_v37  ;;  %7149 = vpow2.f32 %v5752_v8 }
 0x359   : > { %v7132_v39 = vpop.eup %7131  ;;  %7151 = vrcp.f32 %v4751_v38  ;;  %v4752_v21 = vadd.f32 1.0, %v7130_v33  ;;  %v4130_v23 = vadd.f32 %v4129_v53, %v8534_v0  ;;  %v5758_v17 = vmul.f32 -1.442695, %v4138_v49  ;;  %v3669_v59 = vpop.f32.mrb[220].mxu0  ;;  %v9016_v38 = vld [vmem:[#allocation65_spill] sm:$0xff] }
 0x35a   : > { %v7134_v56 = vpop.eup %7133  ;;  %7153 = vrcp.f32 %v4749_v11  ;;  %v4750_v47 = vadd.f32 1.0, %v7132_v39  ;;  %v5967_v2 = vpop.f32.mrb[28].mxu1  ;;  %v8710_v34 = vadd.f32 %v3669_v59, %v3125_v26 }
 0x35b   : > { %v7136_v61 = vpop.eup %7135  ;;  %5126 = vst [vmem:[%s8364_s22 + $0x248] sm:$0xff] %v7134_v56  ;;  %7155 = vrcp.f32 %v4752_v21  ;;  %v5756_v22 = vmul.f32 -1.442695, %v4130_v23  ;;  %v4151_v12 = vadd.f32 %v5967_v2, %v8576_v41  ;;  %v3671_v50 = vpop.f32.mrb[221].mxu0  ;;  %v9017_v21 = vld [vmem:[#allocation66_spill] sm:$0xff] }
 0x35c   : > { %v7138_v16 = vpop.eup %7137  ;;  %5131 = vst [vmem:[%s8364_s22 + $0x270] sm:$0xff] %v7136_v61  ;;  %7157 = vrcp.f32 %v4750_v47  ;;  %v4142_v52 = vpop.f32.mrb[29].mxu1 }
 0x35d   : > { %v7140_v0 = vpop.eup %7139  ;;  %5129 = vst [vmem:[%s8364_s22 + $0x260] sm:$0xff] %v7138_v16  ;;  %7159 = vpow2.f32 %v5757_v63  ;;  %v4143_v43 = vadd.f32 %v4142_v52, %v8560_v46  ;;  %v3672_v42 = vpop.f32.mrb[222].mxu0  ;;  %v5761_v25 = vmul.f32 -1.442695, %v4151_v12  ;;  %v3136_v63 = vadd.f32 %v8591_v55, %v9017_v21 }
 0x35e   : > { %v7142_v30 = vpop.eup %7141  ;;  %5132 = vst [vmem:[%s8364_s22 + $0x278] sm:$0xff] %v7140_v0  ;;  %7161 = vpow2.f32 %v5755_v19  ;;  %v5968_v8 = vpop.f32.mrb[30].mxu1  ;;  %v8716_v45 = vadd.f32 %v3672_v42, %v3128_v36  ;;  %v9018_v42 = vld [vmem:[#allocation67_spill] sm:$0xff] }
 0x35f   : > { %v7144_v9 = vpop.eup %7143  ;;  %5130 = vst [vmem:[%s8364_s22 + $0x268] sm:$0xff] %v7142_v30  ;;  %7163 = vpow2.f32 %v5758_v17  ;;  %v4154_v4 = vadd.f32 %v5968_v8, %v8581_v6  ;;  %v3674_v29 = vpop.f32.mrb[223].mxu0  ;;  %v5759_v28 = vmul.f32 -1.442695, %v4143_v43  ;;  %v3133_v6 = vadd.f32 %v8591_v55, %v9016_v38 }
 0x360   : > { %v4145_v1 = vpop.f32.mrb[31].mxu1  ;;  %v7146_v41 = vpop.eup %7145  ;;  %v4755_v18 = vadd.f32 1.0, %v7144_v9  ;;  %7165 = vpow2.f32 %v5756_v22  ;;  %v3141_v8 = vadd.f32 %v8591_v55, %v9018_v42 }
 0x361   : > { %v4146_v40 = vadd.f32 %v4145_v1, %v8566_v7  ;;  %v7148_v48 = vpop.eup %7147  ;;  %v4753_v46 = vadd.f32 1.0, %v7146_v41  ;;  %7167 = vpow2.f32 %v5761_v25  ;;  %v5762_v53 = vmul.f32 -1.442695, %v4154_v4  ;;  %v3677_v11 = vpop.f32.mrb[224].mxu0  ;;  %v9019_v4 = vld [vmem:[#allocation68_spill] sm:$0xff] }
 0x362   : > { %v7150_v57 = vpop.eup %7149  ;;  %7169 = vrcp.f32 %v4755_v18  ;;  %v4756_v32 = vadd.f32 1.0, %v7148_v48  ;;  %v5971_v49 = vpop.f32.mrb[32].mxu1  ;;  %v8726_v23 = vadd.f32 %v3677_v11, %v3133_v6  ;;  %v3144_v29 = vadd.f32 %v8591_v55, %v9019_v4 }
 0x363   : > { %v7152_v37 = vpop.eup %7151  ;;  %7171 = vrcp.f32 %v4753_v46  ;;  %v4754_v15 = vadd.f32 1.0, %v7150_v57  ;;  %v5760_v7 = vmul.f32 -1.442695, %v4146_v40  ;;  %v4167_v56 = vadd.f32 %v5971_v49, %v8614_v62  ;;  %v3679_v47 = vpop.f32.mrb[225].mxu0 }
 0x364   : > { %v7154_v33 = vpop.eup %7153  ;;  %5135 = vst [vmem:[%s8364_s22 + $0x290] sm:$0xff] %v7152_v37  ;;  %7173 = vrcp.f32 %v4756_v32  ;;  %v4158_v19 = vpop.f32.mrb[33].mxu1 }
 0x365   : > { %v7156_v39 = vpop.eup %7155  ;;  %5133 = vst [vmem:[%s8364_s22 + $0x280] sm:$0xff] %v7154_v33  ;;  %7175 = vrcp.f32 %v4754_v15  ;;  %v4159_v3 = vadd.f32 %v4158_v19, %v8597_v51  ;;  %v3680_v26 = vpop.f32.mrb[226].mxu0  ;;  %v5765_v22 = vmul.f32 -1.442695, %v4167_v56 }
 0x366   : > { %v7158_v61 = vpop.eup %7157  ;;  %5136 = vst [vmem:[%s8364_s22 + $0x298] sm:$0xff] %v7156_v39  ;;  %7177 = vpow2.f32 %v5759_v28  ;;  %v5972_v17 = vpop.f32.mrb[34].mxu1  ;;  %v8732_v59 = vadd.f32 %v3680_v26, %v3136_v63 }
 0x367   : > { %v7160_v16 = vpop.eup %7159  ;;  %5134 = vst [vmem:[%s8364_s22 + $0x288] sm:$0xff] %v7158_v61  ;;  %7179 = vpow2.f32 %v5762_v53  ;;  %v4170_v2 = vadd.f32 %v5972_v17, %v8618_v44  ;;  %v3682_v0 = vpop.f32.mrb[227].mxu0  ;;  %v5763_v9 = vmul.f32 -1.442695, %v4159_v3  ;;  %v9020_v61 = vld [vmem:[#allocation69_spill] sm:$0xff] }
 0x368   : > { %v4161_v10 = vpop.f32.mrb[35].mxu1  ;;  %v7162_v62 = vpop.eup %7161  ;;  %v4759_v36 = vadd.f32 1.0, %v7160_v16  ;;  %7181 = vpow2.f32 %v5760_v7  ;;  %v3149_v3 = vadd.f32 %v8591_v55, %v9020_v61  ;;  %v9021_v16 = vld [vmem:[#allocation70_spill] sm:$0xff] }
 0x369   : > { %v4162_v12 = vadd.f32 %v4161_v10, %v8602_v58  ;;  %v7164_v50 = vpop.eup %7163  ;;  %v4757_v52 = vadd.f32 1.0, %v7162_v62  ;;  %7183 = vpow2.f32 %v5765_v22  ;;  %v5766_v1 = vmul.f32 -1.442695, %v4170_v2  ;;  %v3685_v41 = vpop.f32.mrb[228].mxu0 }
 0x36a   : > { %v7166_v51 = vpop.eup %7165  ;;  %7185 = vrcp.f32 %v4759_v36  ;;  %v4760_v30 = vadd.f32 1.0, %v7164_v50  ;;  %v5975_v18 = vpop.f32.mrb[36].mxu1  ;;  %v8741_v46 = vadd.f32 %v3685_v41, %v3141_v8  ;;  %v3152_v22 = vadd.f32 %v8591_v55, %v9021_v16 }
 0x36b   : > { %v7168_v43 = vpop.eup %7167  ;;  %7187 = vrcp.f32 %v4757_v52  ;;  %v4758_v44 = vadd.f32 1.0, %v7166_v51  ;;  %v5764_v48 = vmul.f32 -1.442695, %v4162_v12  ;;  %v4183_v57 = vadd.f32 %v5975_v18, %v8646_v24  ;;  %v3687_v32 = vpop.f32.mrb[229].mxu0 }
 0x36c   : > { %v7170_v25 = vpop.eup %7169  ;;  %7189 = vrcp.f32 %v4760_v30  ;;  %v4763_v58 = vadd.f32 1.0, %v7168_v43  ;;  %v4174_v28 = vpop.f32.mrb[37].mxu1 }
 0x36d   : > { %v7172_v40 = vpop.eup %7171  ;;  %5139 = vst [vmem:[%s8364_s22 + $0x2b0] sm:$0xff] %v7170_v25  ;;  %7191 = vrcp.f32 %v4758_v44  ;;  %v4175_v38 = vadd.f32 %v4174_v28, %v8630_v54  ;;  %v3688_v6 = vpop.f32.mrb[230].mxu0  ;;  %v5769_v33 = vmul.f32 -1.442695, %v4183_v57  ;;  %v9022_v57 = vld [vmem:[#allocation71_spill] sm:$0xff] }
 0x36e   : > { %v7174_v37 = vpop.eup %7173  ;;  %5137 = vst [vmem:[%s8364_s22 + $0x2a0] sm:$0xff] %v7172_v40  ;;  %7193 = vrcp.f32 %v4763_v58  ;;  %v5976_v15 = vpop.f32.mrb[38].mxu1  ;;  %v8747_v7 = vadd.f32 %v3688_v6, %v3144_v29  ;;  %v3157_v32 = vadd.f32 %v8591_v55, %v9022_v57 }
 0x36f   : > { %v7176_v53 = vpop.eup %7175  ;;  %5140 = vst [vmem:[%s8364_s22 + $0x2b8] sm:$0xff] %v7174_v37  ;;  %7195 = vpow2.f32 %v5763_v9  ;;  %v4186_v11 = vadd.f32 %v5976_v15, %v8650_v35  ;;  %v3690_v49 = vpop.f32.mrb[231].mxu0  ;;  %v5767_v26 = vmul.f32 -1.442695, %v4175_v38  ;;  %v9023_v38 = vld [vmem:[#allocation72_spill] sm:$0xff] }
 0x370   : > { %v4177_v24 = vpop.f32.mrb[39].mxu1  ;;  %v7178_v39 = vpop.eup %7177  ;;  %5138 = vst [vmem:[%s8364_s22 + $0x2a8] sm:$0xff] %v7176_v53  ;;  %7197 = vpow2.f32 %v5766_v1  ;;  %v3160_v6 = vadd.f32 %v8591_v55, %v9023_v38 }
 0x371   : > { %v4178_v21 = vadd.f32 %v4177_v24, %v8634_v20  ;;  %v7180_v63 = vpop.eup %7179  ;;  %v4761_v56 = vadd.f32 1.0, %v7178_v39  ;;  %7199 = vpow2.f32 %v5764_v48  ;;  %v5770_v2 = vmul.f32 -1.442695, %v4186_v11  ;;  %v3693_v0 = vpop.f32.mrb[232].mxu0 }
 0x372   : > { %v7182_v54 = vpop.eup %7181  ;;  %v4764_v47 = vadd.f32 1.0, %v7180_v63  ;;  %7201 = vpow2.f32 %v5769_v33  ;;  %v5979_v10 = vpop.f32.mrb[40].mxu1  ;;  %v8757_v12 = vadd.f32 %v3693_v0, %v3149_v3 }
 0x373   : > { %v7184_v19 = vpop.eup %7183  ;;  %7203 = vrcp.f32 %v4761_v56  ;;  %v4762_v35 = vadd.f32 1.0, %v7182_v54  ;;  %v5768_v36 = vmul.f32 -1.442695, %v4178_v21  ;;  %v4199_v50 = vadd.f32 %v5979_v10, %v8679_v27  ;;  %v3695_v52 = vpop.f32.mrb[233].mxu0  ;;  %v8788_v10 = vld [vmem:[%s8856_s2] ss:$0 sm:$0xff] }
 0x374   : > { %v7186_v17 = vpop.eup %7185  ;;  %7205 = vrcp.f32 %v4764_v47  ;;  %v4767_v20 = vadd.f32 1.0, %v7184_v19  ;;  %v4190_v51 = vpop.f32.mrb[41].mxu1  ;;  %v9025_v52 = vld [vmem:[#allocation74_spill] sm:$0xff] }
 0x375   : > { %v7188_v62 = vpop.eup %7187  ;;  %5143 = vst [vmem:[%s8364_s22 + $0x2d0] sm:$0xff] %v7186_v17  ;;  %7207 = vrcp.f32 %v4762_v35  ;;  %v4191_v43 = vadd.f32 %v4190_v51, %v8663_v5  ;;  %v3696_v42 = vpop.f32.mrb[234].mxu0  ;;  %v5773_v9 = vmul.f32 -1.442695, %v4199_v50 }
 0x376   : > { %v7190_v30 = vpop.eup %7189  ;;  %5141 = vst [vmem:[%s8364_s22 + $0x2c0] sm:$0xff] %v7188_v62  ;;  %7209 = vrcp.f32 %v4767_v20  ;;  %v5980_v8 = vpop.f32.mrb[42].mxu1  ;;  %v8763_v25 = vadd.f32 %v3696_v42, %v3152_v22 }
 0x377   : > { %v7192_v44 = vpop.eup %7191  ;;  %5144 = vst [vmem:[%s8364_s22 + $0x2d8] sm:$0xff] %v7190_v30  ;;  %7211 = vpow2.f32 %v5767_v26  ;;  %v4202_v4 = vadd.f32 %v5980_v8, %v8683_v31  ;;  %v3698_v27 = vpop.f32.mrb[235].mxu0  ;;  %v5771_v1 = vmul.f32 -1.442695, %v4191_v43 }
 0x378   : > { %v4193_v29 = vpop.f32.mrb[43].mxu1  ;;  %v7194_v58 = vpop.eup %7193  ;;  %5142 = vst [vmem:[%s8364_s22 + $0x2c8] sm:$0xff] %v7192_v44  ;;  %7213 = vpow2.f32 %v5770_v2 }
 0x379   : > { %v4194_v41 = vadd.f32 %v4193_v29, %v8667_v60  ;;  %v7196_v5 = vpop.eup %7195  ;;  %5147 = vst [vmem:[%s8364_s22 + $0x2f0] sm:$0xff] %v7194_v58  ;;  %7215 = vpow2.f32 %v5768_v36  ;;  %v5774_v31 = vmul.f32 -1.442695, %v4202_v4  ;;  %v3701_v53 = vpop.f32.mrb[236].mxu0 }
 0x37a   : > { %v7198_v18 = vpop.eup %7197  ;;  %v4765_v40 = vadd.f32 1.0, %v7196_v5  ;;  %7217 = vpow2.f32 %v5773_v9  ;;  %v5983_v33 = vpop.f32.mrb[44].mxu1  ;;  %v8773_v24 = vadd.f32 %v3701_v53, %v3157_v32  ;;  %v9026_v53 = vld [vmem:[#allocation75_spill] sm:$0xff] }
 0x37b   : > { %v7200_v48 = vpop.eup %7199  ;;  %v4768_v28 = vadd.f32 1.0, %v7198_v18  ;;  %7219 = vpow2.f32 %v5771_v1  ;;  %v5772_v15 = vmul.f32 -1.442695, %v4194_v41  ;;  %v4215_v39 = vadd.f32 %v5983_v33, %v8710_v34  ;;  %v3703_v21 = vpop.f32.mrb[237].mxu0 }
 0x37c   : > { %v7202_v37 = vpop.eup %7201  ;;  %7221 = vrcp.f32 %v4765_v40  ;;  %v4766_v60 = vadd.f32 1.0, %v7200_v48  ;;  %v4206_v63 = vpop.f32.mrb[45].mxu1  ;;  %v3173_v33 = vadd.f32 %v8788_v10, %v9026_v53 }
 0x37d   : > { %v7204_v11 = vpop.eup %7203  ;;  %7223 = vrcp.f32 %v4768_v28  ;;  %v4771_v49 = vadd.f32 1.0, %v7202_v37  ;;  %v4207_v55 = vadd.f32 %v4206_v63, %v8694_v14  ;;  %v3704_v54 = vpop.f32.mrb[238].mxu0  ;;  %v5777_v61 = vmul.f32 -1.442695, %v4215_v39 }
 0x37e   : > { %v7206_v56 = vpop.eup %7205  ;;  %5145 = vst [vmem:[%s8364_s22 + $0x2e0] sm:$0xff] %v7204_v11  ;;  %7225 = vrcp.f32 %v4766_v60  ;;  %v5984_v47 = vpop.f32.mrb[46].mxu1  ;;  %v8779_v3 = vadd.f32 %v3704_v54, %v3160_v6 }
 0x37f   : > { %v7208_v19 = vpop.eup %7207  ;;  %5148 = vst [vmem:[%s8364_s22 + $0x2f8] sm:$0xff] %v7206_v56  ;;  %7227 = vrcp.f32 %v4771_v49  ;;  %v4218_v35 = vadd.f32 %v5984_v47, %v8716_v45  ;;  %v3706_v34 = vpop.f32.mrb[239].mxu0  ;;  %v5775_v16 = vmul.f32 -1.442695, %v4207_v55  ;;  %v9024_v45 = vld [vmem:[#allocation73_spill] sm:$0xff]  ;;  %v9027_v49 = vld [vmem:[#allocation76_spill] sm:$0xff] }
 0x380   : > { %v4209_v26 = vpop.f32.mrb[47].mxu1  ;;  %v7210_v17 = vpop.eup %7209  ;;  %5146 = vst [vmem:[%s8364_s22 + $0x2e8] sm:$0xff] %v7208_v19  ;;  %7229 = vpow2.f32 %v5774_v31  ;;  %v3165_v62 = vadd.f32 %v8788_v10, %v9024_v45  ;;  %v3176_v39 = vadd.f32 %v8788_v10, %v9027_v49 }
 0x381   : > { %v4210_v22 = vadd.f32 %v4209_v26, %v8699_v13  ;;  %v7212_v14 = vpop.eup %7211  ;;  %5151 = vst [vmem:[%s8364_s22 + $0x310] sm:$0xff] %v7210_v17  ;;  %7231 = vpow2.f32 %v5772_v15  ;;  %v3168_v13 = vadd.f32 %v8788_v10, %v9025_v52  ;;  %v5778_v30 = vmul.f32 -1.442695, %v4218_v35  ;;  %v3709_v43 = vpop.f32.mrb[240].mxu0 }
 0x382   : > { %v7214_v20 = vpop.eup %7213  ;;  %v4769_v2 = vadd.f32 1.0, %v7212_v14  ;;  %7233 = vpow2.f32 %v5777_v61  ;;  %v5987_v42 = vpop.f32.mrb[48].mxu1  ;;  %v8794_v9 = vadd.f32 %v3709_v43, %v3165_v62  ;;  %v9028_v43 = vld [vmem:[#allocation77_spill] sm:$0xff] }
 0x383   : > { %v7216_v0 = vpop.eup %7215  ;;  %v4772_v36 = vadd.f32 1.0, %v7214_v20  ;;  %7235 = vpow2.f32 %v5775_v16  ;;  %v4231_v4 = vadd.f32 %v5987_v42, %v8741_v46  ;;  %v3711_v27 = vpop.f32.mrb[241].mxu0  ;;  %v5776_v41 = vmul.f32 -1.442695, %v4210_v22 }
 0x384   : > { %v7218_v50 = vpop.eup %7217  ;;  %7237 = vrcp.f32 %v4769_v2  ;;  %v4770_v51 = vadd.f32 1.0, %v7216_v0  ;;  %v4222_v29 = vpop.f32.mrb[49].mxu1 }
 0x385   : > { %v7220_v8 = vpop.eup %7219  ;;  %7239 = vrcp.f32 %v4772_v36  ;;  %v4775_v44 = vadd.f32 1.0, %v7218_v50  ;;  %v4223_v5 = vadd.f32 %v4222_v29, %v8726_v23  ;;  %v3712_v18 = vpop.f32.mrb[242].mxu0  ;;  %v5781_v57 = vmul.f32 -1.442695, %v4231_v4 }
 0x386   : > { %v7222_v58 = vpop.eup %7221  ;;  %7241 = vrcp.f32 %v4770_v51  ;;  %v4773_v1 = vadd.f32 1.0, %v7220_v8  ;;  %v5988_v40 = vpop.f32.mrb[50].mxu1  ;;  %v8799_v32 = vadd.f32 %v3712_v18, %v3168_v13  ;;  %v9029_v8 = vld [vmem:[#allocation79_spill] sm:$0xff] }
 0x387   : > { %v7224_v48 = vpop.eup %7223  ;;  %5149 = vst [vmem:[%s8364_s22 + $0x300] sm:$0xff] %v7222_v58  ;;  %7243 = vrcp.f32 %v4775_v44  ;;  %v4234_v46 = vadd.f32 %v5988_v40, %v8747_v7  ;;  %v3714_v28 = vpop.f32.mrb[243].mxu0  ;;  %v5779_v38 = vmul.f32 -1.442695, %v4223_v5  ;;  %v3184_v44 = vadd.f32 %v8788_v10, %v9029_v8 }
 0x388   : > { %v4225_v31 = vpop.f32.mrb[51].mxu1  ;;  %v7226_v37 = vpop.eup %7225  ;;  %5152 = vst [vmem:[%s8364_s22 + $0x318] sm:$0xff] %v7224_v48  ;;  %7245 = vrcp.f32 %v4773_v1 }
 0x389   : > { %v4226_v23 = vadd.f32 %v4225_v31, %v8732_v59  ;;  %v7228_v6 = vpop.eup %7227  ;;  %5150 = vst [vmem:[%s8364_s22 + $0x308] sm:$0xff] %v7226_v37  ;;  %7247 = vpow2.f32 %v5778_v30  ;;  %v5782_v63 = vmul.f32 -1.442695, %v4234_v46  ;;  %v3717_v59 = vpop.f32.mrb[244].mxu0 }
 0x38a   : > { %v7230_v60 = vpop.eup %7229  ;;  %5155 = vst [vmem:[%s8364_s22 + $0x330] sm:$0xff] %v7228_v6  ;;  %7249 = vpow2.f32 %v5776_v41  ;;  %v5991_v56 = vpop.f32.mrb[52].mxu1  ;;  %v3718_v47 = vadd.f32 %v3717_v59, %v3173_v33 }
 0x38b   : > { %v7232_v15 = vpop.eup %7231  ;;  %v4776_v11 = vadd.f32 1.0, %v7230_v60  ;;  %7251 = vpow2.f32 %v5781_v57  ;;  %v4247_v19 = vadd.f32 %v5991_v56, %v8773_v24  ;;  %v3719_v61 = vpop.f32.mrb[245].mxu0  ;;  %v5780_v17 = vmul.f32 -1.442695, %v4226_v23 }
 0x38c   : > { %v7234_v7 = vpop.eup %7233  ;;  %v4774_v21 = vadd.f32 1.0, %v7232_v15  ;;  %7253 = vpow2.f32 %v5779_v38  ;;  %v4238_v35 = vpop.f32.mrb[53].mxu1 }
 0x38d   : > { %v7236_v55 = vpop.eup %7235  ;;  %7255 = vrcp.f32 %v4776_v11  ;;  %v4779_v54 = vadd.f32 1.0, %v7234_v7  ;;  %v4239_v16 = vadd.f32 %v4238_v35, %v8757_v12  ;;  %v3720_v22 = vpop.f32.mrb[246].mxu0  ;;  %v5785_v2 = vmul.f32 -1.442695, %v4247_v19 }
 0x38e   : > { %v7238_v34 = vpop.eup %7237  ;;  %7257 = vrcp.f32 %v4774_v21  ;;  %v4777_v26 = vadd.f32 1.0, %v7236_v55  ;;  %v5992_v14 = vpop.f32.mrb[54].mxu1  ;;  %v3721_v0 = vadd.f32 %v3720_v22, %v3176_v39 }
 0x38f   : > { %v7240_v20 = vpop.eup %7239  ;;  %5153 = vst [vmem:[%s8364_s22 + $0x320] sm:$0xff] %v7238_v34  ;;  %7259 = vrcp.f32 %v4779_v54  ;;  %v4250_v24 = vadd.f32 %v5992_v14, %v8779_v3  ;;  %v3722_v45 = vpop.f32.mrb[247].mxu0  ;;  %v5783_v50 = vmul.f32 -1.442695, %v4239_v16  ;;  %v3181_v3 = vadd.f32 %v8788_v10, %v9028_v43 }
 0x390   : > { %v4241_v62 = vpop.f32.mrb[55].mxu1  ;;  %v7242_v36 = vpop.eup %7241  ;;  %5156 = vst [vmem:[%s8364_s22 + $0x338] sm:$0xff] %v7240_v20  ;;  %7261 = vrcp.f32 %v4777_v26 }
 0x391   : > { %v4242_v12 = vadd.f32 %v4241_v62, %v8763_v25  ;;  %v7244_v52 = vpop.eup %7243  ;;  %5154 = vst [vmem:[%s8364_s22 + $0x328] sm:$0xff] %v7242_v36  ;;  %7263 = vpow2.f32 %v5782_v63  ;;  %v5786_v13 = vmul.f32 -1.442695, %v4250_v24  ;;  %v3725_v25 = vpop.f32.mrb[248].mxu0  ;;  %v9030_v63 = vld [vmem:[#allocation81_spill] sm:$0xff] }
 0x392   : > { %v7246_v51 = vpop.eup %7245  ;;  %5159 = vst [vmem:[%s8364_s22 + $0x350] sm:$0xff] %v7244_v52  ;;  %7265 = vpow2.f32 %v5780_v17  ;;  %v5995_v27 = vpop.f32.mrb[56].mxu1  ;;  %v3726_v1 = vadd.f32 %v3725_v25, %v3181_v3  ;;  %v3189_v59 = vadd.f32 %v8788_v10, %v9030_v63 }
 0x393   : > { %v7248_v30 = vpop.eup %7247  ;;  %5157 = vst [vmem:[%s8364_s22 + $0x340] sm:$0xff] %v7246_v51  ;;  %7267 = vpow2.f32 %v5785_v2  ;;  %v4263_v41 = vadd.f32 %v5995_v27, %v3718_v47  ;;  %v3727_v5 = vpop.f32.mrb[249].mxu0  ;;  %v5784_v57 = vmul.f32 -1.442695, %v4242_v12 }
 0x394   : > { %v7250_v42 = vpop.eup %7249  ;;  %v4780_v4 = vadd.f32 1.0, %v7248_v30  ;;  %7269 = vpow2.f32 %v5783_v50  ;;  %v4254_v18 = vpop.f32.mrb[57].mxu1 }
 0x395   : > { %v7252_v29 = vpop.eup %7251  ;;  %v4778_v58 = vadd.f32 1.0, %v7250_v42  ;;  %7271 = vpow2.f32 %v5786_v13  ;;  %v4255_v46 = vadd.f32 %v4254_v18, %v8794_v9  ;;  %v3728_v28 = vpop.f32.mrb[250].mxu0  ;;  %v5789_v23 = vmul.f32 -1.442695, %v4263_v41 }
 0x396   : > { %v7254_v40 = vpop.eup %7253  ;;  %7273 = vrcp.f32 %v4780_v4  ;;  %v4783_v48 = vadd.f32 1.0, %v7252_v29  ;;  %v5996_v31 = vpop.f32.mrb[58].mxu1  ;;  %v3729_v6 = vadd.f32 %v3728_v28, %v3184_v44 }
 0x397   : > { %v7256_v37 = vpop.eup %7255  ;;  %7275 = vrcp.f32 %v4778_v58  ;;  %v4781_v38 = vadd.f32 1.0, %v7254_v40  ;;  %v3730_v60 = vpop.f32.mrb[251].mxu0  ;;  %v5787_v33 = vmul.f32 -1.442695, %v4255_v46  ;;  %v4266_v11 = vadd.f32 %v5996_v31, %v3721_v0 }
 0x398   : > { %v4257_v15 = vpop.f32.mrb[59].mxu1  ;;  %v7258_v53 = vpop.eup %7257  ;;  %5160 = vst [vmem:[%s8364_s22 + $0x358] sm:$0xff] %v7256_v37  ;;  %7277 = vrcp.f32 %v4783_v48 }
 0x399   : > { %v4258_v7 = vadd.f32 %v4257_v15, %v8799_v32  ;;  %v7260_v9 = vpop.eup %7259  ;;  %5158 = vst [vmem:[%s8364_s22 + $0x348] sm:$0xff] %v7258_v53  ;;  %7279 = vrcp.f32 %v4781_v38  ;;  %v5790_v39 = vmul.f32 -1.442695, %v4266_v11  ;;  %v3733_v54 = vpop.f32.mrb[252].mxu0  ;;  %v9031_v32 = vld [vmem:[#allocation83_spill] sm:$0xff] }
 0x39a   : > { %v7262_v49 = vpop.eup %7261  ;;  %5163 = vst [vmem:[%s8364_s22 + $0x370] sm:$0xff] %v7260_v9  ;;  %7281 = vpow2.f32 %v5784_v57  ;;  %v5999_v47 = vpop.f32.mrb[60].mxu1  ;;  %v3192_v61 = vadd.f32 %v8788_v10, %v9031_v32  ;;  %v3734_v34 = vadd.f32 %v3733_v54, %v3189_v59 }
 0x39b   : > { %v7264_v21 = vpop.eup %7263  ;;  %5161 = vst [vmem:[%s8364_s22 + $0x360] sm:$0xff] %v7262_v49  ;;  %7283 = vpow2.f32 %v5789_v23  ;;  %v3735_v26 = vpop.f32.mrb[253].mxu0  ;;  %v5788_v14 = vmul.f32 -1.442695, %v4258_v7 }
 0x39c   : > { %v7266_v56 = vpop.eup %7265  ;;  %v4784_v55 = vadd.f32 1.0, %v7264_v21  ;;  %7285 = vpow2.f32 %v5787_v33  ;;  %v4270_v17 = vpop.f32.mrb[61].mxu1  ;;  %v4279_v62 = vadd.f32 %v5999_v47, %v3734_v34 }
 0x39d   : > { %v7268_v19 = vpop.eup %7267  ;;  %v4782_v35 = vadd.f32 1.0, %v7266_v56  ;;  %7287 = vpow2.f32 %v5790_v39  ;;  %v4271_v20 = vadd.f32 %v4270_v17, %v3726_v1  ;;  %v3736_v2 = vpop.f32.mrb[254].mxu0 }
 0x39e   : > { %v7270_v16 = vpop.eup %7269  ;;  %7289 = vrcp.f32 %v4784_v55  ;;  %v4787_v22 = vadd.f32 1.0, %v7268_v19  ;;  %v6000_v0 = vpop.f32.mrb[62].mxu1  ;;  %v3737_v36 = vadd.f32 %v3736_v2, %v3192_v61  ;;  %v5793_v30 = vmul.f32 -1.442695, %v4279_v62 }
 0x39f   : > { %v7272_v24 = vpop.eup %7271  ;;  %7291 = vrcp.f32 %v4782_v35  ;;  %v4785_v45 = vadd.f32 1.0, %v7270_v16  ;;  %v3738_v10 = vpop.f32.mrb[255].mxu0  ;;  %v5791_v43 = vmul.f32 -1.442695, %v4271_v20 }
 0x3a0   : > { %v4273_v50 = vpop.f32.mrb[63].mxu1  ;;  %v7274_v12 = vpop.eup %7273  ;;  %7293 = vrcp.f32 %v4787_v22  ;;  %v4788_v52 = vadd.f32 1.0, %v7272_v24  ;;  %v4282_v3 = vadd.f32 %v6000_v0, %v3737_v36 }
 0x3a1   : > { %v4274_v13 = vadd.f32 %v4273_v50, %v3729_v6  ;;  %v7276_v51 = vpop.eup %7275  ;;  %5164 = vst [vmem:[%s8364_s22 + $0x378] sm:$0xff] %v7274_v12  ;;  %7295 = vrcp.f32 %v4785_v45 }
 0x3a2   : > { %v7278_v42 = vpop.eup %7277  ;;  %5162 = vst [vmem:[%s8364_s22 + $0x368] sm:$0xff] %v7276_v51  ;;  %7297 = vrcp.f32 %v4788_v52  ;;  %v5794_v44 = vmul.f32 -1.442695, %v4282_v3 }
 0x3a3   : > { %v7280_v8 = vpop.eup %7279  ;;  %5167 = vst [vmem:[%s8364_s22 + $0x390] sm:$0xff] %v7278_v42  ;;  %7299 = vpow2.f32 %v5788_v14  ;;  %v5792_v5 = vmul.f32 -1.442695, %v4274_v13 }
 0x3a4   : > { %v7282_v4 = vpop.eup %7281  ;;  %5165 = vst [vmem:[%s8364_s22 + $0x380] sm:$0xff] %v7280_v8  ;;  %7301 = vpow2.f32 %v5793_v30 }
 0x3a5   : > { %v7284_v25 = vpop.eup %7283  ;;  %v4786_v27 = vadd.f32 1.0, %v7282_v4  ;;  %7303 = vpow2.f32 %v5791_v43 }
 0x3a6   : > { %v7286_v29 = vpop.eup %7285  ;;  %v4791_v58 = vadd.f32 1.0, %v7284_v25  ;;  %7305 = vpow2.f32 %v5794_v44 }
 0x3a7   : > { %v7288_v1 = vpop.eup %7287  ;;  %7307 = vrcp.f32 %v4786_v27  ;;  %v4789_v41 = vadd.f32 1.0, %v7286_v29 }
 0x3a8   : > { %v7290_v18 = vpop.eup %7289  ;;  %7309 = vrcp.f32 %v4791_v58  ;;  %v4792_v40 = vadd.f32 1.0, %v7288_v1 }
 0x3a9   : > { %v7292_v48 = vpop.eup %7291  ;;  %5168 = vst [vmem:[%s8364_s22 + $0x398] sm:$0xff] %v7290_v18  ;;  %7311 = vrcp.f32 %v4789_v41 }
 0x3aa   : > { %v7294_v57 = vpop.eup %7293  ;;  %5166 = vst [vmem:[%s8364_s22 + $0x388] sm:$0xff] %v7292_v48  ;;  %7313 = vrcp.f32 %v4792_v40 }
 0x3ab   : > { %v7296_v46 = vpop.eup %7295  ;;  %5171 = vst [vmem:[%s8364_s22 + $0x3b0] sm:$0xff] %v7294_v57  ;;  %7315 = vpow2.f32 %v5792_v5 }
 0x3ac   : > { %v7298_v28 = vpop.eup %7297  ;;  %5169 = vst [vmem:[%s8364_s22 + $0x3a0] sm:$0xff] %v7296_v46 }
 0x3ad   : > { %v7300_v31 = vpop.eup %7299  ;;  %5172 = vst [vmem:[%s8364_s22 + $0x3b8] sm:$0xff] %v7298_v28 }
 0x3ae   : > { %v7302_v37 = vpop.eup %7301  ;;  %v4790_v38 = vadd.f32 1.0, %v7300_v31 }
 0x3af   : > { %v7304_v23 = vpop.eup %7303  ;;  %v4795_v6 = vadd.f32 1.0, %v7302_v37 }
 0x3b0   : > { %v7306_v60 = vpop.eup %7305  ;;  %7317 = vrcp.f32 %v4790_v38  ;;  %v4793_v15 = vadd.f32 1.0, %v7304_v23 }
 0x3b1   : > { %v7308_v53 = vpop.eup %7307  ;;  %7319 = vrcp.f32 %v4795_v6  ;;  %v4796_v33 = vadd.f32 1.0, %v7306_v60 }
 0x3b2   : > { %v7310_v11 = vpop.eup %7309  ;;  %5170 = vst [vmem:[%s8364_s22 + $0x3a8] sm:$0xff] %v7308_v53  ;;  %7321 = vrcp.f32 %v4793_v15 }
 0x3b3   : > { %v7312_v7 = vpop.eup %7311  ;;  %5175 = vst [vmem:[%s8364_s22 + $0x3d0] sm:$0xff] %v7310_v11  ;;  %7323 = vrcp.f32 %v4796_v33 }
 0x3b4   : > { %v7314_v9 = vpop.eup %7313  ;;  %5173 = vst [vmem:[%s8364_s22 + $0x3c0] sm:$0xff] %v7312_v7 }
 0x3b5   : > { %v7316_v49 = vpop.eup %7315  ;;  %5176 = vst [vmem:[%s8364_s22 + $0x3d8] sm:$0xff] %v7314_v9 }
 0x3b6   : > { %v4794_v39 = vadd.f32 1.0, %v7316_v49 }
 0x3b8   : > { %7325 = vrcp.f32 %v4794_v39 }
 0x3ba   : > { %v7318_v21 = vpop.eup %7317 }
 0x3bb   : > { %v7320_v63 = vpop.eup %7319  ;;  %5174 = vst [vmem:[%s8364_s22 + $0x3c8] sm:$0xff] %v7318_v21 }
 0x3bc   : > { %v7322_v59 = vpop.eup %7321  ;;  %5179 = vst [vmem:[%s8364_s22 + $0x3f0] sm:$0xff] %v7320_v63 }
 0x3bd   : > { %v7324_v56 = vpop.eup %7323  ;;  %5177 = vst [vmem:[%s8364_s22 + $0x3e0] sm:$0xff] %v7322_v59 }
 0x3be   : > { %5180 = vst [vmem:[%s8364_s22 + $0x3f8] sm:$0xff] %v7324_v56 }
 0x3c2   : > { %v7326_v55 = vpop.eup %7325 }
 0x3c3   : > { %5178 = vst [vmem:[%s8364_s22 + $0x3e8] sm:$0xff] %v7326_v55 }
 0x3c4 PF: > { %s13_s12 = sadd.s32 1, %s7336_s12  }
 0x3c5   : > { %p10_p4 = scmp.ge.s32.totalorder %s13_s12, 4  }
 0x3c7   :  { %12 = sbr.rel (!%p10_p4) target bundleno = 1 (0x1), region = 62 }

</bundles_post_ra>
